<compile_context>
chip_gen: v5e
topology: v5e:2x2
jax: 0.10.0
libtpu: 0.0.40
codegen_flags: <defaults>
</compile_context>

<pallas_src>
import numpy as np
import jax
import jax.numpy as jnp
from jax import lax
from jax.experimental import pallas as pl
from jax.experimental.pallas import tpu as pltpu

# Small shapes consistent with the module (original: hidden=500, batch=16).
INPUT_SIZE = 1
HIDDEN = 32          # hidden_size
SEQ_L = 8            # == module batch_size == conv length L (LSTM1 input_size)
NUM_LAYERS = 2       # layers per nn.LSTM
MID = 100            # midLin output features

_LSTM_LAYERS = ('lstm1_l0', 'lstm1_l1', 'lstm2_l0', 'lstm2_l1', 'lstm3_l0', 'lstm3_l1')


def _round_up(n, m):
    return (n + m - 1) // m * m


# -----------------------------------------------------------------------------------
# Host-side weight plumbing (numpy, runs once): banded conv matrices, reduced LSTM
# gate matrices, folded final affine, packed biases.
# -----------------------------------------------------------------------------------
def _conv_to_dense(w, L):
    """Conv1d(padding='same') as a dense matrix over flattened (channel, position).

    w: (Cout, Cin, k) torch-layout weight. Returns C of shape (Cin*L, Cout*L) with
    C[cin*L + t_in, cout*L + t_out] = w[cout, cin, j] for t_in = t_out + j - left,
    left = (k-1)//2 (PyTorch 'same'), zero outside -> a_out_flat = a_in_flat @ C.
    """
    Cout, Cin, k = w.shape
    left = (k - 1) // 2
    C = np.zeros((Cin * L, Cout * L), np.float64)
    ci, co = np.arange(Cin), np.arange(Cout)
    for j in range(k):
        for t_out in range(L):
            t_in = t_out + j - left
            if 0 <= t_in < L:
                C[np.ix_(ci * L + t_in, co * L + t_out)] += w[:, :, j].T
    return C


def _lstm_reduce(w_ih, b_ih, b_hh, h):
    """Keep only the i|g|o gate columns (f-gate and W_hh are exact no-ops: seq_len=1, h0=c0=0)."""
    sel = np.concatenate([np.arange(0, h), np.arange(2 * h, 3 * h), np.arange(3 * h, 4 * h)])
    return w_ih[sel].T, (b_ih + b_hh)[sel][None]          # (in, 3h), (1, 3h)


def _pack_bias_rows(rows):
    """Pack (name, (1, n)) rows into one (1, total) array at 128-aligned lane offsets."""
    offs, segs, off = {}, [], 0
    for name, row in rows:
        row = np.asarray(row, np.float32).reshape(1, -1)
        n = row.shape[1]
        pad = (-n) % 128
        offs[name] = off
        segs.append(np.pad(row, ((0, 0), (0, pad))))
        off += n + pad
    return np.concatenate(segs, axis=1).astype(np.float32), offs


def _build_operands(p, H, L, matmul_dtype):
    c1 = _conv_to_dense(p['conv1_w'], L)                      # (L,   H*L)
    c2 = _conv_to_dense(p['conv2_w'], L)                      # (H*L, H*L)
    c3 = _conv_to_dense(p['conv3_w'], L)                      # (H*L, H*L)
    pool = np.tile(np.eye(L), (H, 1)) / H                     # (H*L, L): mean over channels

    bias_rows = [('c1', np.repeat(p['conv1_b'], L)[None]),
                 ('c2', np.repeat(p['conv2_b'], L)[None]),
                 ('c3', np.repeat(p['conv3_b'], L)[None])]
    lstm_ws = []
    for i, name in enumerate(_LSTM_LAYERS):
        hs = p[name + '_w_hh'].shape[1]
        wt, brow = _lstm_reduce(p[name + '_w_ih'], p[name + '_b_ih'], p[name + '_b_hh'], hs)
        lstm_ws.append(wt)
        bias_rows.append(('l%d' % i, brow))

    # midLin -> endNote1 folded (the module has no activation between them).
    wf_row = (p['mid_w'].T @ p['end_w'].T).T                  # (1, 4H)
    bf = p['mid_b'][None] @ p['end_w'].T + p['end_b'][None]   # (1, 1)
    bias_rows.append(('bf', bf))

    bias_pack, offs = _pack_bias_rows(bias_rows)

    def cvt(a):
        return jnp.asarray(np.asarray(a, np.float32), dtype=matmul_dtype)

    ops = tuple(cvt(a) for a in (c1, c2, c3, pool, *lstm_ws, wf_row))
    ops = ops + (jnp.asarray(bias_pack, jnp.float32),)        # biases stay f32
    return ops, offs


# -----------------------------------------------------------------------------------
# Kernel
# -----------------------------------------------------------------------------------
def _make_kernel(H, L, offs):
    HL = H * L

    def kernel(x_ref, c1_ref, c2_ref, c3_ref, pool_ref,
               w10_ref, w11_ref, w20_ref, w21_ref, w30_ref, w31_ref,
               wf_ref, bias_ref, out_ref):
        f32 = jnp.float32
        cdt = c1_ref.dtype                       # matmul operand dtype (f32 or bf16)
        x = x_ref[...]                           # (TB, L) f32

        def bias(name, width):
            off = offs[name]                     # static, 128-aligned
            return bias_ref[:, off:off + width]  # (1, width)

        def mm(a, w_ref):
            return jnp.dot(a.astype(cdt), w_ref[...], preferred_element_type=f32)

        # conv1/2/3 ('same' zero padding is baked into the banded matrices) + ReLU.
        a = jnp.maximum(mm(x, c1_ref) + bias('c1', HL), 0.0)   # (TB, H*L)
        a = jnp.maximum(mm(a, c2_ref) + bias('c2', HL), 0.0)
        a = jnp.maximum(mm(a, c3_ref) + bias('c3', HL), 0.0)

        # AdaptiveAvgPool1d(1): mean over channels per position, then residual with x.
        xr = x + mm(a, pool_ref)                                # (TB, L)

        def cell(inp, w_ref, bname, h):
            g = mm(inp, w_ref) + bias(bname, 3 * h)             # (TB, 3h) = [i | g | o]
            i_g = jax.nn.sigmoid(g[:, 0:h])
            g_g = jnp.tanh(g[:, h:2 * h])
            o_g = jax.nn.sigmoid(g[:, 2 * h:3 * h])
            return o_g * jnp.tanh(i_g * g_g)                    # c0 = 0 -> c = i*g

        hcur = cell(xr,   w10_ref, 'l0', H)        # LSTM1 layer 0
        hcur = cell(hcur, w11_ref, 'l1', H)        # LSTM1 layer 1
        hcur = cell(hcur, w20_ref, 'l2', 2 * H)    # LSTM2 layer 0
        hcur = cell(hcur, w21_ref, 'l3', 2 * H)    # LSTM2 layer 1
        hcur = cell(hcur, w30_ref, 'l4', 4 * H)    # LSTM3 layer 0
        hcur = cell(hcur, w31_ref, 'l5', 4 * H)    # LSTM3 layer 1

        # Folded midLin o endNote1, computed as (1,4H) @ (TB,4H)^T so the store is a
        # lane-dense (1, TB) row.
        out = lax.dot_general(wf_ref[...], hcur.astype(cdt),
                              (((1,), (1,)), ((), ())),
                              preferred_element_type=f32)       # (1, TB)
        out_ref[...] = out + bias('bf', 1)

    return kernel


# -----------------------------------------------------------------------------------
# Wrappers
# -----------------------------------------------------------------------------------
def song_forward_batched(xs, params, *, tile_b=128, matmul_dtype=jnp.float32):
    """xs: (B, L, 1) batch of independent module inputs; returns (B, 1, 1)."""
    B, L, _ = xs.shape
    H = params['conv1_w'].shape[0]
    assert L == params['lstm1_l0_w_ih'].shape[1], \
        "x length must equal the module's batch_size (LSTM1 input_size)"

    tile_b = _round_up(max(8, min(int(tile_b), _round_up(B, 8))), 8)
    b_pad = _round_up(B, tile_b)
    n_tiles = b_pad // tile_b

    ops, offs = _build_operands(params, H, L, matmul_dtype)
    kernel = _make_kernel(H, L, offs)

    x2d = jnp.asarray(xs, jnp.float32).reshape(B, L)
    if b_pad != B:
        x2d = jnp.pad(x2d, ((0, b_pad - B), (0, 0)))

    def resident(a):
        # Full-array block, constant index map -> weight stays resident across grid steps.
        return pl.BlockSpec(a.shape, lambda t, n=a.ndim: (0,) * n)

    out = pl.pallas_call(
        kernel,
        out_shape=jax.ShapeDtypeStruct((n_tiles, 1, tile_b), jnp.float32),
        grid=(n_tiles,),
        in_specs=([pl.BlockSpec((tile_b, L), lambda t: (t, 0))]
                  + [resident(a) for a in ops]),
        out_specs=pl.BlockSpec((None, 1, tile_b), lambda t: (t, 0, 0)),
        compiler_params=pltpu.CompilerParams(dimension_semantics=("parallel",)),
    )(x2d, *ops)

    return out.reshape(b_pad, 1, 1)[:B]


def song_forward(x, params, **kw):
    """Single-sample path: x (L, 1) -> (1, 1), same as the PyTorch module."""
    kw.setdefault('tile_b', 8)
    return song_forward_batched(x[None], params, **kw)[0]


# -----------------------------------------------------------------------------------
# Parameters (PyTorch-native layouts) and float64 NumPy reference of the module math.
# -----------------------------------------------------------------------------------
def init_params(key, hidden=HIDDEN, seq_l=SEQ_L, mid=MID):
    H, L = hidden, seq_l
    keys = iter(jax.random.split(key, 64))

    def w(shape, fan_in):
        a = jax.random.normal(next(keys), shape, jnp.float32)
        return (np.asarray(a) / np.sqrt(fan_in)).astype(np.float32)

    def b(shape):
        return (0.05 * np.asarray(jax.random.normal(next(keys), shape, jnp.float32))
                ).astype(np.float32)

    p = {'conv1_w': w((H, 1, 2), 2.0),       'conv1_b': b((H,)),
         'conv2_w': w((H, H, 4), 4.0 * H),   'conv2_b': b((H,)),
         'conv3_w': w((H, H, 16), 16.0 * H), 'conv3_b': b((H,))}
    sizes = {'lstm1_l0': (L, H),         'lstm1_l1': (H, H),
             'lstm2_l0': (H, 2 * H),     'lstm2_l1': (2 * H, 2 * H),
             'lstm3_l0': (2 * H, 4 * H), 'lstm3_l1': (4 * H, 4 * H)}
    for name, (fin, hs) in sizes.items():
        p[name + '_w_ih'] = w((4 * hs, fin), fin)
        p[name + '_w_hh'] = w((4 * hs, hs), hs)   # multiplies h0=0; kept for the reference
        p[name + '_b_ih'] = b((4 * hs,))
        p[name + '_b_hh'] = b((4 * hs,))
    p['mid_w'] = w((mid, 4 * H), 4.0 * H)
    p['mid_b'] = b((mid,))
    p['end_w'] = w((1, mid), float(mid))
    p['end_b'] = b((1,))
    return p


def song_reference_np(x_batch, p):
    """Float64 transcription of the PyTorch forward (full 4-gate LSTM, W_hh term,
    unfused midLin/endNote1, real 'same' convs), vectorized over a batch of (L,) inputs."""
    x = np.asarray(x_batch, np.float64)
    B, L = x.shape

    def sig(v):
        return 1.0 / (1.0 + np.exp(-v))

    def conv_same(a, w, b):                                   # a: (B, Cin, L)
        Cout, Cin, k = w.shape
        left = (k - 1) // 2
        ap = np.zeros((B, Cin, L + k - 1))
        ap[:, :, left:left + L] = a
        y = np.zeros((B, Cout, L))
        for j in range(k):
            y += np.einsum('oi,bil->bol', w[:, :, j].astype(np.float64), ap[:, :, j:j + L])
        return np.maximum(y + b[None, :, None], 0.0)

    a = conv_same(x[:, None, :], p['conv1_w'], p['conv1_b'])
    a = conv_same(a, p['conv2_w'], p['conv2_b'])
    a = conv_same(a, p['conv3_w'], p['conv3_b'])
    xr = x + a.mean(axis=1)                                   # avgpool over channels + residual

    h = xr
    for name in _LSTM_LAYERS:
        w_ih, w_hh = p[name + '_w_ih'], p[name + '_w_hh']
        b_ih, b_hh = p[name + '_b_ih'], p[name + '_b_hh']
        hs = w_hh.shape[1]
        h0 = np.zeros((B, hs))
        c0 = np.zeros((B, hs))
        g = h @ w_ih.T.astype(np.float64) + b_ih + h0 @ w_hh.T.astype(np.float64) + b_hh
        i_g, f_g = sig(g[:, 0:hs]), sig(g[:, hs:2 * hs])
        g_g, o_g = np.tanh(g[:, 2 * hs:3 * hs]), sig(g[:, 3 * hs:4 * hs])
        c = f_g * c0 + i_g * g_g
        h = o_g * np.tanh(c)

    mid = h @ p['mid_w'].T.astype(np.float64) + p['mid_b']
    return mid @ p['end_w'].T.astype(np.float64) + p['end_b']   # (B, 1)


if __name__ == "__main__":
    key = jax.random.PRNGKey(0)
    pkey, xkey = jax.random.split(key)
    params = init_params(pkey)

    B = 256                                                   # -> 2 "parallel" grid tiles of 128
    xs = jax.random.normal(xkey, (B, SEQ_L, INPUT_SIZE), jnp.float32)

    ref = song_reference_np(np.asarray(xs)[:, :, 0], params)  # (B, 1) float64

    # f32 matmul-operand path (portable). All algebraic rewrites (banded conv matrices,
    # dropped forget-gate/W_hh, folded midLin/endNote1) are exact; the tolerance only
    # covers MXU operand precision + transcendental approximation.
    out32 = jax.block_until_ready(
        song_forward_batched(xs, params, tile_b=128, matmul_dtype=jnp.float32))
    assert out32.shape == (B, 1, 1)
    assert bool(np.all(np.isfinite(np.asarray(out32))))
    err32 = float(np.max(np.abs(np.asarray(out32)[:, 0, 0] - ref[:, 0])))
    assert err32 < 2e-3, f"f32 path mismatch vs reference: max abs err {err32}"

    # bf16 matmul-operand path (recommended on v6e/v7x); accumulation/activations stay f32.
    out16 = jax.block_until_ready(
        song_forward_batched(xs, params, tile_b=128, matmul_dtype=jnp.bfloat16))
    err16 = float(np.max(np.abs(np.asarray(out16)[:, 0, 0] - ref[:, 0])))
    assert err16 < 2e-2, f"bf16 path mismatch vs reference: max abs err {err16}"

    # Single-sample path, identical to the PyTorch module's (L, 1) -> (1, 1) call.
    out1 = jax.block_until_ready(song_forward(xs[0], params))
    assert out1.shape == (1, 1)
    assert abs(float(out1[0, 0]) - float(ref[0, 0])) < 2e-3

    print("KERNEL_OK")
</pallas_src>

<mosaic_0001>
module attributes {stable_mosaic.version = 11 : i64} {
  func.func @kernel(%arg0: i32, %arg1: memref<128x8xf32, #tpu.memory_space<vmem>>, %arg2: memref<8x256xf32, #tpu.memory_space<vmem>>, %arg3: memref<256x256xf32, #tpu.memory_space<vmem>>, %arg4: memref<256x256xf32, #tpu.memory_space<vmem>>, %arg5: memref<256x8xf32, #tpu.memory_space<vmem>>, %arg6: memref<8x96xf32, #tpu.memory_space<vmem>>, %arg7: memref<32x96xf32, #tpu.memory_space<vmem>>, %arg8: memref<32x192xf32, #tpu.memory_space<vmem>>, %arg9: memref<64x192xf32, #tpu.memory_space<vmem>>, %arg10: memref<64x384xf32, #tpu.memory_space<vmem>>, %arg11: memref<128x384xf32, #tpu.memory_space<vmem>>, %arg12: memref<1x128xf32, #tpu.memory_space<vmem>>, %arg13: memref<1x2432xf32, #tpu.memory_space<vmem>>, %arg14: memref<1x1x128xf32, #tpu.memory_space<vmem>>) attributes {dimension_semantics = [#tpu.dimension_semantics<parallel>], iteration_bounds = array<i64: 2>, scalar_prefetch = 0 : i64, scratch_operands = 0 : i64, tpu.core_type = #tpu.core_type<tc>, window_params = [{transform_indices = @transform_0, window_bounds = array<i64: 128, 8>}, {pipeline_mode = #tpu.pipeline_mode<synchronous>, transform_indices = @transform_1, window_bounds = array<i64: 8, 256>}, {pipeline_mode = #tpu.pipeline_mode<synchronous>, transform_indices = @transform_2, window_bounds = array<i64: 256, 256>}, {pipeline_mode = #tpu.pipeline_mode<synchronous>, transform_indices = @transform_3, window_bounds = array<i64: 256, 256>}, {pipeline_mode = #tpu.pipeline_mode<synchronous>, transform_indices = @transform_4, window_bounds = array<i64: 256, 8>}, {pipeline_mode = #tpu.pipeline_mode<synchronous>, transform_indices = @transform_5, window_bounds = array<i64: 8, 96>}, {pipeline_mode = #tpu.pipeline_mode<synchronous>, transform_indices = @transform_6, window_bounds = array<i64: 32, 96>}, {pipeline_mode = #tpu.pipeline_mode<synchronous>, transform_indices = @transform_7, window_bounds = array<i64: 32, 192>}, {pipeline_mode = #tpu.pipeline_mode<synchronous>, transform_indices = @transform_8, window_bounds = array<i64: 64, 192>}, {pipeline_mode = #tpu.pipeline_mode<synchronous>, transform_indices = @transform_9, window_bounds = array<i64: 64, 384>}, {pipeline_mode = #tpu.pipeline_mode<synchronous>, transform_indices = @transform_10, window_bounds = array<i64: 128, 384>}, {pipeline_mode = #tpu.pipeline_mode<synchronous>, transform_indices = @transform_11, window_bounds = array<i64: 1, 128>}, {pipeline_mode = #tpu.pipeline_mode<synchronous>, transform_indices = @transform_12, window_bounds = array<i64: 1, 2432>}, {transform_indices = @transform_13, window_bounds = array<i64: 1, 1, 128>}]} {
    %c0 = arith.constant 0 : index
    %c0_0 = arith.constant 0 : index
    %0 = vector.load %arg1[%c0, %c0_0] : memref<128x8xf32, #tpu.memory_space<vmem>>, vector<128x8xf32>
    %c0_1 = arith.constant 0 : index
    %c0_2 = arith.constant 0 : index
    %1 = vector.load %arg2[%c0_1, %c0_2] : memref<8x256xf32, #tpu.memory_space<vmem>>, vector<8x256xf32>
    %cst = arith.constant dense<0.000000e+00> : vector<128x256xf32>
    %2 = tpu.matmul %0, %1, %cst {dimension_numbers = #tpu.dot_dimension_numbers<[1], [0], [0], [1], [0, 0, 1, 1], [], []>} : vector<128x8xf32>, vector<8x256xf32>, vector<128x256xf32> -> vector<128x256xf32>
    %c0_3 = arith.constant 0 : index
    %c0_4 = arith.constant 0 : index
    %3 = vector.load %arg13[%c0_3, %c0_4] : memref<1x2432xf32, #tpu.memory_space<vmem>>, vector<1x256xf32>
    %4 = vector.broadcast %3 : vector<1x256xf32> to vector<128x256xf32>
    %5 = arith.addf %2, %4 : vector<128x256xf32>
    %cst_5 = arith.constant 0.000000e+00 : f32
    %6 = vector.broadcast %cst_5 : f32 to vector<128x256xf32>
    %7 = arith.maximumf %5, %6 : vector<128x256xf32>
    %c0_6 = arith.constant 0 : index
    %c0_7 = arith.constant 0 : index
    %8 = vector.load %arg3[%c0_6, %c0_7] : memref<256x256xf32, #tpu.memory_space<vmem>>, vector<256x256xf32>
    %cst_8 = arith.constant dense<0.000000e+00> : vector<128x256xf32>
    %9 = tpu.matmul %7, %8, %cst_8 {dimension_numbers = #tpu.dot_dimension_numbers<[1], [0], [0], [1], [0, 0, 1, 1], [], []>} : vector<128x256xf32>, vector<256x256xf32>, vector<128x256xf32> -> vector<128x256xf32>
    %c0_9 = arith.constant 0 : index
    %c256 = arith.constant 256 : index
    %10 = vector.load %arg13[%c0_9, %c256] : memref<1x2432xf32, #tpu.memory_space<vmem>>, vector<1x256xf32>
    %11 = vector.broadcast %10 : vector<1x256xf32> to vector<128x256xf32>
    %12 = arith.addf %9, %11 : vector<128x256xf32>
    %cst_10 = arith.constant 0.000000e+00 : f32
    %13 = vector.broadcast %cst_10 : f32 to vector<128x256xf32>
    %14 = arith.maximumf %12, %13 : vector<128x256xf32>
    %c0_11 = arith.constant 0 : index
    %c0_12 = arith.constant 0 : index
    %15 = vector.load %arg4[%c0_11, %c0_12] : memref<256x256xf32, #tpu.memory_space<vmem>>, vector<256x256xf32>
    %cst_13 = arith.constant dense<0.000000e+00> : vector<128x256xf32>
    %16 = tpu.matmul %14, %15, %cst_13 {dimension_numbers = #tpu.dot_dimension_numbers<[1], [0], [0], [1], [0, 0, 1, 1], [], []>} : vector<128x256xf32>, vector<256x256xf32>, vector<128x256xf32> -> vector<128x256xf32>
    %c0_14 = arith.constant 0 : index
    %c512 = arith.constant 512 : index
    %17 = vector.load %arg13[%c0_14, %c512] : memref<1x2432xf32, #tpu.memory_space<vmem>>, vector<1x256xf32>
    %18 = vector.broadcast %17 : vector<1x256xf32> to vector<128x256xf32>
    %19 = arith.addf %16, %18 : vector<128x256xf32>
    %cst_15 = arith.constant 0.000000e+00 : f32
    %20 = vector.broadcast %cst_15 : f32 to vector<128x256xf32>
    %21 = arith.maximumf %19, %20 : vector<128x256xf32>
    %c0_16 = arith.constant 0 : index
    %c0_17 = arith.constant 0 : index
    %22 = vector.load %arg5[%c0_16, %c0_17] : memref<256x8xf32, #tpu.memory_space<vmem>>, vector<256x8xf32>
    %cst_18 = arith.constant dense<0.000000e+00> : vector<128x8xf32>
    %23 = tpu.matmul %21, %22, %cst_18 {dimension_numbers = #tpu.dot_dimension_numbers<[1], [0], [0], [1], [0, 0, 1, 1], [], []>} : vector<128x256xf32>, vector<256x8xf32>, vector<128x8xf32> -> vector<128x8xf32>
    %24 = arith.addf %0, %23 : vector<128x8xf32>
    %c0_19 = arith.constant 0 : index
    %c0_20 = arith.constant 0 : index
    %25 = vector.load %arg6[%c0_19, %c0_20] : memref<8x96xf32, #tpu.memory_space<vmem>>, vector<8x96xf32>
    %cst_21 = arith.constant dense<0.000000e+00> : vector<128x96xf32>
    %26 = tpu.matmul %24, %25, %cst_21 {dimension_numbers = #tpu.dot_dimension_numbers<[1], [0], [0], [1], [0, 0, 1, 1], [], []>} : vector<128x8xf32>, vector<8x96xf32>, vector<128x96xf32> -> vector<128x96xf32>
    %c0_22 = arith.constant 0 : index
    %c768 = arith.constant 768 : index
    %27 = vector.load %arg13[%c0_22, %c768] : memref<1x2432xf32, #tpu.memory_space<vmem>>, vector<1x96xf32>
    %28 = vector.broadcast %27 : vector<1x96xf32> to vector<128x96xf32>
    %29 = arith.addf %26, %28 : vector<128x96xf32>
    %30 = vector.extract_strided_slice %29 {offsets = [0, 0], sizes = [128, 32], strides = [1, 1]} : vector<128x96xf32> to vector<128x32xf32>
    %31 = arith.negf %30 : vector<128x32xf32>
    %32 = math.exp %31 : vector<128x32xf32>
    %cst_23 = arith.constant 1.000000e+00 : f32
    %33 = vector.broadcast %cst_23 : f32 to vector<128x32xf32>
    %34 = arith.addf %33, %32 : vector<128x32xf32>
    %35 = arith.divf %33, %34 : vector<128x32xf32>
    %36 = vector.extract_strided_slice %29 {offsets = [0, 32], sizes = [128, 32], strides = [1, 1]} : vector<128x96xf32> to vector<128x32xf32>
    %37 = math.tanh %36 : vector<128x32xf32>
    %38 = vector.extract_strided_slice %29 {offsets = [0, 64], sizes = [128, 32], strides = [1, 1]} : vector<128x96xf32> to vector<128x32xf32>
    %39 = arith.negf %38 : vector<128x32xf32>
    %40 = math.exp %39 : vector<128x32xf32>
    %cst_24 = arith.constant 1.000000e+00 : f32
    %41 = vector.broadcast %cst_24 : f32 to vector<128x32xf32>
    %42 = arith.addf %41, %40 : vector<128x32xf32>
    %43 = arith.divf %41, %42 : vector<128x32xf32>
    %44 = arith.mulf %35, %37 : vector<128x32xf32>
    %45 = math.tanh %44 : vector<128x32xf32>
    %46 = arith.mulf %43, %45 : vector<128x32xf32>
    %c0_25 = arith.constant 0 : index
    %c0_26 = arith.constant 0 : index
    %47 = vector.load %arg7[%c0_25, %c0_26] : memref<32x96xf32, #tpu.memory_space<vmem>>, vector<32x96xf32>
    %cst_27 = arith.constant dense<0.000000e+00> : vector<128x96xf32>
    %48 = tpu.matmul %46, %47, %cst_27 {dimension_numbers = #tpu.dot_dimension_numbers<[1], [0], [0], [1], [0, 0, 1, 1], [], []>} : vector<128x32xf32>, vector<32x96xf32>, vector<128x96xf32> -> vector<128x96xf32>
    %c0_28 = arith.constant 0 : index
    %c896 = arith.constant 896 : index
    %49 = vector.load %arg13[%c0_28, %c896] : memref<1x2432xf32, #tpu.memory_space<vmem>>, vector<1x96xf32>
    %50 = vector.broadcast %49 : vector<1x96xf32> to vector<128x96xf32>
    %51 = arith.addf %48, %50 : vector<128x96xf32>
    %52 = vector.extract_strided_slice %51 {offsets = [0, 0], sizes = [128, 32], strides = [1, 1]} : vector<128x96xf32> to vector<128x32xf32>
    %53 = arith.negf %52 : vector<128x32xf32>
    %54 = math.exp %53 : vector<128x32xf32>
    %cst_29 = arith.constant 1.000000e+00 : f32
    %55 = vector.broadcast %cst_29 : f32 to vector<128x32xf32>
    %56 = arith.addf %55, %54 : vector<128x32xf32>
    %57 = arith.divf %55, %56 : vector<128x32xf32>
    %58 = vector.extract_strided_slice %51 {offsets = [0, 32], sizes = [128, 32], strides = [1, 1]} : vector<128x96xf32> to vector<128x32xf32>
    %59 = math.tanh %58 : vector<128x32xf32>
    %60 = vector.extract_strided_slice %51 {offsets = [0, 64], sizes = [128, 32], strides = [1, 1]} : vector<128x96xf32> to vector<128x32xf32>
    %61 = arith.negf %60 : vector<128x32xf32>
    %62 = math.exp %61 : vector<128x32xf32>
    %cst_30 = arith.constant 1.000000e+00 : f32
    %63 = vector.broadcast %cst_30 : f32 to vector<128x32xf32>
    %64 = arith.addf %63, %62 : vector<128x32xf32>
    %65 = arith.divf %63, %64 : vector<128x32xf32>
    %66 = arith.mulf %57, %59 : vector<128x32xf32>
    %67 = math.tanh %66 : vector<128x32xf32>
    %68 = arith.mulf %65, %67 : vector<128x32xf32>
    %c0_31 = arith.constant 0 : index
    %c0_32 = arith.constant 0 : index
    %69 = vector.load %arg8[%c0_31, %c0_32] : memref<32x192xf32, #tpu.memory_space<vmem>>, vector<32x192xf32>
    %cst_33 = arith.constant dense<0.000000e+00> : vector<128x192xf32>
    %70 = tpu.matmul %68, %69, %cst_33 {dimension_numbers = #tpu.dot_dimension_numbers<[1], [0], [0], [1], [0, 0, 1, 1], [], []>} : vector<128x32xf32>, vector<32x192xf32>, vector<128x192xf32> -> vector<128x192xf32>
    %c0_34 = arith.constant 0 : index
    %c1024 = arith.constant 1024 : index
    %71 = vector.load %arg13[%c0_34, %c1024] : memref<1x2432xf32, #tpu.memory_space<vmem>>, vector<1x192xf32>
    %72 = vector.broadcast %71 : vector<1x192xf32> to vector<128x192xf32>
    %73 = arith.addf %70, %72 : vector<128x192xf32>
    %74 = vector.extract_strided_slice %73 {offsets = [0, 0], sizes = [128, 64], strides = [1, 1]} : vector<128x192xf32> to vector<128x64xf32>
    %75 = arith.negf %74 : vector<128x64xf32>
    %76 = math.exp %75 : vector<128x64xf32>
    %cst_35 = arith.constant 1.000000e+00 : f32
    %77 = vector.broadcast %cst_35 : f32 to vector<128x64xf32>
    %78 = arith.addf %77, %76 : vector<128x64xf32>
    %79 = arith.divf %77, %78 : vector<128x64xf32>
    %80 = vector.extract_strided_slice %73 {offsets = [0, 64], sizes = [128, 64], strides = [1, 1]} : vector<128x192xf32> to vector<128x64xf32>
    %81 = math.tanh %80 : vector<128x64xf32>
    %82 = vector.extract_strided_slice %73 {offsets = [0, 128], sizes = [128, 64], strides = [1, 1]} : vector<128x192xf32> to vector<128x64xf32>
    %83 = arith.negf %82 : vector<128x64xf32>
    %84 = math.exp %83 : vector<128x64xf32>
    %cst_36 = arith.constant 1.000000e+00 : f32
    %85 = vector.broadcast %cst_36 : f32 to vector<128x64xf32>
    %86 = arith.addf %85, %84 : vector<128x64xf32>
    %87 = arith.divf %85, %86 : vector<128x64xf32>
    %88 = arith.mulf %79, %81 : vector<128x64xf32>
    %89 = math.tanh %88 : vector<128x64xf32>
    %90 = arith.mulf %87, %89 : vector<128x64xf32>
    %c0_37 = arith.constant 0 : index
    %c0_38 = arith.constant 0 : index
    %91 = vector.load %arg9[%c0_37, %c0_38] : memref<64x192xf32, #tpu.memory_space<vmem>>, vector<64x192xf32>
    %cst_39 = arith.constant dense<0.000000e+00> : vector<128x192xf32>
    %92 = tpu.matmul %90, %91, %cst_39 {dimension_numbers = #tpu.dot_dimension_numbers<[1], [0], [0], [1], [0, 0, 1, 1], [], []>} : vector<128x64xf32>, vector<64x192xf32>, vector<128x192xf32> -> vector<128x192xf32>
    %c0_40 = arith.constant 0 : index
    %c1280 = arith.constant 1280 : index
    %93 = vector.load %arg13[%c0_40, %c1280] : memref<1x2432xf32, #tpu.memory_space<vmem>>, vector<1x192xf32>
    %94 = vector.broadcast %93 : vector<1x192xf32> to vector<128x192xf32>
    %95 = arith.addf %92, %94 : vector<128x192xf32>
    %96 = vector.extract_strided_slice %95 {offsets = [0, 0], sizes = [128, 64], strides = [1, 1]} : vector<128x192xf32> to vector<128x64xf32>
    %97 = arith.negf %96 : vector<128x64xf32>
    %98 = math.exp %97 : vector<128x64xf32>
    %cst_41 = arith.constant 1.000000e+00 : f32
    %99 = vector.broadcast %cst_41 : f32 to vector<128x64xf32>
    %100 = arith.addf %99, %98 : vector<128x64xf32>
    %101 = arith.divf %99, %100 : vector<128x64xf32>
    %102 = vector.extract_strided_slice %95 {offsets = [0, 64], sizes = [128, 64], strides = [1, 1]} : vector<128x192xf32> to vector<128x64xf32>
    %103 = math.tanh %102 : vector<128x64xf32>
    %104 = vector.extract_strided_slice %95 {offsets = [0, 128], sizes = [128, 64], strides = [1, 1]} : vector<128x192xf32> to vector<128x64xf32>
    %105 = arith.negf %104 : vector<128x64xf32>
    %106 = math.exp %105 : vector<128x64xf32>
    %cst_42 = arith.constant 1.000000e+00 : f32
    %107 = vector.broadcast %cst_42 : f32 to vector<128x64xf32>
    %108 = arith.addf %107, %106 : vector<128x64xf32>
    %109 = arith.divf %107, %108 : vector<128x64xf32>
    %110 = arith.mulf %101, %103 : vector<128x64xf32>
    %111 = math.tanh %110 : vector<128x64xf32>
    %112 = arith.mulf %109, %111 : vector<128x64xf32>
    %c0_43 = arith.constant 0 : index
    %c0_44 = arith.constant 0 : index
    %113 = vector.load %arg10[%c0_43, %c0_44] : memref<64x384xf32, #tpu.memory_space<vmem>>, vector<64x384xf32>
    %cst_45 = arith.constant dense<0.000000e+00> : vector<128x384xf32>
    %114 = tpu.matmul %112, %113, %cst_45 {dimension_numbers = #tpu.dot_dimension_numbers<[1], [0], [0], [1], [0, 0, 1, 1], [], []>} : vector<128x64xf32>, vector<64x384xf32>, vector<128x384xf32> -> vector<128x384xf32>
    %c0_46 = arith.constant 0 : index
    %c1536 = arith.constant 1536 : index
    %115 = vector.load %arg13[%c0_46, %c1536] : memref<1x2432xf32, #tpu.memory_space<vmem>>, vector<1x384xf32>
    %116 = vector.broadcast %115 : vector<1x384xf32> to vector<128x384xf32>
    %117 = arith.addf %114, %116 : vector<128x384xf32>
    %118 = vector.extract_strided_slice %117 {offsets = [0, 0], sizes = [128, 128], strides = [1, 1]} : vector<128x384xf32> to vector<128x128xf32>
    %119 = arith.negf %118 : vector<128x128xf32>
    %120 = math.exp %119 : vector<128x128xf32>
    %cst_47 = arith.constant 1.000000e+00 : f32
    %121 = vector.broadcast %cst_47 : f32 to vector<128x128xf32>
    %122 = arith.addf %121, %120 : vector<128x128xf32>
    %123 = arith.divf %121, %122 : vector<128x128xf32>
    %124 = vector.extract_strided_slice %117 {offsets = [0, 128], sizes = [128, 128], strides = [1, 1]} : vector<128x384xf32> to vector<128x128xf32>
    %125 = math.tanh %124 : vector<128x128xf32>
    %126 = vector.extract_strided_slice %117 {offsets = [0, 256], sizes = [128, 128], strides = [1, 1]} : vector<128x384xf32> to vector<128x128xf32>
    %127 = arith.negf %126 : vector<128x128xf32>
    %128 = math.exp %127 : vector<128x128xf32>
    %cst_48 = arith.constant 1.000000e+00 : f32
    %129 = vector.broadcast %cst_48 : f32 to vector<128x128xf32>
    %130 = arith.addf %129, %128 : vector<128x128xf32>
    %131 = arith.divf %129, %130 : vector<128x128xf32>
    %132 = arith.mulf %123, %125 : vector<128x128xf32>
    %133 = math.tanh %132 : vector<128x128xf32>
    %134 = arith.mulf %131, %133 : vector<128x128xf32>
    %c0_49 = arith.constant 0 : index
    %c0_50 = arith.constant 0 : index
    %135 = vector.load %arg11[%c0_49, %c0_50] : memref<128x384xf32, #tpu.memory_space<vmem>>, vector<128x384xf32>
    %cst_51 = arith.constant dense<0.000000e+00> : vector<128x384xf32>
    %136 = tpu.matmul %134, %135, %cst_51 {dimension_numbers = #tpu.dot_dimension_numbers<[1], [0], [0], [1], [0, 0, 1, 1], [], []>} : vector<128x128xf32>, vector<128x384xf32>, vector<128x384xf32> -> vector<128x384xf32>
    %c0_52 = arith.constant 0 : index
    %c1920 = arith.constant 1920 : index
    %137 = vector.load %arg13[%c0_52, %c1920] : memref<1x2432xf32, #tpu.memory_space<vmem>>, vector<1x384xf32>
    %138 = vector.broadcast %137 : vector<1x384xf32> to vector<128x384xf32>
    %139 = arith.addf %136, %138 : vector<128x384xf32>
    %140 = vector.extract_strided_slice %139 {offsets = [0, 0], sizes = [128, 128], strides = [1, 1]} : vector<128x384xf32> to vector<128x128xf32>
    %141 = arith.negf %140 : vector<128x128xf32>
    %142 = math.exp %141 : vector<128x128xf32>
    %cst_53 = arith.constant 1.000000e+00 : f32
    %143 = vector.broadcast %cst_53 : f32 to vector<128x128xf32>
    %144 = arith.addf %143, %142 : vector<128x128xf32>
    %145 = arith.divf %143, %144 : vector<128x128xf32>
    %146 = vector.extract_strided_slice %139 {offsets = [0, 128], sizes = [128, 128], strides = [1, 1]} : vector<128x384xf32> to vector<128x128xf32>
    %147 = math.tanh %146 : vector<128x128xf32>
    %148 = vector.extract_strided_slice %139 {offsets = [0, 256], sizes = [128, 128], strides = [1, 1]} : vector<128x384xf32> to vector<128x128xf32>
    %149 = arith.negf %148 : vector<128x128xf32>
    %150 = math.exp %149 : vector<128x128xf32>
    %cst_54 = arith.constant 1.000000e+00 : f32
    %151 = vector.broadcast %cst_54 : f32 to vector<128x128xf32>
    %152 = arith.addf %151, %150 : vector<128x128xf32>
    %153 = arith.divf %151, %152 : vector<128x128xf32>
    %154 = arith.mulf %145, %147 : vector<128x128xf32>
    %155 = math.tanh %154 : vector<128x128xf32>
    %156 = arith.mulf %153, %155 : vector<128x128xf32>
    %c0_55 = arith.constant 0 : index
    %c0_56 = arith.constant 0 : index
    %157 = vector.load %arg12[%c0_55, %c0_56] : memref<1x128xf32, #tpu.memory_space<vmem>>, vector<1x128xf32>
    %cst_57 = arith.constant dense<0.000000e+00> : vector<1x128xf32>
    %158 = tpu.matmul %157, %156, %cst_57 {dimension_numbers = #tpu.dot_dimension_numbers<[1], [1], [0], [0], [0, 0, 1, 0], [], []>} : vector<1x128xf32>, vector<128x128xf32>, vector<1x128xf32> -> vector<1x128xf32>
    %c0_58 = arith.constant 0 : index
    %c2304 = arith.constant 2304 : index
    %159 = vector.load %arg13[%c0_58, %c2304] : memref<1x2432xf32, #tpu.memory_space<vmem>>, vector<1x1xf32>
    %160 = vector.broadcast %159 : vector<1x1xf32> to vector<1x128xf32>
    %161 = arith.addf %158, %160 : vector<1x128xf32>
    %c0_59 = arith.constant 0 : index
    %c0_60 = arith.constant 0 : index
    %c0_61 = arith.constant 0 : index
    %162 = vector.load %arg14[%c0_59, %c0_60, %c0_61] : memref<1x1x128xf32, #tpu.memory_space<vmem>>, vector<1x1x128xf32>
    %163 = vector.shape_cast %162 : vector<1x1x128xf32> to vector<1x128xf32>
    %164 = vector.shape_cast %161 : vector<1x128xf32> to vector<1x1x128xf32>
    tpu.vector_store %arg14[%c0_59, %c0_60, %c0_61], %164 {strides = array<i32>} : memref<1x1x128xf32, #tpu.memory_space<vmem>>, vector<1x1x128xf32>,
    return
  }
  func.func @transform_0(%arg0: i32) -> (i32, i32) {
    %c0_i32 = arith.constant 0 : i32
    %c0_i32_0 = arith.constant 0 : i32
    return %arg0, %c0_i32 : i32, i32
  }
  func.func @transform_1(%arg0: i32) -> (i32, i32) {
    %c0_i32 = arith.constant 0 : i32
    %c0_i32_0 = arith.constant 0 : i32
    %c0_i32_1 = arith.constant 0 : i32
    return %c0_i32, %c0_i32_0 : i32, i32
  }
  func.func @transform_2(%arg0: i32) -> (i32, i32) {
    %c0_i32 = arith.constant 0 : i32
    %c0_i32_0 = arith.constant 0 : i32
    %c0_i32_1 = arith.constant 0 : i32
    return %c0_i32, %c0_i32_0 : i32, i32
  }
  func.func @transform_3(%arg0: i32) -> (i32, i32) {
    %c0_i32 = arith.constant 0 : i32
    %c0_i32_0 = arith.constant 0 : i32
    %c0_i32_1 = arith.constant 0 : i32
    return %c0_i32, %c0_i32_0 : i32, i32
  }
  func.func @transform_4(%arg0: i32) -> (i32, i32) {
    %c0_i32 = arith.constant 0 : i32
    %c0_i32_0 = arith.constant 0 : i32
    %c0_i32_1 = arith.constant 0 : i32
    return %c0_i32, %c0_i32_0 : i32, i32
  }
  func.func @transform_5(%arg0: i32) -> (i32, i32) {
    %c0_i32 = arith.constant 0 : i32
    %c0_i32_0 = arith.constant 0 : i32
    %c0_i32_1 = arith.constant 0 : i32
    return %c0_i32, %c0_i32_0 : i32, i32
  }
  func.func @transform_6(%arg0: i32) -> (i32, i32) {
    %c0_i32 = arith.constant 0 : i32
    %c0_i32_0 = arith.constant 0 : i32
    %c0_i32_1 = arith.constant 0 : i32
    return %c0_i32, %c0_i32_0 : i32, i32
  }
  func.func @transform_7(%arg0: i32) -> (i32, i32) {
    %c0_i32 = arith.constant 0 : i32
    %c0_i32_0 = arith.constant 0 : i32
    %c0_i32_1 = arith.constant 0 : i32
    return %c0_i32, %c0_i32_0 : i32, i32
  }
  func.func @transform_8(%arg0: i32) -> (i32, i32) {
    %c0_i32 = arith.constant 0 : i32
    %c0_i32_0 = arith.constant 0 : i32
    %c0_i32_1 = arith.constant 0 : i32
    return %c0_i32, %c0_i32_0 : i32, i32
  }
  func.func @transform_9(%arg0: i32) -> (i32, i32) {
    %c0_i32 = arith.constant 0 : i32
    %c0_i32_0 = arith.constant 0 : i32
    %c0_i32_1 = arith.constant 0 : i32
    return %c0_i32, %c0_i32_0 : i32, i32
  }
  func.func @transform_10(%arg0: i32) -> (i32, i32) {
    %c0_i32 = arith.constant 0 : i32
    %c0_i32_0 = arith.constant 0 : i32
    %c0_i32_1 = arith.constant 0 : i32
    return %c0_i32, %c0_i32_0 : i32, i32
  }
  func.func @transform_11(%arg0: i32) -> (i32, i32) {
    %c0_i32 = arith.constant 0 : i32
    %c0_i32_0 = arith.constant 0 : i32
    %c0_i32_1 = arith.constant 0 : i32
    return %c0_i32, %c0_i32_0 : i32, i32
  }
  func.func @transform_12(%arg0: i32) -> (i32, i32) {
    %c0_i32 = arith.constant 0 : i32
    %c0_i32_0 = arith.constant 0 : i32
    %c0_i32_1 = arith.constant 0 : i32
    return %c0_i32, %c0_i32_0 : i32, i32
  }
  func.func @transform_13(%arg0: i32) -> (i32, i32, i32) {
    %c0_i32 = arith.constant 0 : i32
    %c0_i32_0 = arith.constant 0 : i32
    %c0_i32_1 = arith.constant 0 : i32
    return %arg0, %c0_i32, %c0_i32_0 : i32, i32, i32
  }
}

</mosaic_0001>

<bundles_post_ra>
// kernel: tpu_custom_call.1
= control target key start
LH: loop header
LB: loop body
LE: loop exit
PB: predicated region body
PF: predicated region fallthrough
CT: control target
= control target key end

     0   :  { %s13667_s0 = inlined_call_operand.vmem [shape: f32[256,8], index: 0, kind: input, shape index: {}]   ;;  %s13668_s1 = inlined_call_operand.hbm [shape: f32[8,256], index: 1, kind: input, shape index: {}]   ;;  %s13669_s2 = inlined_call_operand.vmem [shape: f32[256,256], index: 2, kind: input, shape index: {}]   ;;  %s13670_s3 = inlined_call_operand.hbm [shape: f32[256,256], index: 3, kind: input, shape index: {}]   ;;  %s13671_s4 = inlined_call_operand.vmem [shape: f32[256,8], index: 4, kind: input, shape index: {}]   ;;  %s13672_s5 = inlined_call_operand.hbm [shape: f32[8,96], index: 5, kind: input, shape index: {}]   ;;  %s13673_s6 = inlined_call_operand.hbm [shape: f32[32,96], index: 6, kind: input, shape index: {}]   ;;  %s13674_s7 = inlined_call_operand.hbm [shape: f32[32,192], index: 7, kind: input, shape index: {}]   ;;  %s13675_s8 = inlined_call_operand.hbm [shape: f32[64,192], index: 8, kind: input, shape index: {}]   ;;  %s13676_s9 = inlined_call_operand.hbm [shape: f32[64,384], index: 9, kind: input, shape index: {}]   ;;  %s13677_s10 = inlined_call_operand.hbm [shape: f32[128,384], index: 10, kind: input, shape index: {}]   ;;  %s13678_s11 = inlined_call_operand.vmem [shape: f32[1,128], index: 11, kind: input, shape index: {}]   ;;  %s13679_s12 = inlined_call_operand.vmem [shape: f32[1,2432], index: 12, kind: input, shape index: {}]   ;;  %s13680_s13 = inlined_call_operand.hbm [shape: f32[2,1,128], index: 13, kind: output, shape index: {}]  }
   0x1   :  { %13690 = sst [smem:[#allocation33_spill]] %s13670_s3 }
   0x2   :  { %13691 = sst [smem:[#allocation34_spill]] %s13673_s6 }
   0x3   :  { %13692 = sst [smem:[#allocation35_spill]] %s13680_s13 }
   0x4   :  { %18 = vsyncpa [#allocation3], 0 }
   0x5   :  { %19 = vsyncpa [#allocation6], 0 }
   0x6   :  { %20 = vsyncpa [#allocation9], 0 }
   0x7   :  { %21 = vsyncpa [#allocation12], 0 }
   0x8   :  { %22 = vsyncpa [#allocation15], 0 }
   0x9   :  { %23 = vsyncpa [#allocation4], 0 }
   0xa   :  { %25 = vsyncpa [#allocation4 + $0x1], 0  ;;  %s8889_s25 = smov 0   ;;  %s8891_s26 = smov 0  }
   0xb   :  { %s8893_s27 = smov 0   ;;  %s8895_s28 = smov 0  }
   0xc LB: > { %13693 = sst [smem:[#allocation23_spill]] %s8788_s25  ;;  %s8910_s29 = sadd.s32 4294967295, %s8800_s28   ;;  %s8800_s28 = sphi %s8895_s28, %s14008_s28   ;;  %s8796_s27 = sphi %s8893_s27, %s14010_s27   ;;  %s8792_s26 = sphi %s8891_s26, %s14012_s26   ;;  %s8788_s25 = sphi %s8889_s25, %s14011_s25  }
   0xd   : > { %13694 = sst [smem:[#allocation24_spill]] %s8796_s27  ;;  %s6913_s30 = sadd.s32 4294967294, %s8800_s28  }
   0xe   : > { %13695 = sst [smem:[#allocation25_spill]] %s8800_s28  ;;  %s8914_s14 = sadd.s32 1, %s8800_s28  }
   0xf   : > { %13696 = sst [smem:[#allocation26_spill]] %s8914_s14  ;;  %s316_s15 = sadd.s32 1, %s8796_s27 }
  0x10   : > { %s313_s16 = ssub.s32 %s8800_s28, %s8914_s14  ;;  %p326_p0 = scmp.ne.s32.totalorder %s8796_s27, %s8792_s26 }
  0x11   : > { %p314_p1 = scmp.eq.s32.totalorder %s313_s16, 0  ;;  %p327_p2 = scmp.eq.s32.totalorder %s8910_s29, 1 }
  0x12   : > { %p332_p3 = scmp.ne.s32.totalorder %s8792_s26, %s8788_s25  ;;  %p333_p4 = scmp.eq.s32.totalorder %s6913_s30, 1 }
  0x13   : > { %s8925_s17 = scalar_select %p314_p1, %s8796_s27, %s316_s15  }
  0x14   : > { %p8927_p5 = por %p327_p2, %p326_p0  ;;  %p8931_p6 = por %p333_p4, %p332_p3 }
  0x15   : > { %13697 = sst [smem:[#allocation27_spill]] %s8925_s17  ;;  %p6914_p7 = scmp.ge.s32.totalorder %s8800_s28, 1 }
  0x16   : > { %s13698_s18 = scalar_select %p8927_p5, 1, 0 }
  0x17   : > { %s13700_s19 = scalar_select %p8931_p6, 1, 0 }
  0x18   : > { %13699 = sst [smem:[#allocation28_spill]] %s13698_s18  ;;  %p340_p8 = scmp.lt.s32.totalorder %s8800_s28, 3 }
  0x19   : > { %13701 = sst [smem:[#allocation29_spill]] %s13700_s19  ;;  %p7368_p9 = scmp.eq.s32.totalorder %s8910_s29, 0 }
  0x1a   : > { %p8938_p10 = pnand %p6914_p7, %p340_p8  ;;  %s13703_s3 = sld [smem:[#allocation33_spill]] }
  0x1b   : > { %s8802_s24 = smov [#allocation5]   ;;  %s13705_s6 = sld [smem:[#allocation34_spill]] }
  0x1c   : > { %p7339_p11 = pneg %p8938_p10  ;;  %s368_s30 = sshll.u32 %s8802_s24, 4  ;;  %s369_s30 = int_to_ptr.vmem [resolvable:$true] %s368_s30 }
  0x1d   : > { %s8803_s21 = smov 256   ;;  %s8804_s22 = smov 16  }
  0x1e   : > { %p8949_p12 = pnand %p7368_p9, %p7339_p11  ;;  %s8805_s24 = smov [#allocation8]  }
  0x1f   : > { %s8806_s14 = smov 128   ;;  %s8807_s19 = smov 8  }
  0x20   : > { %s366_s23 = sshll.u32 %s13703_s3, 4  ;;  %s397_s3 = sshll.u32 %s8805_s24, 4  ;;  %s367_s23 = int_to_ptr.hbm [resolvable:$true] %s366_s23  ;;  %s398_s3 = int_to_ptr.vmem [resolvable:$true] %s397_s3 }
  0x21   : > { %s395_s27 = sshll.u32 %s13705_s6, 4  ;;  %s423_s6 = sshll.u32 %s13675_s8, 4  ;;  %s396_s27 = int_to_ptr.hbm [resolvable:$true] %s395_s27  ;;  %s424_s6 = int_to_ptr.hbm [resolvable:$true] %s423_s6 }
  0x22   : > { %7345 = dma.hbm_to_vmem [thread:$0]  (!%p8949_p12), %s367_s23, 8192, %s369_s30, [#allocation6], %s8803_s21, %s8803_s21, %s8804_s22  }
  0x23   : > { %7351 = dma.hbm_to_vmem [thread:$0]  (!%p8949_p12), %s396_s27, 512, %s398_s3, [#allocation9], %s8806_s14, %s8806_s14, %s8807_s19  }
  0x24   : > { %s8808_s25 = smov [#allocation11]   ;;  %s352_s23 = sshll.u32 %s13668_s1, 4  ;;  %s353_s23 = int_to_ptr.hbm [resolvable:$true] %s352_s23 }
  0x25   : > { %s425_s28 = sshll.u32 %s8808_s25, 4  ;;  %s8809_s3 = smov [#allocation2]   ;;  %s426_s28 = int_to_ptr.vmem [resolvable:$true] %s425_s28 }
  0x26   : > { %7357 = dma.hbm_to_vmem [thread:$0]  (!%p8949_p12), %s424_s6, 2048, %s426_s28, [#allocation12], %s8803_s21, %s8803_s21, %s8804_s22  }
  0x27   : > { %s354_s27 = sshll.u32 %s8809_s3, 4  ;;  %s384_s30 = sshll.u32 %s13672_s5, 4  ;;  %s355_s27 = int_to_ptr.vmem [resolvable:$true] %s354_s27  ;;  %s385_s30 = int_to_ptr.hbm [resolvable:$true] %s384_s30 }
  0x28   : > { %7342 = dma.hbm_to_vmem [thread:$0]  (!%p8949_p12), %s353_s23, 256, %s355_s27, [#allocation3]  }
  0x29   : > { %s409_s18 = sshll.u32 %s13674_s7, 4  ;;  %s8810_s24 = smov [#allocation7]   ;;  %s410_s18 = int_to_ptr.hbm [resolvable:$true] %s409_s18 }
  0x2a   : > { %s386_s17 = sshll.u32 %s8810_s24, 4  ;;  %s8811_s6 = smov [#allocation10]   ;;  %s387_s17 = int_to_ptr.vmem [resolvable:$true] %s386_s17 }
  0x2b   : > { %7348 = dma.hbm_to_vmem [thread:$0]  (!%p8949_p12), %s385_s30, 128, %s387_s17, [#allocation6]  }
  0x2c   : > { %s411_s28 = sshll.u32 %s8811_s6, 4  ;;  %s437_s14 = sshll.u32 %s13676_s9, 4  ;;  %s412_s28 = int_to_ptr.vmem [resolvable:$true] %s411_s28  ;;  %s438_s14 = int_to_ptr.hbm [resolvable:$true] %s437_s14 }
  0x2d   : > { %7354 = dma.hbm_to_vmem [thread:$0]  (!%p8949_p12), %s410_s18, 1024, %s412_s28, [#allocation9], %s8803_s21, %s8803_s21, %s8804_s22  }
  0x2e   : > { %s8812_s23 = smov [#allocation13]   ;;  %s451_s30 = sshll.u32 %s13677_s10, 4  ;;  %s452_s30 = int_to_ptr.hbm [resolvable:$true] %s451_s30 }
  0x2f   : > { %s439_s27 = sshll.u32 %s8812_s23, 4  ;;  %s8813_s13 = smov 384   ;;  %s440_s27 = int_to_ptr.vmem [resolvable:$true] %s439_s27 }
  0x30   : > { %s8814_s24 = smov 24   ;;  %s8815_s17 = smov [#allocation14]  }
  0x31   : > { %7360 = dma.hbm_to_vmem [thread:$0]  (!%p8949_p12), %s438_s14, 3072, %s440_s27, [#allocation12], %s8813_s13, %s8813_s13, %s8814_s24  }
  0x32   : > { %s453_s6 = sshll.u32 %s8815_s17, 4  ;;  %484 = sbr.rel (%p8938_p10) target bundleno = 2869 (0xb35), region = 72  ;;  %s454_s6 = int_to_ptr.vmem [resolvable:$true] %s453_s6 }
  0x33   : > { %7363 = dma.hbm_to_vmem [thread:$0]  (!%p8949_p12), %s452_s30, 6144, %s454_s6, [#allocation15], %s8813_s13, %s8813_s13, %s8814_s24  }
  0x37   : > { %8763 = dma.done.wait (%p7368_p9), [#allocation3], 256  }
  0x38   : > { %8765 = vsyncadd (%p7368_p9), [#allocation3], 4294967040 }
  0x39   : > { %8767 = dma.done.wait (%p7368_p9), [#allocation6], 8320  }
  0x3a   : > { %8769 = vsyncadd (%p7368_p9), [#allocation6], 4294958976 }
  0x3b   : > { %8771 = dma.done.wait (%p7368_p9), [#allocation9], 1536  }
  0x3c   : > { %8773 = vsyncadd (%p7368_p9), [#allocation9], 4294965760 }
  0x3d   : > { %8775 = dma.done.wait (%p7368_p9), [#allocation12], 5120  }
  0x3e   : > { %8777 = vsyncadd (%p7368_p9), [#allocation12], 4294962176 }
  0x3f   : > { %8779 = dma.done.wait (%p7368_p9), [#allocation15], 6144  }
  0x40   : > { %8781 = vsyncadd (%p7368_p9), [#allocation15], 4294961152  ;;  %s6933_s20 = sshll.u32 %s8910_s29, 4  ;;  %vm593_vm0 = vcmask 64512   ;;  %v585_v0 = vld [vmem:[#allocation2] sm:$0xff]  ;;  %v586_v2 = vld [vmem:[#allocation2 + $0x8] sm:$0xff] }
  0x41   : > { %p564_p13 = scmp.lt.s32.totalorder %s6933_s20, 31  ;;  %657 = vmatpush.msra.mxu0 %v585_v0  ;;  %722 = vmatpush.msra.mxu1 %v586_v2  ;;  %v835_v8 = vld [vmem:[%s13669_s2 + $0xf8] sm:$0xff]  ;;  %v833_v11 = vld [vmem:[%s13669_s2 + $0xe8] sm:$0xff]  ;;  %v834_v17 = vld [vmem:[%s13669_s2 + $0xf0] sm:$0xff]  ;;  %s561_s17 = sand.u32 1, %s8792_s26  }
  0x42   : > { %v867_v9 = vld [vmem:[%s13669_s2 + $0x1f8] sm:$0xff]  ;;  %v865_v12 = vld [vmem:[%s13669_s2 + $0x1e8] sm:$0xff]  ;;  %v832_v19 = vld [vmem:[%s13669_s2 + $0xe0] sm:$0xff]  ;;  %874 = vmatpush.msra.mxu2 %v834_v17  ;;  %s562_s22 = scalar_lea.vmem [#allocation16], %s561_s17  ;;  %s6767_s3 = scalar_lea.sflag [#allocation4], %s561_s17 }
  0x43   : > { %s14014_s20 = smov (!%p564_p13, %s6933_s20), 31  ;;  %1004 = vmatpush.msrb.mxu0 %v835_v8  ;;  %1069 = vmatpush.msrb.mxu1 %v867_v9  ;;  %v831_v14 = vld [vmem:[%s13669_s2 + $0xd8] sm:$0xff]  ;;  %v829_v18 = vld [vmem:[%s13669_s2 + $0xc8] sm:$0xff]  ;;  %v866_v20 = vld [vmem:[%s13669_s2 + $0x1f0] sm:$0xff]  ;;  %s6777_s28 = sshll.u32 %s562_s22, 4  ;;  %s6778_s28 = int_to_ptr.vmem [resolvable:$true] %s6777_s28 }
  0x44   : > { %s6934_s15 = sshll.u32 %s14014_s20, 3  ;;  %v863_v15 = vld [vmem:[%s13669_s2 + $0x1d8] sm:$0xff]  ;;  %v861_v21 = vld [vmem:[%s13669_s2 + $0x1c8] sm:$0xff]  ;;  %939 = vmatpush.msra.mxu3 %v866_v20  ;;  %v830_v22 = vld [vmem:[%s13669_s2 + $0xd0] sm:$0xff]  ;;  %875 = vmatpush.msra.mxu2 %v832_v19  ;;  %s8816_s20 = smov 96  }
  0x45   : > { %s9025_s18 = scalar_lea.vmem %s13667_s0, %s6934_s15  ;;  %1005 = vmatpush.msrb.mxu0 %v833_v11  ;;  %1070 = vmatpush.msrb.mxu1 %v865_v12  ;;  %v864_v23 = vld [vmem:[%s13669_s2 + $0x1e0] sm:$0xff]  ;;  %v862_v26 = vld [vmem:[%s13669_s2 + $0x1d0] sm:$0xff]  ;;  %v827_v29 = vld [vmem:[%s13669_s2 + $0xb8] sm:$0xff] }
  0x46   : > { %v569_v1 = vld [vmem:[%s9025_s18] sm:$0xff]  ;;  %v570_v3 = vld [vmem:[%s9025_s18 + $0x8] sm:$0xff]  ;;  %v571_v4 = vld [vmem:[%s9025_s18 + $0x10] sm:$0xff]  ;;  %940 = vmatpush.msra.mxu3 %v864_v23  ;;  %876 = vmatpush.msra.mxu2 %v830_v22 }
  0x47   : > { %6935 = vmatmul.msk.f32.vlgmr.msra.gmra.mxu0 %vm593_vm0, %v569_v1  ;;  %6951 = vmatmul.msk.f32.vlgmr.msra.gmra.mxu1 %vm593_vm0, %v569_v1  ;;  %v572_v5 = vld [vmem:[%s9025_s18 + $0x18] sm:$0xff]  ;;  %v573_v6 = vld [vmem:[%s9025_s18 + $0x20] sm:$0xff]  ;;  %v574_v7 = vld [vmem:[%s9025_s18 + $0x28] sm:$0xff] }
  0x48   : > { %v575_v10 = vld [vmem:[%s9025_s18 + $0x30] sm:$0xff]  ;;  %v576_v13 = vld [vmem:[%s9025_s18 + $0x38] sm:$0xff]  ;;  %1006 = vmatpush.msrb.mxu0 %v831_v14  ;;  %1071 = vmatpush.msrb.mxu1 %v863_v15  ;;  %v577_v16 = vld [vmem:[%s9025_s18 + $0x40] sm:$0xff] }
  0x49   : > { %v578_v24 = vld [vmem:[%s9025_s18 + $0x48] sm:$0xff]  ;;  %v828_v25 = vld [vmem:[%s13669_s2 + $0xc0] sm:$0xff]  ;;  %v826_v27 = vld [vmem:[%s13669_s2 + $0xb0] sm:$0xff]  ;;  %941 = vmatpush.msra.mxu3 %v862_v26 }
  0x4a   : > { %1007 = vmatpush.msrb.mxu0 %v829_v18  ;;  %1072 = vmatpush.msrb.mxu1 %v861_v21  ;;  %v860_v28 = vld [vmem:[%s13669_s2 + $0x1c0] sm:$0xff]  ;;  %v858_v31 = vld [vmem:[%s13669_s2 + $0x1b0] sm:$0xff]  ;;  %v825_v32 = vld [vmem:[%s13669_s2 + $0xa8] sm:$0xff] }
  0x4b   : > { %877 = vmatpush.msra.mxu2 %v828_v25  ;;  %v824_v30 = vld [vmem:[%s13669_s2 + $0xa0] sm:$0xff]  ;;  %v859_v33 = vld [vmem:[%s13669_s2 + $0x1b8] sm:$0xff]  ;;  %942 = vmatpush.msra.mxu3 %v860_v28  ;;  %v822_v35 = vld [vmem:[%s13669_s2 + $0x90] sm:$0xff] }
  0x4c   : > { %1008 = vmatpush.msrb.mxu0 %v827_v29  ;;  %v823_v34 = vld [vmem:[%s13669_s2 + $0x98] sm:$0xff]  ;;  %1073 = vmatpush.msrb.mxu1 %v859_v33  ;;  %v856_v36 = vld [vmem:[%s13669_s2 + $0x1a0] sm:$0xff]  ;;  %v857_v37 = vld [vmem:[%s13669_s2 + $0x1a8] sm:$0xff] }
  0x4d   : > { %878 = vmatpush.msra.mxu2 %v826_v27  ;;  %v579_v38 = vld [vmem:[%s9025_s18 + $0x50] sm:$0xff]  ;;  %943 = vmatpush.msra.mxu3 %v858_v31  ;;  %v820_v39 = vld [vmem:[%s13669_s2 + $0x80] sm:$0xff]  ;;  %v821_v41 = vld [vmem:[%s13669_s2 + $0x88] sm:$0xff] }
  0x4e   : > { %1009 = vmatpush.msrb.mxu0 %v825_v32  ;;  %1074 = vmatpush.msrb.mxu1 %v857_v37  ;;  %v854_v40 = vld [vmem:[%s13669_s2 + $0x190] sm:$0xff]  ;;  %v855_v42 = vld [vmem:[%s13669_s2 + $0x198] sm:$0xff]  ;;  %v852_v44 = vld [vmem:[%s13669_s2 + $0x180] sm:$0xff] }
  0x4f   : > { %6936 = vmatmul.msk.f32.gmra.mxu0 %vm593_vm0, %v570_v3  ;;  %6952 = vmatmul.msk.f32.gmra.mxu1 %vm593_vm0, %v570_v3  ;;  %v818_v43 = vld [vmem:[%s13669_s2 + $0x70] sm:$0xff]  ;;  %v819_v45 = vld [vmem:[%s13669_s2 + $0x78] sm:$0xff]  ;;  %v853_v46 = vld [vmem:[%s13669_s2 + $0x188] sm:$0xff] }
  0x50   : > { %879 = vmatpush.msra.mxu2 %v824_v30  ;;  %1010 = vmatpush.msrb.mxu0 %v823_v34  ;;  %v816_v47 = vld [vmem:[%s13669_s2 + $0x60] sm:$0xff]  ;;  %v850_v48 = vld [vmem:[%s13669_s2 + $0x170] sm:$0xff]  ;;  %v817_v49 = vld [vmem:[%s13669_s2 + $0x68] sm:$0xff] }
  0x51   : > { %944 = vmatpush.msra.mxu3 %v856_v36  ;;  %1075 = vmatpush.msrb.mxu1 %v855_v42  ;;  %v851_v50 = vld [vmem:[%s13669_s2 + $0x178] sm:$0xff]  ;;  %v814_v51 = vld [vmem:[%s13669_s2 + $0x50] sm:$0xff]  ;;  %v848_v52 = vld [vmem:[%s13669_s2 + $0x160] sm:$0xff] }
  0x52   : > { %880 = vmatpush.msra.mxu2 %v822_v35  ;;  %1011 = vmatpush.msrb.mxu0 %v821_v41  ;;  %v580_v53 = vld [vmem:[%s9025_s18 + $0x58] sm:$0xff]  ;;  %v849_v55 = vld [vmem:[%s13669_s2 + $0x168] sm:$0xff]  ;;  %v812_v56 = vld [vmem:[%s13669_s2 + $0x40] sm:$0xff] }
  0x53   : > { %945 = vmatpush.msra.mxu3 %v854_v40  ;;  %1076 = vmatpush.msrb.mxu1 %v853_v46  ;;  %v815_v54 = vld [vmem:[%s13669_s2 + $0x58] sm:$0xff]  ;;  %v846_v57 = vld [vmem:[%s13669_s2 + $0x150] sm:$0xff]  ;;  %v813_v58 = vld [vmem:[%s13669_s2 + $0x48] sm:$0xff] }
  0x54   : > { %881 = vmatpush.msra.mxu2 %v820_v39  ;;  %1012 = vmatpush.msrb.mxu0 %v819_v45  ;;  %v847_v59 = vld [vmem:[%s13669_s2 + $0x158] sm:$0xff]  ;;  %v810_v60 = vld [vmem:[%s13669_s2 + $0x30] sm:$0xff]  ;;  %v844_v61 = vld [vmem:[%s13669_s2 + $0x140] sm:$0xff] }
  0x55   : > { %946 = vmatpush.msra.mxu3 %v852_v44  ;;  %1077 = vmatpush.msrb.mxu1 %v851_v50  ;;  %v811_v62 = vld [vmem:[%s13669_s2 + $0x38] sm:$0xff]  ;;  %v845_v63 = vld [vmem:[%s13669_s2 + $0x148] sm:$0xff]  ;;  %v808_v0 = vld [vmem:[%s13669_s2 + $0x20] sm:$0xff] }
  0x56   : > { %882 = vmatpush.msra.mxu2 %v818_v43  ;;  %1013 = vmatpush.msrb.mxu0 %v817_v49  ;;  %v842_v1 = vld [vmem:[%s13669_s2 + $0x130] sm:$0xff]  ;;  %v809_v2 = vld [vmem:[%s13669_s2 + $0x28] sm:$0xff]  ;;  %v581_v3 = vld [vmem:[%s9025_s18 + $0x60] sm:$0xff] }
  0x57   : > { %6937 = vmatmul.msk.f32.gmra.mxu0 %vm593_vm0, %v571_v4  ;;  %6953 = vmatmul.msk.f32.gmra.mxu1 %vm593_vm0, %v571_v4  ;;  %v843_v4 = vld [vmem:[%s13669_s2 + $0x138] sm:$0xff]  ;;  %v841_v8 = vld [vmem:[%s13669_s2 + $0x128] sm:$0xff]  ;;  %v804_v9 = vld [vmem:[%s13669_s2] sm:$0xff] }
  0x58   : > { %883 = vmatpush.msra.mxu2 %v816_v47  ;;  %947 = vmatpush.msra.mxu3 %v850_v48  ;;  %v805_v11 = vld [vmem:[%s13669_s2 + $0x8] sm:$0xff]  ;;  %v839_v12 = vld [vmem:[%s13669_s2 + $0x118] sm:$0xff]  ;;  %v587_v18 = vld [vmem:[%s13679_s12] sm:$0x3] }
  0x59   : > { %1014 = vmatpush.msrb.mxu0 %v815_v54  ;;  %1078 = vmatpush.msrb.mxu1 %v849_v55  ;;  %v837_v14 = vld [vmem:[%s13669_s2 + $0x108] sm:$0xff]  ;;  %v584_v17 = vld [vmem:[%s9025_s18 + $0x78] sm:$0xff]  ;;  %v9270_v19 = vperm.slane %v587_v18, 0  ;;  %v9272_v20 = vperm.slane %v587_v18, 1  ;;  %v1224_v18 = vld [vmem:[#allocation5 + $0x1d0] sm:$0xff] }
  0x5a   : > { %884 = vmatpush.msra.mxu2 %v814_v51  ;;  %948 = vmatpush.msra.mxu3 %v848_v52  ;;  %v582_v15 = vld [vmem:[%s9025_s18 + $0x68] sm:$0xff] }
  0x5b   : > { %1015 = vmatpush.msrb.mxu0 %v813_v58  ;;  %1079 = vmatpush.msrb.mxu1 %v847_v59 }
  0x5c   : > { %885 = vmatpush.msra.mxu2 %v812_v56  ;;  %949 = vmatpush.msra.mxu3 %v846_v57 }
  0x5d   : > { %1016 = vmatpush.msrb.mxu0 %v811_v62  ;;  %1080 = vmatpush.msrb.mxu1 %v845_v63  ;;  %v1228_v62 = vld [vmem:[#allocation5 + $0x1f0] sm:$0xff] }
  0x5e   : > { %886 = vmatpush.msra.mxu2 %v810_v60  ;;  %950 = vmatpush.msra.mxu3 %v844_v61  ;;  %v1196_v61 = vld [vmem:[#allocation5 + $0xf0] sm:$0xff] }
  0x5f   : > { %6938 = vmatmul.msk.f32.gmra.mxu0 %vm593_vm0, %v572_v5  ;;  %6954 = vmatmul.msk.f32.gmra.mxu1 %vm593_vm0, %v572_v5  ;;  %v806_v5 = vld [vmem:[%s13669_s2 + $0x10] sm:$0xff] }
  0x60   : > { %887 = vmatpush.msra.mxu2 %v808_v0  ;;  %951 = vmatpush.msra.mxu3 %v842_v1  ;;  %v1197_v1 = vld [vmem:[#allocation5 + $0xf8] sm:$0xff] }
  0x61   : > { %1017 = vmatpush.msrb.mxu0 %v809_v2  ;;  %1081 = vmatpush.msrb.mxu1 %v843_v4 }
  0x62   : > { %888 = vmatpush.msra.mxu2 %v806_v5 }
  0x63   : > { %1082 = vmatpush.msrb.mxu1 %v841_v8  ;;  %v1226_v8 = vld [vmem:[#allocation5 + $0x1e0] sm:$0xff] }
  0x64   : > { %889 = vmatpush.msra.mxu2 %v804_v9 }
  0x65   : > { %1083 = vmatpush.msrb.mxu1 %v839_v12 }
  0x66   : > { %1236 = vmatpush.msrb.mxu2 %v1196_v61  ;;  %v1185_v61 = vld [vmem:[#allocation5 + $0x98] sm:$0xff] }
  0x67   : > { %6939 = vmatmul.msk.f32.gmra.mxu0 %vm593_vm0, %v573_v6  ;;  %6955 = vmatmul.msk.f32.gmra.mxu1 %vm593_vm0, %v573_v6  ;;  %v840_v6 = vld [vmem:[%s13669_s2 + $0x120] sm:$0xff] }
  0x68   : > { %952 = vmatpush.msra.mxu3 %v840_v6  ;;  %1084 = vmatpush.msrb.mxu1 %v837_v14  ;;  %v1194_v6 = vld [vmem:[#allocation5 + $0xe0] sm:$0xff] }
  0x69   : > { %1237 = vmatpush.msrb.mxu2 %v1194_v6 }
  0x6f   : > { %6940 = vmatmul.msk.f32.gmra.mxu0 %vm593_vm0, %v574_v7  ;;  %6956 = vmatmul.msk.f32.gmra.mxu1 %vm593_vm0, %v574_v7  ;;  %v807_v7 = vld [vmem:[%s13669_s2 + $0x18] sm:$0xff] }
  0x70   : > { %1018 = vmatpush.msrb.mxu0 %v807_v7  ;;  %v1229_v7 = vld [vmem:[#allocation5 + $0x1f8] sm:$0xff] }
  0x71   : > { %1431 = vmatpush.msra.mxu1 %v1229_v7 }
  0x72   : > { %1019 = vmatpush.msrb.mxu0 %v805_v11  ;;  %v1195_v11 = vld [vmem:[#allocation5 + $0xe8] sm:$0xff] }
  0x74   : > { %1366 = vmatpush.msra.mxu0 %v1197_v1  ;;  %v1183_v1 = vld [vmem:[#allocation5 + $0x88] sm:$0xff] }
  0x76   : > { %1367 = vmatpush.msra.mxu0 %v1195_v11 }
  0x77   : > { %6941 = vmatmul.msk.f32.gmra.mxu0 %vm593_vm0, %v575_v10  ;;  %6957 = vmatmul.msk.f32.gmra.mxu1 %vm593_vm0, %v575_v10  ;;  %v838_v10 = vld [vmem:[%s13669_s2 + $0x110] sm:$0xff] }
  0x78   : > { %953 = vmatpush.msra.mxu3 %v838_v10 }
  0x7f   : > { %6942 = vmatmul.msk.f32.gmra.mxu0 %vm593_vm0, %v576_v13  ;;  %6958 = vmatmul.msk.f32.gmra.mxu1 %vm593_vm0, %v576_v13  ;;  %v836_v13 = vld [vmem:[%s13669_s2 + $0x100] sm:$0xff] }
  0x80   : > { %954 = vmatpush.msra.mxu3 %v836_v13 }
  0x82   : > { %1301 = vmatpush.msrb.mxu3 %v1228_v62  ;;  %v1213_v62 = vld [vmem:[#allocation5 + $0x178] sm:$0xff] }
  0x84   : > { %1302 = vmatpush.msrb.mxu3 %v1226_v8  ;;  %v1209_v8 = vld [vmem:[#allocation5 + $0x158] sm:$0xff] }
  0x86   : > { %1303 = vmatpush.msrb.mxu3 %v1224_v18  ;;  %v1176_v18 = vld [vmem:[#allocation5 + $0x50] sm:$0xff] }
  0x87   : > { %6943 = vmatmul.msk.f32.gmra.mxu0 %vm593_vm0, %v577_v16  ;;  %6959 = vmatmul.msk.f32.gmra.mxu1 %vm593_vm0, %v577_v16  ;;  %v583_v16 = vld [vmem:[%s9025_s18 + $0x70] sm:$0xff] }
  0x8f   : > { %6944 = vmatmul.msk.f32.gmra.mxu0 %vm593_vm0, %v578_v24  ;;  %6960 = vmatmul.msk.f32.gmra.mxu1 %vm593_vm0, %v578_v24 }
  0x97   : > { %6945 = vmatmul.msk.f32.gmra.mxu0 %vm593_vm0, %v579_v38  ;;  %6961 = vmatmul.msk.f32.gmra.mxu1 %vm593_vm0, %v579_v38 }
  0x9f   : > { %6946 = vmatmul.msk.f32.gmra.mxu0 %vm593_vm0, %v580_v53  ;;  %6962 = vmatmul.msk.f32.gmra.mxu1 %vm593_vm0, %v580_v53 }
  0xa7   : > { %6947 = vmatmul.msk.f32.gmra.mxu0 %vm593_vm0, %v581_v3  ;;  %6963 = vmatmul.msk.f32.gmra.mxu1 %vm593_vm0, %v581_v3 }
  0xaf   : > { %6948 = vmatmul.msk.f32.gmra.mxu0 %vm593_vm0, %v582_v15  ;;  %6964 = vmatmul.msk.f32.gmra.mxu1 %vm593_vm0, %v582_v15 }
  0xb7   : > { %6949 = vmatmul.msk.f32.gmra.mxu0 %vm593_vm0, %v583_v16  ;;  %6965 = vmatmul.msk.f32.gmra.mxu1 %vm593_vm0, %v583_v16  ;;  %v1192_v16 = vld [vmem:[#allocation5 + $0xd0] sm:$0xff] }
  0xb8   : > { %1238 = vmatpush.msrb.mxu2 %v1192_v16  ;;  %v1207_v16 = vld [vmem:[#allocation5 + $0x148] sm:$0xff] }
  0xbf   : > { %6950 = vmatmul.msk.f32.gmra.mxu0 %vm593_vm0, %v584_v17  ;;  %6966 = vmatmul.msk.f32.gmra.mxu1 %vm593_vm0, %v584_v17  ;;  %v1227_v17 = vld [vmem:[#allocation5 + $0x1e8] sm:$0xff] }
  0xc0   : > { %1432 = vmatpush.msra.mxu1 %v1227_v17  ;;  %v1204_v17 = vld [vmem:[#allocation5 + $0x130] sm:$0xff] }
  0xc4   : > { %v659_v21 = vpop.f32.mrf.mxu0  ;;  %v724_v22 = vpop.f32.mrf.mxu1 }
  0xc5   : > { %v660_v23 = vadd.f32 %v659_v21, %v9270_v19  ;;  %v725_v24 = vadd.f32 %v724_v22, %v9272_v20 }
  0xc7   : > { %v772_v25 = vmax.f32 %v660_v23, 0.0  ;;  %v773_v26 = vmax.f32 %v725_v24, 0.0  ;;  %v1193_v23 = vld [vmem:[#allocation5 + $0xd8] sm:$0xff] }
  0xc8   : > { %1368 = vmatpush.msra.mxu0 %v1193_v23  ;;  %v1202_v23 = vld [vmem:[#allocation5 + $0x120] sm:$0xff] }
  0xc9   : > { %890 = vmatmul.f32.vlgmr.msra.gmra.mxu2 %v772_v25  ;;  %1020 = vmatmul.f32.vlgmr.msrb.gmra.mxu0 %v772_v25 }
  0xca   : > { %955 = vmatmul.f32.vlgmr.msra.gmra.mxu3 %v773_v26  ;;  %1085 = vmatmul.f32.vlgmr.msrb.gmra.mxu1 %v773_v26 }
  0xcc   : > { %v662_v27 = vpop.f32.mrf.mxu0  ;;  %v727_v28 = vpop.f32.mrf.mxu1 }
  0xcd   : > { %v663_v29 = vadd.f32 %v662_v27, %v9270_v19  ;;  %v728_v30 = vadd.f32 %v727_v28, %v9272_v20  ;;  %v1190_v28 = vld [vmem:[#allocation5 + $0xc0] sm:$0xff] }
  0xce   : > { %1239 = vmatpush.msrb.mxu2 %v1190_v28  ;;  %v1203_v28 = vld [vmem:[#allocation5 + $0x128] sm:$0xff] }
  0xcf   : > { %v774_v31 = vmax.f32 %v663_v29, 0.0  ;;  %v775_v32 = vmax.f32 %v728_v30, 0.0  ;;  %v1225_v29 = vld [vmem:[#allocation5 + $0x1d8] sm:$0xff]  ;;  %v1222_v30 = vld [vmem:[#allocation5 + $0x1c0] sm:$0xff] }
  0xd0   : > { %1433 = vmatpush.msra.mxu1 %v1225_v29  ;;  %1304 = vmatpush.msrb.mxu3 %v1222_v30  ;;  %v1200_v29 = vld [vmem:[#allocation5 + $0x110] sm:$0xff] }
  0xd1   : > { %893 = vmatmul.f32.gmra.mxu2 %v774_v31  ;;  %1023 = vmatmul.f32.gmra.mxu0 %v774_v31 }
  0xd2   : > { %958 = vmatmul.f32.gmra.mxu3 %v775_v32  ;;  %1088 = vmatmul.f32.gmra.mxu1 %v775_v32 }
  0xd4   : > { %v665_v33 = vpop.f32.mrf.mxu0  ;;  %v730_v34 = vpop.f32.mrf.mxu1 }
  0xd5   : > { %v666_v35 = vadd.f32 %v665_v33, %v9270_v19  ;;  %v731_v36 = vadd.f32 %v730_v34, %v9272_v20  ;;  %v1191_v33 = vld [vmem:[#allocation5 + $0xc8] sm:$0xff] }
  0xd6   : > { %1369 = vmatpush.msra.mxu0 %v1191_v33  ;;  %v1223_v34 = vld [vmem:[#allocation5 + $0x1c8] sm:$0xff]  ;;  %v1173_v33 = vld [vmem:[#allocation5 + $0x38] sm:$0xff] }
  0xd7   : > { %v776_v37 = vmax.f32 %v666_v35, 0.0  ;;  %v777_v38 = vmax.f32 %v731_v36, 0.0  ;;  %1434 = vmatpush.msra.mxu1 %v1223_v34 }
  0xd9   : > { %896 = vmatmul.f32.gmra.mxu2 %v776_v37  ;;  %1026 = vmatmul.f32.gmra.mxu0 %v776_v37 }
  0xda   : > { %961 = vmatmul.f32.gmra.mxu3 %v777_v38  ;;  %1091 = vmatmul.f32.gmra.mxu1 %v777_v38 }
  0xdc   : > { %v668_v39 = vpop.f32.mrf.mxu0  ;;  %v733_v40 = vpop.f32.mrf.mxu1 }
  0xdd   : > { %v669_v41 = vadd.f32 %v668_v39, %v9270_v19  ;;  %v734_v42 = vadd.f32 %v733_v40, %v9272_v20  ;;  %v1188_v39 = vld [vmem:[#allocation5 + $0xb0] sm:$0xff] }
  0xde   : > { %v1220_v40 = vld [vmem:[#allocation5 + $0x1b0] sm:$0xff]  ;;  %1240 = vmatpush.msrb.mxu2 %v1188_v39  ;;  %v1171_v39 = vld [vmem:[#allocation5 + $0x28] sm:$0xff] }
  0xdf   : > { %v778_v43 = vmax.f32 %v669_v41, 0.0  ;;  %v779_v44 = vmax.f32 %v734_v42, 0.0  ;;  %v1221_v41 = vld [vmem:[#allocation5 + $0x1b8] sm:$0xff]  ;;  %1305 = vmatpush.msrb.mxu3 %v1220_v40  ;;  %v1218_v42 = vld [vmem:[#allocation5 + $0x1a0] sm:$0xff]  ;;  %v1199_v40 = vld [vmem:[#allocation5 + $0x108] sm:$0xff] }
  0xe0   : > { %1435 = vmatpush.msra.mxu1 %v1221_v41  ;;  %v1168_v41 = vld [vmem:[#allocation5 + $0x10] sm:$0xff] }
  0xe1   : > { %899 = vmatmul.f32.gmra.mxu2 %v778_v43  ;;  %1029 = vmatmul.f32.gmra.mxu0 %v778_v43 }
  0xe2   : > { %964 = vmatmul.f32.gmra.mxu3 %v779_v44  ;;  %1094 = vmatmul.f32.gmra.mxu1 %v779_v44 }
  0xe3   : > { %1306 = vmatpush.msrb.mxu3 %v1218_v42  ;;  %v1169_v42 = vld [vmem:[#allocation5 + $0x18] sm:$0xff] }
  0xe4   : > { %v671_v45 = vpop.f32.mrf.mxu0  ;;  %v736_v46 = vpop.f32.mrf.mxu1 }
  0xe5   : > { %v672_v47 = vadd.f32 %v671_v45, %v9270_v19  ;;  %v737_v48 = vadd.f32 %v736_v46, %v9272_v20  ;;  %v1219_v45 = vld [vmem:[#allocation5 + $0x1a8] sm:$0xff]  ;;  %v1216_v46 = vld [vmem:[#allocation5 + $0x190] sm:$0xff] }
  0xe6   : > { %1436 = vmatpush.msra.mxu1 %v1219_v45  ;;  %1307 = vmatpush.msrb.mxu3 %v1216_v46 }
  0xe7   : > { %v780_v49 = vmax.f32 %v672_v47, 0.0  ;;  %v781_v50 = vmax.f32 %v737_v48, 0.0  ;;  %v1189_v47 = vld [vmem:[#allocation5 + $0xb8] sm:$0xff] }
  0xe8   : > { %v1217_v48 = vld [vmem:[#allocation5 + $0x198] sm:$0xff]  ;;  %1370 = vmatpush.msra.mxu0 %v1189_v47  ;;  %v1166_v47 = vld [vmem:[#allocation5] sm:$0xff] }
  0xe9   : > { %902 = vmatmul.f32.gmra.mxu2 %v780_v49  ;;  %1032 = vmatmul.f32.gmra.mxu0 %v780_v49  ;;  %v1214_v49 = vld [vmem:[#allocation5 + $0x180] sm:$0xff] }
  0xea   : > { %967 = vmatmul.f32.gmra.mxu3 %v781_v50  ;;  %1097 = vmatmul.f32.gmra.mxu1 %v781_v50 }
  0xeb   : > { %1437 = vmatpush.msra.mxu1 %v1217_v48  ;;  %1308 = vmatpush.msrb.mxu3 %v1214_v49  ;;  %v1167_v48 = vld [vmem:[#allocation5 + $0x8] sm:$0xff] }
  0xec   : > { %v674_v51 = vpop.f32.mrf.mxu0  ;;  %v739_v52 = vpop.f32.mrf.mxu1 }
  0xed   : > { %v675_v53 = vadd.f32 %v674_v51, %v9270_v19  ;;  %v740_v54 = vadd.f32 %v739_v52, %v9272_v20  ;;  %v1215_v52 = vld [vmem:[#allocation5 + $0x188] sm:$0xff] }
  0xee   : > { %1438 = vmatpush.msra.mxu1 %v1215_v52 }
  0xef   : > { %v782_v55 = vmax.f32 %v675_v53, 0.0  ;;  %v783_v56 = vmax.f32 %v740_v54, 0.0 }
  0xf0   : > { %1439 = vmatpush.msra.mxu1 %v1213_v62 }
  0xf1   : > { %905 = vmatmul.f32.gmra.mxu2 %v782_v55  ;;  %1035 = vmatmul.f32.gmra.mxu0 %v782_v55  ;;  %v1186_v55 = vld [vmem:[#allocation5 + $0xa0] sm:$0xff] }
  0xf2   : > { %970 = vmatmul.f32.gmra.mxu3 %v783_v56  ;;  %1100 = vmatmul.f32.gmra.mxu1 %v783_v56  ;;  %v1212_v56 = vld [vmem:[#allocation5 + $0x170] sm:$0xff] }
  0xf3   : > { %1241 = vmatpush.msrb.mxu2 %v1186_v55  ;;  %1309 = vmatpush.msrb.mxu3 %v1212_v56 }
  0xf4   : > { %v677_v57 = vpop.f32.mrf.mxu0  ;;  %v742_v58 = vpop.f32.mrf.mxu1 }
  0xf5   : > { %v678_v59 = vadd.f32 %v677_v57, %v9270_v19  ;;  %v743_v60 = vadd.f32 %v742_v58, %v9272_v20  ;;  %v1187_v57 = vld [vmem:[#allocation5 + $0xa8] sm:$0xff]  ;;  %v1184_v58 = vld [vmem:[#allocation5 + $0x90] sm:$0xff] }
  0xf6   : > { %1371 = vmatpush.msra.mxu0 %v1187_v57  ;;  %1242 = vmatpush.msrb.mxu2 %v1184_v58  ;;  %v868_v57 = vld [vmem:[%s13679_s12 + $0x2] sm:$0x3] }
  0xf7   : > { %v784_v63 = vmax.f32 %v678_v59, 0.0  ;;  %v785_v0 = vmax.f32 %v743_v60, 0.0  ;;  %v9309_v58 = vperm.slane %v868_v57, 1 }
  0xf8   : > { %1372 = vmatpush.msra.mxu0 %v1185_v61 }
  0xf9   : > { %908 = vmatmul.f32.gmra.mxu2 %v784_v63  ;;  %1038 = vmatmul.f32.gmra.mxu0 %v784_v63  ;;  %v1210_v63 = vld [vmem:[#allocation5 + $0x160] sm:$0xff] }
  0xfa   : > { %973 = vmatmul.f32.gmra.mxu3 %v785_v0  ;;  %1103 = vmatmul.f32.gmra.mxu1 %v785_v0  ;;  %v1182_v0 = vld [vmem:[#allocation5 + $0x80] sm:$0xff] }
  0xfb   : > { %1310 = vmatpush.msrb.mxu3 %v1210_v63  ;;  %1243 = vmatpush.msrb.mxu2 %v1182_v0 }
  0xfc   : > { %v680_v2 = vpop.f32.mrf.mxu0  ;;  %v745_v3 = vpop.f32.mrf.mxu1  ;;  %1373 = vmatpush.msra.mxu0 %v1183_v1 }
  0xfd   : > { %v681_v4 = vadd.f32 %v680_v2, %v9270_v19  ;;  %v746_v5 = vadd.f32 %v745_v3, %v9272_v20  ;;  %v1211_v2 = vld [vmem:[#allocation5 + $0x168] sm:$0xff]  ;;  %v1208_v3 = vld [vmem:[#allocation5 + $0x150] sm:$0xff] }
  0xfe   : > { %1440 = vmatpush.msra.mxu1 %v1211_v2  ;;  %1311 = vmatpush.msrb.mxu3 %v1208_v3 }
  0xff   : > { %v786_v9 = vmax.f32 %v681_v4, 0.0  ;;  %v787_v10 = vmax.f32 %v746_v5, 0.0  ;;  %v1180_v4 = vld [vmem:[#allocation5 + $0x70] sm:$0xff]  ;;  %v1181_v5 = vld [vmem:[#allocation5 + $0x78] sm:$0xff] }
 0x100   : > { %1244 = vmatpush.msrb.mxu2 %v1180_v4  ;;  %1374 = vmatpush.msra.mxu0 %v1181_v5 }
 0x101   : > { %911 = vmatmul.f32.gmra.mxu2 %v786_v9  ;;  %1041 = vmatmul.f32.gmra.mxu0 %v786_v9  ;;  %v1206_v9 = vld [vmem:[#allocation5 + $0x140] sm:$0xff] }
 0x102   : > { %976 = vmatmul.f32.gmra.mxu3 %v787_v10  ;;  %1106 = vmatmul.f32.gmra.mxu1 %v787_v10 }
 0x103   : > { %1441 = vmatpush.msra.mxu1 %v1209_v8  ;;  %1312 = vmatpush.msrb.mxu3 %v1206_v9 }
 0x104   : > { %v683_v12 = vpop.f32.mrf.mxu0  ;;  %v748_v13 = vpop.f32.mrf.mxu1 }
 0x105   : > { %v684_v14 = vadd.f32 %v683_v12, %v9270_v19  ;;  %v749_v15 = vadd.f32 %v748_v13, %v9272_v20  ;;  %v1178_v12 = vld [vmem:[#allocation5 + $0x60] sm:$0xff]  ;;  %v1179_v13 = vld [vmem:[#allocation5 + $0x68] sm:$0xff]  ;;  %1442 = vmatpush.msra.mxu1 %v1207_v16  ;;  %1313 = vmatpush.msrb.mxu3 %v1204_v17 }
 0x106   : > { %1245 = vmatpush.msrb.mxu2 %v1178_v12  ;;  %1375 = vmatpush.msra.mxu0 %v1179_v13 }
 0x107   : > { %v788_v21 = vmax.f32 %v684_v14, 0.0  ;;  %v789_v22 = vmax.f32 %v749_v15, 0.0  ;;  %1314 = vmatpush.msrb.mxu3 %v1202_v23 }
 0x108   : > { %1246 = vmatpush.msrb.mxu2 %v1176_v18 }
 0x109   : > { %914 = vmatmul.f32.gmra.mxu2 %v788_v21  ;;  %1044 = vmatmul.f32.gmra.mxu0 %v788_v21  ;;  %v1177_v21 = vld [vmem:[#allocation5 + $0x58] sm:$0xff] }
 0x10a   : > { %979 = vmatmul.f32.gmra.mxu3 %v789_v22  ;;  %1109 = vmatmul.f32.gmra.mxu1 %v789_v22  ;;  %v1205_v22 = vld [vmem:[#allocation5 + $0x138] sm:$0xff] }
 0x10b   : > { %1376 = vmatpush.msra.mxu0 %v1177_v21  ;;  %1443 = vmatpush.msra.mxu1 %v1205_v22 }
 0x10c   : > { %v686_v24 = vpop.f32.mrf.mxu0  ;;  %v751_v25 = vpop.f32.mrf.mxu1  ;;  %1315 = vmatpush.msrb.mxu3 %v1200_v29 }
 0x10d   : > { %v687_v26 = vadd.f32 %v686_v24, %v9270_v19  ;;  %v752_v27 = vadd.f32 %v751_v25, %v9272_v20  ;;  %v1174_v24 = vld [vmem:[#allocation5 + $0x40] sm:$0xff]  ;;  %v1175_v25 = vld [vmem:[#allocation5 + $0x48] sm:$0xff]  ;;  %1444 = vmatpush.msra.mxu1 %v1203_v28 }
 0x10e   : > { %1247 = vmatpush.msrb.mxu2 %v1174_v24  ;;  %1377 = vmatpush.msra.mxu0 %v1175_v25 }
 0x10f   : > { %v790_v31 = vmax.f32 %v687_v26, 0.0  ;;  %v791_v32 = vmax.f32 %v752_v27, 0.0 }
 0x110   : > { %1378 = vmatpush.msra.mxu0 %v1173_v33 }
 0x111   : > { %917 = vmatmul.f32.gmra.mxu2 %v790_v31  ;;  %1047 = vmatmul.f32.gmra.mxu0 %v790_v31 }
 0x112   : > { %982 = vmatmul.f32.gmra.mxu3 %v791_v32  ;;  %1112 = vmatmul.f32.gmra.mxu1 %v791_v32  ;;  %v1172_v32 = vld [vmem:[#allocation5 + $0x30] sm:$0xff] }
 0x113   : > { %1248 = vmatpush.msrb.mxu2 %v1172_v32  ;;  %1379 = vmatpush.msra.mxu0 %v1171_v39 }
 0x114   : > { %v689_v35 = vpop.f32.mrf.mxu0  ;;  %v754_v36 = vpop.f32.mrf.mxu1 }
 0x115   : > { %v690_v37 = vadd.f32 %v689_v35, %v9270_v19  ;;  %v755_v38 = vadd.f32 %v754_v36, %v9272_v20  ;;  %v1201_v36 = vld [vmem:[#allocation5 + $0x118] sm:$0xff]  ;;  %1380 = vmatpush.msra.mxu0 %v1169_v42 }
 0x116   : > { %1445 = vmatpush.msra.mxu1 %v1201_v36 }
 0x117   : > { %v792_v43 = vmax.f32 %v690_v37, 0.0  ;;  %v793_v44 = vmax.f32 %v755_v38, 0.0  ;;  %v1198_v37 = vld [vmem:[#allocation5 + $0x100] sm:$0xff]  ;;  %1381 = vmatpush.msra.mxu0 %v1167_v48 }
 0x118   : > { %v1170_v38 = vld [vmem:[#allocation5 + $0x20] sm:$0xff]  ;;  %1316 = vmatpush.msrb.mxu3 %v1198_v37  ;;  %1446 = vmatpush.msra.mxu1 %v1199_v40 }
 0x119   : > { %920 = vmatmul.f32.gmra.mxu2 %v792_v43  ;;  %1050 = vmatmul.f32.gmra.mxu0 %v792_v43 }
 0x11a   : > { %985 = vmatmul.f32.gmra.mxu3 %v793_v44  ;;  %1115 = vmatmul.f32.gmra.mxu1 %v793_v44 }
 0x11b   : > { %1249 = vmatpush.msrb.mxu2 %v1170_v38 }
 0x11c   : > { %v692_v50 = vpop.f32.mrf.mxu0  ;;  %v757_v51 = vpop.f32.mrf.mxu1 }
 0x11d   : > { %v693_v53 = vadd.f32 %v692_v50, %v9270_v19  ;;  %v758_v54 = vadd.f32 %v757_v51, %v9272_v20  ;;  %1250 = vmatpush.msrb.mxu2 %v1168_v41 }
 0x11f   : > { %v794_v59 = vmax.f32 %v693_v53, 0.0  ;;  %v795_v60 = vmax.f32 %v758_v54, 0.0  ;;  %1251 = vmatpush.msrb.mxu2 %v1166_v47 }
 0x121   : > { %923 = vmatmul.f32.gmra.mxu2 %v794_v59  ;;  %1053 = vmatmul.f32.gmra.mxu0 %v794_v59 }
 0x122   : > { %988 = vmatmul.f32.gmra.mxu3 %v795_v60  ;;  %1118 = vmatmul.f32.gmra.mxu1 %v795_v60 }
 0x124   : > { %v695_v6 = vpop.f32.mrf.mxu0  ;;  %v760_v7 = vpop.f32.mrf.mxu1 }
 0x125   : > { %v696_v10 = vadd.f32 %v695_v6, %v9270_v19  ;;  %v761_v11 = vadd.f32 %v760_v7, %v9272_v20 }
 0x127   : > { %v796_v14 = vmax.f32 %v696_v10, 0.0  ;;  %v797_v15 = vmax.f32 %v761_v11, 0.0 }
 0x129   : > { %926 = vmatmul.f32.gmra.mxu2 %v796_v14  ;;  %1056 = vmatmul.f32.gmra.mxu0 %v796_v14 }
 0x12a   : > { %991 = vmatmul.f32.gmra.mxu3 %v797_v15  ;;  %1121 = vmatmul.f32.gmra.mxu1 %v797_v15 }
 0x12c   : > { %v698_v26 = vpop.f32.mrf.mxu0  ;;  %v763_v27 = vpop.f32.mrf.mxu1 }
 0x12d   : > { %v699_v30 = vadd.f32 %v698_v26, %v9270_v19  ;;  %v764_v31 = vadd.f32 %v763_v27, %v9272_v20 }
 0x12f   : > { %v798_v34 = vmax.f32 %v699_v30, 0.0  ;;  %v799_v35 = vmax.f32 %v764_v31, 0.0 }
 0x131   : > { %929 = vmatmul.f32.gmra.mxu2 %v798_v34  ;;  %1059 = vmatmul.f32.gmra.mxu0 %v798_v34 }
 0x132   : > { %994 = vmatmul.f32.gmra.mxu3 %v799_v35  ;;  %1124 = vmatmul.f32.gmra.mxu1 %v799_v35 }
 0x134   : > { %v701_v43 = vpop.f32.mrf.mxu0  ;;  %v766_v44 = vpop.f32.mrf.mxu1 }
 0x135   : > { %v702_v45 = vadd.f32 %v701_v43, %v9270_v19  ;;  %v767_v46 = vadd.f32 %v766_v44, %v9272_v20 }
 0x137   : > { %v800_v49 = vmax.f32 %v702_v45, 0.0  ;;  %v801_v50 = vmax.f32 %v767_v46, 0.0 }
 0x139   : > { %932 = vmatmul.f32.gmra.mxu2 %v800_v49  ;;  %1062 = vmatmul.f32.gmra.mxu0 %v800_v49 }
 0x13a   : > { %997 = vmatmul.f32.gmra.mxu3 %v801_v50  ;;  %1127 = vmatmul.f32.gmra.mxu1 %v801_v50 }
 0x13c   : > { %v704_v51 = vpop.f32.mrf.mxu0  ;;  %v769_v52 = vpop.f32.mrf.mxu1 }
 0x13d   : > { %v705_v53 = vadd.f32 %v704_v51, %v9270_v19  ;;  %v770_v54 = vadd.f32 %v769_v52, %v9272_v20  ;;  %v9312_v19 = vperm.slane %v868_v57, 0 }
 0x13f   : > { %v802_v55 = vmax.f32 %v705_v53, 0.0  ;;  %v803_v56 = vmax.f32 %v770_v54, 0.0 }
 0x141   : > { %935 = vmatmul.f32.gmra.mxu2 %v802_v55  ;;  %1065 = vmatmul.f32.gmra.mxu0 %v802_v55 }
 0x142   : > { %1000 = vmatmul.f32.gmra.mxu3 %v803_v56  ;;  %1130 = vmatmul.f32.gmra.mxu1 %v803_v56 }
 0x146   : > { %v1021_v59 = vpop.f32.mrf.mxu0 }
 0x147   : > { %v1022_v60 = vadd.f32 %v1021_v59, %v9309_v58  ;;  %v1086_v61 = vpop.f32.mrf.mxu1 }
 0x149   : > { %v1087_v62 = vadd.f32 %v1086_v61, %v1022_v60 }
 0x14b   : > { %v1135_v20 = vmax.f32 %v1087_v62, 0.0 }
 0x14c   : > { %v891_v63 = vpop.f32.mrf.mxu2 }
 0x14d   : > { %v892_v0 = vadd.f32 %v891_v63, %v9312_v19  ;;  %1317 = vmatmul.f32.vlgmr.msrb.gmra.mxu3 %v1135_v20  ;;  %1447 = vmatmul.f32.vlgmr.msra.gmra.mxu1 %v1135_v20  ;;  %v956_v1 = vpop.f32.mrf.mxu3 }
 0x14e   : > { %v1024_v2 = vpop.f32.mrf.mxu0 }
 0x14f   : > { %v957_v3 = vadd.f32 %v956_v1, %v892_v0  ;;  %v1025_v4 = vadd.f32 %v1024_v2, %v9309_v58  ;;  %v1089_v5 = vpop.f32.mrf.mxu1 }
 0x151   : > { %v1134_v6 = vmax.f32 %v957_v3, 0.0  ;;  %v1090_v7 = vadd.f32 %v1089_v5, %v1025_v4 }
 0x153   : > { %1252 = vmatmul.f32.vlgmr.msrb.gmra.mxu2 %v1134_v6  ;;  %1382 = vmatmul.f32.vlgmr.msra.gmra.mxu0 %v1134_v6  ;;  %v1137_v8 = vmax.f32 %v1090_v7, 0.0 }
 0x154   : > { %v894_v9 = vpop.f32.mrf.mxu2 }
 0x155   : > { %v895_v10 = vadd.f32 %v894_v9, %v9312_v19  ;;  %1320 = vmatmul.f32.gmra.mxu3 %v1137_v8  ;;  %1450 = vmatmul.f32.gmra.mxu1 %v1137_v8  ;;  %v959_v11 = vpop.f32.mrf.mxu3 }
 0x156   : > { %v1027_v12 = vpop.f32.mrf.mxu0 }
 0x157   : > { %v960_v13 = vadd.f32 %v959_v11, %v895_v10  ;;  %v1028_v14 = vadd.f32 %v1027_v12, %v9309_v58  ;;  %v1092_v15 = vpop.f32.mrf.mxu1  ;;  %v1543_v10 = vld [vmem:[%s13671_s4 + $0x78] sm:$0xff] }
 0x158   : > { %v1559_v11 = vld [vmem:[%s13671_s4 + $0xf8] sm:$0xff]  ;;  %1560 = vmatpush.msrb.mxu1 %v1543_v10  ;;  %7273 = vmatpush.msra.mxu2 %v1543_v10  ;;  %v1550_v10 = vld [vmem:[%s13671_s4 + $0xb0] sm:$0xff] }
 0x159   : > { %v1093_v16 = vadd.f32 %v1092_v15, %v1028_v14  ;;  %v1136_v17 = vmax.f32 %v960_v13, 0.0  ;;  %1625 = vmatpush.msrb.mxu0 %v1559_v11  ;;  %7289 = vmatpush.msra.mxu3 %v1559_v11 }
 0x15b   : > { %1255 = vmatmul.f32.gmra.mxu2 %v1136_v17  ;;  %1385 = vmatmul.f32.gmra.mxu0 %v1136_v17  ;;  %v1139_v18 = vmax.f32 %v1093_v16, 0.0 }
 0x15c   : > { %v897_v21 = vpop.f32.mrf.mxu2 }
 0x15d   : > { %v898_v22 = vadd.f32 %v897_v21, %v9312_v19  ;;  %1323 = vmatmul.f32.gmra.mxu3 %v1139_v18  ;;  %1453 = vmatmul.f32.gmra.mxu1 %v1139_v18  ;;  %v962_v23 = vpop.f32.mrf.mxu3 }
 0x15e   : > { %v1030_v24 = vpop.f32.mrf.mxu0 }
 0x15f   : > { %v963_v25 = vadd.f32 %v962_v23, %v898_v22  ;;  %v1031_v26 = vadd.f32 %v1030_v24, %v9309_v58  ;;  %v1095_v27 = vpop.f32.mrf.mxu1  ;;  %v1542_v24 = vld [vmem:[%s13671_s4 + $0x70] sm:$0xff] }
 0x160   : > { %1561 = vmatpush.msrb.mxu1 %v1542_v24  ;;  %7274 = vmatpush.msra.mxu2 %v1542_v24 }
 0x161   : > { %v1096_v28 = vadd.f32 %v1095_v27, %v1031_v26  ;;  %v1138_v29 = vmax.f32 %v963_v25, 0.0  ;;  %v1558_v25 = vld [vmem:[%s13671_s4 + $0xf0] sm:$0xff] }
 0x162   : > { %1626 = vmatpush.msrb.mxu0 %v1558_v25  ;;  %7290 = vmatpush.msra.mxu3 %v1558_v25  ;;  %v1534_v25 = vld [vmem:[%s13671_s4 + $0x30] sm:$0xff] }
 0x163   : > { %1258 = vmatmul.f32.gmra.mxu2 %v1138_v29  ;;  %1388 = vmatmul.f32.gmra.mxu0 %v1138_v29  ;;  %v1141_v30 = vmax.f32 %v1096_v28, 0.0 }
 0x164   : > { %v900_v31 = vpop.f32.mrf.mxu2 }
 0x165   : > { %v901_v32 = vadd.f32 %v900_v31, %v9312_v19  ;;  %1326 = vmatmul.f32.gmra.mxu3 %v1141_v30  ;;  %1456 = vmatmul.f32.gmra.mxu1 %v1141_v30  ;;  %v965_v33 = vpop.f32.mrf.mxu3 }
 0x166   : > { %v1033_v34 = vpop.f32.mrf.mxu0 }
 0x167   : > { %v966_v35 = vadd.f32 %v965_v33, %v901_v32  ;;  %v1098_v36 = vpop.f32.mrf.mxu1  ;;  %v1034_v37 = vadd.f32 %v1033_v34, %v9309_v58 }
 0x169   : > { %v1140_v38 = vmax.f32 %v966_v35, 0.0  ;;  %v1099_v39 = vadd.f32 %v1098_v36, %v1034_v37  ;;  %v1541_v36 = vld [vmem:[%s13671_s4 + $0x68] sm:$0xff] }
 0x16a   : > { %v1557_v37 = vld [vmem:[%s13671_s4 + $0xe8] sm:$0xff]  ;;  %1562 = vmatpush.msrb.mxu1 %v1541_v36  ;;  %7275 = vmatpush.msra.mxu2 %v1541_v36 }
 0x16b   : > { %1261 = vmatmul.f32.gmra.mxu2 %v1140_v38  ;;  %1391 = vmatmul.f32.gmra.mxu0 %v1140_v38  ;;  %v1143_v40 = vmax.f32 %v1099_v39, 0.0 }
 0x16c   : > { %v903_v41 = vpop.f32.mrf.mxu2  ;;  %1627 = vmatpush.msrb.mxu0 %v1557_v37  ;;  %7291 = vmatpush.msra.mxu3 %v1557_v37  ;;  %v1531_v37 = vld [vmem:[%s13671_s4 + $0x18] sm:$0xff] }
 0x16d   : > { %v904_v42 = vadd.f32 %v903_v41, %v9312_v19  ;;  %v968_v43 = vpop.f32.mrf.mxu3  ;;  %1329 = vmatmul.f32.gmra.mxu3 %v1143_v40  ;;  %1459 = vmatmul.f32.gmra.mxu1 %v1143_v40 }
 0x16e   : > { %v1036_v44 = vpop.f32.mrf.mxu0 }
 0x16f   : > { %v969_v45 = vadd.f32 %v968_v43, %v904_v42  ;;  %v1101_v46 = vpop.f32.mrf.mxu1  ;;  %v1037_v47 = vadd.f32 %v1036_v44, %v9309_v58 }
 0x171   : > { %v1142_v48 = vmax.f32 %v969_v45, 0.0  ;;  %v1102_v49 = vadd.f32 %v1101_v46, %v1037_v47 }
 0x173   : > { %1264 = vmatmul.f32.gmra.mxu2 %v1142_v48  ;;  %1394 = vmatmul.f32.gmra.mxu0 %v1142_v48  ;;  %v1145_v50 = vmax.f32 %v1102_v49, 0.0  ;;  %v1540_v48 = vld [vmem:[%s13671_s4 + $0x60] sm:$0xff] }
 0x174   : > { %v906_v51 = vpop.f32.mrf.mxu2  ;;  %v1556_v49 = vld [vmem:[%s13671_s4 + $0xe0] sm:$0xff]  ;;  %1563 = vmatpush.msrb.mxu1 %v1540_v48  ;;  %7276 = vmatpush.msra.mxu2 %v1540_v48 }
 0x175   : > { %v907_v52 = vadd.f32 %v906_v51, %v9312_v19  ;;  %v971_v53 = vpop.f32.mrf.mxu3  ;;  %1332 = vmatmul.f32.gmra.mxu3 %v1145_v50  ;;  %1462 = vmatmul.f32.gmra.mxu1 %v1145_v50  ;;  %v1528_v48 = vld [vmem:[%s13671_s4] sm:$0xff] }
 0x176   : > { %v1039_v54 = vpop.f32.mrf.mxu0  ;;  %1628 = vmatpush.msrb.mxu0 %v1556_v49  ;;  %7292 = vmatpush.msra.mxu3 %v1556_v49 }
 0x177   : > { %v972_v55 = vadd.f32 %v971_v53, %v907_v52  ;;  %v1104_v56 = vpop.f32.mrf.mxu1  ;;  %v1040_v57 = vadd.f32 %v1039_v54, %v9309_v58  ;;  %v1555_v54 = vld [vmem:[%s13671_s4 + $0xd8] sm:$0xff] }
 0x178   : > { %1629 = vmatpush.msrb.mxu0 %v1555_v54  ;;  %7293 = vmatpush.msra.mxu3 %v1555_v54 }
 0x179   : > { %v1144_v59 = vmax.f32 %v972_v55, 0.0  ;;  %v1105_v60 = vadd.f32 %v1104_v56, %v1040_v57  ;;  %v1554_v57 = vld [vmem:[%s13671_s4 + $0xd0] sm:$0xff] }
 0x17a   : > { %1630 = vmatpush.msrb.mxu0 %v1554_v57  ;;  %7294 = vmatpush.msra.mxu3 %v1554_v57 }
 0x17b   : > { %1267 = vmatmul.f32.gmra.mxu2 %v1144_v59  ;;  %1397 = vmatmul.f32.gmra.mxu0 %v1144_v59  ;;  %v1147_v61 = vmax.f32 %v1105_v60, 0.0  ;;  %v1553_v60 = vld [vmem:[%s13671_s4 + $0xc8] sm:$0xff] }
 0x17c   : > { %v909_v62 = vpop.f32.mrf.mxu2  ;;  %1631 = vmatpush.msrb.mxu0 %v1553_v60  ;;  %7295 = vmatpush.msra.mxu3 %v1553_v60 }
 0x17d   : > { %v910_v20 = vadd.f32 %v909_v62, %v9312_v19  ;;  %v974_v63 = vpop.f32.mrf.mxu3  ;;  %1335 = vmatmul.f32.gmra.mxu3 %v1147_v61  ;;  %1465 = vmatmul.f32.gmra.mxu1 %v1147_v61 }
 0x17e   : > { %v1042_v0 = vpop.f32.mrf.mxu0 }
 0x17f   : > { %v975_v1 = vadd.f32 %v974_v63, %v910_v20  ;;  %v1107_v2 = vpop.f32.mrf.mxu1  ;;  %v1043_v3 = vadd.f32 %v1042_v0, %v9309_v58  ;;  %v1539_v63 = vld [vmem:[%s13671_s4 + $0x58] sm:$0xff]  ;;  %v1552_v0 = vld [vmem:[%s13671_s4 + $0xc0] sm:$0xff] }
 0x180   : > { %1564 = vmatpush.msrb.mxu1 %v1539_v63  ;;  %7277 = vmatpush.msra.mxu2 %v1539_v63 }
 0x181   : > { %v1146_v4 = vmax.f32 %v975_v1, 0.0  ;;  %v1108_v5 = vadd.f32 %v1107_v2, %v1043_v3  ;;  %1632 = vmatpush.msrb.mxu0 %v1552_v0  ;;  %7296 = vmatpush.msra.mxu3 %v1552_v0  ;;  %v1230_v0 = vld [vmem:[%s13679_s12 + $0x4] sm:$0x3] }
 0x183   : > { %1270 = vmatmul.f32.gmra.mxu2 %v1146_v4  ;;  %1400 = vmatmul.f32.gmra.mxu0 %v1146_v4  ;;  %v1149_v6 = vmax.f32 %v1108_v5, 0.0  ;;  %v1538_v5 = vld [vmem:[%s13671_s4 + $0x50] sm:$0xff] }
 0x184   : > { %v912_v7 = vpop.f32.mrf.mxu2  ;;  %1565 = vmatpush.msrb.mxu1 %v1538_v5  ;;  %7278 = vmatpush.msra.mxu2 %v1538_v5 }
 0x185   : > { %v913_v8 = vadd.f32 %v912_v7, %v9312_v19  ;;  %v977_v9 = vpop.f32.mrf.mxu3  ;;  %1338 = vmatmul.f32.gmra.mxu3 %v1149_v6  ;;  %1468 = vmatmul.f32.gmra.mxu1 %v1149_v6  ;;  %v1551_v6 = vld [vmem:[%s13671_s4 + $0xb8] sm:$0xff] }
 0x186   : > { %v1045_v12 = vpop.f32.mrf.mxu0  ;;  %1633 = vmatpush.msrb.mxu0 %v1551_v6  ;;  %7297 = vmatpush.msra.mxu3 %v1551_v6  ;;  %v9447_v6 = vperm.slane %v1230_v0, 0 }
 0x187   : > { %v978_v13 = vadd.f32 %v977_v9, %v913_v8  ;;  %v1110_v14 = vpop.f32.mrf.mxu1  ;;  %v1046_v15 = vadd.f32 %v1045_v12, %v9309_v58  ;;  %v1537_v9 = vld [vmem:[%s13671_s4 + $0x48] sm:$0xff]  ;;  %v1536_v12 = vld [vmem:[%s13671_s4 + $0x40] sm:$0xff] }
 0x188   : > { %1566 = vmatpush.msrb.mxu1 %v1537_v9  ;;  %7279 = vmatpush.msra.mxu2 %v1537_v9 }
 0x189   : > { %v1148_v16 = vmax.f32 %v978_v13, 0.0  ;;  %v1111_v17 = vadd.f32 %v1110_v14, %v1046_v15  ;;  %v1549_v13 = vld [vmem:[%s13671_s4 + $0xa8] sm:$0xff]  ;;  %v1535_v14 = vld [vmem:[%s13671_s4 + $0x38] sm:$0xff]  ;;  %1634 = vmatpush.msrb.mxu0 %v1550_v10  ;;  %7298 = vmatpush.msra.mxu3 %v1550_v10 }
 0x18a   : > { %1567 = vmatpush.msrb.mxu1 %v1536_v12  ;;  %7280 = vmatpush.msra.mxu2 %v1536_v12 }
 0x18b   : > { %1273 = vmatmul.f32.gmra.mxu2 %v1148_v16  ;;  %1403 = vmatmul.f32.gmra.mxu0 %v1148_v16  ;;  %v1151_v18 = vmax.f32 %v1111_v17, 0.0 }
 0x18c   : > { %v915_v21 = vpop.f32.mrf.mxu2  ;;  %1635 = vmatpush.msrb.mxu0 %v1549_v13  ;;  %1568 = vmatpush.msrb.mxu1 %v1535_v14 }
 0x18d   : > { %v916_v22 = vadd.f32 %v915_v21, %v9312_v19  ;;  %v980_v23 = vpop.f32.mrf.mxu3  ;;  %1341 = vmatmul.f32.gmra.mxu3 %v1151_v18  ;;  %1471 = vmatmul.f32.gmra.mxu1 %v1151_v18  ;;  %v1548_v18 = vld [vmem:[%s13671_s4 + $0xa0] sm:$0xff] }
 0x18e   : > { %v1048_v26 = vpop.f32.mrf.mxu0  ;;  %1636 = vmatpush.msrb.mxu0 %v1548_v18  ;;  %1569 = vmatpush.msrb.mxu1 %v1534_v25 }
 0x18f   : > { %v981_v27 = vadd.f32 %v980_v23, %v916_v22  ;;  %v1113_v28 = vpop.f32.mrf.mxu1  ;;  %v1049_v29 = vadd.f32 %v1048_v26, %v9309_v58  ;;  %v1547_v26 = vld [vmem:[%s13671_s4 + $0x98] sm:$0xff]  ;;  %7281 = vmatpush.msra.mxu2 %v1535_v14  ;;  %7299 = vmatpush.msra.mxu3 %v1549_v13 }
 0x190   : > { %1637 = vmatpush.msrb.mxu0 %v1547_v26 }
 0x191   : > { %v1150_v30 = vmax.f32 %v981_v27, 0.0  ;;  %v1114_v31 = vadd.f32 %v1113_v28, %v1049_v29  ;;  %v1533_v29 = vld [vmem:[%s13671_s4 + $0x28] sm:$0xff]  ;;  %7282 = vmatpush.msra.mxu2 %v1534_v25  ;;  %7300 = vmatpush.msra.mxu3 %v1548_v18 }
 0x192   : > { %1570 = vmatpush.msrb.mxu1 %v1533_v29 }
 0x193   : > { %1276 = vmatmul.f32.gmra.mxu2 %v1150_v30  ;;  %1406 = vmatmul.f32.gmra.mxu0 %v1150_v30  ;;  %v1153_v32 = vmax.f32 %v1114_v31, 0.0  ;;  %v1546_v30 = vld [vmem:[%s13671_s4 + $0x90] sm:$0xff] }
 0x194   : > { %v918_v33 = vpop.f32.mrf.mxu2  ;;  %1638 = vmatpush.msrb.mxu0 %v1546_v30  ;;  %7283 = vmatpush.msra.mxu2 %v1533_v29 }
 0x195   : > { %v919_v34 = vadd.f32 %v918_v33, %v9312_v19  ;;  %v983_v35 = vpop.f32.mrf.mxu3  ;;  %1344 = vmatmul.f32.gmra.mxu3 %v1153_v32  ;;  %1474 = vmatmul.f32.gmra.mxu1 %v1153_v32  ;;  %v1532_v32 = vld [vmem:[%s13671_s4 + $0x20] sm:$0xff]  ;;  %v1545_v33 = vld [vmem:[%s13671_s4 + $0x88] sm:$0xff] }
 0x196   : > { %v1051_v38 = vpop.f32.mrf.mxu0  ;;  %1571 = vmatpush.msrb.mxu1 %v1532_v32  ;;  %1639 = vmatpush.msrb.mxu0 %v1545_v33 }
 0x197   : > { %v984_v39 = vadd.f32 %v983_v35, %v919_v34  ;;  %v1116_v40 = vpop.f32.mrf.mxu1  ;;  %v1052_v41 = vadd.f32 %v1051_v38, %v9309_v58  ;;  %v1544_v38 = vld [vmem:[%s13671_s4 + $0x80] sm:$0xff]  ;;  %7301 = vmatpush.msra.mxu3 %v1547_v26  ;;  %7284 = vmatpush.msra.mxu2 %v1532_v32 }
 0x198   : > { %1572 = vmatpush.msrb.mxu1 %v1531_v37  ;;  %1640 = vmatpush.msrb.mxu0 %v1544_v38 }
 0x199   : > { %v1152_v42 = vmax.f32 %v984_v39, 0.0  ;;  %v1117_v43 = vadd.f32 %v1116_v40, %v1052_v41  ;;  %7302 = vmatpush.msra.mxu3 %v1546_v30  ;;  %7285 = vmatpush.msra.mxu2 %v1531_v37 }
 0x19b   : > { %1279 = vmatmul.f32.gmra.mxu2 %v1152_v42  ;;  %1409 = vmatmul.f32.gmra.mxu0 %v1152_v42  ;;  %v1155_v44 = vmax.f32 %v1117_v43, 0.0  ;;  %v1530_v43 = vld [vmem:[%s13671_s4 + $0x10] sm:$0xff] }
 0x19c   : > { %v921_v45 = vpop.f32.mrf.mxu2  ;;  %1573 = vmatpush.msrb.mxu1 %v1530_v43  ;;  %7303 = vmatpush.msra.mxu3 %v1545_v33 }
 0x19d   : > { %v922_v46 = vadd.f32 %v921_v45, %v9312_v19  ;;  %v986_v47 = vpop.f32.mrf.mxu3  ;;  %1347 = vmatmul.f32.gmra.mxu3 %v1155_v44  ;;  %1477 = vmatmul.f32.gmra.mxu1 %v1155_v44 }
 0x19e   : > { %v1054_v50 = vpop.f32.mrf.mxu0  ;;  %7304 = vmatpush.msra.mxu3 %v1544_v38  ;;  %7286 = vmatpush.msra.mxu2 %v1530_v43 }
 0x19f   : > { %v987_v51 = vadd.f32 %v986_v47, %v922_v46  ;;  %v1119_v52 = vpop.f32.mrf.mxu1  ;;  %v1055_v53 = vadd.f32 %v1054_v50, %v9309_v58  ;;  %v1529_v46 = vld [vmem:[%s13671_s4 + $0x8] sm:$0xff] }
 0x1a0   : > { %1574 = vmatpush.msrb.mxu1 %v1529_v46  ;;  %7287 = vmatpush.msra.mxu2 %v1529_v46 }
 0x1a1   : > { %v1154_v55 = vmax.f32 %v987_v51, 0.0  ;;  %v1120_v56 = vadd.f32 %v1119_v52, %v1055_v53 }
 0x1a2   : > { %1575 = vmatpush.msrb.mxu1 %v1528_v48  ;;  %7288 = vmatpush.msra.mxu2 %v1528_v48 }
 0x1a3   : > { %1282 = vmatmul.f32.gmra.mxu2 %v1154_v55  ;;  %1412 = vmatmul.f32.gmra.mxu0 %v1154_v55  ;;  %v1157_v59 = vmax.f32 %v1120_v56, 0.0 }
 0x1a4   : > { %v924_v61 = vpop.f32.mrf.mxu2 }
 0x1a5   : > { %v925_v62 = vadd.f32 %v924_v61, %v9312_v19  ;;  %v989_v20 = vpop.f32.mrf.mxu3  ;;  %1350 = vmatmul.f32.gmra.mxu3 %v1157_v59  ;;  %1480 = vmatmul.f32.gmra.mxu1 %v1157_v59 }
 0x1a6   : > { %v1057_v1 = vpop.f32.mrf.mxu0 }
 0x1a7   : > { %v990_v2 = vadd.f32 %v989_v20, %v925_v62  ;;  %v1122_v3 = vpop.f32.mrf.mxu1  ;;  %v1058_v4 = vadd.f32 %v1057_v1, %v9309_v58  ;;  %v9444_v1 = vperm.slane %v1230_v0, 1 }
 0x1a9   : > { %v1156_v7 = vmax.f32 %v990_v2, 0.0  ;;  %v1123_v8 = vadd.f32 %v1122_v3, %v1058_v4 }
 0x1ab   : > { %1285 = vmatmul.f32.gmra.mxu2 %v1156_v7  ;;  %1415 = vmatmul.f32.gmra.mxu0 %v1156_v7  ;;  %v1159_v11 = vmax.f32 %v1123_v8, 0.0 }
 0x1ac   : > { %v927_v15 = vpop.f32.mrf.mxu2 }
 0x1ad   : > { %v928_v16 = vadd.f32 %v927_v15, %v9312_v19  ;;  %v992_v17 = vpop.f32.mrf.mxu3  ;;  %1353 = vmatmul.f32.gmra.mxu3 %v1159_v11  ;;  %1483 = vmatmul.f32.gmra.mxu1 %v1159_v11 }
 0x1ae   : > { %v1060_v21 = vpop.f32.mrf.mxu0 }
 0x1af   : > { %v993_v22 = vadd.f32 %v992_v17, %v928_v16  ;;  %v1125_v23 = vpop.f32.mrf.mxu1  ;;  %v1061_v24 = vadd.f32 %v1060_v21, %v9309_v58 }
 0x1b1   : > { %v1158_v27 = vmax.f32 %v993_v22, 0.0  ;;  %v1126_v28 = vadd.f32 %v1125_v23, %v1061_v24 }
 0x1b3   : > { %1288 = vmatmul.f32.gmra.mxu2 %v1158_v27  ;;  %1418 = vmatmul.f32.gmra.mxu0 %v1158_v27  ;;  %v1161_v31 = vmax.f32 %v1126_v28, 0.0 }
 0x1b4   : > { %v930_v34 = vpop.f32.mrf.mxu2 }
 0x1b5   : > { %v931_v35 = vadd.f32 %v930_v34, %v9312_v19  ;;  %v995_v36 = vpop.f32.mrf.mxu3  ;;  %1356 = vmatmul.f32.gmra.mxu3 %v1161_v31  ;;  %1486 = vmatmul.f32.gmra.mxu1 %v1161_v31 }
 0x1b6   : > { %v1063_v39 = vpop.f32.mrf.mxu0 }
 0x1b7   : > { %v996_v40 = vadd.f32 %v995_v36, %v931_v35  ;;  %v1128_v41 = vpop.f32.mrf.mxu1  ;;  %v1064_v42 = vadd.f32 %v1063_v39, %v9309_v58 }
 0x1b9   : > { %v1160_v44 = vmax.f32 %v996_v40, 0.0  ;;  %v1129_v45 = vadd.f32 %v1128_v41, %v1064_v42 }
 0x1bb   : > { %1291 = vmatmul.f32.gmra.mxu2 %v1160_v44  ;;  %1421 = vmatmul.f32.gmra.mxu0 %v1160_v44  ;;  %v1163_v47 = vmax.f32 %v1129_v45, 0.0 }
 0x1bc   : > { %v933_v49 = vpop.f32.mrf.mxu2 }
 0x1bd   : > { %v934_v50 = vadd.f32 %v933_v49, %v9312_v19  ;;  %v998_v51 = vpop.f32.mrf.mxu3  ;;  %1359 = vmatmul.f32.gmra.mxu3 %v1163_v47  ;;  %1489 = vmatmul.f32.gmra.mxu1 %v1163_v47 }
 0x1be   : > { %v1066_v52 = vpop.f32.mrf.mxu0 }
 0x1bf   : > { %v999_v53 = vadd.f32 %v998_v51, %v934_v50  ;;  %v1067_v54 = vadd.f32 %v1066_v52, %v9309_v58  ;;  %v1131_v55 = vpop.f32.mrf.mxu1 }
 0x1c1   : > { %v1162_v56 = vmax.f32 %v999_v53, 0.0  ;;  %v1132_v57 = vadd.f32 %v1131_v55, %v1067_v54 }
 0x1c3   : > { %1294 = vmatmul.f32.gmra.mxu2 %v1162_v56  ;;  %1424 = vmatmul.f32.gmra.mxu0 %v1162_v56  ;;  %v1165_v59 = vmax.f32 %v1132_v57, 0.0 }
 0x1c4   : > { %v936_v60 = vpop.f32.mrf.mxu2 }
 0x1c5   : > { %v937_v61 = vadd.f32 %v936_v60, %v9312_v19  ;;  %v1001_v62 = vpop.f32.mrf.mxu3  ;;  %1362 = vmatmul.f32.gmra.mxu3 %v1165_v59  ;;  %1492 = vmatmul.f32.gmra.mxu1 %v1165_v59 }
 0x1c7   : > { %v1002_v20 = vadd.f32 %v1001_v62, %v937_v61 }
 0x1c9   : > { %v1164_v58 = vmax.f32 %v1002_v20, 0.0 }
 0x1ca   : > { %v1448_v63 = vpop.f32.mrf.mxu1 }
 0x1cb   : > { %1297 = vmatmul.f32.gmra.mxu2 %v1164_v58  ;;  %1427 = vmatmul.f32.gmra.mxu0 %v1164_v58 }
 0x1d0   : > { %v1318_v2 = vpop.f32.mrf.mxu3  ;;  %v1383_v3 = vpop.f32.mrf.mxu0 }
 0x1d1   : > { %v1384_v4 = vadd.f32 %v1383_v3, %v9444_v1 }
 0x1d2   : > { %v1451_v19 = vpop.f32.mrf.mxu1 }
 0x1d3   : > { %v1449_v5 = vadd.f32 %v1448_v63, %v1384_v4 }
 0x1d5   : > { %v1497_v7 = vmax.f32 %v1449_v5, 0.0 }
 0x1d6   : > { %v1253_v8 = vpop.f32.mrf.mxu2 }
 0x1d7   : > { %v1254_v9 = vadd.f32 %v1253_v8, %v9447_v6  ;;  %1641 = vmatmul.f32.vlgmr.msrb.gmra.mxu0 %v1497_v7 }
 0x1d8   : > { %v1321_v10 = vpop.f32.mrf.mxu3  ;;  %v1386_v11 = vpop.f32.mrf.mxu0 }
 0x1d9   : > { %v1319_v12 = vadd.f32 %v1318_v2, %v1254_v9  ;;  %v1387_v13 = vadd.f32 %v1386_v11, %v9444_v1 }
 0x1da   : > { %v1454_v14 = vpop.f32.mrf.mxu1 }
 0x1db   : > { %v1496_v15 = vmax.f32 %v1319_v12, 0.0  ;;  %v1452_v16 = vadd.f32 %v1451_v19, %v1387_v13 }
 0x1dd   : > { %v1499_v17 = vmax.f32 %v1452_v16, 0.0  ;;  %1576 = vmatmul.f32.vlgmr.msrb.gmra.mxu1 %v1496_v15 }
 0x1de   : > { %v1256_v18 = vpop.f32.mrf.mxu2 }
 0x1df   : > { %v1257_v21 = vadd.f32 %v1256_v18, %v9447_v6  ;;  %1644 = vmatmul.f32.vlgmr.msra.gmra.mxu3 %v1499_v17 }
 0x1e0   : > { %v1324_v22 = vpop.f32.mrf.mxu3  ;;  %v1389_v23 = vpop.f32.mrf.mxu0 }
 0x1e1   : > { %v1322_v24 = vadd.f32 %v1321_v10, %v1257_v21  ;;  %v1390_v25 = vadd.f32 %v1389_v23, %v9444_v1 }
 0x1e2   : > { %v1457_v26 = vpop.f32.mrf.mxu1 }
 0x1e3   : > { %v1498_v27 = vmax.f32 %v1322_v24, 0.0  ;;  %v1455_v28 = vadd.f32 %v1454_v14, %v1390_v25 }
 0x1e5   : > { %1579 = vmatmul.f32.vlgmr.msra.gmra.mxu2 %v1498_v27  ;;  %v1501_v29 = vmax.f32 %v1455_v28, 0.0 }
 0x1e6   : > { %v1259_v30 = vpop.f32.mrf.mxu2 }
 0x1e7   : > { %v1260_v31 = vadd.f32 %v1259_v30, %v9447_v6  ;;  %1647 = vmatmul.f32.gmra.mxu3 %v1501_v29 }
 0x1e8   : > { %v1327_v32 = vpop.f32.mrf.mxu3  ;;  %v1392_v33 = vpop.f32.mrf.mxu0 }
 0x1e9   : > { %v1325_v34 = vadd.f32 %v1324_v22, %v1260_v31  ;;  %v1393_v35 = vadd.f32 %v1392_v33, %v9444_v1 }
 0x1ea   : > { %v1460_v36 = vpop.f32.mrf.mxu1 }
 0x1eb   : > { %v1458_v37 = vadd.f32 %v1457_v26, %v1393_v35  ;;  %v1500_v38 = vmax.f32 %v1325_v34, 0.0 }
 0x1ed   : > { %1582 = vmatmul.f32.gmra.mxu2 %v1500_v38  ;;  %v1503_v39 = vmax.f32 %v1458_v37, 0.0 }
 0x1ee   : > { %v1262_v40 = vpop.f32.mrf.mxu2 }
 0x1ef   : > { %v1263_v41 = vadd.f32 %v1262_v40, %v9447_v6  ;;  %1650 = vmatmul.f32.gmra.mxu3 %v1503_v39 }
 0x1f0   : > { %v1395_v42 = vpop.f32.mrf.mxu0  ;;  %v1330_v43 = vpop.f32.mrf.mxu3 }
 0x1f1   : > { %v1328_v44 = vadd.f32 %v1327_v32, %v1263_v41  ;;  %v1396_v45 = vadd.f32 %v1395_v42, %v9444_v1 }
 0x1f2   : > { %v1463_v46 = vpop.f32.mrf.mxu1 }
 0x1f3   : > { %v1461_v47 = vadd.f32 %v1460_v36, %v1396_v45  ;;  %v1502_v48 = vmax.f32 %v1328_v44, 0.0 }
 0x1f5   : > { %v1505_v49 = vmax.f32 %v1461_v47, 0.0  ;;  %1585 = vmatmul.f32.gmra.mxu2 %v1502_v48 }
 0x1f6   : > { %v1265_v50 = vpop.f32.mrf.mxu2 }
 0x1f7   : > { %v1266_v51 = vadd.f32 %v1265_v50, %v9447_v6  ;;  %1653 = vmatmul.f32.gmra.mxu3 %v1505_v49 }
 0x1f8   : > { %v1398_v52 = vpop.f32.mrf.mxu0  ;;  %v1333_v53 = vpop.f32.mrf.mxu3 }
 0x1f9   : > { %v1331_v54 = vadd.f32 %v1330_v43, %v1266_v51  ;;  %v1399_v55 = vadd.f32 %v1398_v52, %v9444_v1 }
 0x1fa   : > { %v1466_v56 = vpop.f32.mrf.mxu1 }
 0x1fb   : > { %v1504_v57 = vmax.f32 %v1331_v54, 0.0  ;;  %v1464_v59 = vadd.f32 %v1463_v46, %v1399_v55 }
 0x1fd   : > { %v1507_v60 = vmax.f32 %v1464_v59, 0.0  ;;  %1588 = vmatmul.f32.gmra.mxu2 %v1504_v57 }
 0x1fe   : > { %v1268_v61 = vpop.f32.mrf.mxu2 }
 0x1ff   : > { %v1269_v62 = vadd.f32 %v1268_v61, %v9447_v6  ;;  %1656 = vmatmul.f32.gmra.mxu3 %v1507_v60 }
 0x200   : > { %v1401_v20 = vpop.f32.mrf.mxu0  ;;  %v1336_v58 = vpop.f32.mrf.mxu3 }
 0x201   : > { %v1334_v63 = vadd.f32 %v1333_v53, %v1269_v62  ;;  %v1402_v0 = vadd.f32 %v1401_v20, %v9444_v1 }
 0x202   : > { %v1469_v2 = vpop.f32.mrf.mxu1 }
 0x203   : > { %v1506_v3 = vmax.f32 %v1334_v63, 0.0  ;;  %v1467_v4 = vadd.f32 %v1466_v56, %v1402_v0 }
 0x205   : > { %v1509_v19 = vmax.f32 %v1467_v4, 0.0  ;;  %1591 = vmatmul.f32.gmra.mxu2 %v1506_v3 }
 0x206   : > { %v1271_v5 = vpop.f32.mrf.mxu2 }
 0x207   : > { %v1272_v7 = vadd.f32 %v1271_v5, %v9447_v6  ;;  %1659 = vmatmul.f32.gmra.mxu3 %v1509_v19 }
 0x208   : > { %v1404_v8 = vpop.f32.mrf.mxu0  ;;  %v1339_v9 = vpop.f32.mrf.mxu3 }
 0x209   : > { %v1337_v10 = vadd.f32 %v1336_v58, %v1272_v7  ;;  %v1405_v11 = vadd.f32 %v1404_v8, %v9444_v1 }
 0x20a   : > { %v1472_v12 = vpop.f32.mrf.mxu1 }
 0x20b   : > { %v1508_v13 = vmax.f32 %v1337_v10, 0.0  ;;  %v1470_v14 = vadd.f32 %v1469_v2, %v1405_v11 }
 0x20d   : > { %v1511_v15 = vmax.f32 %v1470_v14, 0.0  ;;  %1594 = vmatmul.f32.gmra.mxu2 %v1508_v13  ;;  %v1706_v13 = vld [vmem:[#allocation7] sm:$0xff] }
 0x20e   : > { %v1274_v16 = vpop.f32.mrf.mxu2  ;;  %1774 = vmatpush.msra.mxu0 %v1706_v13  ;;  %v8469_v13 = vld [vmem:[%s9025_s18 + $0x38] sm:$0xff] }
 0x20f   : > { %v1275_v17 = vadd.f32 %v1274_v16, %v9447_v6  ;;  %1662 = vmatmul.f32.gmra.mxu3 %v1511_v15 }
 0x210   : > { %v1407_v18 = vpop.f32.mrf.mxu0  ;;  %v1342_v21 = vpop.f32.mrf.mxu3 }
 0x211   : > { %v1340_v22 = vadd.f32 %v1339_v9, %v1275_v17  ;;  %v1408_v23 = vadd.f32 %v1407_v18, %v9444_v1 }
 0x212   : > { %v1475_v24 = vpop.f32.mrf.mxu1 }
 0x213   : > { %v1510_v25 = vmax.f32 %v1340_v22, 0.0  ;;  %v1473_v26 = vadd.f32 %v1472_v12, %v1408_v23 }
 0x215   : > { %v1513_v27 = vmax.f32 %v1473_v26, 0.0  ;;  %1597 = vmatmul.f32.gmra.mxu2 %v1510_v25 }
 0x216   : > { %v1277_v28 = vpop.f32.mrf.mxu2 }
 0x217   : > { %v1278_v29 = vadd.f32 %v1277_v28, %v9447_v6  ;;  %1665 = vmatmul.f32.gmra.mxu3 %v1513_v27 }
 0x218   : > { %v1410_v30 = vpop.f32.mrf.mxu0  ;;  %v1345_v31 = vpop.f32.mrf.mxu3 }
 0x219   : > { %v1343_v32 = vadd.f32 %v1342_v21, %v1278_v29  ;;  %v1411_v33 = vadd.f32 %v1410_v30, %v9444_v1 }
 0x21a   : > { %v1478_v34 = vpop.f32.mrf.mxu1 }
 0x21b   : > { %v1512_v35 = vmax.f32 %v1343_v32, 0.0  ;;  %v1476_v36 = vadd.f32 %v1475_v24, %v1411_v33 }
 0x21d   : > { %v1515_v37 = vmax.f32 %v1476_v36, 0.0  ;;  %1600 = vmatmul.f32.gmra.mxu2 %v1512_v35 }
 0x21e   : > { %v1280_v38 = vpop.f32.mrf.mxu2 }
 0x21f   : > { %v1281_v39 = vadd.f32 %v1280_v38, %v9447_v6  ;;  %1668 = vmatmul.f32.gmra.mxu3 %v1515_v37 }
 0x220   : > { %v1413_v40 = vpop.f32.mrf.mxu0  ;;  %v1348_v41 = vpop.f32.mrf.mxu3 }
 0x221   : > { %v1346_v42 = vadd.f32 %v1345_v31, %v1281_v39  ;;  %v1414_v43 = vadd.f32 %v1413_v40, %v9444_v1 }
 0x222   : > { %v1481_v44 = vpop.f32.mrf.mxu1 }
 0x223   : > { %v1514_v45 = vmax.f32 %v1346_v42, 0.0  ;;  %v1479_v46 = vadd.f32 %v1478_v34, %v1414_v43  ;;  %v8462_v43 = vld [vmem:[%s9025_s18] sm:$0xff] }
 0x225   : > { %v1517_v47 = vmax.f32 %v1479_v46, 0.0  ;;  %1603 = vmatmul.f32.gmra.mxu2 %v1514_v45 }
 0x226   : > { %v1283_v48 = vpop.f32.mrf.mxu2 }
 0x227   : > { %v1284_v49 = vadd.f32 %v1283_v48, %v9447_v6  ;;  %1671 = vmatmul.f32.gmra.mxu3 %v1517_v47  ;;  %v8463_v48 = vld [vmem:[%s9025_s18 + $0x8] sm:$0xff] }
 0x228   : > { %v1416_v50 = vpop.f32.mrf.mxu0  ;;  %v1351_v51 = vpop.f32.mrf.mxu3 }
 0x229   : > { %v1349_v52 = vadd.f32 %v1348_v41, %v1284_v49  ;;  %v1417_v53 = vadd.f32 %v1416_v50, %v9444_v1 }
 0x22a   : > { %v1484_v54 = vpop.f32.mrf.mxu1 }
 0x22b   : > { %v1516_v55 = vmax.f32 %v1349_v52, 0.0  ;;  %v1482_v56 = vadd.f32 %v1481_v44, %v1417_v53  ;;  %v8464_v52 = vld [vmem:[%s9025_s18 + $0x10] sm:$0xff] }
 0x22d   : > { %v1519_v57 = vmax.f32 %v1482_v56, 0.0  ;;  %1606 = vmatmul.f32.gmra.mxu2 %v1516_v55 }
 0x22e   : > { %v1286_v59 = vpop.f32.mrf.mxu2 }
 0x22f   : > { %v1287_v60 = vadd.f32 %v1286_v59, %v9447_v6  ;;  %1674 = vmatmul.f32.gmra.mxu3 %v1519_v57  ;;  %v8465_v57 = vld [vmem:[%s9025_s18 + $0x18] sm:$0xff] }
 0x230   : > { %v1419_v61 = vpop.f32.mrf.mxu0  ;;  %v1354_v62 = vpop.f32.mrf.mxu3 }
 0x231   : > { %v1352_v20 = vadd.f32 %v1351_v51, %v1287_v60  ;;  %v1420_v58 = vadd.f32 %v1419_v61, %v9444_v1 }
 0x232   : > { %v1487_v2 = vpop.f32.mrf.mxu1 }
 0x233   : > { %v1518_v63 = vmax.f32 %v1352_v20, 0.0  ;;  %v1485_v0 = vadd.f32 %v1484_v54, %v1420_v58  ;;  %v8466_v20 = vld [vmem:[%s9025_s18 + $0x20] sm:$0xff] }
 0x235   : > { %v1521_v3 = vmax.f32 %v1485_v0, 0.0  ;;  %1609 = vmatmul.f32.gmra.mxu2 %v1518_v63 }
 0x236   : > { %v1289_v4 = vpop.f32.mrf.mxu2 }
 0x237   : > { %v1290_v19 = vadd.f32 %v1289_v4, %v9447_v6  ;;  %1677 = vmatmul.f32.gmra.mxu3 %v1521_v3  ;;  %v8467_v3 = vld [vmem:[%s9025_s18 + $0x28] sm:$0xff] }
 0x238   : > { %v1422_v5 = vpop.f32.mrf.mxu0  ;;  %v1357_v9 = vpop.f32.mrf.mxu3 }
 0x239   : > { %v1355_v7 = vadd.f32 %v1354_v62, %v1290_v19  ;;  %v1423_v8 = vadd.f32 %v1422_v5, %v9444_v1 }
 0x23a   : > { %v1490_v15 = vpop.f32.mrf.mxu1 }
 0x23b   : > { %v1520_v10 = vmax.f32 %v1355_v7, 0.0  ;;  %v1488_v11 = vadd.f32 %v1487_v2, %v1423_v8  ;;  %v8468_v8 = vld [vmem:[%s9025_s18 + $0x30] sm:$0xff] }
 0x23d   : > { %v1523_v12 = vmax.f32 %v1488_v11, 0.0  ;;  %1612 = vmatmul.f32.gmra.mxu2 %v1520_v10 }
 0x23e   : > { %v1292_v14 = vpop.f32.mrf.mxu2 }
 0x23f   : > { %v1293_v16 = vadd.f32 %v1292_v14, %v9447_v6  ;;  %1680 = vmatmul.f32.gmra.mxu3 %v1523_v12 }
 0x240   : > { %v1425_v17 = vpop.f32.mrf.mxu0  ;;  %v1360_v24 = vpop.f32.mrf.mxu3 }
 0x241   : > { %v1358_v18 = vadd.f32 %v1357_v9, %v1293_v16  ;;  %v1426_v21 = vadd.f32 %v1425_v17, %v9444_v1 }
 0x242   : > { %v1493_v29 = vpop.f32.mrf.mxu1 }
 0x243   : > { %v1522_v22 = vmax.f32 %v1358_v18, 0.0  ;;  %v1491_v23 = vadd.f32 %v1490_v15, %v1426_v21  ;;  %v8470_v18 = vld [vmem:[%s9025_s18 + $0x40] sm:$0xff] }
 0x245   : > { %v1525_v25 = vmax.f32 %v1491_v23, 0.0  ;;  %1615 = vmatmul.f32.gmra.mxu2 %v1522_v22 }
 0x246   : > { %v1295_v26 = vpop.f32.mrf.mxu2 }
 0x247   : > { %v1296_v27 = vadd.f32 %v1295_v26, %v9447_v6  ;;  %1683 = vmatmul.f32.gmra.mxu3 %v1525_v25  ;;  %v8471_v25 = vld [vmem:[%s9025_s18 + $0x48] sm:$0xff] }
 0x248   : > { %v1428_v28 = vpop.f32.mrf.mxu0  ;;  %v1363_v36 = vpop.f32.mrf.mxu3 }
 0x249   : > { %v1361_v30 = vadd.f32 %v1360_v24, %v1296_v27  ;;  %v1429_v31 = vadd.f32 %v1428_v28, %v9444_v1 }
 0x24b   : > { %v1524_v32 = vmax.f32 %v1361_v30, 0.0  ;;  %v1494_v33 = vadd.f32 %v1493_v29, %v1429_v31  ;;  %v8472_v30 = vld [vmem:[%s9025_s18 + $0x50] sm:$0xff] }
 0x24d   : > { %v1527_v34 = vmax.f32 %v1494_v33, 0.0  ;;  %1618 = vmatmul.f32.gmra.mxu2 %v1524_v32 }
 0x24e   : > { %v1298_v35 = vpop.f32.mrf.mxu2 }
 0x24f   : > { %v1299_v37 = vadd.f32 %v1298_v35, %v9447_v6  ;;  %1686 = vmatmul.f32.gmra.mxu3 %v1527_v34  ;;  %v8473_v35 = vld [vmem:[%s9025_s18 + $0x58] sm:$0xff] }
 0x251   : > { %v1364_v38 = vadd.f32 %v1363_v36, %v1299_v37 }
 0x253   : > { %v1526_v39 = vmax.f32 %v1364_v38, 0.0 }
 0x254   : > { %v1642_v40 = vpop.f32.mrf.mxu0 }
 0x255   : > { %1621 = vmatmul.f32.gmra.mxu2 %v1526_v39  ;;  %v8474_v39 = vld [vmem:[%s9025_s18 + $0x60] sm:$0xff] }
 0x25a   : > { %v1577_v41 = vpop.f32.mrf.mxu1 }
 0x25b   : > { %v1643_v42 = vadd.f32 %v1642_v40, %v1577_v41 }
 0x25d   : > { %v1690_v44 = vadd.f32 %v8462_v43, %v1643_v42 }
 0x25f   : > { %6967 = vmatmul.msk.f32.vlgmr.msra.gmra.mxu0 %vm593_vm0, %v1690_v44  ;;  %v8475_v44 = vld [vmem:[%s9025_s18 + $0x68] sm:$0xff] }
 0x262   : > { %v1645_v1 = vpop.f32.mrf.mxu3 }
 0x268   : > { %v1580_v45 = vpop.f32.mrf.mxu2 }
 0x269   : > { %v1646_v46 = vadd.f32 %v1645_v1, %v1580_v45 }
 0x26a   : > { %v1648_v47 = vpop.f32.mrf.mxu3 }
 0x26b   : > { %v1691_v49 = vadd.f32 %v8463_v48, %v1646_v46  ;;  %v8476_v48 = vld [vmem:[%s9025_s18 + $0x70] sm:$0xff] }
 0x26d   : > { %6968 = vmatmul.msk.f32.gmra.mxu0 %vm593_vm0, %v1691_v49 }
 0x270   : > { %v1583_v6 = vpop.f32.mrf.mxu2 }
 0x271   : > { %v1649_v50 = vadd.f32 %v1648_v47, %v1583_v6 }
 0x272   : > { %v1651_v51 = vpop.f32.mrf.mxu3 }
 0x273   : > { %v1692_v53 = vadd.f32 %v8464_v52, %v1649_v50  ;;  %v9513_v52 = vld [vmem:[%s13679_s12 + $0x6] ss:$0 sm:$0xff] }
 0x275   : > { %6969 = vmatmul.msk.f32.gmra.mxu0 %vm593_vm0, %v1692_v53  ;;  %v8477_v53 = vld [vmem:[%s9025_s18 + $0x78] sm:$0xff]  ;;  %s8817_s18 = smov 64  }
 0x278   : > { %v1586_v54 = vpop.f32.mrf.mxu2 }
 0x279   : > { %v1652_v55 = vadd.f32 %v1651_v51, %v1586_v54 }
 0x27a   : > { %v1654_v56 = vpop.f32.mrf.mxu3 }
 0x27b   : > { %v1693_v59 = vadd.f32 %v8465_v57, %v1652_v55 }
 0x27d   : > { %6970 = vmatmul.msk.f32.gmra.mxu0 %vm593_vm0, %v1693_v59 }
 0x280   : > { %v1589_v60 = vpop.f32.mrf.mxu2 }
 0x281   : > { %v1655_v61 = vadd.f32 %v1654_v56, %v1589_v60 }
 0x282   : > { %v1657_v62 = vpop.f32.mrf.mxu3 }
 0x283   : > { %v1694_v58 = vadd.f32 %v8466_v20, %v1655_v61 }
 0x285   : > { %6971 = vmatmul.msk.f32.gmra.mxu0 %vm593_vm0, %v1694_v58 }
 0x288   : > { %v1592_v63 = vpop.f32.mrf.mxu2 }
 0x289   : > { %v1658_v0 = vadd.f32 %v1657_v62, %v1592_v63 }
 0x28a   : > { %v1660_v2 = vpop.f32.mrf.mxu3 }
 0x28b   : > { %v1695_v4 = vadd.f32 %v8467_v3, %v1658_v0 }
 0x28d   : > { %6972 = vmatmul.msk.f32.gmra.mxu0 %vm593_vm0, %v1695_v4 }
 0x290   : > { %v1595_v19 = vpop.f32.mrf.mxu2 }
 0x291   : > { %v1661_v5 = vadd.f32 %v1660_v2, %v1595_v19 }
 0x292   : > { %v1663_v7 = vpop.f32.mrf.mxu3 }
 0x293   : > { %v1696_v9 = vadd.f32 %v8468_v8, %v1661_v5 }
 0x295   : > { %6973 = vmatmul.msk.f32.gmra.mxu0 %vm593_vm0, %v1696_v9 }
 0x298   : > { %v1598_v10 = vpop.f32.mrf.mxu2 }
 0x299   : > { %v1664_v11 = vadd.f32 %v1663_v7, %v1598_v10 }
 0x29a   : > { %v1666_v12 = vpop.f32.mrf.mxu3 }
 0x29b   : > { %v1697_v14 = vadd.f32 %v8469_v13, %v1664_v11 }
 0x29d   : > { %6974 = vmatmul.msk.f32.gmra.mxu0 %vm593_vm0, %v1697_v14 }
 0x2a0   : > { %v1601_v15 = vpop.f32.mrf.mxu2 }
 0x2a1   : > { %v1667_v16 = vadd.f32 %v1666_v12, %v1601_v15 }
 0x2a2   : > { %v1669_v17 = vpop.f32.mrf.mxu3 }
 0x2a3   : > { %v1698_v21 = vadd.f32 %v8470_v18, %v1667_v16 }
 0x2a5   : > { %6975 = vmatmul.msk.f32.gmra.mxu0 %vm593_vm0, %v1698_v21 }
 0x2a8   : > { %v1604_v22 = vpop.f32.mrf.mxu2 }
 0x2a9   : > { %v1670_v23 = vadd.f32 %v1669_v17, %v1604_v22 }
 0x2aa   : > { %v1672_v24 = vpop.f32.mrf.mxu3 }
 0x2ab   : > { %v1699_v26 = vadd.f32 %v8471_v25, %v1670_v23 }
 0x2ad   : > { %6976 = vmatmul.msk.f32.gmra.mxu0 %vm593_vm0, %v1699_v26 }
 0x2b0   : > { %v1607_v27 = vpop.f32.mrf.mxu2 }
 0x2b1   : > { %v1673_v28 = vadd.f32 %v1672_v24, %v1607_v27 }
 0x2b2   : > { %v1675_v29 = vpop.f32.mrf.mxu3 }
 0x2b3   : > { %v1700_v31 = vadd.f32 %v8472_v30, %v1673_v28 }
 0x2b5   : > { %6977 = vmatmul.msk.f32.gmra.mxu0 %vm593_vm0, %v1700_v31 }
 0x2b8   : > { %v1610_v32 = vpop.f32.mrf.mxu2 }
 0x2b9   : > { %v1676_v33 = vadd.f32 %v1675_v29, %v1610_v32 }
 0x2ba   : > { %v1678_v34 = vpop.f32.mrf.mxu3 }
 0x2bb   : > { %v1701_v36 = vadd.f32 %v8473_v35, %v1676_v33 }
 0x2bd   : > { %6978 = vmatmul.msk.f32.gmra.mxu0 %vm593_vm0, %v1701_v36 }
 0x2c0   : > { %v1613_v37 = vpop.f32.mrf.mxu2 }
 0x2c1   : > { %v1679_v38 = vadd.f32 %v1678_v34, %v1613_v37 }
 0x2c2   : > { %v1681_v41 = vpop.f32.mrf.mxu3 }
 0x2c3   : > { %v1702_v40 = vadd.f32 %v8474_v39, %v1679_v38 }
 0x2c5   : > { %6979 = vmatmul.msk.f32.gmra.mxu0 %vm593_vm0, %v1702_v40 }
 0x2c8   : > { %v1616_v42 = vpop.f32.mrf.mxu2 }
 0x2c9   : > { %v1682_v43 = vadd.f32 %v1681_v41, %v1616_v42 }
 0x2ca   : > { %v1684_v45 = vpop.f32.mrf.mxu3 }
 0x2cb   : > { %v1703_v1 = vadd.f32 %v8475_v44, %v1682_v43 }
 0x2cd   : > { %6980 = vmatmul.msk.f32.gmra.mxu0 %vm593_vm0, %v1703_v1 }
 0x2d0   : > { %v1619_v46 = vpop.f32.mrf.mxu2 }
 0x2d1   : > { %v1685_v47 = vadd.f32 %v1684_v45, %v1619_v46 }
 0x2d2   : > { %v1687_v6 = vpop.f32.mrf.mxu3 }
 0x2d3   : > { %v1704_v49 = vadd.f32 %v8476_v48, %v1685_v47 }
 0x2d5   : > { %6981 = vmatmul.msk.f32.gmra.mxu0 %vm593_vm0, %v1704_v49 }
 0x2d8   : > { %v1622_v50 = vpop.f32.mrf.mxu2 }
 0x2d9   : > { %v1688_v51 = vadd.f32 %v1687_v6, %v1622_v50 }
 0x2db   : > { %v1705_v54 = vadd.f32 %v8477_v53, %v1688_v51 }
 0x2dc   : > { %v1776_v55 = vpop.f32.mrf.mxu0 }
 0x2dd   : > { %v1777_v56 = vadd.f32 %v9513_v52, %v1776_v55  ;;  %6982 = vmatmul.msk.f32.gmra.mxu0 %vm593_vm0, %v1705_v54 }
 0x2df   : > { %7438 = vtanh.f32 %v1777_v56  ;;  %v6983_v15 = vmul.f32 -1.442695, %v1777_v56 }
 0x2e5   : > { %v7439_v57 = vpop.eup %7438 }
 0x2e6   : > { %2160 = vrot.lane.b32.xlu0 %v7439_v57, %s8816_s20 }
 0x2ea   : > { %v1779_v59 = vpop.f32.mrf.mxu0 }
 0x2eb   : > { %v1780_v60 = vadd.f32 %v9513_v52, %v1779_v59 }
 0x2ed   : > { %7440 = vtanh.f32 %v1780_v60  ;;  %v6984_v18 = vmul.f32 -1.442695, %v1780_v60 }
 0x2f2   : > { %v1782_v61 = vpop.f32.mrf.mxu0 }
 0x2f3   : > { %v7441_v62 = vpop.eup %7440  ;;  %v1783_v20 = vadd.f32 %v9513_v52, %v1782_v61 }
 0x2f4   : > { %2162 = vrot.lane.b32.xlu0 %v7441_v62, %s8816_s20 }
 0x2f5   : > { %7442 = vtanh.f32 %v1783_v20  ;;  %v6985_v21 = vmul.f32 -1.442695, %v1783_v20 }
 0x2fa   : > { %v1785_v58 = vpop.f32.mrf.mxu0 }
 0x2fb   : > { %v7443_v63 = vpop.eup %7442  ;;  %v1786_v0 = vadd.f32 %v9513_v52, %v1785_v58 }
 0x2fc   : > { %2164 = vrot.lane.b32.xlu1 %v7443_v63, %s8816_s20 }
 0x2fd   : > { %7444 = vtanh.f32 %v1786_v0  ;;  %v6986_v27 = vmul.f32 -1.442695, %v1786_v0 }
 0x302   : > { %v1788_v2 = vpop.f32.mrf.mxu0 }
 0x303   : > { %v7445_v3 = vpop.eup %7444  ;;  %v1789_v4 = vadd.f32 %v9513_v52, %v1788_v2 }
 0x304   : > { %2166 = vrot.lane.b32.xlu1 %v7445_v3, %s8816_s20 }
 0x305   : > { %7446 = vtanh.f32 %v1789_v4  ;;  %v6987_v26 = vmul.f32 -1.442695, %v1789_v4 }
 0x30a   : > { %v1791_v19 = vpop.f32.mrf.mxu0 }
 0x30b   : > { %v7447_v5 = vpop.eup %7446  ;;  %v1792_v7 = vadd.f32 %v9513_v52, %v1791_v19 }
 0x30c   : > { %2168 = vrot.lane.b32.xlu2 %v7447_v5, %s8816_s20 }
 0x30d   : > { %7448 = vtanh.f32 %v1792_v7  ;;  %v6988_v33 = vmul.f32 -1.442695, %v1792_v7 }
 0x312   : > { %v1794_v8 = vpop.f32.mrf.mxu0 }
 0x313   : > { %v7449_v9 = vpop.eup %7448  ;;  %v1795_v10 = vadd.f32 %v9513_v52, %v1794_v8 }
 0x314   : > { %2170 = vrot.lane.b32.xlu2 %v7449_v9, %s8816_s20 }
 0x315   : > { %7450 = vtanh.f32 %v1795_v10  ;;  %v6989_v53 = vmul.f32 -1.442695, %v1795_v10 }
 0x31a   : > { %v1797_v11 = vpop.f32.mrf.mxu0 }
 0x31b   : > { %v7451_v12 = vpop.eup %7450  ;;  %v9531_v13 = vadd.f32 %v9513_v52, %v1797_v11 }
 0x31c   : > { %2172 = vrot.lane.b32.xlu0 %v7451_v12, %s8816_s20 }
 0x31d   : > { %7452 = vtanh.f32 %v9531_v13  ;;  %v6990_v4 = vmul.f32 -1.442695, %v9531_v13 }
 0x31e   : > { %7454 = vpow2.f32 %v6983_v15 }
 0x322   : > { %v1800_v40 = vpop.f32.mrf.mxu0 }
 0x323   : > { %v7453_v14 = vpop.eup %7452  ;;  %v9561_v56 = vadd.f32 %v9513_v52, %v1800_v40 }
 0x324   : > { %2174 = vrot.lane.b32.xlu2 %v7453_v14, %s8816_s20  ;;  %v7455_v16 = vpop.eup %7454 }
 0x325   : > { %v1872_v17 = vadd.f32 1.0, %v7455_v16 }
 0x327   : > { %7456 = vrcp.f32 %v1872_v17  ;;  %v1899_v36 = vand.u32 2147483648, %v1872_v17  ;;  %vm1893_vm2 = vweird.f32 %v1872_v17  ;;  %v1897_v38 = vand.u32 2147483647, %v1872_v17 }
 0x328   : > { %7458 = vpow2.f32 %v6984_v18 }
 0x329   : > { %7460 = vpow2.f32 %v6985_v21  ;;  %v1900_v44 = vor.u32 1.1754944e-38, %v1899_v36  ;;  %vm1898_vm4 = vcmp.eq.f32.partialorder %v1897_v38, 8.507059e+37 }
 0x32a   : > { %v1803_v54 = vpop.f32.mrf.mxu0 }
 0x32d   : > { %v7457_v22 = vpop.eup %7456 }
 0x32e   : > { %v7459_v23 = vpop.eup %7458  ;;  %v1889_v24 = vmul.f32 %v7457_v22, %v1872_v17  ;;  %vm1894_vm1 = vweird.f32 %v7457_v22 }
 0x32f   : > { %v9536_v25 = vadd.f32 1.0, %v7459_v23  ;;  %v7461_v29 = vpop.eup %7460  ;;  %vm1895_vm3 = vmor %vm1893_vm2, %vm1894_vm1 }
 0x330   : > { %v1890_v28 = vsub.f32 1.0, %v1889_v24  ;;  %v9539_v31 = vadd.f32 1.0, %v7461_v29 }
 0x331   : > { %7462 = vrcp.f32 %v9536_v25  ;;  %v1914_v61 = vand.u32 2147483648, %v9536_v25  ;;  %vm1908_vm6 = vweird.f32 %v9536_v25  ;;  %v1912_v20 = vand.u32 2147483647, %v9536_v25 }
 0x332   : > { %7464 = vpow2.f32 %v6987_v26  ;;  %v1891_v30 = vmul.f32 %v7457_v22, %v1890_v28  ;;  %v1806_v14 = vpop.f32.mrf.mxu0  ;;  %v1929_v15 = vand.u32 2147483648, %v9539_v31  ;;  %vm1923_vm10 = vweird.f32 %v9539_v31 }
 0x333   : > { %7466 = vpow2.f32 %v6986_v27  ;;  %v1915_v3 = vor.u32 1.1754944e-38, %v1914_v61  ;;  %vm1913_vm8 = vcmp.eq.f32.partialorder %v1912_v20, 8.507059e+37  ;;  %v1927_v13 = vand.u32 2147483647, %v9539_v31 }
 0x334   : > { %v1892_v34 = vadd.f32 %v7457_v22, %v1891_v30  ;;  %7468 = vrcp.f32 %v9539_v31  ;;  %v1930_v24 = vor.u32 1.1754944e-38, %v1929_v15 }
 0x335   : > { %7470 = vpow2.f32 %v6988_v33  ;;  %vm1928_vm12 = vcmp.eq.f32.partialorder %v1927_v13, 8.507059e+37 }
 0x336   : > { %v1896_v42 = vsel %vm1895_vm3, %v7457_v22, %v1892_v34 }
 0x337   : > { %v7463_v32 = vpop.eup %7462  ;;  %v9549_v47 = vsel %vm1898_vm4, %v1900_v44, %v1896_v42 }
 0x338   : > { %v7465_v35 = vpop.eup %7464  ;;  %v1904_v39 = vmul.f32 %v7463_v32, %v9536_v25  ;;  %vm1909_vm5 = vweird.f32 %v7463_v32  ;;  %v9596_v25 = vadd.f32 %v9513_v52, %v1803_v54 }
 0x339   : > { %v7467_v37 = vpop.eup %7466  ;;  %v9543_v41 = vadd.f32 1.0, %v7465_v35  ;;  %vm1910_vm7 = vmor %vm1908_vm6, %vm1909_vm5 }
 0x33a   : > { %v9545_v43 = vadd.f32 1.0, %v7467_v37  ;;  %v1905_v1 = vsub.f32 1.0, %v1904_v39  ;;  %v9547_v45 = vpop.eup %7468  ;;  %v1809_v40 = vpop.f32.mrf.mxu0 }
 0x33b   : > { %7472 = vrcp.f32 %v9543_v41  ;;  %v7471_v49 = vpop.eup %7470  ;;  %v1919_v50 = vmul.f32 %v9547_v45, %v9539_v31  ;;  %vm1924_vm9 = vweird.f32 %v9547_v45  ;;  %v1959_v31 = vand.u32 2147483648, %v9543_v41 }
 0x33c   : > { %7474 = vrcp.f32 %v9545_v43  ;;  %v1906_v6 = vmul.f32 %v7463_v32, %v1905_v1  ;;  %v9556_v51 = vadd.f32 1.0, %v7471_v49  ;;  %vm1925_vm11 = vmor %vm1923_vm10, %vm1924_vm9  ;;  %vm1953_vm15 = vweird.f32 %v9543_v41 }
 0x33d   : > { %v1920_v59 = vsub.f32 1.0, %v1919_v50  ;;  %v1957_v35 = vand.u32 2147483647, %v9543_v41  ;;  %v1944_v36 = vand.u32 2147483648, %v9545_v43  ;;  %vm1938_vm1 = vweird.f32 %v9545_v43 }
 0x33e   : > { %v1907_v57 = vadd.f32 %v7463_v32, %v1906_v6  ;;  %v1942_v39 = vand.u32 2147483647, %v9545_v43  ;;  %v1960_v1 = vor.u32 1.1754944e-38, %v1959_v31  ;;  %vm1968_vm6 = vweird.f32 %v9556_v51 }
 0x33f   : > { %v1921_v0 = vmul.f32 %v9547_v45, %v1920_v59  ;;  %vm1958_vm3 = vcmp.eq.f32.partialorder %v1957_v35, 8.507059e+37  ;;  %v1972_v61 = vand.u32 2147483647, %v9556_v51 }
 0x340   : > { %v1911_v63 = vsel %vm1910_vm7, %v7463_v32, %v1907_v57  ;;  %vm1943_vm4 = vcmp.eq.f32.partialorder %v1942_v39, 8.507059e+37  ;;  %v1974_v57 = vand.u32 2147483648, %v9556_v51 }
 0x341   : > { %v9558_v55 = vpop.eup %7472  ;;  %v9577_v5 = vsel %vm1913_vm8, %v1915_v3, %v1911_v63  ;;  %v1922_v10 = vadd.f32 %v9547_v45, %v1921_v0  ;;  %vm1973_vm8 = vcmp.eq.f32.partialorder %v1972_v61, 8.507059e+37  ;;  %v9653_v3 = vadd.f32 %v9513_v52, %v1809_v40 }
 0x342   : > { %v9563_v60 = vpop.eup %7474  ;;  %v1949_v58 = vmul.f32 %v9558_v55, %v9543_v41  ;;  %vm1954_vm13 = vweird.f32 %v9558_v55  ;;  %v1975_v20 = vor.u32 1.1754944e-38, %v1974_v57  ;;  %v1812_v0 = vpop.f32.mrf.mxu0 }
 0x343   : > { %v1934_v2 = vmul.f32 %v9563_v60, %v9545_v43  ;;  %v1926_v21 = vsel %vm1925_vm11, %v9547_v45, %v1922_v10  ;;  %vm1939_vm14 = vweird.f32 %v9563_v60  ;;  %vm9613_vm0 = vmor %vm1953_vm15, %vm1954_vm13  ;;  %v1945_v43 = vor.u32 1.1754944e-38, %v1944_v36 }
 0x344   : > { %v1950_v19 = vsub.f32 1.0, %v1949_v58  ;;  %v9600_v29 = vsel %vm1928_vm12, %v1930_v24, %v1926_v21  ;;  %vm1940_vm2 = vmor %vm1938_vm1, %vm1939_vm14 }
 0x345   : > { %v1935_v11 = vsub.f32 1.0, %v1934_v2 }
 0x346   : > { %v1951_v17 = vmul.f32 %v9558_v55, %v1950_v19 }
 0x347   : > { %v1936_v22 = vmul.f32 %v9563_v60, %v1935_v11 }
 0x348   : > { %v1952_v26 = vadd.f32 %v9558_v55, %v1951_v17 }
 0x349   : > { %v1937_v33 = vadd.f32 %v9563_v60, %v1936_v22 }
 0x34a   : > { %v1956_v41 = vsel %vm9613_vm0, %v9558_v55, %v1952_v26  ;;  %v1815_v15 = vpop.f32.mrf.mxu0 }
 0x34b   : > { %v1941_v45 = vsel %vm1940_vm2, %v9563_v60, %v1937_v33  ;;  %v9677_v26 = vadd.f32 %v9513_v52, %v1815_v15 }
 0x352   : > { %v1818_v35 = vpop.f32.mrf.mxu0 }
 0x353   : > { %v9688_v39 = vadd.f32 %v9513_v52, %v1818_v35 }
 0x358   : > { %v2161_v46 = vpop.permute.xlu0 %2160 }
 0x359   : > { %v2208_v48 = vmul.f32 %v2161_v46, %v9549_v47  ;;  %v9630_v46 = vadd.f32 %v9513_v52, %v1806_v14 }
 0x35b   : > { %7476 = vtanh.f32 %v2208_v48  ;;  %v9632_v48 = vsel %vm1958_vm3, %v1960_v1, %v1956_v41  ;;  %v1821_v1 = vpop.f32.mrf.mxu0 }
 0x35c   : > { %7478 = vrcp.f32 %v9556_v51 }
 0x35d   : > { %7480 = vpow2.f32 %v6989_v53  ;;  %v9639_v53 = vsel %vm1943_vm4, %v1945_v43, %v1941_v45  ;;  %v9697_v45 = vadd.f32 %v9513_v52, %v1821_v1 }
 0x35e   : > { %7482 = vtanh.f32 %v9561_v56 }
 0x35f   : > { %7484 = vpow2.f32 %v6990_v4 }
 0x361   : > { %v7477_v62 = vpop.eup %7476 }
 0x362   : > { %2256 = vrot.lane.b32.xlu1 %v7477_v62, %s8817_s18  ;;  %v9579_v8 = vpop.eup %7478 }
 0x363   : > { %v7481_v12 = vpop.eup %7480  ;;  %v1964_v18 = vmul.f32 %v9579_v8, %v9556_v51  ;;  %vm1969_vm5 = vweird.f32 %v9579_v8 }
 0x364   : > { %v7483_v16 = vpop.eup %7482  ;;  %v9593_v23 = vadd.f32 1.0, %v7481_v12  ;;  %vm1970_vm7 = vmor %vm1968_vm6, %vm1969_vm5  ;;  %v9665_v12 = vadd.f32 %v9513_v52, %v1812_v0 }
 0x365   : > { %v1965_v27 = vsub.f32 1.0, %v1964_v18  ;;  %v7485_v30 = vpop.eup %7484 }
 0x366   : > { %v2163_v7 = vpop.permute.xlu0 %2162  ;;  %v2169_v37 = vpop.permute.xlu2 %2168  ;;  %v9626_v44 = vadd.f32 1.0, %v7485_v30  ;;  %v1989_v18 = vand.u32 2147483648, %v9593_v23  ;;  %vm1983_vm10 = vweird.f32 %v9593_v23  ;;  %v1987_v22 = vand.u32 2147483647, %v9593_v23 }
 0x367   : > { %v2209_v9 = vmul.f32 %v2163_v7, %v9577_v5  ;;  %v1966_v42 = vmul.f32 %v9579_v8, %v1965_v27  ;;  %v2212_v6 = vmul.f32 %v2169_v37, %v9632_v48 }
 0x368   : > { %v1990_v27 = vor.u32 1.1754944e-38, %v1989_v18  ;;  %vm1988_vm13 = vcmp.eq.f32.partialorder %v1987_v22, 8.507059e+37  ;;  %v2004_v30 = vand.u32 2147483648, %v9626_v44  ;;  %vm1998_vm14 = vweird.f32 %v9626_v44 }
 0x369   : > { %7486 = vtanh.f32 %v2209_v9  ;;  %v1967_v50 = vadd.f32 %v9579_v8, %v1966_v42 }
 0x36a   : > { %2176 = vrot.lane.b32.xlu1 %v7483_v16, %s8816_s20  ;;  %7488 = vrcp.f32 %v9593_v23  ;;  %v2005_v37 = vor.u32 1.1754944e-38, %v2004_v30  ;;  %v6996_v30 = vmul.f32 -1.442695, %v9677_v26 }
 0x36b   : > { %7490 = vtanh.f32 %v9596_v25  ;;  %v1971_v62 = vsel %vm1970_vm7, %v9579_v8, %v1967_v50  ;;  %v6993_v50 = vmul.f32 -1.442695, %v9630_v46 }
 0x36c   : > { %v9655_v51 = vsel %vm1973_vm8, %v1975_v20, %v1971_v62 }
 0x36e   : > { %v2165_v28 = vpop.permute.xlu1 %2164  ;;  %v2171_v58 = vpop.permute.xlu2 %2170 }
 0x36f   : > { %v2210_v32 = vmul.f32 %v2165_v28, %v9600_v29  ;;  %v7487_v34 = vpop.eup %7486  ;;  %v2213_v19 = vmul.f32 %v2171_v58, %v9655_v51 }
 0x370   : > { %2258 = vrot.lane.b32.xlu0 %v7487_v34, %s8817_s18  ;;  %v9634_v49 = vpop.eup %7488 }
 0x371   : > { %7492 = vtanh.f32 %v2210_v32  ;;  %v7491_v55 = vpop.eup %7490  ;;  %v1979_v63 = vmul.f32 %v9634_v49, %v9593_v23  ;;  %vm1984_vm9 = vweird.f32 %v9634_v49  ;;  %v2002_v23 = vand.u32 2147483647, %v9626_v44 }
 0x372   : > { %7494 = vrcp.f32 %v9626_v44  ;;  %vm1985_vm11 = vmor %vm1983_vm10, %vm1984_vm9 }
 0x373   : > { %7496 = vtanh.f32 %v9630_v46  ;;  %v1980_v9 = vsub.f32 1.0, %v1979_v63  ;;  %vm2003_vm0 = vcmp.eq.f32.partialorder %v2002_v23, 8.507059e+37 }
 0x375   : > { %v1981_v11 = vmul.f32 %v9634_v49, %v1980_v9 }
 0x376   : > { %v2167_v54 = vpop.permute.xlu1 %2166 }
 0x377   : > { %v2211_v59 = vmul.f32 %v2167_v54, %v9639_v53  ;;  %v7493_v60 = vpop.eup %7492  ;;  %v1982_v13 = vadd.f32 %v9634_v49, %v1981_v11  ;;  %v6991_v54 = vmul.f32 -1.442695, %v9561_v56  ;;  %v6994_v56 = vmul.f32 -1.442695, %v9653_v3 }
 0x378   : > { %2260 = vrot.lane.b32.xlu2 %v7493_v60, %s8817_s18  ;;  %2178 = vrot.lane.b32.xlu0 %v7491_v55, %s8816_s20  ;;  %v7495_v2 = vpop.eup %7494  ;;  %v6992_v60 = vmul.f32 -1.442695, %v9596_v25 }
 0x379   : > { %7498 = vtanh.f32 %v2211_v59  ;;  %v7497_v4 = vpop.eup %7496  ;;  %v1994_v8 = vmul.f32 %v7495_v2, %v9626_v44  ;;  %v1986_v24 = vsel %vm1985_vm11, %v9634_v49, %v1982_v13  ;;  %vm1999_vm12 = vweird.f32 %v7495_v2 }
 0x37a   : > { %7500 = vtanh.f32 %v2212_v6  ;;  %v9680_v31 = vsel %vm1988_vm13, %v1990_v27, %v1986_v24  ;;  %vm2000_vm15 = vmor %vm1998_vm14, %vm1999_vm12 }
 0x37b   : > { %7502 = vtanh.f32 %v9653_v3  ;;  %v1995_v14 = vsub.f32 1.0, %v1994_v8  ;;  %v6995_v8 = vmul.f32 -1.442695, %v9665_v12 }
 0x37c   : > { %7504 = vtanh.f32 %v2213_v19 }
 0x37d   : > { %7506 = vtanh.f32 %v9665_v12  ;;  %v1996_v21 = vmul.f32 %v7495_v2, %v1995_v14 }
 0x37e   : > { %7508 = vtanh.f32 %v9677_v26  ;;  %v2175_v38 = vpop.permute.xlu2 %2174 }
 0x37f   : > { %v7499_v7 = vpop.eup %7498  ;;  %v1997_v28 = vadd.f32 %v7495_v2, %v1996_v21 }
 0x380   : > { %v7501_v10 = vpop.eup %7500  ;;  %2262 = vrot.lane.b32.xlu1 %v7499_v7, %s8817_s18  ;;  %2180 = vrot.lane.b32.xlu2 %v7497_v4, %s8816_s20 }
 0x381   : > { %2264 = vrot.lane.b32.xlu0 %v7501_v10, %s8817_s18  ;;  %v7503_v16 = vpop.eup %7502  ;;  %v2001_v36 = vsel %vm2000_vm15, %v7495_v2, %v1997_v28 }
 0x382   : > { %v7505_v17 = vpop.eup %7504  ;;  %v9690_v40 = vsel %vm2003_vm0, %v2005_v37, %v2001_v36 }
 0x383   : > { %v7507_v33 = vpop.eup %7506  ;;  %v2215_v41 = vmul.f32 %v2175_v38, %v9690_v40 }
 0x384   : > { %v7509_v42 = vpop.eup %7508 }
 0x388   : > { %2182 = vrot.lane.b32.xlu1 %v7503_v16, %s8816_s20  ;;  %2266 = vrot.lane.b32.xlu2 %v7505_v17, %s8817_s18 }
 0x38e   : > { %v2173_v32 = vpop.permute.xlu0 %2172 }
 0x38f   : > { %v2214_v34 = vmul.f32 %v2173_v32, %v9680_v31 }
 0x390   : > { %2184 = vrot.lane.b32.xlu1 %v7507_v33, %s8816_s20 }
 0x391   : > { %7510 = vtanh.f32 %v2214_v34 }
 0x392   : > { %7512 = vtanh.f32 %v9688_v39 }
 0x393   : > { %7514 = vtanh.f32 %v2215_v41 }
 0x394   : > { %7516 = vtanh.f32 %v9697_v45 }
 0x395   : > { %7518 = vpow2.f32 %v6993_v50 }
 0x396   : > { %7520 = vpow2.f32 %v6991_v54 }
 0x397   : > { %v7511_v44 = vpop.eup %7510 }
 0x398   : > { %2268 = vrot.lane.b32.xlu2 %v7511_v44, %s8817_s18  ;;  %2186 = vrot.lane.b32.xlu1 %v7509_v42, %s8816_s20  ;;  %v7513_v43 = vpop.eup %7512 }
 0x399   : > { %v7515_v49 = vpop.eup %7514 }
 0x39a   : > { %v7517_v6 = vpop.eup %7516 }
 0x39b   : > { %v7519_v55 = vpop.eup %7518 }
 0x39c   : > { %v7521_v52 = vpop.eup %7520  ;;  %v1882_v57 = vadd.f32 1.0, %v7519_v55 }
 0x39d   : > { %v1880_v59 = vadd.f32 1.0, %v7521_v52 }
 0x39e   : > { %7522 = vrcp.f32 %v1882_v57  ;;  %v2049_v3 = vand.u32 2147483648, %v1882_v57  ;;  %vm2043_vm3 = vweird.f32 %v1882_v57  ;;  %v2047_v16 = vand.u32 2147483647, %v1882_v57 }
 0x39f   : > { %7524 = vrcp.f32 %v1880_v59  ;;  %v2019_v13 = vand.u32 2147483648, %v1880_v59  ;;  %vm2013_vm5 = vweird.f32 %v1880_v59  ;;  %v2017_v17 = vand.u32 2147483647, %v1880_v59 }
 0x3a0   : > { %2270 = vrot.lane.b32.xlu2 %v7515_v49, %s8817_s18  ;;  %2188 = vrot.lane.b32.xlu1 %v7513_v43, %s8816_s20  ;;  %7526 = vpow2.f32 %v6992_v60  ;;  %vm2048_vm7 = vcmp.eq.f32.partialorder %v2047_v16, 8.507059e+37  ;;  %v6997_v49 = vmul.f32 -1.442695, %v9688_v39 }
 0x3a1   : > { %v2020_v24 = vor.u32 1.1754944e-38, %v2019_v13  ;;  %vm2018_vm8 = vcmp.eq.f32.partialorder %v2017_v17, 8.507059e+37 }
 0x3a4   : > { %v7523_v61 = vpop.eup %7522 }
 0x3a5   : > { %v7525_v62 = vpop.eup %7524  ;;  %v2039_v58 = vmul.f32 %v7523_v61, %v1882_v57  ;;  %vm2044_vm1 = vweird.f32 %v7523_v61 }
 0x3a6   : > { %v7527_v20 = vpop.eup %7526  ;;  %v2009_v63 = vmul.f32 %v7525_v62, %v1880_v59  ;;  %vm2014_vm2 = vweird.f32 %v7525_v62  ;;  %vm2045_vm4 = vmor %vm2043_vm3, %vm2044_vm1 }
 0x3a7   : > { %v9706_v0 = vadd.f32 1.0, %v7527_v20  ;;  %v2040_v46 = vsub.f32 1.0, %v2039_v58  ;;  %vm2015_vm6 = vmor %vm2013_vm5, %vm2014_vm2 }
 0x3a8   : > { %2190 = vrot.lane.b32.xlu1 %v7517_v6, %s8816_s20  ;;  %v2010_v2 = vsub.f32 1.0, %v2009_v63 }
 0x3a9   : > { %7528 = vrcp.f32 %v9706_v0  ;;  %v2041_v4 = vmul.f32 %v7523_v61, %v2040_v46  ;;  %v2034_v6 = vand.u32 2147483648, %v9706_v0  ;;  %vm2028_vm10 = vweird.f32 %v9706_v0 }
 0x3aa   : > { %7530 = vpow2.f32 %v6994_v56  ;;  %v2011_v19 = vmul.f32 %v7525_v62, %v2010_v2 }
 0x3ab   : > { %v2042_v9 = vadd.f32 %v7523_v61, %v2041_v4  ;;  %7532 = vpow2.f32 %v6995_v8  ;;  %v2035_v52 = vor.u32 1.1754944e-38, %v2034_v6 }
 0x3ac   : > { %v2012_v14 = vadd.f32 %v7525_v62, %v2011_v19 }
 0x3ad   : > { %v2046_v18 = vsel %vm2045_vm4, %v7523_v61, %v2042_v9 }
 0x3ae   : > { %v2016_v22 = vsel %vm2015_vm6, %v7525_v62, %v2012_v14 }
 0x3af   : > { %v9712_v10 = vpop.eup %7528  ;;  %v9726_v33 = vsel %vm2018_vm8, %v2020_v24, %v2016_v22 }
 0x3b0   : > { %v7531_v15 = vpop.eup %7530  ;;  %v2024_v21 = vmul.f32 %v9712_v10, %v9706_v0  ;;  %vm2029_vm9 = vweird.f32 %v9712_v10 }
 0x3b1   : > { %v9720_v12 = vadd.f32 1.0, %v7531_v15  ;;  %v7533_v36 = vpop.eup %7532  ;;  %vm2030_vm11 = vmor %vm2028_vm10, %vm2029_vm9 }
 0x3b2   : > { %v2025_v34 = vsub.f32 1.0, %v2024_v21  ;;  %v9731_v38 = vadd.f32 1.0, %v7533_v36 }
 0x3b3   : > { %7534 = vrcp.f32 %v9720_v12  ;;  %v2064_v8 = vand.u32 2147483648, %v9720_v12  ;;  %vm2058_vm14 = vweird.f32 %v9720_v12 }
 0x3b4   : > { %v2026_v37 = vmul.f32 %v9712_v10, %v2025_v34  ;;  %v2079_v24 = vand.u32 2147483648, %v9731_v38  ;;  %vm2073_vm2 = vweird.f32 %v9731_v38 }
 0x3b5   : > { %v2065_v14 = vor.u32 1.1754944e-38, %v2064_v8 }
 0x3b6   : > { %v2027_v1 = vadd.f32 %v9712_v10, %v2026_v37 }
 0x3b8   : > { %v2031_v39 = vsel %vm2030_vm11, %v9712_v10, %v2027_v1 }
 0x3b9   : > { %v7535_v41 = vpop.eup %7534 }
 0x3ba   : > { %v2054_v54 = vmul.f32 %v7535_v41, %v9720_v12  ;;  %vm2059_vm13 = vweird.f32 %v7535_v41 }
 0x3bb   : > { %vm2060_vm15 = vmor %vm2058_vm14, %vm2059_vm13 }
 0x3bc   : > { %v2055_v61 = vsub.f32 1.0, %v2054_v54 }
 0x3d2   : > { %v9710_v25 = vpop.permute.xlu2 %2260 }
 0x3d3   : > { %v2306_v20 = vmul.f32 %v9710_v25, %v9600_v29 }
 0x3d4   : > { %v2257_v7 = vpop.permute.xlu1 %2256 }
 0x3d5   : > { %v2304_v11 = vmul.f32 %v2257_v7, %v9549_v47  ;;  %v2050_v47 = vor.u32 1.1754944e-38, %v2049_v3 }
 0x3d7   : > { %2344 = vrot.lane.b32.xlu0 %v2304_v11, %s8817_s18  ;;  %v9722_v27 = vsel %vm2048_vm7, %v2050_v47, %v2046_v18  ;;  %v2062_v11 = vand.u32 2147483647, %v9720_v12 }
 0x3d9   : > { %vm2063_vm0 = vcmp.eq.f32.partialorder %v2062_v11, 8.507059e+37 }
 0x3da   : > { %v2181_v28 = vpop.permute.xlu2 %2180 }
 0x3db   : > { %v2218_v32 = vmul.f32 %v2181_v28, %v9722_v27  ;;  %v2077_v28 = vand.u32 2147483647, %v9731_v38 }
 0x3dc   : > { %v2177_v23 = vpop.permute.xlu1 %2176 }
 0x3dd   : > { %v2216_v35 = vmul.f32 %v2177_v23, %v9726_v33  ;;  %7536 = vtanh.f32 %v2218_v32  ;;  %v2080_v23 = vor.u32 1.1754944e-38, %v2079_v24  ;;  %vm2078_vm4 = vcmp.eq.f32.partialorder %v2077_v28, 8.507059e+37 }
 0x3df   : > { %7538 = vtanh.f32 %v2216_v35 }
 0x3e0   : > { %7540 = vpow2.f32 %v6996_v30 }
 0x3e1   : > { %7542 = vrcp.f32 %v9731_v38 }
 0x3e2   : > { %v2259_v26 = vpop.permute.xlu0 %2258  ;;  %7544 = vpow2.f32 %v6997_v49  ;;  %v2267_v57 = vpop.permute.xlu2 %2266 }
 0x3e3   : > { %v7537_v42 = vpop.eup %7536  ;;  %v2305_v44 = vmul.f32 %v2259_v26, %v9577_v5  ;;  %v2032_v5 = vand.u32 2147483647, %v9706_v0  ;;  %v2056_v0 = vmul.f32 %v7535_v41, %v2055_v61  ;;  %v2309_v17 = vmul.f32 %v2267_v57, %v9655_v51 }
 0x3e4   : > { %2276 = vrot.lane.b32.xlu1 %v7537_v42, %s8817_s18  ;;  %v6998_v61 = vmul.f32 -1.442695, %v9697_v45  ;;  %v2321_v45 = vld [vmem:[#allocation8 + $0x8] sm:$0xff] }
 0x3e5   : > { %v7539_v43 = vpop.eup %7538  ;;  %2346 = vrot.lane.b32.xlu0 %v2305_v44, %s8817_s18  ;;  %vm2033_vm12 = vcmp.eq.f32.partialorder %v2032_v5, 8.507059e+37  ;;  %v2057_v25 = vadd.f32 %v7535_v41, %v2056_v0 }
 0x3e6   : > { %v7541_v50 = vpop.eup %7540  ;;  %2272 = vrot.lane.b32.xlu2 %v7539_v43, %s8817_s18  ;;  %v9748_v59 = vsel %vm2033_vm12, %v2035_v52, %v2031_v39 }
 0x3e7   : > { %v9746_v55 = vadd.f32 1.0, %v7541_v50  ;;  %v7543_v62 = vpop.eup %7542 }
 0x3e8   : > { %v7545_v63 = vpop.eup %7544  ;;  %v2069_v56 = vmul.f32 %v7543_v62, %v9731_v38  ;;  %vm2074_vm1 = vweird.f32 %v7543_v62 }
 0x3e9   : > { %7546 = vrcp.f32 %v9746_v55  ;;  %v9756_v46 = vadd.f32 1.0, %v7545_v63  ;;  %vm2075_vm3 = vmor %vm2073_vm2, %vm2074_vm1  ;;  %v2094_v38 = vand.u32 2147483648, %v9746_v55  ;;  %vm2088_vm6 = vweird.f32 %v9746_v55 }
 0x3ea   : > { %v2179_v60 = vpop.permute.xlu0 %2178  ;;  %v2070_v9 = vsub.f32 1.0, %v2069_v56  ;;  %v2092_v26 = vand.u32 2147483647, %v9746_v55  ;;  %vm2376_vm1 = vcmask 261120  }
 0x3eb   : > { %v2217_v58 = vmul.f32 %v2179_v60, %v9748_v59  ;;  %v2095_v1 = vor.u32 1.1754944e-38, %v2094_v38  ;;  %vm2103_vm10 = vweird.f32 %v9756_v46  ;;  %v2107_v52 = vand.u32 2147483647, %v9756_v46 }
 0x3ec   : > { %vm2093_vm8 = vcmp.eq.f32.partialorder %v2092_v26, 8.507059e+37 }
 0x3ed   : > { %7548 = vtanh.f32 %v2217_v58  ;;  %2348 = vrot.lane.b32.xlu0 %v2306_v20, %s8817_s18  ;;  %vm2108_vm12 = vcmp.eq.f32.partialorder %v2107_v52, 8.507059e+37 }
 0x3ee   : > { %7550 = vrcp.f32 %v9756_v46 }
 0x3ef   : > { %v7547_v19 = vpop.eup %7546 }
 0x3f0   : > { %v2084_v3 = vmul.f32 %v7547_v19, %v9746_v55  ;;  %vm2089_vm5 = vweird.f32 %v7547_v19  ;;  %v2109_v55 = vand.u32 2147483648, %v9756_v46 }
 0x3f1   : > { %vm2090_vm7 = vmor %vm2088_vm6, %vm2089_vm5 }
 0x3f2   : > { %v2269_v2 = vpop.permute.xlu2 %2268  ;;  %v2263_v4 = vpop.permute.xlu1 %2262  ;;  %v2085_v12 = vsub.f32 1.0, %v2084_v3  ;;  %v2110_v60 = vor.u32 1.1754944e-38, %v2109_v55 }
 0x3f3   : > { %v2310_v7 = vmul.f32 %v2269_v2, %v9680_v31  ;;  %v2307_v29 = vmul.f32 %v2263_v4, %v9639_v53  ;;  %v7549_v10 = vpop.eup %7548  ;;  %v2061_v31 = vsel %vm2060_vm15, %v7535_v41, %v2057_v25  ;;  %v2071_v53 = vmul.f32 %v7543_v62, %v2070_v9  ;;  %v2265_v15 = vpop.permute.xlu0 %2264  ;;  %v2322_v2 = vld [vmem:[#allocation8 + $0x10] sm:$0xff]  ;;  %v2320_v4 = vld [vmem:[#allocation8] sm:$0xff] }
 0x3f4   : > { %2274 = vrot.lane.b32.xlu2 %v7549_v10, %s8817_s18  ;;  %v9768_v16 = vsel %vm2063_vm0, %v2065_v14, %v2061_v31  ;;  %v7551_v47 = vpop.eup %7550  ;;  %v2308_v22 = vmul.f32 %v2265_v15, %v9632_v48  ;;  %v2086_v30 = vmul.f32 %v7547_v19, %v2085_v12 }
 0x3f5   : > { %2356 = vrot.lane.b32.xlu1 %v2310_v7, %s8817_s18  ;;  %2350 = vrot.lane.b32.xlu0 %v2307_v29, %s8817_s18  ;;  %v2072_v21 = vadd.f32 %v7543_v62, %v2071_v53  ;;  %v2099_v32 = vmul.f32 %v7551_v47, %v9756_v46  ;;  %vm2104_vm9 = vweird.f32 %v7551_v47  ;;  %v2323_v46 = vld [vmem:[#allocation8 + $0x18] sm:$0xff] }
 0x3f6   : > { %v2087_v37 = vadd.f32 %v7547_v19, %v2086_v30  ;;  %vm2105_vm11 = vmor %vm2103_vm10, %vm2104_vm9  ;;  %2421 = vmatpush.msra.mxu1 %v2323_v46 }
 0x3f7   : > { %v2076_v51 = vsel %vm2075_vm3, %v7543_v62, %v2072_v21  ;;  %v2100_v41 = vsub.f32 1.0, %v2099_v32 }
 0x3f8   : > { %v9779_v34 = vsel %vm2078_vm4, %v2080_v23, %v2076_v51  ;;  %v2091_v42 = vsel %vm2090_vm7, %v7547_v19, %v2087_v37  ;;  %2422 = vmatpush.msra.mxu1 %v2322_v2 }
 0x3f9   : > { %v2101_v44 = vmul.f32 %v7551_v47, %v2100_v41  ;;  %v9786_v49 = vsel %vm2093_vm8, %v2095_v1, %v2091_v42 }
 0x3fa   : > { %v2183_v13 = vpop.permute.xlu1 %2182  ;;  %v2271_v43 = vpop.permute.xlu2 %2270  ;;  %2423 = vmatpush.msra.mxu1 %v2321_v45 }
 0x3fb   : > { %v2219_v18 = vmul.f32 %v2183_v13, %v9768_v16  ;;  %v2102_v54 = vadd.f32 %v7551_v47, %v2101_v44  ;;  %v2311_v39 = vmul.f32 %v2271_v43, %v9690_v40  ;;  %v9829_v44 = vld [vmem:[%s13679_s12 + $0x7] ss:$0 sm:$0xff] }
 0x3fc   : > { %2354 = vrot.lane.b32.xlu2 %v2309_v17, %s8817_s18  ;;  %2424 = vmatpush.msra.mxu1 %v2320_v4 }
 0x3fd   : > { %7552 = vtanh.f32 %v2219_v18  ;;  %2352 = vrot.lane.b32.xlu0 %v2308_v22, %s8817_s18  ;;  %v2106_v57 = vsel %vm2105_vm11, %v7551_v47, %v2102_v54 }
 0x3fe   : > { %v9796_v62 = vsel %vm2108_vm12, %v2110_v60, %v2106_v57 }
 0x402   : > { %v2185_v48 = vpop.permute.xlu1 %2184 }
 0x403   : > { %v7553_v35 = vpop.eup %7552  ;;  %v2220_v36 = vmul.f32 %v2185_v48, %v9779_v34 }
 0x405   : > { %7554 = vtanh.f32 %v2220_v36  ;;  %2278 = vrot.lane.b32.xlu0 %v7553_v35, %s8817_s18 }
 0x40a   : > { %v2187_v6 = vpop.permute.xlu1 %2186 }
 0x40b   : > { %v7555_v50 = vpop.eup %7554  ;;  %v2221_v5 = vmul.f32 %v2187_v6, %v9786_v49 }
 0x40c   : > { %2280 = vrot.lane.b32.xlu2 %v7555_v50, %s8817_s18 }
 0x40d   : > { %7556 = vtanh.f32 %v2221_v5  ;;  %2358 = vrot.lane.b32.xlu0 %v2311_v39, %s8817_s18 }
 0x412   : > { %v2189_v40 = vpop.permute.xlu1 %2188 }
 0x413   : > { %v7557_v20 = vpop.eup %7556  ;;  %v2222_v58 = vmul.f32 %v2189_v40, %v9796_v62 }
 0x414   : > { %2282 = vrot.lane.b32.xlu1 %v7557_v20, %s8817_s18 }
 0x415   : > { %7558 = vtanh.f32 %v2222_v58 }
 0x416   : > { %7560 = vpow2.f32 %v6998_v61 }
 0x41a   : > { %v2191_v53 = vpop.permute.xlu1 %2190 }
 0x41b   : > { %v7559_v63 = vpop.eup %7558 }
 0x41c   : > { %v7561_v0 = vpop.eup %7560  ;;  %2284 = vrot.lane.b32.xlu0 %v7559_v63, %s8817_s18 }
 0x41d   : > { %v1887_v56 = vadd.f32 1.0, %v7561_v0 }
 0x41f   : > { %7562 = vrcp.f32 %v1887_v56  ;;  %v2124_v10 = vand.u32 2147483648, %v1887_v56  ;;  %vm2118_vm14 = vweird.f32 %v1887_v56  ;;  %v2122_v8 = vand.u32 2147483647, %v1887_v56 }
 0x421   : > { %v2125_v31 = vor.u32 1.1754944e-38, %v2124_v10  ;;  %vm2123_vm0 = vcmp.eq.f32.partialorder %v2122_v8, 8.507059e+37 }
 0x425   : > { %v7563_v19 = vpop.eup %7562 }
 0x426   : > { %v2114_v7 = vmul.f32 %v7563_v19, %v1887_v56  ;;  %vm2119_vm13 = vweird.f32 %v7563_v19 }
 0x427   : > { %vm2120_vm15 = vmor %vm2118_vm14, %vm2119_vm13 }
 0x428   : > { %v2115_v29 = vsub.f32 1.0, %v2114_v7 }
 0x42a   : > { %v2116_v25 = vmul.f32 %v7563_v19, %v2115_v29 }
 0x42c   : > { %v2117_v9 = vadd.f32 %v7563_v19, %v2116_v25 }
 0x42e   : > { %v2121_v11 = vsel %vm2120_vm15, %v7563_v19, %v2117_v9 }
 0x42f   : > { %v2126_v3 = vsel %vm2123_vm0, %v2125_v31, %v2121_v11 }
 0x430   : > { %v2223_v14 = vmul.f32 %v2191_v53, %v2126_v3 }
 0x432   : > { %7564 = vtanh.f32 %v2223_v14 }
 0x438   : > { %v7565_v18 = vpop.eup %7564 }
 0x440   : > { %v2273_v15 = vpop.permute.xlu2 %2272 }
 0x441   : > { %v2312_v13 = vmul.f32 %v2273_v15, %v9726_v33 }
 0x443   : > { %2360 = vrot.lane.b32.xlu2 %v2312_v13, %s8817_s18 }
 0x449   : > { %v2345_v17 = vpop.permute.xlu0 %2344 }
 0x44a   : > { %6999 = vmatmul.msk.f32.vlgmr.msra.gmra.mxu1 %vm2376_vm1, %v2345_v17 }
 0x44b   : > { %2286 = vrot.lane.b32.xlu2 %v7565_v18, %s8817_s18 }
 0x44e   : > { %v2275_v21 = vpop.permute.xlu2 %2274 }
 0x44f   : > { %v2313_v12 = vmul.f32 %v2275_v21, %v9748_v59 }
 0x451   : > { %2362 = vrot.lane.b32.xlu1 %v2313_v12, %s8817_s18 }
 0x456   : > { %v2277_v47 = vpop.permute.xlu1 %2276  ;;  %v2355_v33 = vpop.permute.xlu2 %2354 }
 0x457   : > { %v2314_v22 = vmul.f32 %v2277_v47, %v9722_v27  ;;  %v2347_v24 = vpop.permute.xlu0 %2346 }
 0x458   : > { %7000 = vmatmul.msk.f32.gmra.mxu1 %vm2376_vm1, %v2347_v24 }
 0x459   : > { %2364 = vrot.lane.b32.xlu0 %v2314_v22, %s8817_s18 }
 0x45f   : > { %v2349_v28 = vpop.permute.xlu0 %2348 }
 0x460   : > { %7001 = vmatmul.msk.f32.gmra.mxu1 %vm2376_vm1, %v2349_v28 }
 0x466   : > { %v2281_v51 = vpop.permute.xlu2 %2280 }
 0x467   : > { %v2316_v30 = vmul.f32 %v2281_v51, %v9779_v34  ;;  %v2351_v32 = vpop.permute.xlu0 %2350  ;;  %v2357_v48 = vpop.permute.xlu1 %2356 }
 0x468   : > { %7002 = vmatmul.msk.f32.gmra.mxu1 %vm2376_vm1, %v2351_v32 }
 0x469   : > { %2368 = vrot.lane.b32.xlu2 %v2316_v30, %s8817_s18 }
 0x46f   : > { %v2353_v59 = vpop.permute.xlu0 %2352 }
 0x470   : > { %7003 = vmatmul.msk.f32.gmra.mxu1 %vm2376_vm1, %v2353_v59 }
 0x477   : > { %v2279_v27 = vpop.permute.xlu0 %2278 }
 0x478   : > { %v2315_v23 = vmul.f32 %v2279_v27, %v9768_v16  ;;  %7004 = vmatmul.msk.f32.gmra.mxu1 %vm2376_vm1, %v2355_v33 }
 0x47a   : > { %2366 = vrot.lane.b32.xlu1 %v2315_v23, %s8817_s18 }
 0x47f   : > { %v2359_v35 = vpop.permute.xlu0 %2358 }
 0x480   : > { %7005 = vmatmul.msk.f32.gmra.mxu1 %vm2376_vm1, %v2357_v48 }
 0x486   : > { %v2283_v34 = vpop.permute.xlu1 %2282 }
 0x487   : > { %v2317_v36 = vmul.f32 %v2283_v34, %v9786_v49 }
 0x488   : > { %7006 = vmatmul.msk.f32.gmra.mxu1 %vm2376_vm1, %v2359_v35 }
 0x489   : > { %2370 = vrot.lane.b32.xlu0 %v2317_v36, %s8817_s18 }
 0x48e   : > { %v2285_v37 = vpop.permute.xlu0 %2284 }
 0x48f   : > { %v2318_v41 = vmul.f32 %v2285_v37, %v9796_v62 }
 0x491   : > { %2372 = vrot.lane.b32.xlu1 %v2318_v41, %s8817_s18 }
 0x49d   : > { %v2361_v16 = vpop.permute.xlu2 %2360 }
 0x49e   : > { %7007 = vmatmul.msk.f32.gmra.mxu1 %vm2376_vm1, %v2361_v16 }
 0x4a5   : > { %v2287_v38 = vpop.permute.xlu2 %2286 }
 0x4a6   : > { %v2319_v26 = vmul.f32 %v2287_v38, %v2126_v3 }
 0x4a8   : > { %2374 = vrot.lane.b32.xlu2 %v2319_v26, %s8817_s18 }
 0x4c3   : > { %v2363_v42 = vpop.permute.xlu1 %2362  ;;  %v2369_v58 = vpop.permute.xlu2 %2368 }
 0x4c4   : > { %7008 = vmatmul.msk.f32.gmra.mxu1 %vm2376_vm1, %v2363_v42 }
 0x4c7   : > { %v2426_v1 = vpop.f32.mrf.mxu1 }
 0x4c8   : > { %v2427_v43 = vadd.f32 %v9829_v44, %v2426_v1 }
 0x4ca   : > { %7566 = vtanh.f32 %v2427_v43  ;;  %v7015_v11 = vmul.f32 -1.442695, %v2427_v43 }
 0x4cb   : > { %v2365_v49 = vpop.permute.xlu0 %2364 }
 0x4cc   : > { %7009 = vmatmul.msk.f32.gmra.mxu1 %vm2376_vm1, %v2365_v49 }
 0x4d0   : > { %v7567_v6 = vpop.eup %7566 }
 0x4d1   : > { %2810 = vrot.lane.b32.xlu0 %v7567_v6, %s8816_s20 }
 0x4d5   : > { %v2429_v50 = vpop.f32.mrf.mxu1 }
 0x4d6   : > { %v2430_v5 = vadd.f32 %v9829_v44, %v2429_v50 }
 0x4d8   : > { %7568 = vtanh.f32 %v2430_v5  ;;  %v7016_v15 = vmul.f32 -1.442695, %v2430_v5 }
 0x4dd   : > { %v2432_v54 = vpop.f32.mrf.mxu1 }
 0x4de   : > { %v7569_v39 = vpop.eup %7568  ;;  %v2433_v55 = vadd.f32 %v9829_v44, %v2432_v54 }
 0x4df   : > { %2812 = vrot.lane.b32.xlu1 %v7569_v39, %s8816_s20 }
 0x4e0   : > { %7570 = vtanh.f32 %v2433_v55  ;;  %v7017_v8 = vmul.f32 -1.442695, %v2433_v55 }
 0x4e5   : > { %v2435_v52 = vpop.f32.mrf.mxu1 }
 0x4e6   : > { %v7571_v57 = vpop.eup %7570  ;;  %v2436_v60 = vadd.f32 %v9829_v44, %v2435_v52 }
 0x4e7   : > { %2814 = vrot.lane.b32.xlu2 %v7571_v57, %s8816_s20 }
 0x4e8   : > { %7572 = vtanh.f32 %v2436_v60  ;;  %v7018_v24 = vmul.f32 -1.442695, %v2436_v60 }
 0x4ec   : > { %v2367_v61 = vpop.permute.xlu1 %2366 }
 0x4ed   : > { %v2438_v62 = vpop.f32.mrf.mxu1  ;;  %7010 = vmatmul.msk.f32.gmra.mxu1 %vm2376_vm1, %v2367_v61 }
 0x4ee   : > { %v7573_v40 = vpop.eup %7572  ;;  %v9842_v20 = vadd.f32 %v9829_v44, %v2438_v62 }
 0x4ef   : > { %2816 = vrot.lane.b32.xlu0 %v7573_v40, %s8816_s20 }
 0x4f0   : > { %7574 = vtanh.f32 %v9842_v20  ;;  %v7019_v37 = vmul.f32 -1.442695, %v9842_v20 }
 0x4f5   : > { %v2441_v63 = vpop.f32.mrf.mxu1  ;;  %7011 = vmatmul.msk.f32.gmra.mxu1 %vm2376_vm1, %v2369_v58 }
 0x4f6   : > { %v7575_v0 = vpop.eup %7574  ;;  %v2442_v56 = vadd.f32 %v9829_v44, %v2441_v63 }
 0x4f7   : > { %2818 = vrot.lane.b32.xlu1 %v7575_v0, %s8816_s20 }
 0x4f8   : > { %7576 = vtanh.f32 %v2442_v56  ;;  %v7020_v18 = vmul.f32 -1.442695, %v2442_v56 }
 0x4fb   : > { %v2371_v46 = vpop.permute.xlu0 %2370 }
 0x4fd   : > { %v2444_v2 = vpop.f32.mrf.mxu1  ;;  %7012 = vmatmul.msk.f32.gmra.mxu1 %vm2376_vm1, %v2371_v46 }
 0x4fe   : > { %v7577_v45 = vpop.eup %7576  ;;  %v9851_v4 = vadd.f32 %v9829_v44, %v2444_v2 }
 0x4ff   : > { %2820 = vrot.lane.b32.xlu2 %v7577_v45, %s8816_s20 }
 0x500   : > { %7578 = vtanh.f32 %v9851_v4 }
 0x502   : > { %v2375_v9 = vpop.permute.xlu2 %2374 }
 0x503   : > { %v2373_v19 = vpop.permute.xlu1 %2372 }
 0x505   : > { %v2447_v7 = vpop.f32.mrf.mxu1  ;;  %7013 = vmatmul.msk.f32.gmra.mxu1 %vm2376_vm1, %v2373_v19 }
 0x506   : > { %v7579_v29 = vpop.eup %7578  ;;  %v9857_v25 = vadd.f32 %v9829_v44, %v2447_v7 }
 0x507   : > { %2822 = vrot.lane.b32.xlu0 %v7579_v29, %s8816_s20  ;;  %v7021_v29 = vmul.f32 -1.442695, %v9851_v4 }
 0x508   : > { %7580 = vtanh.f32 %v9857_v25 }
 0x509   : > { %7582 = vpow2.f32 %v7017_v8 }
 0x50a   : > { %7584 = vpow2.f32 %v7015_v11 }
 0x50d   : > { %7014 = vmatmul.msk.f32.gmra.mxu1 %vm2376_vm1, %v2375_v9 }
 0x50e   : > { %v7581_v10 = vpop.eup %7580 }
 0x50f   : > { %2824 = vrot.lane.b32.xlu2 %v7581_v10, %s8816_s20  ;;  %v7583_v31 = vpop.eup %7582 }
 0x510   : > { %v7585_v53 = vpop.eup %7584  ;;  %v2524_v3 = vadd.f32 1.0, %v7583_v31 }
 0x511   : > { %v2522_v14 = vadd.f32 1.0, %v7585_v53 }
 0x512   : > { %7586 = vrcp.f32 %v2524_v3  ;;  %v2579_v35 = vand.u32 2147483648, %v2524_v3  ;;  %vm2573_vm4 = vweird.f32 %v2524_v3  ;;  %v2577_v41 = vand.u32 2147483647, %v2524_v3 }
 0x513   : > { %7588 = vrcp.f32 %v2522_v14  ;;  %v2549_v16 = vand.u32 2147483648, %v2522_v14  ;;  %vm2543_vm6 = vweird.f32 %v2522_v14  ;;  %v2547_v38 = vand.u32 2147483647, %v2522_v14 }
 0x514   : > { %7590 = vpow2.f32 %v7016_v15  ;;  %v2580_v43 = vor.u32 1.1754944e-38, %v2579_v35  ;;  %vm2578_vm8 = vcmp.eq.f32.partialorder %v2577_v41, 8.507059e+37 }
 0x515   : > { %7592 = vpow2.f32 %v7020_v18  ;;  %v2550_v6 = vor.u32 1.1754944e-38, %v2549_v16  ;;  %vm2548_vm9 = vcmp.eq.f32.partialorder %v2547_v38, 8.507059e+37 }
 0x518   : > { %v7587_v13 = vpop.eup %7586 }
 0x519   : > { %v7589_v17 = vpop.eup %7588  ;;  %v2569_v12 = vmul.f32 %v7587_v13, %v2524_v3  ;;  %vm2574_vm2 = vweird.f32 %v7587_v13 }
 0x51a   : > { %v7591_v21 = vpop.eup %7590  ;;  %v2539_v47 = vmul.f32 %v7589_v17, %v2522_v14  ;;  %vm2544_vm3 = vweird.f32 %v7589_v17  ;;  %vm2575_vm5 = vmor %vm2573_vm4, %vm2574_vm2 }
 0x51b   : > { %v9863_v22 = vadd.f32 1.0, %v7591_v21  ;;  %v2570_v33 = vsub.f32 1.0, %v2569_v12  ;;  %v7593_v51 = vpop.eup %7592  ;;  %v2450_v27 = vpop.f32.mrf.mxu1  ;;  %vm2545_vm7 = vmor %vm2543_vm6, %vm2544_vm3 }
 0x51c   : > { %v2540_v28 = vsub.f32 1.0, %v2539_v47  ;;  %v9866_v59 = vadd.f32 1.0, %v7593_v51  ;;  %v9895_v19 = vadd.f32 %v9829_v44, %v2450_v27 }
 0x51d   : > { %7594 = vrcp.f32 %v9863_v22  ;;  %v2571_v30 = vmul.f32 %v7587_v13, %v2570_v33  ;;  %v2564_v7 = vand.u32 2147483648, %v9863_v22  ;;  %vm2558_vm11 = vweird.f32 %v9863_v22 }
 0x51e   : > { %7596 = vpow2.f32 %v7018_v24  ;;  %v2541_v32 = vmul.f32 %v7589_v17, %v2540_v28  ;;  %v2562_v9 = vand.u32 2147483647, %v9863_v22  ;;  %v2624_v12 = vand.u32 2147483648, %v9866_v59 }
 0x51f   : > { %v2572_v23 = vadd.f32 %v7587_v13, %v2571_v30  ;;  %7598 = vrcp.f32 %v9866_v59  ;;  %v2565_v4 = vor.u32 1.1754944e-38, %v2564_v7  ;;  %vm2618_vm15 = vweird.f32 %v9866_v59 }
 0x520   : > { %v2542_v34 = vadd.f32 %v7589_v17, %v2541_v32  ;;  %7600 = vpow2.f32 %v7019_v37  ;;  %vm2563_vm13 = vcmp.eq.f32.partialorder %v2562_v9, 8.507059e+37  ;;  %v2622_v47 = vand.u32 2147483647, %v9866_v59 }
 0x521   : > { %v2576_v26 = vsel %vm2575_vm5, %v7587_v13, %v2572_v23  ;;  %v7022_v13 = vmul.f32 -1.442695, %v9857_v25  ;;  %v2625_v30 = vor.u32 1.1754944e-38, %v2624_v12 }
 0x522   : > { %v2546_v49 = vsel %vm2545_vm7, %v7589_v17, %v2542_v34  ;;  %v9876_v50 = vsel %vm2578_vm8, %v2580_v43, %v2576_v26  ;;  %vm2623_vm2 = vcmp.eq.f32.partialorder %v2622_v47, 8.507059e+37 }
 0x523   : > { %v9868_v48 = vpop.eup %7594  ;;  %v9879_v55 = vsel %vm2548_vm9, %v2550_v6, %v2546_v49 }
 0x524   : > { %v7597_v36 = vpop.eup %7596  ;;  %v2554_v42 = vmul.f32 %v9868_v48, %v9863_v22  ;;  %vm2559_vm10 = vweird.f32 %v9868_v48 }
 0x525   : > { %v9874_v1 = vadd.f32 1.0, %v7597_v36  ;;  %v7599_v60 = vpop.eup %7598  ;;  %vm2560_vm12 = vmor %vm2558_vm11, %vm2559_vm10 }
 0x526   : > { %v2555_v57 = vsub.f32 1.0, %v2554_v42  ;;  %v7601_v62 = vpop.eup %7600  ;;  %v2614_v20 = vmul.f32 %v7599_v60, %v9866_v59  ;;  %vm2619_vm14 = vweird.f32 %v7599_v60 }
 0x527   : > { %7602 = vrcp.f32 %v9874_v1  ;;  %v9887_v63 = vadd.f32 1.0, %v7601_v62  ;;  %vm2620_vm0 = vmor %vm2618_vm15, %vm2619_vm14  ;;  %v2594_v36 = vand.u32 2147483648, %v9874_v1  ;;  %vm2588_vm4 = vweird.f32 %v9874_v1 }
 0x528   : > { %v2556_v40 = vmul.f32 %v9868_v48, %v2555_v57  ;;  %v2615_v45 = vsub.f32 1.0, %v2614_v20  ;;  %v2592_v41 = vand.u32 2147483647, %v9874_v1 }
 0x529   : > { %v2595_v42 = vor.u32 1.1754944e-38, %v2594_v36  ;;  %vm2603_vm8 = vweird.f32 %v9887_v63  ;;  %v2607_v57 = vand.u32 2147483647, %v9887_v63 }
 0x52a   : > { %v2557_v2 = vadd.f32 %v9868_v48, %v2556_v40  ;;  %v2616_v31 = vmul.f32 %v7599_v60, %v2615_v45  ;;  %vm2593_vm6 = vcmp.eq.f32.partialorder %v2592_v41, 8.507059e+37 }
 0x52b   : > { %vm2608_vm10 = vcmp.eq.f32.partialorder %v2607_v57, 8.507059e+37 }
 0x52c   : > { %v2561_v11 = vsel %vm2560_vm12, %v9868_v48, %v2557_v2  ;;  %v2617_v18 = vadd.f32 %v7599_v60, %v2616_v31 }
 0x52d   : > { %v9885_v58 = vpop.eup %7602  ;;  %v9909_v53 = vsel %vm2563_vm13, %v2565_v4, %v2561_v11 }
 0x52e   : > { %v2584_v8 = vmul.f32 %v9885_v58, %v9874_v1  ;;  %v2621_v25 = vsel %vm2620_vm0, %v7599_v60, %v2617_v18  ;;  %vm2589_vm3 = vweird.f32 %v9885_v58 }
 0x52f   : > { %v9925_v27 = vsel %vm2623_vm2, %v2625_v30, %v2621_v25  ;;  %vm2590_vm5 = vmor %vm2588_vm4, %vm2589_vm3 }
 0x530   : > { %v2585_v14 = vsub.f32 1.0, %v2584_v8 }
 0x532   : > { %v2586_v33 = vmul.f32 %v9885_v58, %v2585_v14 }
 0x534   : > { %v2587_v35 = vadd.f32 %v9885_v58, %v2586_v33 }
 0x536   : > { %v2591_v16 = vsel %vm2590_vm5, %v9885_v58, %v2587_v35 }
 0x537   : > { %v9939_v49 = vsel %vm2593_vm6, %v2595_v42, %v2591_v16 }
 0x541   : > { %v2815_v5 = vpop.permute.xlu2 %2814  ;;  %v2453_v54 = vpop.f32.mrf.mxu1 }
 0x542   : > { %v2860_v39 = vmul.f32 %v2815_v5, %v9876_v50  ;;  %v9921_v51 = vadd.f32 %v9829_v44, %v2453_v54 }
 0x543   : > { %v2811_v52 = vpop.permute.xlu0 %2810 }
 0x544   : > { %v2858_v61 = vmul.f32 %v2811_v52, %v9879_v55  ;;  %7604 = vtanh.f32 %v2860_v39  ;;  %v2609_v52 = vand.u32 2147483648, %v9887_v63 }
 0x546   : > { %7606 = vtanh.f32 %v2858_v61  ;;  %v2610_v62 = vor.u32 1.1754944e-38, %v2609_v52 }
 0x549   : > { %v2456_v0 = vpop.f32.mrf.mxu1 }
 0x54a   : > { %v7605_v56 = vpop.eup %7604  ;;  %v9890_v46 = vadd.f32 %v9829_v44, %v2456_v0 }
 0x54b   : > { %2910 = vrot.lane.b32.xlu2 %v7605_v56, %s8817_s18 }
 0x54c   : > { %7608 = vtanh.f32 %v9890_v46  ;;  %v7607_v10 = vpop.eup %7606 }
 0x54d   : > { %7610 = vrcp.f32 %v9887_v63  ;;  %2906 = vrot.lane.b32.xlu1 %v7607_v10, %s8817_s18 }
 0x54e   : > { %7612 = vtanh.f32 %v9895_v19 }
 0x54f   : > { %7614 = vpow2.f32 %v7021_v29 }
 0x551   : > { %v2813_v3 = vpop.permute.xlu1 %2812 }
 0x552   : > { %v7609_v15 = vpop.eup %7608  ;;  %v2859_v17 = vmul.f32 %v2813_v3, %v9909_v53 }
 0x553   : > { %v7611_v21 = vpop.eup %7610  ;;  %2830 = vrot.lane.b32.xlu2 %v7609_v15, %s8816_s20 }
 0x554   : > { %7616 = vtanh.f32 %v2859_v17  ;;  %v7613_v22 = vpop.eup %7612  ;;  %v2599_v28 = vmul.f32 %v7611_v21, %v9887_v63  ;;  %vm2604_vm7 = vweird.f32 %v7611_v21 }
 0x555   : > { %v7615_v24 = vpop.eup %7614  ;;  %7618 = vpow2.f32 %v7022_v13  ;;  %2826 = vrot.lane.b32.xlu1 %v7613_v22, %s8816_s20  ;;  %vm2605_vm9 = vmor %vm2603_vm8, %vm2604_vm7 }
 0x556   : > { %v9923_v32 = vadd.f32 1.0, %v7615_v24  ;;  %v2600_v34 = vsub.f32 1.0, %v2599_v28  ;;  %7620 = vtanh.f32 %v9921_v51 }
 0x558   : > { %v2601_v38 = vmul.f32 %v7611_v21, %v2600_v34  ;;  %v2639_v4 = vand.u32 2147483648, %v9923_v32  ;;  %vm2633_vm12 = vweird.f32 %v9923_v32  ;;  %v2637_v15 = vand.u32 2147483647, %v9923_v32 }
 0x559   : > { %v2821_v59 = vpop.permute.xlu2 %2820 }
 0x55a   : > { %v7617_v23 = vpop.eup %7616  ;;  %v2863_v48 = vmul.f32 %v2821_v59, %v9925_v27  ;;  %v2602_v39 = vadd.f32 %v7611_v21, %v2601_v38  ;;  %v2640_v17 = vor.u32 1.1754944e-38, %v2639_v4  ;;  %vm2638_vm15 = vcmp.eq.f32.partialorder %v2637_v15, 8.507059e+37 }
 0x55b   : > { %2908 = vrot.lane.b32.xlu0 %v7617_v23, %s8817_s18  ;;  %v7619_v37 = vpop.eup %7618  ;;  %v7025_v23 = vmul.f32 -1.442695, %v9890_v46 }
 0x55c   : > { %7622 = vtanh.f32 %v2863_v48  ;;  %v9937_v26 = vadd.f32 1.0, %v7619_v37  ;;  %v7621_v43 = vpop.eup %7620  ;;  %v2606_v60 = vsel %vm2605_vm9, %v7611_v21, %v2602_v39 }
 0x55d   : > { %7624 = vrcp.f32 %v9923_v32  ;;  %v9949_v20 = vsel %vm2608_vm10, %v2610_v62, %v2606_v60 }
 0x55e   : > { %7626 = vrcp.f32 %v9937_v26  ;;  %v2654_v21 = vand.u32 2147483648, %v9937_v26  ;;  %vm2648_vm0 = vweird.f32 %v9937_v26  ;;  %v2652_v22 = vand.u32 2147483647, %v9937_v26 }
 0x560   : > { %v2655_v59 = vor.u32 1.1754944e-38, %v2654_v21  ;;  %vm2653_vm3 = vcmp.eq.f32.partialorder %v2652_v22, 8.507059e+37 }
 0x561   : > { %v2817_v6 = vpop.permute.xlu0 %2816 }
 0x562   : > { %v7623_v5 = vpop.eup %7622  ;;  %v2861_v54 = vmul.f32 %v2817_v6, %v9939_v49 }
 0x563   : > { %v7625_v1 = vpop.eup %7624  ;;  %2916 = vrot.lane.b32.xlu2 %v7623_v5, %s8817_s18  ;;  %2828 = vrot.lane.b32.xlu0 %v7621_v43, %s8816_s20 }
 0x564   : > { %7628 = vtanh.f32 %v2861_v54  ;;  %v2629_v61 = vmul.f32 %v7625_v1, %v9923_v32  ;;  %v7627_v40 = vpop.eup %7626  ;;  %vm2634_vm11 = vweird.f32 %v7625_v1  ;;  %v7023_v54 = vmul.f32 -1.442695, %v9895_v19 }
 0x565   : > { %v2644_v63 = vmul.f32 %v7627_v40, %v9937_v26  ;;  %vm2635_vm13 = vmor %vm2633_vm12, %vm2634_vm11  ;;  %vm2649_vm14 = vweird.f32 %v7627_v40 }
 0x566   : > { %v2630_v45 = vsub.f32 1.0, %v2629_v61  ;;  %vm2650_vm2 = vmor %vm2648_vm0, %vm2649_vm14 }
 0x567   : > { %v2645_v9 = vsub.f32 1.0, %v2644_v63 }
 0x568   : > { %v2631_v29 = vmul.f32 %v7625_v1, %v2630_v45 }
 0x569   : > { %v2819_v58 = vpop.permute.xlu1 %2818  ;;  %v2646_v14 = vmul.f32 %v7627_v40, %v2645_v9  ;;  %v2825_v32 = vpop.permute.xlu2 %2824 }
 0x56a   : > { %v7629_v0 = vpop.eup %7628  ;;  %v2862_v56 = vmul.f32 %v2819_v58, %v9949_v20  ;;  %v2459_v2 = vpop.f32.mrf.mxu1  ;;  %v2632_v8 = vadd.f32 %v7625_v1, %v2631_v29 }
 0x56b   : > { %v9953_v7 = vadd.f32 %v9829_v44, %v2459_v2  ;;  %2912 = vrot.lane.b32.xlu1 %v7629_v0, %s8817_s18  ;;  %v2647_v18 = vadd.f32 %v7627_v40, %v2646_v14 }
 0x56c   : > { %7630 = vtanh.f32 %v2862_v56  ;;  %v2636_v13 = vsel %vm2635_vm13, %v7625_v1, %v2632_v8 }
 0x56d   : > { %7632 = vtanh.f32 %v9953_v7  ;;  %v9968_v12 = vsel %vm2638_vm15, %v2640_v17, %v2636_v13  ;;  %v2651_v30 = vsel %vm2650_vm2, %v7627_v40, %v2647_v18  ;;  %v7024_v40 = vmul.f32 -1.442695, %v9921_v51 }
 0x56e   : > { %v9979_v48 = vsel %vm2653_vm3, %v2655_v59, %v2651_v30  ;;  %v7026_v51 = vmul.f32 -1.442695, %v9953_v7 }
 0x56f   : > { %v2865_v35 = vmul.f32 %v2825_v32, %v9979_v48 }
 0x572   : > { %v2462_v10 = vpop.f32.mrf.mxu1  ;;  %v7631_v11 = vpop.eup %7630 }
 0x573   : > { %v9959_v31 = vadd.f32 %v9829_v44, %v2462_v10  ;;  %v7633_v3 = vpop.eup %7632  ;;  %2914 = vrot.lane.b32.xlu0 %v7631_v11, %s8817_s18 }
 0x574   : > { %2832 = vrot.lane.b32.xlu1 %v7633_v3, %s8816_s20 }
 0x575   : > { %7634 = vtanh.f32 %v9959_v31  ;;  %v7027_v17 = vmul.f32 -1.442695, %v9959_v31 }
 0x579   : > { %v2823_v47 = vpop.permute.xlu0 %2822 }
 0x57a   : > { %v2864_v24 = vmul.f32 %v2823_v47, %v9968_v12  ;;  %v2465_v25 = vpop.f32.mrf.mxu1 }
 0x57b   : > { %v7635_v33 = vpop.eup %7634  ;;  %v9974_v28 = vadd.f32 %v9829_v44, %v2465_v25 }
 0x57c   : > { %7636 = vtanh.f32 %v2864_v24  ;;  %2834 = vrot.lane.b32.xlu1 %v7635_v33, %s8816_s20 }
 0x57d   : > { %7638 = vtanh.f32 %v9974_v28  ;;  %v7028_v32 = vmul.f32 -1.442695, %v9974_v28 }
 0x57e   : > { %7640 = vpow2.f32 %v7025_v23 }
 0x57f   : > { %7642 = vtanh.f32 %v2865_v35 }
 0x582   : > { %v7637_v34 = vpop.eup %7636  ;;  %v2468_v36 = vpop.f32.mrf.mxu1 }
 0x583   : > { %v7639_v37 = vpop.eup %7638  ;;  %v9983_v41 = vadd.f32 %v9829_v44, %v2468_v36  ;;  %2918 = vrot.lane.b32.xlu2 %v7637_v34, %s8817_s18 }
 0x584   : > { %2836 = vrot.lane.b32.xlu1 %v7639_v37, %s8816_s20  ;;  %v7641_v16 = vpop.eup %7640 }
 0x585   : > { %7644 = vtanh.f32 %v9983_v41  ;;  %v7643_v46 = vpop.eup %7642  ;;  %v2532_v43 = vadd.f32 1.0, %v7641_v16  ;;  %v7029_v28 = vmul.f32 -1.442695, %v9983_v41 }
 0x587   : > { %v2699_v62 = vand.u32 2147483648, %v2532_v43  ;;  %vm2693_vm5 = vweird.f32 %v2532_v43  ;;  %v2697_v58 = vand.u32 2147483647, %v2532_v43 }
 0x589   : > { %v2700_v56 = vor.u32 1.1754944e-38, %v2699_v62  ;;  %vm2698_vm7 = vcmp.eq.f32.partialorder %v2697_v58, 8.507059e+37 }
 0x58a   : > { %v2471_v38 = vpop.f32.mrf.mxu1 }
 0x58b   : > { %v7645_v26 = vpop.eup %7644  ;;  %v9989_v42 = vadd.f32 %v9829_v44, %v2471_v38  ;;  %2920 = vrot.lane.b32.xlu2 %v7643_v46, %s8817_s18 }
 0x58c   : > { %2838 = vrot.lane.b32.xlu1 %v7645_v26, %s8816_s20 }
 0x58d   : > { %7646 = vtanh.f32 %v9989_v42 }
 0x58e   : > { %7648 = vrcp.f32 %v2532_v43 }
 0x58f   : > { %7650 = vpow2.f32 %v7023_v54 }
 0x593   : > { %v7647_v6 = vpop.eup %7646 }
 0x594   : > { %2840 = vrot.lane.b32.xlu1 %v7647_v6, %s8816_s20  ;;  %v7649_v5 = vpop.eup %7648 }
 0x595   : > { %v2689_v39 = vmul.f32 %v7649_v5, %v2532_v43  ;;  %v7651_v44 = vpop.eup %7650  ;;  %vm2694_vm4 = vweird.f32 %v7649_v5 }
 0x596   : > { %v2530_v61 = vadd.f32 1.0, %v7651_v44  ;;  %vm2695_vm6 = vmor %vm2693_vm5, %vm2694_vm4 }
 0x597   : > { %v2690_v1 = vsub.f32 1.0, %v2689_v39 }
 0x598   : > { %7652 = vrcp.f32 %v2530_v61  ;;  %v2669_v18 = vand.u32 2147483648, %v2530_v61  ;;  %vm2663_vm9 = vweird.f32 %v2530_v61  ;;  %v2667_v22 = vand.u32 2147483647, %v2530_v61 }
 0x599   : > { %v2691_v52 = vmul.f32 %v7649_v5, %v2690_v1  ;;  %7654 = vpow2.f32 %v7024_v40 }
 0x59a   : > { %v2670_v25 = vor.u32 1.1754944e-38, %v2669_v18  ;;  %vm2668_vm11 = vcmp.eq.f32.partialorder %v2667_v22, 8.507059e+37 }
 0x59b   : > { %v2692_v60 = vadd.f32 %v7649_v5, %v2691_v52 }
 0x59d   : > { %v2696_v0 = vsel %vm2695_vm6, %v7649_v5, %v2692_v60 }
 0x59e   : > { %v9999_v2 = vsel %vm2698_vm7, %v2700_v56, %v2696_v0  ;;  %v7653_v63 = vpop.eup %7652 }
 0x59f   : > { %v7655_v29 = vpop.eup %7654  ;;  %v2659_v10 = vmul.f32 %v7653_v63, %v2530_v61  ;;  %vm2664_vm8 = vweird.f32 %v7653_v63 }
 0x5a0   : > { %v2531_v9 = vadd.f32 1.0, %v7655_v29  ;;  %vm2665_vm10 = vmor %vm2663_vm9, %vm2664_vm8 }
 0x5a1   : > { %v2660_v11 = vsub.f32 1.0, %v2659_v10 }
 0x5a2   : > { %v2684_v16 = vand.u32 2147483648, %v2531_v9  ;;  %vm2678_vm13 = vweird.f32 %v2531_v9  ;;  %v2682_v38 = vand.u32 2147483647, %v2531_v9 }
 0x5a3   : > { %v2661_v4 = vmul.f32 %v7653_v63, %v2660_v11 }
 0x5a4   : > { %vm2683_vm15 = vcmp.eq.f32.partialorder %v2682_v38, 8.507059e+37 }
 0x5a5   : > { %v9996_v57 = vpop.permute.xlu2 %2910  ;;  %v2662_v13 = vadd.f32 %v7653_v63, %v2661_v4 }
 0x5a6   : > { %v2956_v52 = vmul.f32 %v9996_v57, %v9876_v50 }
 0x5a7   : > { %v2666_v7 = vsel %vm2665_vm10, %v7653_v63, %v2662_v13 }
 0x5ad   : > { %v2831_v19 = vpop.permute.xlu2 %2830 }
 0x5ae   : > { %v2868_v45 = vmul.f32 %v2831_v19, %v9999_v2 }
 0x5b0   : > { %7656 = vtanh.f32 %v2868_v45 }
 0x5b1   : > { %7658 = vrcp.f32 %v2531_v9 }
 0x5b2   : > { %7660 = vpow2.f32 %v7026_v51 }
 0x5b3   : > { %7662 = vpow2.f32 %v7027_v17 }
 0x5b6   : > { %v7657_v8 = vpop.eup %7656 }
 0x5b7   : > { %2926 = vrot.lane.b32.xlu1 %v7657_v8, %s8817_s18  ;;  %v7659_v3 = vpop.eup %7658 }
 0x5b8   : > { %v2674_v21 = vmul.f32 %v7659_v3, %v2531_v9  ;;  %v7661_v47 = vpop.eup %7660  ;;  %vm2679_vm12 = vweird.f32 %v7659_v3 }
 0x5b9   : > { %v10007_v24 = vadd.f32 1.0, %v7661_v47  ;;  %v7663_v23 = vpop.eup %7662  ;;  %vm2680_vm14 = vmor %vm2678_vm13, %vm2679_vm12 }
 0x5ba   : > { %v2675_v33 = vsub.f32 1.0, %v2674_v21  ;;  %v10015_v37 = vadd.f32 1.0, %v7663_v23 }
 0x5bb   : > { %7664 = vrcp.f32 %v10007_v24  ;;  %v2714_v10 = vand.u32 2147483648, %v10007_v24  ;;  %vm2708_vm2 = vweird.f32 %v10007_v24 }
 0x5bc   : > { %v2676_v59 = vmul.f32 %v7659_v3, %v2675_v33  ;;  %vm2723_vm6 = vweird.f32 %v10015_v37 }
 0x5bd   : > { %v2917_v54 = vpop.permute.xlu2 %2916  ;;  %v2715_v4 = vor.u32 1.1754944e-38, %v2714_v10 }
 0x5be   : > { %v2677_v36 = vadd.f32 %v7659_v3, %v2676_v59  ;;  %v2959_v11 = vmul.f32 %v2917_v54, %v9925_v27  ;;  %v2729_v27 = vand.u32 2147483648, %v10015_v37 }
 0x5bf   : > { %v2907_v14 = vpop.permute.xlu1 %2906 }
 0x5c0   : > { %v2954_v15 = vmul.f32 %v2907_v14, %v9879_v55  ;;  %v10009_v55 = vsel %vm2668_vm11, %v2670_v25, %v2666_v7  ;;  %v2681_v43 = vsel %vm2680_vm14, %v7659_v3, %v2677_v36  ;;  %v2730_v25 = vor.u32 1.1754944e-38, %v2729_v27 }
 0x5c1   : > { %v7665_v46 = vpop.eup %7664 }
 0x5c2   : > { %3000 = vrot.lane.b32.xlu0 %v2954_v15, %s8817_s18  ;;  %v2704_v5 = vmul.f32 %v7665_v46, %v10007_v24  ;;  %vm2709_vm0 = vweird.f32 %v7665_v46 }
 0x5c3   : > { %vm2710_vm3 = vmor %vm2708_vm2, %vm2709_vm0 }
 0x5c4   : > { %v2705_v60 = vsub.f32 1.0, %v2704_v5 }
 0x5c6   : > { %v2706_v40 = vmul.f32 %v7665_v46, %v2705_v60 }
 0x5c7   : > { %v2827_v30 = vpop.permute.xlu1 %2826 }
 0x5c8   : > { %v2866_v31 = vmul.f32 %v2827_v30, %v10009_v55  ;;  %v2707_v63 = vadd.f32 %v7665_v46, %v2706_v40 }
 0x5ca   : > { %7666 = vtanh.f32 %v2866_v31 }
 0x5cb   : > { %7668 = vpow2.f32 %v7028_v32 }
 0x5cc   : > { %7670 = vrcp.f32 %v10015_v37 }
 0x5cd   : > { %v2909_v35 = vpop.permute.xlu0 %2908  ;;  %7672 = vpow2.f32 %v7029_v28 }
 0x5ce   : > { %v2955_v34 = vmul.f32 %v2909_v35, %v9909_v53  ;;  %v2685_v53 = vor.u32 1.1754944e-38, %v2684_v16 }
 0x5d0   : > { %3002 = vrot.lane.b32.xlu0 %v2955_v34, %s8817_s18  ;;  %v7667_v26 = vpop.eup %7666  ;;  %v10022_v39 = vsel %vm2683_vm15, %v2685_v53, %v2681_v43 }
 0x5d1   : > { %2922 = vrot.lane.b32.xlu2 %v7667_v26, %s8817_s18  ;;  %v7669_v6 = vpop.eup %7668 }
 0x5d2   : > { %v10027_v44 = vadd.f32 1.0, %v7669_v6  ;;  %v7671_v61 = vpop.eup %7670 }
 0x5d3   : > { %v7673_v62 = vpop.eup %7672  ;;  %v2719_v58 = vmul.f32 %v7671_v61, %v10015_v37  ;;  %vm2724_vm5 = vweird.f32 %v7671_v61 }
 0x5d4   : > { %v10034_v45 = vadd.f32 1.0, %v7673_v62  ;;  %vm2725_vm7 = vmor %vm2723_vm6, %vm2724_vm5  ;;  %v2744_v35 = vand.u32 2147483648, %v10027_v44  ;;  %vm2738_vm10 = vweird.f32 %v10027_v44  ;;  %v2742_v34 = vand.u32 2147483647, %v10027_v44 }
 0x5d5   : > { %v2829_v1 = vpop.permute.xlu0 %2828  ;;  %v2720_v29 = vsub.f32 1.0, %v2719_v58 }
 0x5d6   : > { %v2867_v41 = vmul.f32 %v2829_v1, %v10022_v39  ;;  %vm2743_vm12 = vcmp.eq.f32.partialorder %v2742_v34, 8.507059e+37  ;;  %v2759_v5 = vand.u32 2147483648, %v10034_v45  ;;  %vm2753_vm14 = vweird.f32 %v10034_v45 }
 0x5d7   : > { %v2721_v8 = vmul.f32 %v7671_v61, %v2720_v29  ;;  %v2757_v54 = vand.u32 2147483647, %v10034_v45  ;;  %v7030_v1 = vmul.f32 -1.442695, %v9989_v42  ;;  %v2974_v42 = vld [vmem:[#allocation10 + $0x20] sm:$0xff] }
 0x5d8   : > { %7674 = vtanh.f32 %v2867_v41  ;;  %3004 = vrot.lane.b32.xlu0 %v2956_v52, %s8817_s18  ;;  %v2760_v52 = vor.u32 1.1754944e-38, %v2759_v5 }
 0x5d9   : > { %7676 = vrcp.f32 %v10027_v44  ;;  %v2722_v18 = vadd.f32 %v7671_v61, %v2721_v8  ;;  %vm2758_vm0 = vcmp.eq.f32.partialorder %v2757_v54, 8.507059e+37 }
 0x5da   : > { %7678 = vrcp.f32 %v10034_v45 }
 0x5db   : > { %v2726_v22 = vsel %vm2725_vm7, %v7671_v61, %v2722_v18 }
 0x5dd   : > { %v2919_v0 = vpop.permute.xlu2 %2918  ;;  %v2913_v56 = vpop.permute.xlu1 %2912 }
 0x5de   : > { %v7675_v19 = vpop.eup %7674  ;;  %v2960_v50 = vmul.f32 %v2919_v0, %v9968_v12  ;;  %v2957_v57 = vmul.f32 %v2913_v56, %v9939_v49  ;;  %v2712_v12 = vand.u32 2147483647, %v10007_v24  ;;  %v2711_v49 = vsel %vm2710_vm3, %v7665_v46, %v2707_v63  ;;  %v2976_v0 = vld [vmem:[#allocation10 + $0x30] sm:$0xff]  ;;  %v2977_v56 = vld [vmem:[#allocation10 + $0x38] sm:$0xff]  ;;  %v2971_v63 = vld [vmem:[#allocation10 + $0x8] sm:$0xff] }
 0x5df   : > { %2924 = vrot.lane.b32.xlu2 %v7675_v19, %s8817_s18  ;;  %v7677_v9 = vpop.eup %7676  ;;  %v2745_v46 = vor.u32 1.1754944e-38, %v2744_v35  ;;  %3076 = vmatpush.msrb.mxu2 %v2976_v0  ;;  %v2975_v19 = vld [vmem:[#allocation10 + $0x28] sm:$0xff] }
 0x5e0   : > { %3012 = vrot.lane.b32.xlu1 %v2960_v50, %s8817_s18  ;;  %3006 = vrot.lane.b32.xlu0 %v2957_v57, %s8817_s18  ;;  %v2734_v51 = vmul.f32 %v7677_v9, %v10027_v44  ;;  %vm2713_vm4 = vcmp.eq.f32.partialorder %v2712_v12, 8.507059e+37  ;;  %v7679_v47 = vpop.eup %7678  ;;  %vm2739_vm9 = vweird.f32 %v7677_v9  ;;  %v2972_v50 = vld [vmem:[#allocation10 + $0x10] sm:$0xff]  ;;  %v2973_v57 = vld [vmem:[#allocation10 + $0x18] sm:$0xff] }
 0x5e1   : > { %v10046_v15 = vsel %vm2713_vm4, %v2715_v4, %v2711_v49  ;;  %v2749_v24 = vmul.f32 %v7679_v47, %v10034_v45  ;;  %vm2740_vm11 = vmor %vm2738_vm10, %vm2739_vm9  ;;  %vm2754_vm13 = vweird.f32 %v7679_v47  ;;  %3141 = vmatpush.msrb.mxu3 %v2977_v56  ;;  %3077 = vmatpush.msrb.mxu2 %v2974_v42  ;;  %v2970_v45 = vld [vmem:[#allocation10] sm:$0xff] }
 0x5e2   : > { %v2735_v21 = vsub.f32 1.0, %v2734_v51  ;;  %vm2755_vm15 = vmor %vm2753_vm14, %vm2754_vm13 }
 0x5e3   : > { %v2750_v23 = vsub.f32 1.0, %v2749_v24  ;;  %3142 = vmatpush.msrb.mxu3 %v2975_v19  ;;  %3078 = vmatpush.msrb.mxu2 %v2972_v50 }
 0x5e4   : > { %v2736_v7 = vmul.f32 %v7677_v9, %v2735_v21 }
 0x5e5   : > { %v2915_v3 = vpop.permute.xlu0 %2914  ;;  %v2921_v36 = vpop.permute.xlu2 %2920  ;;  %v2751_v16 = vmul.f32 %v7679_v47, %v2750_v23  ;;  %3143 = vmatpush.msrb.mxu3 %v2973_v57  ;;  %3079 = vmatpush.msrb.mxu2 %v2970_v45 }
 0x5e6   : > { %v2958_v14 = vmul.f32 %v2915_v3, %v9949_v20  ;;  %v2833_v13 = vpop.permute.xlu1 %2832  ;;  %v2727_v20 = vand.u32 2147483647, %v10015_v37  ;;  %v2737_v59 = vadd.f32 %v7677_v9, %v2736_v7  ;;  %v2961_v38 = vmul.f32 %v2921_v36, %v9979_v48 }
 0x5e7   : > { %3010 = vrot.lane.b32.xlu2 %v2959_v11, %s8817_s18  ;;  %v2869_v17 = vmul.f32 %v2833_v13, %v10046_v15  ;;  %v2752_v6 = vadd.f32 %v7679_v47, %v2751_v16  ;;  %3144 = vmatpush.msrb.mxu3 %v2971_v63 }
 0x5e8   : > { %3008 = vrot.lane.b32.xlu0 %v2958_v14, %s8817_s18  ;;  %vm2728_vm8 = vcmp.eq.f32.partialorder %v2727_v20, 8.507059e+37  ;;  %v2741_v37 = vsel %vm2740_vm11, %v7677_v9, %v2737_v59 }
 0x5e9   : > { %7680 = vtanh.f32 %v2869_v17  ;;  %v10055_v33 = vsel %vm2728_vm8, %v2730_v25, %v2726_v22  ;;  %v10063_v26 = vsel %vm2743_vm12, %v2745_v46, %v2741_v37  ;;  %v2756_v48 = vsel %vm2755_vm15, %v7679_v47, %v2752_v6 }
 0x5ea   : > { %v10072_v41 = vsel %vm2758_vm0, %v2760_v52, %v2756_v48 }
 0x5ee   : > { %v2835_v30 = vpop.permute.xlu1 %2834 }
 0x5ef   : > { %v7681_v31 = vpop.eup %7680  ;;  %v2870_v32 = vmul.f32 %v2835_v30, %v10055_v33 }
 0x5f0   : > { %2928 = vrot.lane.b32.xlu0 %v7681_v31, %s8817_s18 }
 0x5f1   : > { %7682 = vtanh.f32 %v2870_v32 }
 0x5f6   : > { %v2837_v28 = vpop.permute.xlu1 %2836 }
 0x5f7   : > { %v7683_v43 = vpop.eup %7682  ;;  %v2871_v53 = vmul.f32 %v2837_v28, %v10063_v26 }
 0x5f8   : > { %3014 = vrot.lane.b32.xlu0 %v2961_v38, %s8817_s18  ;;  %2930 = vrot.lane.b32.xlu2 %v7683_v43, %s8817_s18 }
 0x5f9   : > { %7684 = vtanh.f32 %v2871_v53 }
 0x5fa   : > { %7686 = vpow2.f32 %v7030_v1 }
 0x5fe   : > { %v2839_v44 = vpop.permute.xlu1 %2838 }
 0x5ff   : > { %v7685_v60 = vpop.eup %7684  ;;  %v2872_v61 = vmul.f32 %v2839_v44, %v10072_v41 }
 0x600   : > { %2932 = vrot.lane.b32.xlu1 %v7685_v60, %s8817_s18  ;;  %v7687_v62 = vpop.eup %7686 }
 0x601   : > { %7688 = vtanh.f32 %v2872_v61  ;;  %v2537_v58 = vadd.f32 1.0, %v7687_v62 }
 0x603   : > { %7690 = vrcp.f32 %v2537_v58  ;;  %v2774_v51 = vand.u32 2147483648, %v2537_v58  ;;  %vm2768_vm3 = vweird.f32 %v2537_v58  ;;  %v2772_v11 = vand.u32 2147483647, %v2537_v58 }
 0x605   : > { %v2775_v3 = vor.u32 1.1754944e-38, %v2774_v51  ;;  %vm2773_vm5 = vcmp.eq.f32.partialorder %v2772_v11, 8.507059e+37 }
 0x606   : > { %v2841_v49 = vpop.permute.xlu1 %2840 }
 0x607   : > { %v7689_v40 = vpop.eup %7688 }
 0x608   : > { %2934 = vrot.lane.b32.xlu0 %v7689_v40, %s8817_s18 }
 0x609   : > { %v7691_v29 = vpop.eup %7690 }
 0x60a   : > { %v2764_v9 = vmul.f32 %v7691_v29, %v2537_v58  ;;  %vm2769_vm2 = vweird.f32 %v7691_v29 }
 0x60b   : > { %vm2770_vm4 = vmor %vm2768_vm3, %vm2769_vm2 }
 0x60c   : > { %v2765_v10 = vsub.f32 1.0, %v2764_v9 }
 0x60e   : > { %v2766_v12 = vmul.f32 %v7691_v29, %v2765_v10 }
 0x610   : > { %v2767_v8 = vadd.f32 %v7691_v29, %v2766_v12 }
 0x612   : > { %v2771_v4 = vsel %vm2770_vm4, %v7691_v29, %v2767_v8  ;;  %vm3952_vm4 = vcmask 523264  }
 0x613   : > { %v2776_v17 = vsel %vm2773_vm5, %v2775_v3, %v2771_v4  ;;  %v3944_v3 = vld [vmem:[#allocation11 + $0x70] sm:$0xff] }
 0x614   : > { %v2873_v18 = vmul.f32 %v2841_v49, %v2776_v17  ;;  %4009 = vmatpush.msrb.mxu0 %v3944_v3 }
 0x616   : > { %7692 = vtanh.f32 %v2873_v18 }
 0x61c   : > { %v7693_v20 = vpop.eup %7692 }
 0x629   : > { %v2927_v14 = vpop.permute.xlu1 %2926 }
 0x62a   : > { %v2964_v13 = vmul.f32 %v2927_v14, %v9999_v2  ;;  %v3945_v14 = vld [vmem:[#allocation11 + $0x78] sm:$0xff] }
 0x62b   : > { %v2923_v21 = vpop.permute.xlu2 %2922  ;;  %4074 = vmatpush.msrb.mxu1 %v3945_v14 }
 0x62c   : > { %3020 = vrot.lane.b32.xlu0 %v2964_v13, %s8817_s18  ;;  %v2962_v47 = vmul.f32 %v2923_v21, %v10009_v55 }
 0x62e   : > { %3016 = vrot.lane.b32.xlu2 %v2962_v47, %s8817_s18 }
 0x634   : > { %v3001_v27 = vpop.permute.xlu0 %3000 }
 0x635   : > { %7031 = vmatmul.msk.f32.vlgmr.msrb.gmra.mxu2 %vm2376_vm1, %v3001_v27  ;;  %7047 = vmatmul.msk.f32.vlgmr.msrb.gmra.mxu3 %vm2376_vm1, %v3001_v27 }
 0x636   : > { %2936 = vrot.lane.b32.xlu2 %v7693_v20, %s8817_s18 }
 0x639   : > { %v2925_v22 = vpop.permute.xlu2 %2924 }
 0x63a   : > { %v2963_v2 = vmul.f32 %v2925_v22, %v10022_v39 }
 0x63c   : > { %3018 = vrot.lane.b32.xlu1 %v2963_v2, %s8817_s18 }
 0x641   : > { %v3011_v24 = vpop.permute.xlu2 %3010 }
 0x642   : > { %v3003_v7 = vpop.permute.xlu0 %3002 }
 0x643   : > { %7032 = vmatmul.msk.f32.gmra.mxu2 %vm2376_vm1, %v3003_v7  ;;  %7048 = vmatmul.msk.f32.gmra.mxu3 %vm2376_vm1, %v3003_v7 }
 0x64a   : > { %v3005_v55 = vpop.permute.xlu0 %3004 }
 0x64b   : > { %7033 = vmatmul.msk.f32.gmra.mxu2 %vm2376_vm1, %v3005_v55  ;;  %7049 = vmatmul.msk.f32.gmra.mxu3 %vm2376_vm1, %v3005_v55 }
 0x652   : > { %v3007_v25 = vpop.permute.xlu0 %3006  ;;  %v2931_v30 = vpop.permute.xlu2 %2930 }
 0x653   : > { %7034 = vmatmul.msk.f32.gmra.mxu2 %vm2376_vm1, %v3007_v25  ;;  %7050 = vmatmul.msk.f32.gmra.mxu3 %vm2376_vm1, %v3007_v25  ;;  %v2966_v39 = vmul.f32 %v2931_v30, %v10055_v33  ;;  %v3013_v23 = vpop.permute.xlu1 %3012  ;;  %v3943_v25 = vld [vmem:[#allocation11 + $0x68] sm:$0xff] }
 0x654   : > { %4075 = vmatpush.msrb.mxu1 %v3943_v25 }
 0x655   : > { %3024 = vrot.lane.b32.xlu2 %v2966_v39, %s8817_s18 }
 0x65a   : > { %v3009_v31 = vpop.permute.xlu0 %3008 }
 0x65b   : > { %7035 = vmatmul.msk.f32.gmra.mxu2 %vm2376_vm1, %v3009_v31  ;;  %7051 = vmatmul.msk.f32.gmra.mxu3 %vm2376_vm1, %v3009_v31 }
 0x662   : > { %v2929_v32 = vpop.permute.xlu0 %2928 }
 0x663   : > { %v2965_v59 = vmul.f32 %v2929_v32, %v10046_v15  ;;  %7036 = vmatmul.msk.f32.gmra.mxu2 %vm2376_vm1, %v3011_v24  ;;  %7052 = vmatmul.msk.f32.gmra.mxu3 %vm2376_vm1, %v3011_v24  ;;  %v3942_v24 = vld [vmem:[#allocation11 + $0x60] sm:$0xff]  ;;  %v3940_v32 = vld [vmem:[#allocation11 + $0x50] sm:$0xff] }
 0x664   : > { %4010 = vmatpush.msrb.mxu0 %v3942_v24 }
 0x665   : > { %3022 = vrot.lane.b32.xlu1 %v2965_v59, %s8817_s18  ;;  %v3941_v59 = vld [vmem:[#allocation11 + $0x58] sm:$0xff] }
 0x666   : > { %4011 = vmatpush.msrb.mxu0 %v3940_v32  ;;  %4076 = vmatpush.msrb.mxu1 %v3941_v59 }
 0x66a   : > { %v3015_v33 = vpop.permute.xlu0 %3014 }
 0x66b   : > { %7037 = vmatmul.msk.f32.gmra.mxu2 %vm2376_vm1, %v3013_v23  ;;  %7053 = vmatmul.msk.f32.gmra.mxu3 %vm2376_vm1, %v3013_v23 }
 0x672   : > { %v2933_v35 = vpop.permute.xlu1 %2932 }
 0x673   : > { %v2967_v34 = vmul.f32 %v2933_v35, %v10063_v26  ;;  %7038 = vmatmul.msk.f32.gmra.mxu2 %vm2376_vm1, %v3015_v33  ;;  %7054 = vmatmul.msk.f32.gmra.mxu3 %vm2376_vm1, %v3015_v33  ;;  %v2978_v26 = vld [vmem:[%s13679_s12 + $0x8] sm:$0x3]  ;;  %v3938_v33 = vld [vmem:[#allocation11 + $0x40] sm:$0xff]  ;;  %v3939_v35 = vld [vmem:[#allocation11 + $0x48] sm:$0xff] }
 0x674   : > { %v10116_v43 = vperm.slane %v2978_v26, 0  ;;  %v10167_v4 = vperm.slane %v2978_v26, 1  ;;  %4012 = vmatpush.msrb.mxu0 %v3938_v33  ;;  %4077 = vmatpush.msrb.mxu1 %v3939_v35  ;;  %v3935_v26 = vld [vmem:[#allocation11 + $0x28] sm:$0xff] }
 0x675   : > { %3026 = vrot.lane.b32.xlu0 %v2967_v34, %s8817_s18 }
 0x67a   : > { %v2935_v15 = vpop.permute.xlu0 %2934 }
 0x67b   : > { %v2968_v36 = vmul.f32 %v2935_v15, %v10072_v41 }
 0x67d   : > { %3028 = vrot.lane.b32.xlu1 %v2968_v36, %s8817_s18  ;;  %v3936_v36 = vld [vmem:[#allocation11 + $0x30] sm:$0xff] }
 0x67e   : > { %4013 = vmatpush.msrb.mxu0 %v3936_v36 }
 0x688   : > { %v3017_v37 = vpop.permute.xlu2 %3016 }
 0x689   : > { %7039 = vmatmul.msk.f32.gmra.mxu2 %vm2376_vm1, %v3017_v37  ;;  %7055 = vmatmul.msk.f32.gmra.mxu3 %vm2376_vm1, %v3017_v37  ;;  %v3937_v37 = vld [vmem:[#allocation11 + $0x38] sm:$0xff] }
 0x68a   : > { %4078 = vmatpush.msrb.mxu1 %v3937_v37 }
 0x68c   : > { %4079 = vmatpush.msrb.mxu1 %v3935_v26 }
 0x690   : > { %v2937_v16 = vpop.permute.xlu2 %2936 }
 0x691   : > { %v2969_v46 = vmul.f32 %v2937_v16, %v2776_v17 }
 0x693   : > { %3030 = vrot.lane.b32.xlu2 %v2969_v46, %s8817_s18 }
 0x69e   : > { %v3021_v28 = vpop.permute.xlu0 %3020 }
 0x6ae   : > { %v3019_v38 = vpop.permute.xlu1 %3018 }
 0x6af   : > { %7040 = vmatmul.msk.f32.gmra.mxu2 %vm2376_vm1, %v3019_v38  ;;  %7056 = vmatmul.msk.f32.gmra.mxu3 %vm2376_vm1, %v3019_v38  ;;  %v3025_v0 = vpop.permute.xlu2 %3024  ;;  %v3934_v38 = vld [vmem:[#allocation11 + $0x20] sm:$0xff] }
 0x6b0   : > { %4014 = vmatpush.msrb.mxu0 %v3934_v38 }
 0x6b7   : > { %7041 = vmatmul.msk.f32.gmra.mxu2 %vm2376_vm1, %v3021_v28  ;;  %7057 = vmatmul.msk.f32.gmra.mxu3 %vm2376_vm1, %v3021_v28 }
 0x6b8   : > { %v3081_v53 = vpop.f32.mrf.mxu2  ;;  %v3146_v11 = vpop.f32.mrf.mxu3 }
 0x6b9   : > { %v3082_v6 = vadd.f32 %v3081_v53, %v10116_v43  ;;  %v3147_v18 = vadd.f32 %v3146_v11, %v10167_v4  ;;  %v3932_v53 = vld [vmem:[#allocation11 + $0x10] sm:$0xff] }
 0x6ba   : > { %4015 = vmatpush.msrb.mxu0 %v3932_v53 }
 0x6bb   : > { %7694 = vtanh.f32 %v3082_v6  ;;  %v7063_v13 = vmul.f32 -1.442695, %v3082_v6  ;;  %v7079_v21 = vmul.f32 -1.442695, %v3147_v18  ;;  %v3933_v6 = vld [vmem:[#allocation11 + $0x18] sm:$0xff] }
 0x6bc   : > { %4080 = vmatpush.msrb.mxu1 %v3933_v6 }
 0x6c1   : > { %v7695_v5 = vpop.eup %7694 }
 0x6c2   : > { %3834 = vrot.lane.b32.xlu0 %v7695_v5, %s8817_s18 }
 0x6c6   : > { %v3084_v54 = vpop.f32.mrf.mxu2  ;;  %v3149_v17 = vpop.f32.mrf.mxu3 }
 0x6c7   : > { %v10123_v48 = vadd.f32 %v3084_v54, %v10116_v43  ;;  %v3150_v39 = vadd.f32 %v3149_v17, %v10167_v4 }
 0x6c9   : > { %7696 = vtanh.f32 %v10123_v48  ;;  %v7064_v2 = vmul.f32 -1.442695, %v10123_v48  ;;  %v7080_v34 = vmul.f32 -1.442695, %v3150_v39 }
 0x6ce   : > { %v3087_v1 = vpop.f32.mrf.mxu2  ;;  %v3152_v22 = vpop.f32.mrf.mxu3 }
 0x6cf   : > { %v7697_v52 = vpop.eup %7696  ;;  %v10127_v41 = vadd.f32 %v3087_v1, %v10116_v43  ;;  %v3153_v46 = vadd.f32 %v3152_v22, %v10167_v4 }
 0x6d0   : > { %3836 = vrot.lane.b32.xlu1 %v7697_v52, %s8817_s18  ;;  %v3930_v52 = vld [vmem:[#allocation11] sm:$0xff] }
 0x6d1   : > { %7698 = vtanh.f32 %v10127_v41  ;;  %v7065_v31 = vmul.f32 -1.442695, %v10127_v41  ;;  %v7081_v48 = vmul.f32 -1.442695, %v3153_v46  ;;  %v3931_v41 = vld [vmem:[#allocation11 + $0x8] sm:$0xff]  ;;  %4016 = vmatpush.msrb.mxu0 %v3930_v52 }
 0x6d2   : > { %4081 = vmatpush.msrb.mxu1 %v3931_v41 }
 0x6d6   : > { %v3090_v44 = vpop.f32.mrf.mxu2  ;;  %v3155_v15 = vpop.f32.mrf.mxu3 }
 0x6d7   : > { %v7699_v60 = vpop.eup %7698  ;;  %v10132_v61 = vadd.f32 %v3090_v44, %v10116_v43  ;;  %v3023_v62 = vpop.permute.xlu1 %3022 }
 0x6d8   : > { %3838 = vrot.lane.b32.xlu2 %v7699_v60, %s8817_s18  ;;  %7042 = vmatmul.msk.f32.gmra.mxu2 %vm2376_vm1, %v3023_v62 }
 0x6d9   : > { %7700 = vtanh.f32 %v10132_v61  ;;  %7058 = vmatmul.msk.f32.gmra.mxu3 %vm2376_vm1, %v3023_v62  ;;  %v7066_v44 = vmul.f32 -1.442695, %v10132_v61 }
 0x6de   : > { %v3093_v58 = vpop.f32.mrf.mxu2 }
 0x6df   : > { %v7701_v40 = vpop.eup %7700  ;;  %v10139_v56 = vadd.f32 %v3093_v58, %v10116_v43  ;;  %v3158_v58 = vpop.f32.mrf.mxu3 }
 0x6e0   : > { %3840 = vrot.lane.b32.xlu0 %v7701_v40, %s8817_s18  ;;  %7043 = vmatmul.msk.f32.gmra.mxu2 %vm2376_vm1, %v3025_v0  ;;  %v3159_v18 = vadd.f32 %v3158_v58, %v10167_v4 }
 0x6e1   : > { %7059 = vmatmul.msk.f32.gmra.mxu3 %vm2376_vm1, %v3025_v0  ;;  %7702 = vtanh.f32 %v10139_v56  ;;  %v7067_v11 = vmul.f32 -1.442695, %v10139_v56 }
 0x6e6   : > { %v3096_v42 = vpop.f32.mrf.mxu2 }
 0x6e7   : > { %v7703_v19 = vpop.eup %7702  ;;  %v10146_v50 = vadd.f32 %v3096_v42, %v10116_v43  ;;  %v3027_v57 = vpop.permute.xlu0 %3026  ;;  %v3156_v42 = vadd.f32 %v3155_v15, %v10167_v4 }
 0x6e8   : > { %3842 = vrot.lane.b32.xlu1 %v7703_v19, %s8817_s18  ;;  %7044 = vmatmul.msk.f32.gmra.mxu2 %vm2376_vm1, %v3027_v57 }
 0x6e9   : > { %7704 = vtanh.f32 %v10146_v50  ;;  %7060 = vmatmul.msk.f32.gmra.mxu3 %vm2376_vm1, %v3027_v57 }
 0x6ed   : > { %v3031_v49 = vpop.permute.xlu2 %3030 }
 0x6ee   : > { %v3099_v45 = vpop.f32.mrf.mxu2 }
 0x6ef   : > { %v7705_v63 = vpop.eup %7704  ;;  %v10153_v29 = vadd.f32 %v3099_v45, %v10116_v43  ;;  %v3029_v9 = vpop.permute.xlu1 %3028 }
 0x6f0   : > { %3844 = vrot.lane.b32.xlu2 %v7705_v63, %s8817_s18  ;;  %7045 = vmatmul.msk.f32.gmra.mxu2 %vm2376_vm1, %v3029_v9  ;;  %v7082_v63 = vmul.f32 -1.442695, %v3156_v42 }
 0x6f1   : > { %7706 = vtanh.f32 %v10153_v29  ;;  %7061 = vmatmul.msk.f32.gmra.mxu3 %vm2376_vm1, %v3029_v9 }
 0x6f6   : > { %v3102_v10 = vpop.f32.mrf.mxu2 }
 0x6f7   : > { %v7707_v12 = vpop.eup %7706  ;;  %v10160_v8 = vadd.f32 %v3102_v10, %v10116_v43 }
 0x6f8   : > { %3846 = vrot.lane.b32.xlu0 %v7707_v12, %s8817_s18  ;;  %7046 = vmatmul.msk.f32.gmra.mxu2 %vm2376_vm1, %v3031_v49 }
 0x6f9   : > { %7708 = vtanh.f32 %v10160_v8  ;;  %7062 = vmatmul.msk.f32.gmra.mxu3 %vm2376_vm1, %v3031_v49 }
 0x6fa   : > { %7710 = vpow2.f32 %v7063_v13 }
 0x6ff   : > { %v7709_v51 = vpop.eup %7708 }
 0x700   : > { %3848 = vrot.lane.b32.xlu1 %v7709_v51, %s8817_s18  ;;  %v7711_v20 = vpop.eup %7710 }
 0x701   : > { %v10175_v7 = vadd.f32 1.0, %v7711_v20  ;;  %v7068_v20 = vmul.f32 -1.442695, %v10146_v50 }
 0x703   : > { %v3267_v49 = vand.u32 2147483647, %v10175_v7  ;;  %v3269_v51 = vand.u32 2147483648, %v10175_v7  ;;  %vm3263_vm6 = vweird.f32 %v10175_v7 }
 0x705   : > { %vm10229_vm9 = vcmp.eq.f32.partialorder %v3267_v49, 8.507059e+37 }
 0x70c   : > { %v3105_v47 = vpop.f32.mrf.mxu2 }
 0x70d   : > { %v10171_v27 = vadd.f32 %v3105_v47, %v10116_v43  ;;  %v3161_v47 = vpop.f32.mrf.mxu3 }
 0x70e   : > { %v3162_v32 = vadd.f32 %v3161_v47, %v10167_v4 }
 0x70f   : > { %7712 = vtanh.f32 %v10171_v27 }
 0x710   : > { %7714 = vpow2.f32 %v7079_v21 }
 0x711   : > { %7716 = vpow2.f32 %v7064_v2 }
 0x712   : > { %7718 = vrcp.f32 %v10175_v7 }
 0x713   : > { %7720 = vpow2.f32 %v7065_v31  ;;  %v7083_v31 = vmul.f32 -1.442695, %v3159_v18 }
 0x715   : > { %v7713_v55 = vpop.eup %7712 }
 0x716   : > { %v7715_v30 = vpop.eup %7714  ;;  %3850 = vrot.lane.b32.xlu2 %v7713_v55, %s8817_s18  ;;  %v3270_v55 = vor.u32 1.1754944e-38, %v3269_v51  ;;  %v7069_v51 = vmul.f32 -1.442695, %v10153_v29 }
 0x717   : > { %v10181_v23 = vadd.f32 1.0, %v7715_v30  ;;  %v7717_v16 = vpop.eup %7716 }
 0x718   : > { %v10185_v28 = vpop.eup %7718  ;;  %v10187_v5 = vadd.f32 1.0, %v7717_v16 }
 0x719   : > { %7722 = vrcp.f32 %v10181_v23  ;;  %v7721_v54 = vpop.eup %7720  ;;  %v3259_v1 = vmul.f32 %v10185_v28, %v10175_v7  ;;  %vm3264_vm1 = vweird.f32 %v10185_v28  ;;  %vm3583_vm7 = vweird.f32 %v10181_v23 }
 0x71a   : > { %7724 = vpow2.f32 %v7080_v34  ;;  %v10195_v40 = vadd.f32 1.0, %v7721_v54  ;;  %vm10225_vm8 = vmor %vm3263_vm6, %vm3264_vm1  ;;  %v3587_v24 = vand.u32 2147483647, %v10181_v23  ;;  %v3589_v35 = vand.u32 2147483648, %v10181_v23 }
 0x71b   : > { %7726 = vrcp.f32 %v10187_v5  ;;  %v3260_v0 = vsub.f32 1.0, %v3259_v1  ;;  %v3282_v16 = vand.u32 2147483647, %v10187_v5  ;;  %v3284_v41 = vand.u32 2147483648, %v10187_v5 }
 0x71c   : > { %7728 = vpow2.f32 %v7081_v48  ;;  %vm10263_vm12 = vcmp.eq.f32.partialorder %v3587_v24, 8.507059e+37  ;;  %v3590_v52 = vor.u32 1.1754944e-38, %v3589_v35  ;;  %vm3278_vm13 = vweird.f32 %v10187_v5 }
 0x71d   : > { %7730 = vpow2.f32 %v7066_v44  ;;  %v3261_v61 = vmul.f32 %v10185_v28, %v3260_v0  ;;  %vm10276_vm14 = vcmp.eq.f32.partialorder %v3282_v16, 8.507059e+37  ;;  %v3297_v18 = vand.u32 2147483647, %v10195_v40 }
 0x71e   : > { %7732 = vrcp.f32 %v10195_v40  ;;  %v3299_v47 = vand.u32 2147483648, %v10195_v40  ;;  %vm3293_vm1 = vweird.f32 %v10195_v40 }
 0x71f   : > { %v10192_v60 = vpop.eup %7722  ;;  %v3262_v3 = vadd.f32 %v10185_v28, %v3261_v61 }
 0x720   : > { %v7725_v62 = vpop.eup %7724  ;;  %v3579_v19 = vmul.f32 %v10192_v60, %v10181_v23  ;;  %vm3584_vm10 = vweird.f32 %v10192_v60 }
 0x721   : > { %v10200_v57 = vadd.f32 1.0, %v7725_v62  ;;  %v10204_v45 = vpop.eup %7726  ;;  %v3266_v50 = vsel %vm10225_vm8, %v10185_v28, %v3262_v3  ;;  %v7084_v28 = vmul.f32 -1.442695, %v3162_v32  ;;  %vm10259_vm11 = vmor %vm3583_vm7, %vm3584_vm10  ;;  %vm10340_vm8 = vcmp.eq.f32.partialorder %v3297_v18, 8.507059e+37 }
 0x722   : > { %v7729_v9 = vpop.eup %7728  ;;  %v3580_v10 = vsub.f32 1.0, %v3579_v19  ;;  %v3274_v14 = vmul.f32 %v10204_v45, %v10187_v5  ;;  %v3271_v36 = vsel %vm10229_vm9, %v3270_v55, %v3266_v50  ;;  %vm3279_vm15 = vweird.f32 %v10204_v45 }
 0x723   : > { %7734 = vrcp.f32 %v10200_v57  ;;  %v7731_v12 = vpop.eup %7730  ;;  %v10216_v17 = vadd.f32 1.0, %v7729_v9  ;;  %v3602_v19 = vand.u32 2147483647, %v10200_v57  ;;  %v3164_v9 = vpop.f32.mrf.mxu3  ;;  %vm3598_vm0 = vweird.f32 %v10200_v57  ;;  %vm10305_vm2 = vmor %vm3278_vm13, %vm3279_vm15 }
 0x724   : > { %v10214_v13 = vpop.eup %7732  ;;  %7736 = vpow2.f32 %v7082_v63  ;;  %v10219_v21 = vadd.f32 1.0, %v7731_v12  ;;  %v3581_v56 = vmul.f32 %v10192_v60, %v3580_v10  ;;  %v3275_v39 = vsub.f32 1.0, %v3274_v14 }
 0x725   : > { %7738 = vpow2.f32 %v7067_v11  ;;  %v3289_v7 = vmul.f32 %v10214_v13, %v10195_v40  ;;  %v3285_v11 = vor.u32 1.1754944e-38, %v3284_v41  ;;  %v3604_v3 = vand.u32 2147483648, %v10200_v57 }
 0x726   : > { %7740 = vrcp.f32 %v10216_v17  ;;  %v3582_v33 = vadd.f32 %v10192_v60, %v3581_v56  ;;  %v3276_v26 = vmul.f32 %v10204_v45, %v3275_v39  ;;  %vm3294_vm3 = vweird.f32 %v10214_v13 }
 0x727   : > { %7742 = vrcp.f32 %v10219_v21  ;;  %v3290_v46 = vsub.f32 1.0, %v3289_v7  ;;  %vm10320_vm5 = vcmp.eq.f32.partialorder %v3602_v19, 8.507059e+37  ;;  %v3605_v39 = vor.u32 1.1754944e-38, %v3604_v3  ;;  %vm10336_vm7 = vmor %vm3293_vm1, %vm3294_vm3 }
 0x728   : > { %7744 = vpow2.f32 %v7068_v20  ;;  %v3586_v1 = vsel %vm10259_vm11, %v10192_v60, %v3582_v33  ;;  %v3277_v60 = vadd.f32 %v10204_v45, %v3276_v26  ;;  %vm3613_vm10 = vweird.f32 %v10216_v17 }
 0x729   : > { %v10234_v25 = vpop.eup %7734  ;;  %v3291_v0 = vmul.f32 %v10214_v13, %v3290_v46  ;;  %v3591_v10 = vsel %vm10263_vm12, %v3590_v52, %v3586_v1  ;;  %v7070_v62 = vmul.f32 -1.442695, %v10160_v8  ;;  %vm3308_vm11 = vweird.f32 %v10219_v21 }
 0x72a   : > { %v7737_v34 = vpop.eup %7736  ;;  %v3594_v15 = vmul.f32 %v10234_v25, %v10200_v57  ;;  %v3281_v2 = vsel %vm10305_vm2, %v10204_v45, %v3277_v60  ;;  %v3165_v45 = vadd.f32 %v3164_v9, %v10167_v4  ;;  %vm3599_vm6 = vweird.f32 %v10234_v25 }
 0x72b   : > { %v7739_v54 = vpop.eup %7738  ;;  %v10267_v48 = vadd.f32 1.0, %v7737_v34  ;;  %v3292_v22 = vadd.f32 %v10214_v13, %v3291_v0  ;;  %v3286_v40 = vsel %vm10276_vm14, %v3285_v11, %v3281_v2  ;;  %vm10360_vm9 = vmor %vm3598_vm0, %vm3599_vm6  ;;  %v3167_v41 = vpop.f32.mrf.mxu3  ;;  %v3619_v60 = vand.u32 2147483648, %v10216_v17 }
 0x72c   : > { %v10273_v44 = vpop.eup %7740  ;;  %v3595_v23 = vsub.f32 1.0, %v3594_v15  ;;  %v10286_v63 = vadd.f32 1.0, %v7739_v54  ;;  %v7085_v52 = vmul.f32 -1.442695, %v3165_v45  ;;  %v3312_v9 = vand.u32 2147483647, %v10219_v21 }
 0x72d   : > { %v10280_v58 = vpop.eup %7742  ;;  %v3609_v20 = vmul.f32 %v10273_v44, %v10216_v17  ;;  %v3296_v46 = vsel %vm10336_vm7, %v10214_v13, %v3292_v22  ;;  %v3617_v13 = vand.u32 2147483647, %v10216_v17  ;;  %v3314_v3 = vand.u32 2147483648, %v10219_v21 }
 0x72e   : > { %v7745_v61 = vpop.eup %7744  ;;  %v3596_v29 = vmul.f32 %v10234_v25, %v3595_v23  ;;  %v3304_v7 = vmul.f32 %v10280_v58, %v10219_v21  ;;  %v7071_v18 = vmul.f32 -1.442695, %v10171_v27  ;;  %vm3614_vm12 = vweird.f32 %v10273_v44 }
 0x72f   : > { %v10318_v5 = vadd.f32 1.0, %v7745_v61  ;;  %v3610_v35 = vsub.f32 1.0, %v3609_v20  ;;  %vm3309_vm13 = vweird.f32 %v10280_v58  ;;  %vm10399_vm14 = vcmp.eq.f32.partialorder %v3312_v9, 8.507059e+37  ;;  %vm10408_vm15 = vmor %vm3613_vm10, %vm3614_vm12 }
 0x730   : > { %v3597_v32 = vadd.f32 %v10234_v25, %v3596_v29  ;;  %v3305_v26 = vsub.f32 1.0, %v3304_v7  ;;  %v3315_v24 = vor.u32 1.1754944e-38, %v3314_v3  ;;  %vm10412_vm0 = vcmp.eq.f32.partialorder %v3617_v13, 8.507059e+37  ;;  %vm10427_vm2 = vmor %vm3308_vm11, %vm3309_vm13 }
 0x731   : > { %vm3628_vm3 = vweird.f32 %v10267_v48  ;;  %v3632_v21 = vand.u32 2147483647, %v10267_v48  ;;  %vm3323_vm1 = vweird.f32 %v10286_v63  ;;  %vm3338_vm13 = vweird.f32 %v10318_v5 }
 0x732   : > { %v3108_v30 = vpop.f32.mrf.mxu2  ;;  %v3839_v53 = vpop.permute.xlu2 %3838  ;;  %v3601_v57 = vsel %vm10360_vm9, %v10234_v25, %v3597_v32  ;;  %v3306_v61 = vmul.f32 %v10280_v58, %v3305_v26  ;;  %v3168_v25 = vadd.f32 %v3167_v41, %v10167_v4 }
 0x733   : > { %v10244_v59 = vadd.f32 %v3108_v30, %v10116_v43  ;;  %v3606_v8 = vsel %vm10320_vm5, %v3605_v39, %v3601_v57  ;;  %v3170_v15 = vpop.f32.mrf.mxu3  ;;  %vm10472_vm9 = vcmp.eq.f32.partialorder %v3632_v21, 8.507059e+37 }
 0x734   : > { %v3835_v37 = vpop.permute.xlu0 %3834  ;;  %v3307_v29 = vadd.f32 %v10280_v58, %v3306_v61  ;;  %v7086_v22 = vmul.f32 -1.442695, %v3168_v25  ;;  %v3171_v6 = vadd.f32 %v3170_v15, %v10167_v4 }
 0x735   : > { %7746 = vtanh.f32 %v10244_v59  ;;  %v3882_v38 = vmul.f32 %v3835_v37, %v3271_v36  ;;  %v3300_v36 = vor.u32 1.1754944e-38, %v3299_v47 }
 0x736   : > { %7748 = vpow2.f32 %v7083_v31 }
 0x737   : > { %7750 = vtanh.f32 %v3882_v38  ;;  %v3301_v0 = vsel %vm10340_vm8, %v3300_v36, %v3296_v46  ;;  %v3311_v36 = vsel %vm10427_vm2, %v10280_v58, %v3307_v29  ;;  %v3329_v58 = vand.u32 2147483648, %v10286_v63 }
 0x738   : > { %7752 = vpow2.f32 %v7084_v28  ;;  %v3884_v19 = vmul.f32 %v3839_v53, %v3301_v0  ;;  %v3316_v13 = vsel %vm10399_vm14, %v3315_v24, %v3311_v36 }
 0x739   : > { %7754 = vrcp.f32 %v10267_v48  ;;  %v3330_v9 = vor.u32 1.1754944e-38, %v3329_v58 }
 0x73a   : > { %v3111_v42 = vpop.f32.mrf.mxu2 }
 0x73b   : > { %v10291_v12 = vadd.f32 %v3111_v42, %v10116_v43  ;;  %v7747_v49 = vpop.eup %7746  ;;  %v3611_v42 = vmul.f32 %v10273_v44, %v3610_v35  ;;  %v3620_v35 = vor.u32 1.1754944e-38, %v3619_v60 }
 0x73c   : > { %v7749_v14 = vpop.eup %7748  ;;  %3852 = vrot.lane.b32.xlu0 %v7747_v49, %s8817_s18 }
 0x73d   : > { %7756 = vtanh.f32 %v10291_v12  ;;  %v7751_v55 = vpop.eup %7750  ;;  %v10326_v30 = vadd.f32 1.0, %v7749_v14  ;;  %v3612_v47 = vadd.f32 %v10273_v44, %v3611_v42 }
 0x73e   : > { %7758 = vrcp.f32 %v10286_v63  ;;  %v3914_v50 = vmul.f32 %v7751_v55, %v3591_v10  ;;  %v7753_v31 = vpop.eup %7752 }
 0x73f   : > { %7760 = vpow2.f32 %v7069_v51  ;;  %v10332_v33 = vpop.eup %7754  ;;  %v10353_v28 = vadd.f32 1.0, %v7753_v31  ;;  %v3616_v32 = vsel %vm10408_vm15, %v10273_v44, %v3612_v47  ;;  %vm3643_vm10 = vweird.f32 %v10326_v30 }
 0x740   : > { %7095 = vmatmul.msk.f32.vlgmr.msrb.gmra.mxu0 %vm3952_vm4, %v3914_v50  ;;  %7111 = vmatmul.msk.f32.vlgmr.msrb.gmra.mxu1 %vm3952_vm4, %v3914_v50  ;;  %7762 = vrcp.f32 %v10318_v5  ;;  %v3624_v1 = vmul.f32 %v10332_v33, %v10267_v48  ;;  %vm3629_vm5 = vweird.f32 %v10332_v33  ;;  %v3649_v15 = vand.u32 2147483648, %v10326_v30 }
 0x741   : > { %7764 = vrcp.f32 %v10326_v30  ;;  %vm10468_vm8 = vmor %vm3628_vm3, %vm3629_vm5 }
 0x742   : > { %v3837_v37 = vpop.permute.xlu1 %3836  ;;  %v3625_v51 = vsub.f32 1.0, %v3624_v1 }
 0x743   : > { %v7757_v16 = vpop.eup %7756  ;;  %v3883_v38 = vmul.f32 %v3837_v37, %v3286_v40  ;;  %v3327_v40 = vand.u32 2147483647, %v10286_v63 }
 0x744   : > { %3854 = vrot.lane.b32.xlu1 %v7757_v16, %s8817_s18  ;;  %v10366_v54 = vpop.eup %7758  ;;  %v3626_v39 = vmul.f32 %v10332_v33, %v3625_v51  ;;  %v7087_v51 = vmul.f32 -1.442695, %v3171_v6  ;;  %v3650_v6 = vor.u32 1.1754944e-38, %v3649_v15 }
 0x745   : > { %7766 = vtanh.f32 %v3883_v38  ;;  %v7761_v23 = vpop.eup %7760  ;;  %v3319_v10 = vmul.f32 %v10366_v54, %v10286_v63  ;;  %v3621_v38 = vsel %vm10412_vm0, %v3620_v35, %v3616_v32  ;;  %vm3324_vm6 = vweird.f32 %v10366_v54 }
 0x746   : > { %7768 = vrcp.f32 %v10353_v28  ;;  %v10387_v49 = vpop.eup %7762  ;;  %v10389_v11 = vadd.f32 1.0, %v7761_v23  ;;  %v3627_v26 = vadd.f32 %v10332_v33, %v3626_v39  ;;  %vm10456_vm7 = vcmp.eq.f32.partialorder %v3327_v40, 8.507059e+37  ;;  %vm10492_vm11 = vmor %vm3323_vm1, %vm3324_vm6 }
 0x747   : > { %7770 = vpow2.f32 %v7085_v52  ;;  %v10392_v14 = vpop.eup %7764  ;;  %v3334_v2 = vmul.f32 %v10387_v49, %v10318_v5  ;;  %v3320_v27 = vsub.f32 1.0, %v3319_v10  ;;  %v3634_v52 = vand.u32 2147483648, %v10267_v48 }
 0x748   : > { %7772 = vpow2.f32 %v7070_v62  ;;  %v3639_v45 = vmul.f32 %v10392_v14, %v10326_v30  ;;  %v3631_v48 = vsel %vm10468_vm8, %v10332_v33, %v3627_v26  ;;  %vm3339_vm12 = vweird.f32 %v10387_v49 }
 0x749   : > { %7774 = vtanh.f32 %v3884_v19  ;;  %v3335_v16 = vsub.f32 1.0, %v3334_v2  ;;  %v3321_v46 = vmul.f32 %v10366_v54, %v3320_v27  ;;  %v3635_v3 = vor.u32 1.1754944e-38, %v3634_v52  ;;  %vm10514_vm15 = vmor %vm3338_vm13, %vm3339_vm12 }
 0x74a   : > { %7776 = vrcp.f32 %v10389_v11  ;;  %v3640_v53 = vsub.f32 1.0, %v3639_v45  ;;  %v3342_v63 = vand.u32 2147483647, %v10318_v5  ;;  %vm3644_vm14 = vweird.f32 %v10392_v14  ;;  %v3845_v21 = vpop.permute.xlu2 %3844 }
 0x74b   : > { %v7767_v56 = vpop.eup %7766  ;;  %7778 = vpow2.f32 %v7071_v18  ;;  %v3336_v60 = vmul.f32 %v10387_v49, %v3335_v16  ;;  %v3322_v61 = vadd.f32 %v10366_v54, %v3321_v46  ;;  %v3636_v27 = vsel %vm10472_vm9, %v3635_v3, %v3631_v48  ;;  %vm10534_vm0 = vmor %vm3643_vm10, %vm3644_vm14 }
 0x74c   : > { %v3915_v55 = vmul.f32 %v7767_v56, %v3606_v8  ;;  %v10417_v31 = vpop.eup %7768  ;;  %7780 = vpow2.f32 %v7086_v22  ;;  %v3641_v18 = vmul.f32 %v10392_v14, %v3640_v53  ;;  %v3647_v16 = vand.u32 2147483647, %v10326_v30 }
 0x74d   : > { %v7771_v34 = vpop.eup %7770  ;;  %v3654_v47 = vmul.f32 %v10417_v31, %v10353_v28  ;;  %v3337_v20 = vadd.f32 %v10387_v49, %v3336_v60  ;;  %v3326_v22 = vsel %vm10492_vm11, %v10366_v54, %v3322_v61  ;;  %vm3343_vm2 = vcmp.eq.f32.partialorder %v3342_v63, 8.507059e+37 }
 0x74e   : > { %7096 = vmatmul.msk.f32.gmra.mxu0 %vm3952_vm4, %v3915_v55  ;;  %7112 = vmatmul.msk.f32.gmra.mxu1 %vm3952_vm4, %v3915_v55  ;;  %v7773_v37 = vpop.eup %7772  ;;  %v10460_v42 = vadd.f32 1.0, %v7771_v34  ;;  %v3344_v55 = vand.u32 2147483648, %v10318_v5  ;;  %v3642_v24 = vadd.f32 %v10392_v14, %v3641_v18  ;;  %v3331_v39 = vsel %vm10456_vm7, %v3330_v9, %v3326_v22 }
 0x74f   : > { %v7775_v44 = vpop.eup %7774  ;;  %v10453_v57 = vadd.f32 1.0, %v7773_v37  ;;  %v3655_v50 = vsub.f32 1.0, %v3654_v47  ;;  %v3341_v17 = vsel %vm10514_vm15, %v10387_v49, %v3337_v20  ;;  %vm3648_vm3 = vcmp.eq.f32.partialorder %v3647_v16, 8.507059e+37 }
 0x750   : > { %v10451_v41 = vpop.eup %7776  ;;  %v3916_v19 = vmul.f32 %v7775_v44, %v3621_v38  ;;  %v3345_v40 = vor.u32 1.1754944e-38, %v3344_v55  ;;  %v3646_v44 = vsel %vm10534_vm0, %v10392_v14, %v3642_v24  ;;  %vm3353_vm5 = vweird.f32 %v10389_v11 }
 0x751   : > { %v7779_v0 = vpop.eup %7778  ;;  %v3349_v33 = vmul.f32 %v10451_v41, %v10389_v11  ;;  %v3656_v26 = vmul.f32 %v10417_v31, %v3655_v50  ;;  %v3651_v14 = vsel %vm3648_vm3, %v3650_v6, %v3646_v44  ;;  %vm3659_vm1 = vweird.f32 %v10417_v31 }
 0x752   : > { %v3841_v1 = vpop.permute.xlu0 %3840  ;;  %v7781_v10 = vpop.eup %7780  ;;  %v10486_v56 = vadd.f32 1.0, %v7779_v0  ;;  %v3346_v38 = vsel %vm3343_vm2, %v3345_v40, %v3341_v17  ;;  %vm3354_vm6 = vweird.f32 %v10451_v41  ;;  %vm3658_vm7 = vweird.f32 %v10353_v28 }
 0x753   : > { %v3885_v23 = vmul.f32 %v3841_v1, %v3316_v13  ;;  %v10504_v2 = vadd.f32 1.0, %v7781_v10  ;;  %v3350_v45 = vsub.f32 1.0, %v3349_v33  ;;  %v3887_v53 = vmul.f32 %v3845_v21, %v3346_v38  ;;  %vm10573_vm8 = vmor %vm3658_vm7, %vm3659_vm1 }
 0x754   : > { %v3657_v60 = vadd.f32 %v10417_v31, %v3656_v26  ;;  %v3664_v47 = vand.u32 2147483648, %v10353_v28  ;;  %vm10583_vm9 = vmor %vm3353_vm5, %vm3354_vm6  ;;  %v3357_v33 = vand.u32 2147483647, %v10389_v11  ;;  %v3662_v20 = vand.u32 2147483647, %v10353_v28 }
 0x755   : > { %7782 = vtanh.f32 %v3885_v23  ;;  %v3351_v58 = vmul.f32 %v10451_v41, %v3350_v45  ;;  %v3359_v23 = vand.u32 2147483648, %v10389_v11  ;;  %vm3368_vm14 = vweird.f32 %v10453_v57 }
 0x756   : > { %7097 = vmatmul.msk.f32.gmra.mxu0 %vm3952_vm4, %v3916_v19  ;;  %7113 = vmatmul.msk.f32.gmra.mxu1 %vm3952_vm4, %v3916_v19  ;;  %7784 = vrcp.f32 %v10453_v57  ;;  %v3661_v63 = vsel %vm10573_vm8, %v10417_v31, %v3657_v60  ;;  %v3665_v24 = vor.u32 1.1754944e-38, %v3664_v47  ;;  %vm3358_vm10 = vcmp.eq.f32.partialorder %v3357_v33, 8.507059e+37 }
 0x757   : > { %7786 = vrcp.f32 %v10460_v42  ;;  %v3352_v0 = vadd.f32 %v10451_v41, %v3351_v58  ;;  %vm3663_vm11 = vcmp.eq.f32.partialorder %v3662_v20, 8.507059e+37  ;;  %v3374_v31 = vand.u32 2147483648, %v10453_v57 }
 0x758   : > { %7788 = vpow2.f32 %v7087_v51  ;;  %v3372_v16 = vand.u32 2147483647, %v10453_v57  ;;  %v3679_v44 = vand.u32 2147483648, %v10460_v42  ;;  %vm3673_vm0 = vweird.f32 %v10460_v42 }
 0x759   : > { %7790 = vrcp.f32 %v10486_v56  ;;  %v3356_v22 = vsel %vm10583_vm9, %v10451_v41, %v3352_v0  ;;  %v3677_v58 = vand.u32 2147483647, %v10460_v42  ;;  %vm3383_vm5 = vweird.f32 %v10486_v56 }
 0x75a   : > { %v3843_v5 = vpop.permute.xlu1 %3842  ;;  %7792 = vrcp.f32 %v10504_v2  ;;  %vm3373_vm1 = vcmp.eq.f32.partialorder %v3372_v16, 8.507059e+37  ;;  %v3694_v33 = vand.u32 2147483648, %v10504_v2  ;;  %v3692_v20 = vand.u32 2147483647, %v10504_v2 }
 0x75b   : > { %v7783_v7 = vpop.eup %7782  ;;  %v3886_v32 = vmul.f32 %v3843_v5, %v3331_v39  ;;  %v3114_v35 = vpop.f32.mrf.mxu2  ;;  %v3666_v39 = vsel %vm3663_vm11, %v3665_v24, %v3661_v63  ;;  %vm3678_vm7 = vcmp.eq.f32.partialorder %v3677_v58, 8.507059e+37 }
 0x75c   : > { %v3917_v34 = vmul.f32 %v7783_v7, %v3636_v27  ;;  %v10524_v36 = vpop.eup %7784  ;;  %v10528_v37 = vadd.f32 %v3114_v35, %v10116_v43  ;;  %v3360_v27 = vor.u32 1.1754944e-38, %v3359_v23 }
 0x75d   : > { %v10539_v46 = vpop.eup %7786  ;;  %7794 = vtanh.f32 %v3886_v32  ;;  %v3364_v13 = vmul.f32 %v10524_v36, %v10453_v57  ;;  %vm3369_vm12 = vweird.f32 %v10524_v36 }
 0x75e   : > { %7098 = vmatmul.msk.f32.gmra.mxu0 %vm3952_vm4, %v3917_v34  ;;  %7114 = vmatmul.msk.f32.gmra.mxu1 %vm3952_vm4, %v3917_v34  ;;  %7796 = vtanh.f32 %v10528_v37  ;;  %v7789_v30 = vpop.eup %7788  ;;  %v3669_v52 = vmul.f32 %v10539_v46, %v10460_v42  ;;  %v3361_v41 = vsel %vm3358_vm10, %v3360_v27, %v3356_v22  ;;  %vm3674_vm13 = vweird.f32 %v10539_v46  ;;  %vm10623_vm15 = vmor %vm3368_vm14, %vm3369_vm12 }
 0x75f   : > { %v10551_v1 = vpop.eup %7790  ;;  %v10564_v61 = vadd.f32 1.0, %v7789_v30  ;;  %7798 = vtanh.f32 %v3887_v53  ;;  %v3365_v8 = vsub.f32 1.0, %v3364_v13  ;;  %vm10636_vm3 = vmor %vm3673_vm0, %vm3674_vm13  ;;  %v3389_v42 = vand.u32 2147483648, %v10486_v56 }
 0x760   : > { %v10558_v62 = vpop.eup %7792  ;;  %v3379_v25 = vmul.f32 %v10551_v1, %v10486_v56  ;;  %v3670_v51 = vsub.f32 1.0, %v3669_v52  ;;  %vm3384_vm2 = vweird.f32 %v10551_v1  ;;  %v3375_v13 = vor.u32 1.1754944e-38, %v3374_v31 }
 0x761   : > { %v3684_v55 = vmul.f32 %v10558_v62, %v10504_v2  ;;  %v3366_v11 = vmul.f32 %v10524_v36, %v3365_v8  ;;  %vm10649_vm6 = vmor %vm3383_vm5, %vm3384_vm2  ;;  %vm3689_vm8 = vweird.f32 %v10558_v62  ;;  %v3390_v18 = vor.u32 1.1754944e-38, %v3389_v42 }
 0x762   : > { %v3380_v28 = vsub.f32 1.0, %v3379_v25  ;;  %v3671_v7 = vmul.f32 %v10539_v46, %v3670_v51  ;;  %vm3688_vm10 = vweird.f32 %v10504_v2  ;;  %vm3693_vm12 = vcmp.eq.f32.partialorder %v3692_v20, 8.507059e+37 }
 0x763   : > { %v7795_v19 = vpop.eup %7794  ;;  %v3117_v9 = vpop.f32.mrf.mxu2  ;;  %v3685_v5 = vsub.f32 1.0, %v3684_v55  ;;  %v3367_v35 = vadd.f32 %v10524_v36, %v3366_v11  ;;  %vm3690_vm11 = vmor %vm3688_vm10, %vm3689_vm8  ;;  %vm3703_vm14 = vweird.f32 %v10564_v61  ;;  %v7074_v58 = vmul.f32 -1.442695, %v10528_v37 }
 0x764   : > { %v7797_v10 = vpop.eup %7796  ;;  %v10569_v48 = vadd.f32 %v3117_v9, %v10116_v43  ;;  %v3918_v3 = vmul.f32 %v7795_v19, %v3651_v14  ;;  %v3381_v32 = vmul.f32 %v10551_v1, %v3380_v28  ;;  %v3672_v21 = vadd.f32 %v10539_v46, %v3671_v7 }
 0x765   : > { %3856 = vrot.lane.b32.xlu2 %v7797_v10, %s8817_s18  ;;  %v7799_v50 = vpop.eup %7798  ;;  %v3371_v26 = vsel %vm10623_vm15, %v10524_v36, %v3367_v35  ;;  %v3686_v53 = vmul.f32 %v10558_v62, %v3685_v5  ;;  %v3387_v36 = vand.u32 2147483647, %v10486_v56  ;;  %v3680_v14 = vor.u32 1.1754944e-38, %v3679_v44 }
 0x766   : > { %7800 = vtanh.f32 %v10569_v48  ;;  %7099 = vmatmul.msk.f32.gmra.mxu0 %vm3952_vm4, %v3918_v3  ;;  %7115 = vmatmul.msk.f32.gmra.mxu1 %vm3952_vm4, %v3918_v3  ;;  %v3919_v40 = vmul.f32 %v7799_v50, %v3666_v39  ;;  %v3382_v57 = vadd.f32 %v10551_v1, %v3381_v32  ;;  %v3676_v52 = vsel %vm10636_vm3, %v10539_v46, %v3672_v21 }
 0x767   : > { %7802 = vrcp.f32 %v10564_v61  ;;  %v3376_v0 = vsel %vm3373_vm1, %v3375_v13, %v3371_v26  ;;  %v3681_v8 = vsel %vm3678_vm7, %v3680_v14, %v3676_v52  ;;  %v3687_v56 = vadd.f32 %v10558_v62, %v3686_v53 }
 0x768   : > { %v3386_v46 = vsel %vm10649_vm6, %v10551_v1, %v3382_v57  ;;  %vm3388_vm9 = vcmp.eq.f32.partialorder %v3387_v36, 8.507059e+37  ;;  %v3695_v28 = vor.u32 1.1754944e-38, %v3694_v33  ;;  %v7072_v5 = vmul.f32 -1.442695, %v10244_v59 }
 0x769   : > { %v3391_v1 = vsel %vm3388_vm9, %v3390_v18, %v3386_v46  ;;  %v3691_v63 = vsel %vm3690_vm11, %v10558_v62, %v3687_v56  ;;  %v3709_v62 = vand.u32 2147483648, %v10564_v61 }
 0x76a   : > { %v3847_v54 = vpop.permute.xlu0 %3846  ;;  %v3696_v24 = vsel %vm3693_vm12, %v3695_v28, %v3691_v63 }
 0x76b   : > { %v3888_v45 = vmul.f32 %v3847_v54, %v3361_v41  ;;  %v3120_v17 = vpop.f32.mrf.mxu2  ;;  %v3173_v54 = vpop.f32.mrf.mxu3 }
 0x76c   : > { %v7801_v34 = vpop.eup %7800  ;;  %v10608_v15 = vadd.f32 %v3120_v17, %v10116_v43 }
 0x76d   : > { %v10612_v49 = vpop.eup %7802  ;;  %7804 = vtanh.f32 %v3888_v45  ;;  %3858 = vrot.lane.b32.xlu0 %v7801_v34, %s8817_s18  ;;  %v3710_v45 = vor.u32 1.1754944e-38, %v3709_v62  ;;  %v3174_v34 = vadd.f32 %v3173_v54, %v10167_v4 }
 0x76e   : > { %7806 = vtanh.f32 %v10608_v15  ;;  %7100 = vmatmul.msk.f32.gmra.mxu0 %vm3952_vm4, %v3919_v40  ;;  %7116 = vmatmul.msk.f32.gmra.mxu1 %vm3952_vm4, %v3919_v40  ;;  %v3699_v6 = vmul.f32 %v10612_v49, %v10564_v61  ;;  %vm3704_vm13 = vweird.f32 %v10612_v49 }
 0x76f   : > { %vm3705_vm15 = vmor %vm3703_vm14, %vm3704_vm13  ;;  %v7088_v40 = vmul.f32 -1.442695, %v3174_v34 }
 0x770   : > { %v3700_v51 = vsub.f32 1.0, %v3699_v6  ;;  %v3851_v3 = vpop.permute.xlu2 %3850 }
 0x771   : > { %v3890_v22 = vmul.f32 %v3851_v3, %v3391_v1 }
 0x772   : > { %v3849_v60 = vpop.permute.xlu1 %3848  ;;  %v3701_v55 = vmul.f32 %v10612_v49, %v3700_v51 }
 0x773   : > { %v7805_v19 = vpop.eup %7804  ;;  %v3889_v9 = vmul.f32 %v3849_v60, %v3376_v0  ;;  %v3123_v25 = vpop.f32.mrf.mxu2 }
 0x774   : > { %v7807_v10 = vpop.eup %7806  ;;  %v10659_v47 = vadd.f32 %v3123_v25, %v10116_v43  ;;  %v3920_v29 = vmul.f32 %v7805_v19, %v3681_v8  ;;  %v3702_v2 = vadd.f32 %v10612_v49, %v3701_v55  ;;  %v3176_v21 = vpop.f32.mrf.mxu3 }
 0x775   : > { %7808 = vtanh.f32 %v3889_v9  ;;  %3860 = vrot.lane.b32.xlu1 %v7807_v10, %s8817_s18  ;;  %v3177_v59 = vadd.f32 %v3176_v21, %v10167_v4 }
 0x776   : > { %7810 = vtanh.f32 %v10659_v47  ;;  %7101 = vmatmul.msk.f32.gmra.mxu0 %vm3952_vm4, %v3920_v29  ;;  %7117 = vmatmul.msk.f32.gmra.mxu1 %vm3952_vm4, %v3920_v29  ;;  %v3706_v39 = vsel %vm3705_vm15, %v10612_v49, %v3702_v2 }
 0x777   : > { %7812 = vtanh.f32 %v3890_v22  ;;  %v7089_v44 = vmul.f32 -1.442695, %v3177_v59 }
 0x77b   : > { %v7809_v11 = vpop.eup %7808  ;;  %v3126_v27 = vpop.f32.mrf.mxu2 }
 0x77c   : > { %v7811_v7 = vpop.eup %7810  ;;  %v10673_v50 = vadd.f32 %v3126_v27, %v10116_v43  ;;  %v3921_v41 = vmul.f32 %v7809_v11, %v3696_v24  ;;  %v3707_v43 = vand.u32 2147483647, %v10564_v61  ;;  %v7073_v61 = vmul.f32 -1.442695, %v10291_v12  ;;  %v3179_v26 = vpop.f32.mrf.mxu3 }
 0x77d   : > { %3862 = vrot.lane.b32.xlu2 %v7811_v7, %s8817_s18  ;;  %v7813_v31 = vpop.eup %7812  ;;  %v3180_v53 = vadd.f32 %v3179_v26, %v10167_v4 }
 0x77e   : > { %7814 = vtanh.f32 %v10673_v50  ;;  %7102 = vmatmul.msk.f32.gmra.mxu0 %vm3952_vm4, %v3921_v41  ;;  %7118 = vmatmul.msk.f32.gmra.mxu1 %vm3952_vm4, %v3921_v41  ;;  %vm3708_vm0 = vcmp.eq.f32.partialorder %v3707_v43, 8.507059e+37 }
 0x77f   : > { %v3711_v17 = vsel %vm3708_vm0, %v3710_v45, %v3706_v39  ;;  %7816 = vpow2.f32 %v7072_v5  ;;  %v7090_v13 = vmul.f32 -1.442695, %v3180_v53 }
 0x780   : > { %v3922_v35 = vmul.f32 %v7813_v31, %v3711_v17  ;;  %7818 = vpow2.f32 %v7073_v61  ;;  %v7075_v17 = vmul.f32 -1.442695, %v10569_v48 }
 0x781   : > { %7820 = vpow2.f32 %v7088_v40 }
 0x784   : > { %v7815_v32 = vpop.eup %7814  ;;  %v3182_v41 = vpop.f32.mrf.mxu3 }
 0x785   : > { %3864 = vrot.lane.b32.xlu0 %v7815_v32, %s8817_s18  ;;  %v7817_v49 = vpop.eup %7816  ;;  %v3183_v59 = vadd.f32 %v3182_v41, %v10167_v4 }
 0x786   : > { %7103 = vmatmul.msk.f32.gmra.mxu0 %vm3952_vm4, %v3922_v35  ;;  %7119 = vmatmul.msk.f32.gmra.mxu1 %vm3952_vm4, %v3922_v35  ;;  %v3251_v16 = vadd.f32 1.0, %v7817_v49  ;;  %v7819_v38 = vpop.eup %7818 }
 0x787   : > { %v7821_v57 = vpop.eup %7820  ;;  %v10693_v30 = vadd.f32 1.0, %v7819_v38 }
 0x788   : > { %7822 = vrcp.f32 %v3251_v16  ;;  %v10695_v12 = vadd.f32 1.0, %v7821_v57  ;;  %v3404_v18 = vand.u32 2147483648, %v3251_v16  ;;  %vm3398_vm3 = vweird.f32 %v3251_v16 }
 0x789   : > { %7824 = vpow2.f32 %v7089_v44  ;;  %v3402_v33 = vand.u32 2147483647, %v3251_v16  ;;  %vm3413_vm7 = vweird.f32 %v10693_v30  ;;  %v3419_v62 = vand.u32 2147483648, %v10693_v30 }
 0x78a   : > { %7826 = vpow2.f32 %v7074_v58  ;;  %v3405_v63 = vor.u32 1.1754944e-38, %v3404_v18  ;;  %v3417_v43 = vand.u32 2147483647, %v10693_v30  ;;  %v3724_v5 = vand.u32 2147483648, %v10695_v12 }
 0x78b   : > { %7828 = vrcp.f32 %v10693_v30  ;;  %vm3403_vm1 = vcmp.eq.f32.partialorder %v3402_v33, 8.507059e+37  ;;  %vm3718_vm10 = vweird.f32 %v10695_v12  ;;  %v3722_v35 = vand.u32 2147483647, %v10695_v12 }
 0x78c   : > { %7830 = vrcp.f32 %v10695_v12  ;;  %v3420_v34 = vor.u32 1.1754944e-38, %v3419_v62  ;;  %vm3418_vm12 = vcmp.eq.f32.partialorder %v3417_v43, 8.507059e+37  ;;  %v3725_v38 = vor.u32 1.1754944e-38, %v3724_v5 }
 0x78d   : > { %7832 = vpow2.f32 %v7090_v13  ;;  %vm3723_vm13 = vcmp.eq.f32.partialorder %v3722_v35, 8.507059e+37 }
 0x78e   : > { %v7823_v6 = vpop.eup %7822 }
 0x78f   : > { %v7825_v42 = vpop.eup %7824  ;;  %v3394_v52 = vmul.f32 %v7823_v6, %v3251_v16  ;;  %vm3399_vm2 = vweird.f32 %v7823_v6 }
 0x790   : > { %v7827_v36 = vpop.eup %7826  ;;  %v10700_v37 = vadd.f32 1.0, %v7825_v42  ;;  %vm3400_vm5 = vmor %vm3398_vm3, %vm3399_vm2 }
 0x791   : > { %v7829_v14 = vpop.eup %7828  ;;  %v10702_v23 = vadd.f32 1.0, %v7827_v36  ;;  %v3395_v0 = vsub.f32 1.0, %v3394_v52  ;;  %v7091_v52 = vmul.f32 -1.442695, %v3183_v59  ;;  %v3185_v36 = vpop.f32.mrf.mxu3 }
 0x792   : > { %v10704_v60 = vpop.eup %7830  ;;  %7834 = vrcp.f32 %v10700_v37  ;;  %v3409_v19 = vmul.f32 %v7829_v14, %v10693_v30  ;;  %vm3414_vm6 = vweird.f32 %v7829_v14  ;;  %vm3733_vm14 = vweird.f32 %v10700_v37 }
 0x793   : > { %7836 = vrcp.f32 %v10702_v23  ;;  %v3396_v46 = vmul.f32 %v7823_v6, %v3395_v0  ;;  %v3714_v9 = vmul.f32 %v10704_v60, %v10695_v12  ;;  %v7833_v25 = vpop.eup %7832  ;;  %vm3719_vm8 = vweird.f32 %v10704_v60  ;;  %vm10728_vm9 = vmor %vm3413_vm7, %vm3414_vm6 }
 0x794   : > { %v3410_v8 = vsub.f32 1.0, %v3409_v19  ;;  %v10713_v3 = vadd.f32 1.0, %v7833_v25  ;;  %vm10740_vm11 = vmor %vm3718_vm10, %vm3719_vm8  ;;  %v3739_v12 = vand.u32 2147483648, %v10700_v37  ;;  %v3737_v0 = vand.u32 2147483647, %v10700_v37 }
 0x795   : > { %v3397_v56 = vadd.f32 %v7823_v6, %v3396_v46  ;;  %v3715_v51 = vsub.f32 1.0, %v3714_v9  ;;  %vm3428_vm2 = vweird.f32 %v10702_v23  ;;  %v3432_v19 = vand.u32 2147483647, %v10702_v23 }
 0x796   : > { %v3411_v1 = vmul.f32 %v7829_v14, %v3410_v8  ;;  %7838 = vrcp.f32 %v10713_v3  ;;  %v3740_v8 = vor.u32 1.1754944e-38, %v3739_v12  ;;  %vm3748_vm8 = vweird.f32 %v10713_v3 }
 0x797   : > { %v3401_v22 = vsel %vm3400_vm5, %v7823_v6, %v3397_v56  ;;  %v3716_v55 = vmul.f32 %v10704_v60, %v3715_v51  ;;  %v10759_v6 = vld [vmem:[%s13679_s12 + $0xa] sm:$0x3]  ;;  %vm3433_vm6 = vcmp.eq.f32.partialorder %v3432_v19, 8.507059e+37  ;;  %v3752_v41 = vand.u32 2147483647, %v10713_v3 }
 0x798   : > { %v10711_v10 = vpop.eup %7834  ;;  %v3406_v27 = vsel %vm3403_vm1, %v3405_v63, %v3401_v22  ;;  %v3412_v24 = vadd.f32 %v7829_v14, %v3411_v1  ;;  %v10779_v9 = vperm.slane %v10759_v6, 0  ;;  %vm3738_vm1 = vcmp.eq.f32.partialorder %v3737_v0, 8.507059e+37 }
 0x799   : > { %v10715_v29 = vpop.eup %7836  ;;  %v3729_v20 = vmul.f32 %v10711_v10, %v10700_v37  ;;  %v3717_v54 = vadd.f32 %v10704_v60, %v3716_v55  ;;  %vm3734_vm15 = vweird.f32 %v10711_v10  ;;  %vm3753_vm10 = vcmp.eq.f32.partialorder %v3752_v41, 8.507059e+37 }
 0x79a   : > { %v3424_v28 = vmul.f32 %v10715_v29, %v10702_v23  ;;  %v3416_v32 = vsel %vm10728_vm9, %v7829_v14, %v3412_v24  ;;  %vm3429_vm0 = vweird.f32 %v10715_v29  ;;  %v3434_v14 = vand.u32 2147483648, %v10702_v23  ;;  %vm10774_vm3 = vmor %vm3733_vm14, %vm3734_vm15 }
 0x79b   : > { %v3730_v7 = vsub.f32 1.0, %v3729_v20  ;;  %v3721_v21 = vsel %vm10740_vm11, %v10704_v60, %v3717_v54  ;;  %v3421_v16 = vsel %vm3418_vm12, %v3420_v34, %v3416_v32  ;;  %v7076_v60 = vmul.f32 -1.442695, %v10608_v15  ;;  %vm10781_vm5 = vmor %vm3428_vm2, %vm3429_vm0 }
 0x79c   : > { %v3425_v39 = vsub.f32 1.0, %v3424_v28  ;;  %v10733_v45 = vpop.eup %7838  ;;  %v3726_v26 = vsel %vm3723_vm13, %v3725_v38, %v3721_v21  ;;  %v3435_v56 = vor.u32 1.1754944e-38, %v3434_v14  ;;  %v3754_v24 = vand.u32 2147483648, %v10713_v3 }
 0x79d   : > { %v3731_v40 = vmul.f32 %v10711_v10, %v3730_v7  ;;  %v3744_v49 = vmul.f32 %v10733_v45, %v10713_v3  ;;  %vm3749_vm7 = vweird.f32 %v10733_v45  ;;  %v7078_v34 = vmul.f32 -1.442695, %v10673_v50 }
 0x79e   : > { %v3426_v48 = vmul.f32 %v10715_v29, %v3425_v39  ;;  %vm3750_vm9 = vmor %vm3748_vm8, %vm3749_vm7  ;;  %v3755_v54 = vor.u32 1.1754944e-38, %v3754_v24 }
 0x79f   : > { %v3732_v30 = vadd.f32 %v10711_v10, %v3731_v40  ;;  %v3745_v13 = vsub.f32 1.0, %v3744_v49 }
 0x7a0   : > { %v3427_v42 = vadd.f32 %v10715_v29, %v3426_v48 }
 0x7a1   : > { %v3736_v25 = vsel %vm10774_vm3, %v10711_v10, %v3732_v30  ;;  %v3746_v51 = vmul.f32 %v10733_v45, %v3745_v13 }
 0x7a2   : > { %v3431_v37 = vsel %vm10781_vm5, %v10715_v29, %v3427_v42  ;;  %v3741_v1 = vsel %vm3738_vm1, %v3740_v8, %v3736_v25  ;;  %v7077_v29 = vmul.f32 -1.442695, %v10659_v47  ;;  %v3188_v47 = vpop.f32.mrf.mxu3 }
 0x7a3   : > { %v3436_v63 = vsel %vm3433_vm6, %v3435_v56, %v3431_v37  ;;  %v3189_v32 = vadd.f32 %v3188_v47, %v10167_v4 }
 0x7a5   : > { %v7093_v48 = vmul.f32 -1.442695, %v3189_v32 }
 0x7aa   : > { %v3191_v50 = vpop.f32.mrf.mxu3 }
 0x7ae   : > { %v3853_v11 = vpop.permute.xlu0 %3852 }
 0x7af   : > { %v3891_v2 = vmul.f32 %v3853_v11, %v3406_v27  ;;  %v3186_v11 = vadd.f32 %v3185_v36, %v10167_v4  ;;  %v3747_v27 = vadd.f32 %v10733_v45, %v3746_v51 }
 0x7b1   : > { %7840 = vtanh.f32 %v3891_v2  ;;  %v7092_v62 = vmul.f32 -1.442695, %v3186_v11  ;;  %v3751_v43 = vsel %vm3750_vm9, %v10733_v45, %v3747_v27 }
 0x7b2   : > { %7842 = vpow2.f32 %v7075_v17  ;;  %v3756_v35 = vsel %vm3753_vm10, %v3755_v54, %v3751_v43 }
 0x7b6   : > { %v3855_v44 = vpop.permute.xlu1 %3854 }
 0x7b7   : > { %v3892_v58 = vmul.f32 %v3855_v44, %v3421_v16  ;;  %v7841_v57 = vpop.eup %7840  ;;  %v3192_v44 = vadd.f32 %v3191_v50, %v10167_v4 }
 0x7b8   : > { %v3923_v53 = vmul.f32 %v7841_v57, %v3726_v26  ;;  %v7843_v23 = vpop.eup %7842 }
 0x7b9   : > { %7844 = vtanh.f32 %v3892_v58  ;;  %v10792_v20 = vadd.f32 1.0, %v7843_v23  ;;  %v7094_v13 = vmul.f32 -1.442695, %v3192_v44 }
 0x7ba   : > { %7104 = vmatmul.msk.f32.gmra.mxu0 %vm3952_vm4, %v3923_v53  ;;  %7120 = vmatmul.msk.f32.gmra.mxu1 %vm3952_vm4, %v3923_v53  ;;  %7846 = vpow2.f32 %v7091_v52 }
 0x7bb   : > { %7848 = vpow2.f32 %v7076_v60  ;;  %v3449_v25 = vand.u32 2147483648, %v10792_v20  ;;  %vm3443_vm12 = vweird.f32 %v10792_v20  ;;  %v3447_v56 = vand.u32 2147483647, %v10792_v20 }
 0x7bd   : > { %v4018_v33 = vpop.f32.mrf.mxu0  ;;  %vm3448_vm14 = vcmp.eq.f32.partialorder %v3447_v56, 8.507059e+37 }
 0x7be   : > { %v10795_v10 = vadd.f32 %v4018_v33, %v10779_v9 }
 0x7bf   : > { %v7845_v18 = vpop.eup %7844  ;;  %v3857_v22 = vpop.permute.xlu2 %3856 }
 0x7c0   : > { %v3924_v55 = vmul.f32 %v7845_v18, %v3741_v1  ;;  %v3893_v28 = vmul.f32 %v3857_v22, %v3436_v63  ;;  %7850 = vtanh.f32 %v10795_v10  ;;  %v7847_v7 = vpop.eup %7846  ;;  %v3450_v63 = vor.u32 1.1754944e-38, %v3449_v25 }
 0x7c1   : > { %v7849_v2 = vpop.eup %7848  ;;  %v10811_v17 = vadd.f32 1.0, %v7847_v7 }
 0x7c2   : > { %7852 = vtanh.f32 %v3893_v28  ;;  %7105 = vmatmul.msk.f32.gmra.mxu0 %vm3952_vm4, %v3924_v55  ;;  %7121 = vmatmul.msk.f32.gmra.mxu1 %vm3952_vm4, %v3924_v55  ;;  %v10809_v31 = vadd.f32 1.0, %v7849_v2 }
 0x7c3   : > { %7854 = vrcp.f32 %v10792_v20  ;;  %vm3763_vm1 = vweird.f32 %v10811_v17 }
 0x7c4   : > { %7856 = vpow2.f32 %v7077_v29  ;;  %v3462_v24 = vand.u32 2147483647, %v10809_v31  ;;  %v3464_v41 = vand.u32 2147483648, %v10809_v31  ;;  %vm3458_vm2 = vweird.f32 %v10809_v31 }
 0x7c5   : > { %7858 = vpow2.f32 %v7092_v62 }
 0x7c6   : > { %v7851_v39 = vpop.eup %7850  ;;  %7860 = vrcp.f32 %v10809_v31  ;;  %vm10893_vm5 = vcmp.eq.f32.partialorder %v3462_v24, 8.507059e+37 }
 0x7c7   : > { %4771 = vrot.lane.b32.xlu1 %v7851_v39, %s8817_s18  ;;  %7862 = vrcp.f32 %v10811_v17  ;;  %v3769_v39 = vand.u32 2147483648, %v10811_v17 }
 0x7c8   : > { %v7853_v5 = vpop.eup %7852  ;;  %7864 = vpow2.f32 %v7078_v34 }
 0x7c9   : > { %v10815_v3 = vpop.eup %7854  ;;  %v3925_v61 = vmul.f32 %v7853_v5, %v3756_v35 }
 0x7ca   : > { %v7857_v45 = vpop.eup %7856  ;;  %v3439_v49 = vmul.f32 %v10815_v3, %v10792_v20  ;;  %vm3444_vm11 = vweird.f32 %v10815_v3 }
 0x7cb   : > { %v4021_v40 = vpop.f32.mrf.mxu0  ;;  %7106 = vmatmul.msk.f32.gmra.mxu0 %vm3952_vm4, %v3925_v61  ;;  %7122 = vmatmul.msk.f32.gmra.mxu1 %vm3952_vm4, %v3925_v61  ;;  %v10827_v59 = vadd.f32 1.0, %v7857_v45  ;;  %v7859_v16 = vpop.eup %7858  ;;  %vm3445_vm13 = vmor %vm3443_vm12, %vm3444_vm11  ;;  %v3767_v61 = vand.u32 2147483647, %v10811_v17 }
 0x7cc   : > { %v10820_v21 = vadd.f32 %v4021_v40, %v10779_v9  ;;  %v3440_v38 = vsub.f32 1.0, %v3439_v49  ;;  %v10831_v58 = vpop.eup %7860  ;;  %v10836_v26 = vadd.f32 1.0, %v7859_v16 }
 0x7cd   : > { %v10834_v57 = vpop.eup %7862  ;;  %v3454_v4 = vmul.f32 %v10831_v58, %v10809_v31  ;;  %vm3459_vm15 = vweird.f32 %v10831_v58  ;;  %v3477_v50 = vand.u32 2147483647, %v10827_v59  ;;  %v3479_v16 = vand.u32 2147483648, %v10827_v59 }
 0x7ce   : > { %7866 = vtanh.f32 %v10820_v21  ;;  %v7865_v12 = vpop.eup %7864  ;;  %v3441_v52 = vmul.f32 %v10815_v3, %v3440_v38  ;;  %v3759_v36 = vmul.f32 %v10834_v57, %v10811_v17  ;;  %vm3764_vm0 = vweird.f32 %v10834_v57  ;;  %vm10889_vm3 = vmor %vm3458_vm2, %vm3459_vm15 }
 0x7cf   : > { %7868 = vpow2.f32 %v7093_v48  ;;  %v10851_v60 = vadd.f32 1.0, %v7865_v12  ;;  %v3455_v46 = vsub.f32 1.0, %v3454_v4  ;;  %v3465_v48 = vor.u32 1.1754944e-38, %v3464_v41  ;;  %vm10910_vm6 = vmor %vm3763_vm1, %vm3764_vm0 }
 0x7d0   : > { %7870 = vrcp.f32 %v10827_v59  ;;  %v3442_v19 = vadd.f32 %v10815_v3, %v3441_v52  ;;  %v3760_v15 = vsub.f32 1.0, %v3759_v36  ;;  %vm3768_vm8 = vcmp.eq.f32.partialorder %v3767_v61, 8.507059e+37 }
 0x7d1   : > { %v3456_v22 = vmul.f32 %v10831_v58, %v3455_v46  ;;  %vm3473_vm9 = vweird.f32 %v10827_v59  ;;  %vm3478_vm11 = vcmp.eq.f32.partialorder %v3477_v50, 8.507059e+37  ;;  %vm3488_vm2 = vweird.f32 %v10851_v60 }
 0x7d2   : > { %v3446_v1 = vsel %vm3445_vm13, %v10815_v3, %v3442_v19  ;;  %v3761_v20 = vmul.f32 %v10834_v57, %v3760_v15  ;;  %vm3778_vm13 = vweird.f32 %v10836_v26  ;;  %v3492_v41 = vand.u32 2147483647, %v10851_v60 }
 0x7d3   : > { %v4024_v30 = vpop.f32.mrf.mxu0  ;;  %v3451_v27 = vsel %vm3448_vm14, %v3450_v63, %v3446_v1  ;;  %v3457_v47 = vadd.f32 %v10831_v58, %v3456_v22 }
 0x7d4   : > { %v10839_v53 = vadd.f32 %v4024_v30, %v10779_v9  ;;  %v7867_v42 = vpop.eup %7866  ;;  %v3762_v43 = vadd.f32 %v10834_v57, %v3761_v20  ;;  %v3782_v20 = vand.u32 2147483647, %v10836_v26 }
 0x7d5   : > { %4773 = vrot.lane.b32.xlu2 %v7867_v42, %s8817_s18  ;;  %v7869_v14 = vpop.eup %7868  ;;  %v3461_v40 = vsel %vm10889_vm3, %v10831_v58, %v3457_v47  ;;  %v3770_v58 = vor.u32 1.1754944e-38, %v3769_v39 }
 0x7d6   : > { %7872 = vtanh.f32 %v10839_v53  ;;  %v10849_v0 = vpop.eup %7870  ;;  %v10856_v23 = vadd.f32 1.0, %v7869_v14  ;;  %v3766_v44 = vsel %vm10910_vm6, %v10834_v57, %v3762_v43  ;;  %v3466_v12 = vsel %vm10893_vm5, %v3465_v48, %v3461_v40 }
 0x7d7   : > { %7874 = vrcp.f32 %v10836_v26  ;;  %v3469_v37 = vmul.f32 %v10849_v0, %v10827_v59  ;;  %vm3474_vm7 = vweird.f32 %v10849_v0  ;;  %v3771_v4 = vsel %vm3768_vm8, %v3770_v58, %v3766_v44 }
 0x7d8   : > { %7876 = vpow2.f32 %v7094_v13  ;;  %vm10931_vm10 = vmor %vm3473_vm9, %vm3474_vm7  ;;  %vm3783_vm0 = vcmp.eq.f32.partialorder %v3782_v20, 8.507059e+37  ;;  %vm3793_vm1 = vweird.f32 %v10856_v23  ;;  %v3797_v61 = vand.u32 2147483647, %v10856_v23 }
 0x7d9   : > { %7878 = vrcp.f32 %v10851_v60  ;;  %v3470_v29 = vsub.f32 1.0, %v3469_v37  ;;  %v3863_v37 = vpop.permute.xlu2 %3862  ;;  %vm3493_vm6 = vcmp.eq.f32.partialorder %v3492_v41, 8.507059e+37 }
 0x7da   : > { %vm3798_vm8 = vcmp.eq.f32.partialorder %v3797_v61, 8.507059e+37 }
 0x7db   : > { %v4027_v8 = vpop.f32.mrf.mxu0  ;;  %v3471_v54 = vmul.f32 %v10849_v0, %v3470_v29 }
 0x7dc   : > { %v7873_v51 = vpop.eup %7872  ;;  %v10864_v18 = vadd.f32 %v4027_v8, %v10779_v9  ;;  %v3480_v8 = vor.u32 1.1754944e-38, %v3479_v16 }
 0x7dd   : > { %v10866_v33 = vpop.eup %7874  ;;  %4775 = vrot.lane.b32.xlu0 %v7873_v51, %s8817_s18  ;;  %v3472_v38 = vadd.f32 %v10849_v0, %v3471_v54 }
 0x7de   : > { %7880 = vtanh.f32 %v10864_v18  ;;  %v7877_v55 = vpop.eup %7876  ;;  %v3774_v28 = vmul.f32 %v10866_v33, %v10836_v26  ;;  %vm3779_vm12 = vweird.f32 %v10866_v33 }
 0x7df   : > { %7882 = vrcp.f32 %v10856_v23  ;;  %v3859_v11 = vpop.permute.xlu0 %3858  ;;  %v10880_v2 = vpop.eup %7878  ;;  %v10882_v62 = vadd.f32 1.0, %v7877_v55  ;;  %v3476_v46 = vsel %vm10931_vm10, %v10849_v0, %v3472_v38  ;;  %v3784_v0 = vand.u32 2147483648, %v10836_v26  ;;  %vm3780_vm14 = vmor %vm3778_vm13, %vm3779_vm12 }
 0x7e0   : > { %v3894_v7 = vmul.f32 %v3859_v11, %v3451_v27  ;;  %v3775_v32 = vsub.f32 1.0, %v3774_v28  ;;  %v3484_v17 = vmul.f32 %v10880_v2, %v10851_v60  ;;  %v3481_v63 = vsel %vm3478_vm11, %v3480_v8, %v3476_v46 }
 0x7e1   : > { %v3896_v55 = vmul.f32 %v3863_v37, %v3481_v63  ;;  %v3785_v27 = vor.u32 1.1754944e-38, %v3784_v0  ;;  %vm3489_vm15 = vweird.f32 %v10880_v2  ;;  %vm3808_vm10 = vweird.f32 %v10882_v62  ;;  %v4890_v0 = vld [vmem:[#allocation13 + $0xb8] sm:$0xff] }
 0x7e2   : > { %7884 = vtanh.f32 %v3894_v7  ;;  %v3776_v13 = vmul.f32 %v10866_v33, %v3775_v32  ;;  %v3485_v36 = vsub.f32 1.0, %v3484_v17  ;;  %v3494_v7 = vand.u32 2147483648, %v10851_v60  ;;  %vm10962_vm3 = vmor %vm3488_vm2, %vm3489_vm15  ;;  %5085 = vmatpush.msra.mxu0 %v4890_v0  ;;  %v4870_v0 = vld [vmem:[#allocation13 + $0x18] sm:$0xff] }
 0x7e3   : > { %v4030_v35 = vpop.f32.mrf.mxu0  ;;  %7886 = vrcp.f32 %v10882_v62  ;;  %v3799_v60 = vand.u32 2147483648, %v10856_v23  ;;  %v11006_v37 = vperm.slane %v10759_v6, 1 }
 0x7e4   : > { %v7881_v5 = vpop.eup %7880  ;;  %v10902_v31 = vadd.f32 %v4030_v35, %v10779_v9  ;;  %v3777_v59 = vadd.f32 %v10866_v33, %v3776_v13  ;;  %v3486_v22 = vmul.f32 %v10880_v2, %v3485_v36  ;;  %v3495_v34 = vor.u32 1.1754944e-38, %v3494_v7 }
 0x7e5   : > { %v10899_v45 = vpop.eup %7882  ;;  %4777 = vrot.lane.b32.xlu1 %v7881_v5, %s8817_s18  ;;  %v3800_v16 = vor.u32 1.1754944e-38, %v3799_v60 }
 0x7e6   : > { %7888 = vtanh.f32 %v10902_v31  ;;  %v3789_v30 = vmul.f32 %v10899_v45, %v10856_v23  ;;  %v3781_v28 = vsel %vm3780_vm14, %v10866_v33, %v3777_v59  ;;  %v3487_v24 = vadd.f32 %v10880_v2, %v3486_v22  ;;  %v4888_v59 = vld [vmem:[#allocation13 + $0xa8] sm:$0xff] }
 0x7e7   : > { %v3861_v42 = vpop.permute.xlu1 %3860  ;;  %v3786_v47 = vsel %vm3783_vm0, %v3785_v27, %v3781_v28  ;;  %vm3794_vm5 = vweird.f32 %v10899_v45  ;;  %4955 = vmatpush.msra.mxu2 %v4888_v59  ;;  %v7129_v27 = vmul.f32 -1.442695, %v10839_v53 }
 0x7e8   : > { %v7885_v52 = vpop.eup %7884  ;;  %v3895_v57 = vmul.f32 %v3861_v42, %v3466_v12  ;;  %v3790_v25 = vsub.f32 1.0, %v3789_v30  ;;  %v3491_v3 = vsel %vm10962_vm3, %v10880_v2, %v3487_v24  ;;  %vm3795_vm7 = vmor %vm3793_vm1, %vm3794_vm5  ;;  %v3812_v42 = vand.u32 2147483647, %v10882_v62 }
 0x7e9   : > { %v3926_v19 = vmul.f32 %v7885_v52, %v3771_v4  ;;  %v10938_v15 = vpop.eup %7886  ;;  %v3496_v48 = vsel %vm3493_vm6, %v3495_v34, %v3491_v3  ;;  %v4887_v3 = vld [vmem:[#allocation13 + $0xa0] sm:$0xff] }
 0x7ea   : > { %7890 = vtanh.f32 %v3895_v57  ;;  %v3804_v29 = vmul.f32 %v10938_v15, %v10882_v62  ;;  %v3791_v11 = vmul.f32 %v10899_v45, %v3790_v25  ;;  %vm3809_vm9 = vweird.f32 %v10938_v15  ;;  %5086 = vmatpush.msra.mxu0 %v4887_v3 }
 0x7eb   : > { %v4033_v56 = vpop.f32.mrf.mxu0  ;;  %7107 = vmatmul.msk.f32.gmra.mxu0 %vm3952_vm4, %v3926_v19  ;;  %7123 = vmatmul.msk.f32.gmra.mxu1 %vm3952_vm4, %v3926_v19  ;;  %vm3810_vm11 = vmor %vm3808_vm10, %vm3809_vm9  ;;  %vm3813_vm12 = vcmp.eq.f32.partialorder %v3812_v42, 8.507059e+37  ;;  %v7127_v25 = vmul.f32 -1.442695, %v10795_v10  ;;  %v4878_v42 = vld [vmem:[#allocation13 + $0x58] sm:$0xff] }
 0x7ec   : > { %v7889_v51 = vpop.eup %7888  ;;  %v10945_v1 = vadd.f32 %v4033_v56, %v10779_v9  ;;  %v3805_v43 = vsub.f32 1.0, %v3804_v29  ;;  %v3792_v5 = vadd.f32 %v10899_v45, %v3791_v11  ;;  %v7128_v56 = vmul.f32 -1.442695, %v10820_v21 }
 0x7ed   : > { %4779 = vrot.lane.b32.xlu2 %v7889_v51, %s8817_s18  ;;  %v4889_v51 = vld [vmem:[#allocation13 + $0xb0] sm:$0xff] }
 0x7ee   : > { %7892 = vtanh.f32 %v10945_v1  ;;  %v3796_v2 = vsel %vm3795_vm7, %v10899_v45, %v3792_v5  ;;  %v3806_v49 = vmul.f32 %v10938_v15, %v3805_v43  ;;  %v3814_v45 = vand.u32 2147483648, %v10882_v62  ;;  %v4083_v62 = vpop.f32.mrf.mxu1  ;;  %5020 = vmatpush.msra.mxu3 %v4889_v51  ;;  %v4885_v5 = vld [vmem:[#allocation13 + $0x90] sm:$0xff] }
 0x7ef   : > { %7894 = vtanh.f32 %v3896_v55  ;;  %v3801_v44 = vsel %vm3798_vm8, %v3800_v16, %v3796_v2  ;;  %v4084_v22 = vadd.f32 %v4083_v62, %v11006_v37  ;;  %4956 = vmatpush.msra.mxu2 %v4885_v5  ;;  %v4883_v2 = vld [vmem:[#allocation13 + $0x80] sm:$0xff]  ;;  %v4874_v62 = vld [vmem:[#allocation13 + $0x38] sm:$0xff] }
 0x7f0   : > { %v7891_v26 = vpop.eup %7890  ;;  %v3807_v23 = vadd.f32 %v10938_v15, %v3806_v49  ;;  %v3815_v52 = vor.u32 1.1754944e-38, %v3814_v45  ;;  %v4884_v49 = vld [vmem:[#allocation13 + $0x88] sm:$0xff]  ;;  %v4877_v45 = vld [vmem:[#allocation13 + $0x50] sm:$0xff] }
 0x7f1   : > { %v3927_v33 = vmul.f32 %v7891_v26, %v3786_v47  ;;  %v7143_v10 = vmul.f32 -1.442695, %v4084_v22  ;;  %5087 = vmatpush.msra.mxu0 %v4884_v49  ;;  %v4871_v22 = vld [vmem:[#allocation13 + $0x20] sm:$0xff] }
 0x7f2   : > { %v3811_v13 = vsel %vm3810_vm11, %v10938_v15, %v3807_v23 }
 0x7f3   : > { %v4036_v54 = vpop.f32.mrf.mxu0  ;;  %7108 = vmatmul.msk.f32.gmra.mxu0 %vm3952_vm4, %v3927_v33  ;;  %7124 = vmatmul.msk.f32.gmra.mxu1 %vm3952_vm4, %v3927_v33  ;;  %v3816_v4 = vsel %vm3813_vm12, %v3815_v52, %v3811_v13  ;;  %v7130_v33 = vmul.f32 -1.442695, %v10864_v18 }
 0x7f4   : > { %v7893_v32 = vpop.eup %7892  ;;  %v10969_v35 = vadd.f32 %v4036_v54, %v10779_v9 }
 0x7f5   : > { %4781 = vrot.lane.b32.xlu0 %v7893_v32, %s8817_s18  ;;  %v7895_v17 = vpop.eup %7894  ;;  %v4886_v32 = vld [vmem:[#allocation13 + $0x98] sm:$0xff] }
 0x7f6   : > { %7896 = vtanh.f32 %v10969_v35  ;;  %v3928_v58 = vmul.f32 %v7895_v17, %v3801_v44  ;;  %v4086_v8 = vpop.f32.mrf.mxu1  ;;  %5021 = vmatpush.msra.mxu3 %v4886_v32  ;;  %v4879_v44 = vld [vmem:[#allocation13 + $0x60] sm:$0xff] }
 0x7f7   : > { %v3865_v40 = vpop.permute.xlu0 %3864  ;;  %v4087_v20 = vadd.f32 %v4086_v8, %v11006_v37 }
 0x7f8   : > { %v3897_v50 = vmul.f32 %v3865_v40, %v3496_v48  ;;  %v7131_v40 = vmul.f32 -1.442695, %v10902_v31  ;;  %v4882_v48 = vld [vmem:[#allocation13 + $0x78] sm:$0xff]  ;;  %5022 = vmatpush.msra.mxu3 %v4883_v2  ;;  %v4881_v31 = vld [vmem:[#allocation13 + $0x70] sm:$0xff] }
 0x7f9   : > { %v7144_v28 = vmul.f32 -1.442695, %v4087_v20  ;;  %4957 = vmatpush.msra.mxu2 %v4882_v48  ;;  %5088 = vmatpush.msra.mxu0 %v4881_v31 }
 0x7fa   : > { %7898 = vtanh.f32 %v3897_v50 }
 0x7fb   : > { %v4039_v38 = vpop.f32.mrf.mxu0  ;;  %7109 = vmatmul.msk.f32.gmra.mxu0 %vm3952_vm4, %v3928_v58  ;;  %7125 = vmatmul.msk.f32.gmra.mxu1 %vm3952_vm4, %v3928_v58 }
 0x7fc   : > { %v7897_v30 = vpop.eup %7896  ;;  %v10986_v12 = vadd.f32 %v4039_v38, %v10779_v9  ;;  %v4880_v38 = vld [vmem:[#allocation13 + $0x68] sm:$0xff]  ;;  %4958 = vmatpush.msra.mxu2 %v4879_v44  ;;  %5089 = vmatpush.msra.mxu0 %v4878_v42  ;;  %v7132_v44 = vmul.f32 -1.442695, %v10945_v1 }
 0x7fd   : > { %4783 = vrot.lane.b32.xlu1 %v7897_v30, %s8817_s18  ;;  %5023 = vmatpush.msra.mxu3 %v4880_v38  ;;  %v4876_v30 = vld [vmem:[#allocation13 + $0x48] sm:$0xff] }
 0x7fe   : > { %7900 = vtanh.f32 %v10986_v12  ;;  %v4089_v55 = vpop.f32.mrf.mxu1  ;;  %4959 = vmatpush.msra.mxu2 %v4876_v30 }
 0x7ff   : > { %v4090_v24 = vadd.f32 %v4089_v55, %v11006_v37  ;;  %5024 = vmatpush.msra.mxu3 %v4877_v45 }
 0x800   : > { %v7899_v57 = vpop.eup %7898 }
 0x801   : > { %v3929_v14 = vmul.f32 %v7899_v57, %v3816_v4  ;;  %v7145_v43 = vmul.f32 -1.442695, %v4090_v24  ;;  %5025 = vmatpush.msra.mxu3 %v4874_v62  ;;  %v4868_v24 = vld [vmem:[#allocation13 + $0x8] sm:$0xff] }
 0x803   : > { %v4042_v36 = vpop.f32.mrf.mxu0  ;;  %7110 = vmatmul.msk.f32.gmra.mxu0 %vm3952_vm4, %v3929_v14  ;;  %7126 = vmatmul.msk.f32.gmra.mxu1 %vm3952_vm4, %v3929_v14 }
 0x804   : > { %v7901_v19 = vpop.eup %7900  ;;  %v10997_v46 = vadd.f32 %v4042_v36, %v10779_v9  ;;  %5026 = vmatpush.msra.mxu3 %v4871_v22 }
 0x805   : > { %4785 = vrot.lane.b32.xlu2 %v7901_v19, %s8817_s18  ;;  %v4873_v19 = vld [vmem:[#allocation13 + $0x30] sm:$0xff] }
 0x806   : > { %7902 = vtanh.f32 %v10997_v46  ;;  %v4092_v7 = vpop.f32.mrf.mxu1  ;;  %4960 = vmatpush.msra.mxu2 %v4873_v19  ;;  %5027 = vmatpush.msra.mxu3 %v4868_v24 }
 0x807   : > { %7904 = vpow2.f32 %v7127_v25  ;;  %v4093_v34 = vadd.f32 %v4092_v7, %v11006_v37  ;;  %v4869_v7 = vld [vmem:[#allocation13 + $0x10] sm:$0xff] }
 0x808   : > { %7906 = vpow2.f32 %v7128_v56  ;;  %4961 = vmatpush.msra.mxu2 %v4870_v0 }
 0x809   : > { %7908 = vpow2.f32 %v7143_v10  ;;  %v7146_v58 = vmul.f32 -1.442695, %v4093_v34 }
 0x80c   : > { %v7903_v15 = vpop.eup %7902 }
 0x80d   : > { %4787 = vrot.lane.b32.xlu0 %v7903_v15, %s8817_s18  ;;  %v7905_v63 = vpop.eup %7904  ;;  %v4875_v15 = vld [vmem:[#allocation13 + $0x40] sm:$0xff] }
 0x80e   : > { %v11011_v6 = vadd.f32 1.0, %v7905_v63  ;;  %v7907_v29 = vpop.eup %7906  ;;  %v4095_v17 = vpop.f32.mrf.mxu1  ;;  %5090 = vmatpush.msra.mxu0 %v4875_v15  ;;  %v4872_v63 = vld [vmem:[#allocation13 + $0x28] sm:$0xff] }
 0x80f   : > { %v11014_v21 = vadd.f32 1.0, %v7907_v29  ;;  %v7909_v11 = vpop.eup %7908  ;;  %v4096_v59 = vadd.f32 %v4095_v17, %v11006_v37 }
 0x810   : > { %7910 = vrcp.f32 %v11011_v6  ;;  %v11021_v47 = vadd.f32 1.0, %v7909_v11  ;;  %v4204_v4 = vand.u32 2147483647, %v11011_v6  ;;  %v4206_v14 = vand.u32 2147483648, %v11011_v6  ;;  %5091 = vmatpush.msra.mxu0 %v4872_v63 }
 0x811   : > { %7912 = vpow2.f32 %v7144_v28  ;;  %vm4200_vm14 = vweird.f32 %v11011_v6  ;;  %v7147_v3 = vmul.f32 -1.442695, %v4096_v59  ;;  %vm4215_vm5 = vweird.f32 %v11014_v21 }
 0x812   : > { %7914 = vrcp.f32 %v11014_v21  ;;  %vm11063_vm0 = vcmp.eq.f32.partialorder %v4204_v4, 8.507059e+37  ;;  %v4207_v28 = vor.u32 1.1754944e-38, %v4206_v14  ;;  %v4524_v11 = vand.u32 2147483647, %v11021_v47  ;;  %5092 = vmatpush.msra.mxu0 %v4869_v7 }
 0x813   : > { %7916 = vpow2.f32 %v7129_v27  ;;  %v4867_v27 = vld [vmem:[#allocation13] sm:$0xff]  ;;  %vm4520_vm3 = vweird.f32 %v11021_v47  ;;  %v4526_v5 = vand.u32 2147483648, %v11021_v47  ;;  %v4219_v48 = vand.u32 2147483647, %v11014_v21 }
 0x814   : > { %7918 = vrcp.f32 %v11021_v47  ;;  %4962 = vmatpush.msra.mxu2 %v4867_v27  ;;  %vm11100_vm6 = vcmp.eq.f32.partialorder %v4524_v11, 8.507059e+37 }
 0x815   : > { %7920 = vpow2.f32 %v7145_v43  ;;  %v4527_v30 = vor.u32 1.1754944e-38, %v4526_v5  ;;  %vm4220_vm8 = vcmp.eq.f32.partialorder %v4219_v48, 8.507059e+37 }
 0x816   : > { %v11019_v26 = vpop.eup %7910  ;;  %7922 = vpow2.f32 %v7130_v33  ;;  %v4098_v43 = vpop.f32.mrf.mxu1 }
 0x817   : > { %v7913_v41 = vpop.eup %7912  ;;  %v4196_v54 = vmul.f32 %v11019_v26, %v11011_v6  ;;  %vm4201_vm13 = vweird.f32 %v11019_v26 }
 0x818   : > { %v11027_v53 = vpop.eup %7914  ;;  %v11029_v39 = vadd.f32 1.0, %v7913_v41  ;;  %vm11059_vm15 = vmor %vm4200_vm14, %vm4201_vm13 }
 0x819   : > { %v7917_v60 = vpop.eup %7916  ;;  %v4197_v61 = vsub.f32 1.0, %v4196_v54  ;;  %v4211_v18 = vmul.f32 %v11027_v53, %v11014_v21  ;;  %vm4216_vm2 = vweird.f32 %v11027_v53 }
 0x81a   : > { %v11035_v50 = vpop.eup %7918  ;;  %7924 = vrcp.f32 %v11029_v39  ;;  %v11038_v16 = vadd.f32 1.0, %v7917_v60  ;;  %vm11096_vm1 = vmor %vm4215_vm5, %vm4216_vm2  ;;  %v4541_v4 = vand.u32 2147483648, %v11029_v39  ;;  %vm4535_vm10 = vweird.f32 %v11029_v39 }
 0x81b   : > { %v4198_v23 = vmul.f32 %v11019_v26, %v4197_v61  ;;  %7926 = vpow2.f32 %v7131_v40  ;;  %v4212_v13 = vsub.f32 1.0, %v4211_v18  ;;  %v7921_v52 = vpop.eup %7920  ;;  %v4516_v57 = vmul.f32 %v11035_v50, %v11021_v47 }
 0x81c   : > { %v7923_v36 = vpop.eup %7922  ;;  %7928 = vrcp.f32 %v11038_v16  ;;  %v11050_v56 = vadd.f32 1.0, %v7921_v52  ;;  %v4221_v40 = vand.u32 2147483648, %v11014_v21  ;;  %vm4521_vm7 = vweird.f32 %v11035_v50 }
 0x81d   : > { %7930 = vpow2.f32 %v7146_v58  ;;  %v4199_v25 = vadd.f32 %v11019_v26, %v4198_v23  ;;  %v4213_v51 = vmul.f32 %v11027_v53, %v4212_v13  ;;  %v4517_v10 = vsub.f32 1.0, %v4516_v57  ;;  %vm11127_vm9 = vmor %vm4520_vm3, %vm4521_vm7 }
 0x81e   : > { %v11055_v20 = vadd.f32 1.0, %v7923_v36  ;;  %7932 = vrcp.f32 %v11050_v56  ;;  %v4222_v42 = vor.u32 1.1754944e-38, %v4221_v40  ;;  %v4539_v57 = vand.u32 2147483647, %v11029_v39  ;;  %v4101_v22 = vpop.f32.mrf.mxu1 }
 0x81f   : > { %v4203_v33 = vsel %vm11059_vm15, %v11019_v26, %v4199_v25  ;;  %v4214_v60 = vadd.f32 %v11027_v53, %v4213_v51  ;;  %v4518_v18 = vmul.f32 %v11035_v50, %v4517_v10  ;;  %v4099_v25 = vadd.f32 %v4098_v43, %v11006_v37 }
 0x820   : > { %v11048_v8 = vpop.eup %7924  ;;  %7934 = vrcp.f32 %v11055_v20  ;;  %v4208_v2 = vsel %vm11063_vm0, %v4207_v28, %v4203_v33  ;;  %v4234_v10 = vand.u32 2147483647, %v11038_v16  ;;  %v4236_v47 = vand.u32 2147483648, %v11038_v16 }
 0x821   : > { %v7927_v6 = vpop.eup %7926  ;;  %v4531_v41 = vmul.f32 %v11048_v8, %v11029_v39  ;;  %v4218_v1 = vsel %vm11096_vm1, %v11027_v53, %v4214_v60  ;;  %v4519_v13 = vadd.f32 %v11035_v50, %v4518_v18  ;;  %vm4536_vm11 = vweird.f32 %v11048_v8 }
 0x822   : > { %v11076_v32 = vpop.eup %7928  ;;  %v11084_v26 = vadd.f32 1.0, %v7927_v6  ;;  %v4223_v53 = vsel %vm4220_vm8, %v4222_v42, %v4218_v1  ;;  %v7133_v6 = vmul.f32 -1.442695, %v10969_v35  ;;  %vm11151_vm12 = vcmp.eq.f32.partialorder %v4539_v57, 8.507059e+37  ;;  %vm11172_vm15 = vmor %vm4535_vm10, %vm4536_vm11 }
 0x823   : > { %v7931_v61 = vpop.eup %7930  ;;  %v4532_v17 = vsub.f32 1.0, %v4531_v41  ;;  %v4226_v58 = vmul.f32 %v11076_v32, %v11038_v16  ;;  %v4523_v63 = vsel %vm11127_vm9, %v11035_v50, %v4519_v13  ;;  %v4542_v24 = vor.u32 1.1754944e-38, %v4541_v4 }
 0x824   : > { %v11106_v23 = vadd.f32 1.0, %v7931_v61  ;;  %v11114_v52 = vpop.eup %7932  ;;  %v7148_v35 = vmul.f32 -1.442695, %v4099_v25  ;;  %v4528_v43 = vsel %vm11100_vm6, %v4527_v30, %v4523_v63  ;;  %vm4230_vm13 = vweird.f32 %v11038_v16 }
 0x825   : > { %v4533_v19 = vmul.f32 %v11048_v8, %v4532_v17  ;;  %v4227_v62 = vsub.f32 1.0, %v4226_v58  ;;  %v4546_v29 = vmul.f32 %v11114_v52, %v11050_v56  ;;  %vm11161_vm14 = vcmp.eq.f32.partialorder %v4234_v10, 8.507059e+37 }
 0x826   : > { %v11118_v36 = vpop.eup %7934  ;;  %v4237_v60 = vor.u32 1.1754944e-38, %v4236_v47  ;;  %v7134_v18 = vmul.f32 -1.442695, %v10986_v12  ;;  %vm4231_vm0 = vweird.f32 %v11076_v32  ;;  %vm4550_vm2 = vweird.f32 %v11050_v56  ;;  %v4104_v4 = vpop.f32.mrf.mxu1 }
 0x827   : > { %v4241_v28 = vmul.f32 %v11118_v36, %v11055_v20  ;;  %v4534_v11 = vadd.f32 %v11048_v8, %v4533_v19  ;;  %v4228_v7 = vmul.f32 %v11076_v32, %v4227_v62  ;;  %v4547_v40 = vsub.f32 1.0, %v4546_v29  ;;  %vm11203_vm3 = vmor %vm4230_vm13, %vm4231_vm0 }
 0x828   : > { %v4102_v38 = vadd.f32 %v4101_v22, %v11006_v37  ;;  %v4251_v1 = vand.u32 2147483648, %v11055_v20  ;;  %v4554_v57 = vand.u32 2147483647, %v11050_v56  ;;  %v4556_v16 = vand.u32 2147483648, %v11050_v56 }
 0x829   : > { %v4538_v12 = vsel %vm11172_vm15, %v11048_v8, %v4534_v11  ;;  %v4229_v17 = vadd.f32 %v11076_v32, %v4228_v7  ;;  %v4548_v13 = vmul.f32 %v11114_v52, %v4547_v40  ;;  %vm4245_vm5 = vweird.f32 %v11055_v20 }
 0x82a   : > { %v7149_v62 = vmul.f32 -1.442695, %v4102_v38  ;;  %v4252_v22 = vor.u32 1.1754944e-38, %v4251_v1  ;;  %vm4551_vm6 = vweird.f32 %v11114_v52  ;;  %vm4246_vm7 = vweird.f32 %v11118_v36 }
 0x82b   : > { %v4264_v7 = vand.u32 2147483647, %v11084_v26  ;;  %vm11244_vm8 = vmor %vm4550_vm2, %vm4551_vm6  ;;  %vm11248_vm9 = vcmp.eq.f32.partialorder %v4554_v57, 8.507059e+37  ;;  %v4557_v56 = vor.u32 1.1754944e-38, %v4556_v16  ;;  %vm4565_vm15 = vweird.f32 %v11106_v23 }
 0x82c   : > { %vm11258_vm10 = vmor %vm4245_vm5, %vm4246_vm7 }
 0x82d   : > { %vm11281_vm13 = vcmp.eq.f32.partialorder %v4264_v7, 8.507059e+37 }
 0x82f   : > { %v4774_v45 = vpop.permute.xlu2 %4773 }
 0x830   : > { %v4820_v59 = vmul.f32 %v4774_v45, %v4223_v53 }
 0x837   : > { %v4045_v54 = vpop.f32.mrf.mxu0 }
 0x838   : > { %v11081_v34 = vadd.f32 %v4045_v54, %v10779_v9 }
 0x839   : > { %v4772_v49 = vpop.permute.xlu1 %4771 }
 0x83a   : > { %7936 = vtanh.f32 %v11081_v34  ;;  %v4819_v21 = vmul.f32 %v4772_v49, %v4208_v2  ;;  %v4242_v2 = vsub.f32 1.0, %v4241_v28  ;;  %v4105_v28 = vadd.f32 %v4104_v4, %v11006_v37 }
 0x83b   : > { %7938 = vpow2.f32 %v7147_v3 }
 0x83c   : > { %7940 = vrcp.f32 %v11084_v26  ;;  %v4243_v42 = vmul.f32 %v11118_v36, %v4242_v2 }
 0x83d   : > { %7942 = vtanh.f32 %v4819_v21  ;;  %v4249_v21 = vand.u32 2147483647, %v11055_v20 }
 0x83e   : > { %7944 = vpow2.f32 %v7132_v44  ;;  %v4244_v47 = vadd.f32 %v11118_v36, %v4243_v42 }
 0x83f   : > { %v4048_v14 = vpop.f32.mrf.mxu0  ;;  %7946 = vrcp.f32 %v11106_v23  ;;  %vm11219_vm1 = vcmp.eq.f32.partialorder %v4249_v21, 8.507059e+37 }
 0x840   : > { %v7937_v15 = vpop.eup %7936  ;;  %v11132_v0 = vadd.f32 %v4048_v14, %v10779_v9  ;;  %v4233_v14 = vsel %vm11203_vm3, %v11076_v32, %v4229_v17  ;;  %v4248_v48 = vsel %vm11258_vm10, %v11118_v36, %v4244_v47 }
 0x841   : > { %4789 = vrot.lane.b32.xlu1 %v7937_v15, %s8817_s18  ;;  %v7939_v55 = vpop.eup %7938  ;;  %v4543_v15 = vsel %vm11151_vm12, %v4542_v24, %v4538_v12  ;;  %v4238_v10 = vsel %vm11161_vm14, %v4237_v60, %v4233_v14  ;;  %vm4260_vm12 = vweird.f32 %v11084_v26  ;;  %v4571_v14 = vand.u32 2147483648, %v11106_v23 }
 0x842   : > { %7948 = vtanh.f32 %v11132_v0  ;;  %v11147_v50 = vpop.eup %7940  ;;  %v11159_v33 = vadd.f32 1.0, %v7939_v55  ;;  %v4549_v55 = vadd.f32 %v11114_v52, %v4548_v13 }
 0x843   : > { %v7943_v41 = vpop.eup %7942  ;;  %7950 = vtanh.f32 %v4820_v59  ;;  %v4256_v49 = vmul.f32 %v11147_v50, %v11084_v26  ;;  %vm4261_vm11 = vweird.f32 %v11147_v50  ;;  %v4572_v47 = vor.u32 1.1754944e-38, %v4571_v14 }
 0x844   : > { %v7945_v54 = vpop.eup %7944  ;;  %v4851_v5 = vmul.f32 %v7943_v41, %v4528_v43  ;;  %7952 = vpow2.f32 %v7133_v6  ;;  %v4266_v41 = vand.u32 2147483648, %v11084_v26  ;;  %v4553_v20 = vsel %vm11244_vm8, %v11114_v52, %v4549_v55  ;;  %v4107_v52 = vpop.f32.mrf.mxu1  ;;  %vm11293_vm14 = vmor %vm4260_vm12, %vm4261_vm11 }
 0x845   : > { %v11165_v61 = vpop.eup %7946  ;;  %v11186_v44 = vadd.f32 1.0, %v7945_v54  ;;  %7954 = vpow2.f32 %v7148_v35  ;;  %v4257_v53 = vsub.f32 1.0, %v4256_v49  ;;  %v7150_v49 = vmul.f32 -1.442695, %v4105_v28 }
 0x846   : > { %7159 = vmatmul.msk.f32.vlgmr.msra.gmra.mxu2 %vm3952_vm4, %v4851_v5  ;;  %7175 = vmatmul.msk.f32.vlgmr.msra.gmra.mxu3 %vm3952_vm4, %v4851_v5  ;;  %v4561_v8 = vmul.f32 %v11165_v61, %v11106_v23  ;;  %7956 = vrcp.f32 %v11159_v33  ;;  %v4267_v36 = vor.u32 1.1754944e-38, %v4266_v41  ;;  %vm4566_vm0 = vweird.f32 %v11165_v61 }
 0x847   : > { %7191 = vmatmul.msk.f32.vlgmr.msra.gmra.mxu0 %vm3952_vm4, %v4851_v5  ;;  %7958 = vpow2.f32 %v7134_v18  ;;  %v4258_v11 = vmul.f32 %v11147_v50, %v4257_v53  ;;  %v7135_v18 = vmul.f32 -1.442695, %v10997_v46  ;;  %v4108_v57 = vadd.f32 %v4107_v52, %v11006_v37  ;;  %v4780_v4 = vpop.permute.xlu2 %4779  ;;  %vm11320_vm2 = vmor %vm4565_vm15, %vm4566_vm0 }
 0x848   : > { %v7949_v39 = vpop.eup %7948  ;;  %v4051_v31 = vpop.f32.mrf.mxu0  ;;  %v4562_v25 = vsub.f32 1.0, %v4561_v8  ;;  %v4253_v8 = vsel %vm11219_vm1, %v4252_v22, %v4248_v48  ;;  %v4281_v48 = vand.u32 2147483648, %v11186_v44  ;;  %vm4580_vm6 = vweird.f32 %v11159_v33 }
 0x849   : > { %v11195_v58 = vadd.f32 %v4051_v31, %v10779_v9  ;;  %4791 = vrot.lane.b32.xlu2 %v7949_v39, %s8817_s18  ;;  %v7951_v30 = vpop.eup %7950  ;;  %v4259_v46 = vadd.f32 %v11147_v50, %v4258_v11  ;;  %v4558_v39 = vsel %vm11248_vm9, %v4557_v56, %v4553_v20  ;;  %v4584_v20 = vand.u32 2147483647, %v11159_v33 }
 0x84a   : > { %v7953_v19 = vpop.eup %7952  ;;  %v4852_v59 = vmul.f32 %v7951_v30, %v4543_v15  ;;  %v4563_v60 = vmul.f32 %v11165_v61, %v4562_v25  ;;  %vm4275_vm7 = vweird.f32 %v11186_v44  ;;  %v4282_v26 = vor.u32 1.1754944e-38, %v4281_v48 }
 0x84b   : > { %7960 = vtanh.f32 %v11195_v58  ;;  %v7955_v32 = vpop.eup %7954  ;;  %v11231_v6 = vadd.f32 1.0, %v7953_v19  ;;  %v4263_v42 = vsel %vm11293_vm14, %v11147_v50, %v4259_v46  ;;  %vm4585_vm10 = vcmp.eq.f32.partialorder %v4584_v20, 8.507059e+37 }
 0x84c   : > { %7962 = vrcp.f32 %v11186_v44  ;;  %v11229_v29 = vpop.eup %7956  ;;  %v11252_v5 = vadd.f32 1.0, %v7955_v32  ;;  %v4564_v38 = vadd.f32 %v11165_v61, %v4563_v60  ;;  %v4268_v50 = vsel %vm11281_vm13, %v4267_v36, %v4263_v42 }
 0x84d   : > { %v7959_v24 = vpop.eup %7958  ;;  %7964 = vpow2.f32 %v7149_v62  ;;  %v4576_v2 = vmul.f32 %v11229_v29, %v11159_v33  ;;  %v4569_v62 = vand.u32 2147483647, %v11106_v23  ;;  %v4823_v51 = vmul.f32 %v4780_v4, %v4268_v50 }
 0x84e   : > { %7160 = vmatmul.msk.f32.gmra.mxu2 %vm3952_vm4, %v4852_v59  ;;  %7176 = vmatmul.msk.f32.gmra.mxu3 %vm3952_vm4, %v4852_v59  ;;  %v11278_v12 = vadd.f32 1.0, %v7959_v24  ;;  %v4568_v22 = vsel %vm11320_vm2, %v11165_v61, %v4564_v38  ;;  %vm4581_vm1 = vweird.f32 %v11229_v29  ;;  %v4586_v60 = vand.u32 2147483648, %v11159_v33 }
 0x84f   : > { %v4776_v63 = vpop.permute.xlu0 %4775  ;;  %7192 = vmatmul.msk.f32.gmra.mxu0 %vm3952_vm4, %v4852_v59  ;;  %v4577_v45 = vsub.f32 1.0, %v4576_v2  ;;  %vm4570_vm3 = vcmp.eq.f32.partialorder %v4569_v62, 8.507059e+37  ;;  %vm11363_vm8 = vmor %vm4580_vm6, %vm4581_vm1  ;;  %vm4290_vm12 = vweird.f32 %v11231_v6  ;;  %vm4595_vm0 = vweird.f32 %v11252_v5 }
 0x850   : > { %v4821_v27 = vmul.f32 %v4776_v63, %v4238_v10  ;;  %v7151_v10 = vmul.f32 -1.442695, %v4108_v57  ;;  %v4573_v61 = vsel %vm4570_vm3, %v4572_v47, %v4568_v22  ;;  %v4587_v38 = vor.u32 1.1754944e-38, %v4586_v60 }
 0x851   : > { %v7961_v54 = vpop.eup %7960  ;;  %v4578_v32 = vmul.f32 %v11229_v29, %v4577_v45  ;;  %v4294_v22 = vand.u32 2147483647, %v11231_v6 }
 0x852   : > { %7966 = vtanh.f32 %v4821_v27  ;;  %v11263_v40 = vpop.eup %7962  ;;  %4793 = vrot.lane.b32.xlu0 %v7961_v54, %s8817_s18 }
 0x853   : > { %7968 = vrcp.f32 %v11231_v6  ;;  %v4271_v31 = vmul.f32 %v11263_v40, %v11186_v44  ;;  %v7965_v21 = vpop.eup %7964  ;;  %vm4276_vm5 = vweird.f32 %v11263_v40  ;;  %v4579_v41 = vadd.f32 %v11229_v29, %v4578_v32 }
 0x854   : > { %7970 = vrcp.f32 %v11252_v5  ;;  %v11309_v19 = vadd.f32 1.0, %v7965_v21  ;;  %vm11369_vm9 = vmor %vm4275_vm7, %vm4276_vm5  ;;  %v4601_v32 = vand.u32 2147483648, %v11252_v5  ;;  %vm4305_vm5 = vweird.f32 %v11278_v12 }
 0x855   : > { %7972 = vpow2.f32 %v7135_v18  ;;  %v4272_v15 = vsub.f32 1.0, %v4271_v31  ;;  %v4583_v17 = vsel %vm11363_vm8, %v11229_v29, %v4579_v41  ;;  %vm4295_vm1 = vcmp.eq.f32.partialorder %v4294_v22, 8.507059e+37 }
 0x856   : > { %7974 = vpow2.f32 %v7150_v49  ;;  %v4279_v49 = vand.u32 2147483647, %v11186_v44  ;;  %v4588_v29 = vsel %vm4585_vm10, %v4587_v38, %v4583_v17  ;;  %v4602_v41 = vor.u32 1.1754944e-38, %v4601_v32 }
 0x857   : > { %v4778_v1 = vpop.permute.xlu1 %4777  ;;  %7976 = vrcp.f32 %v11278_v12  ;;  %v4273_v28 = vmul.f32 %v11263_v40, %v4272_v15  ;;  %v4296_v15 = vand.u32 2147483648, %v11231_v6  ;;  %vm4610_vm10 = vweird.f32 %v11309_v19 }
 0x858   : > { %v7967_v30 = vpop.eup %7966  ;;  %v4822_v13 = vmul.f32 %v4778_v1, %v4253_v8  ;;  %vm4280_vm11 = vcmp.eq.f32.partialorder %v4279_v49, 8.507059e+37  ;;  %v4614_v38 = vand.u32 2147483647, %v11309_v19 }
 0x859   : > { %v4853_v53 = vmul.f32 %v7967_v30, %v4558_v39  ;;  %v11307_v16 = vpop.eup %7968  ;;  %v4274_v56 = vadd.f32 %v11263_v40, %v4273_v28  ;;  %v4297_v28 = vor.u32 1.1754944e-38, %v4296_v15 }
 0x85a   : > { %7978 = vtanh.f32 %v4822_v13  ;;  %v11324_v59 = vpop.eup %7970  ;;  %v4286_v23 = vmul.f32 %v11307_v16, %v11231_v6  ;;  %vm4291_vm13 = vweird.f32 %v11307_v16 }
 0x85b   : > { %7161 = vmatmul.msk.f32.gmra.mxu2 %vm3952_vm4, %v4853_v53  ;;  %7177 = vmatmul.msk.f32.gmra.mxu3 %vm3952_vm4, %v4853_v53  ;;  %v7973_v63 = vpop.eup %7972  ;;  %7980 = vrcp.f32 %v11309_v19  ;;  %v4591_v27 = vmul.f32 %v11324_v59, %v11252_v5  ;;  %v4278_v39 = vsel %vm11369_vm9, %v11263_v40, %v4274_v56  ;;  %vm4596_vm14 = vweird.f32 %v11324_v59  ;;  %vm11411_vm15 = vmor %vm4290_vm12, %vm4291_vm13 }
 0x85c   : > { %7193 = vmatmul.msk.f32.gmra.mxu0 %vm3952_vm4, %v4853_v53  ;;  %v7975_v55 = vpop.eup %7974  ;;  %v11339_v7 = vadd.f32 1.0, %v7973_v63  ;;  %7982 = vtanh.f32 %v4823_v51  ;;  %v4287_v43 = vsub.f32 1.0, %v4286_v23  ;;  %v4283_v30 = vsel %vm4280_vm11, %v4282_v26, %v4278_v39  ;;  %vm11427_vm3 = vmor %vm4595_vm0, %vm4596_vm14 }
 0x85d   : > { %v11335_v11 = vpop.eup %7976  ;;  %7984 = vpow2.f32 %v7151_v10  ;;  %v11344_v54 = vadd.f32 1.0, %v7975_v55  ;;  %v4592_v18 = vsub.f32 1.0, %v4591_v27  ;;  %v4311_v51 = vand.u32 2147483648, %v11278_v12 }
 0x85e   : > { %v4301_v3 = vmul.f32 %v11335_v11, %v11278_v12  ;;  %7986 = vrcp.f32 %v11339_v7  ;;  %v4288_v36 = vmul.f32 %v11307_v16, %v4287_v43  ;;  %v4599_v10 = vand.u32 2147483647, %v11252_v5 }
 0x85f   : > { %7988 = vrcp.f32 %v11344_v54  ;;  %v4593_v8 = vmul.f32 %v11324_v59, %v4592_v18  ;;  %vm4306_vm2 = vweird.f32 %v11335_v11  ;;  %v4312_v18 = vor.u32 1.1754944e-38, %v4311_v51  ;;  %v4786_v46 = vpop.permute.xlu2 %4785 }
 0x860   : > { %v7979_v24 = vpop.eup %7978  ;;  %v4302_v44 = vsub.f32 1.0, %v4301_v3  ;;  %v4289_v13 = vadd.f32 %v11307_v16, %v4288_v36  ;;  %vm11441_vm6 = vmor %vm4305_vm5, %vm4306_vm2  ;;  %vm4600_vm7 = vcmp.eq.f32.partialorder %v4599_v10, 8.507059e+37  ;;  %vm4615_vm12 = vcmp.eq.f32.partialorder %v4614_v38, 8.507059e+37 }
 0x861   : > { %v4854_v35 = vmul.f32 %v7979_v24, %v4573_v61  ;;  %v11355_v2 = vpop.eup %7980  ;;  %v4594_v50 = vadd.f32 %v11324_v59, %v4593_v8  ;;  %v11437_v24 = vpop.f32.mrf.mxu1  ;;  %vm4320_vm13 = vweird.f32 %v11339_v7  ;;  %v4631_v32 = vand.u32 2147483648, %v11344_v54 }
 0x862   : > { %v7983_v52 = vpop.eup %7982  ;;  %v4606_v21 = vmul.f32 %v11355_v2, %v11309_v19  ;;  %v4303_v4 = vmul.f32 %v11335_v11, %v4302_v44  ;;  %v4293_v6 = vsel %vm11411_vm15, %v11307_v16, %v4289_v13  ;;  %v4309_v16 = vand.u32 2147483647, %v11278_v12 }
 0x863   : > { %7162 = vmatmul.msk.f32.gmra.mxu2 %vm3952_vm4, %v4854_v35  ;;  %7178 = vmatmul.msk.f32.gmra.mxu3 %vm3952_vm4, %v4854_v35  ;;  %v7985_v31 = vpop.eup %7984  ;;  %v4855_v42 = vmul.f32 %v7983_v52, %v4588_v29  ;;  %v4598_v27 = vsel %vm11427_vm3, %v11324_v59, %v4594_v50  ;;  %v4298_v43 = vsel %vm4295_vm1, %v4297_v28, %v4293_v6  ;;  %vm4611_vm8 = vweird.f32 %v11355_v2 }
 0x864   : > { %7194 = vmatmul.msk.f32.gmra.mxu0 %vm3952_vm4, %v4854_v35  ;;  %v11387_v40 = vpop.eup %7986  ;;  %v11389_v57 = vadd.f32 1.0, %v7985_v31  ;;  %v4607_v62 = vsub.f32 1.0, %v4606_v21  ;;  %v4304_v23 = vadd.f32 %v11335_v11, %v4303_v4  ;;  %v4603_v20 = vsel %vm4600_vm7, %v4602_v41, %v4598_v27  ;;  %vm4612_vm11 = vmor %vm4610_vm10, %vm4611_vm8 }
 0x865   : > { %v11400_v25 = vpop.eup %7988  ;;  %v4316_v47 = vmul.f32 %v11387_v40, %v11339_v7  ;;  %vm4310_vm9 = vcmp.eq.f32.partialorder %v4309_v16, 8.507059e+37  ;;  %vm4321_vm14 = vweird.f32 %v11387_v40  ;;  %v4324_v13 = vand.u32 2147483647, %v11339_v7 }
 0x866   : > { %v4621_v5 = vmul.f32 %v11400_v25, %v11344_v54  ;;  %v4608_v61 = vmul.f32 %v11355_v2, %v4607_v62  ;;  %v4308_v59 = vsel %vm11441_vm6, %v11335_v11, %v4304_v23  ;;  %v4616_v11 = vand.u32 2147483648, %v11309_v19  ;;  %vm11482_vm0 = vmor %vm4320_vm13, %vm4321_vm14 }
 0x867   : > { %v4782_v1 = vpop.permute.xlu0 %4781  ;;  %v4317_v56 = vsub.f32 1.0, %v4316_v47  ;;  %v4313_v39 = vsel %vm4310_vm9, %v4312_v18, %v4308_v59  ;;  %v4326_v4 = vand.u32 2147483648, %v11339_v7  ;;  %vm4626_vm15 = vweird.f32 %v11400_v25 }
 0x868   : > { %v4054_v45 = vpop.f32.mrf.mxu0  ;;  %v4824_v53 = vmul.f32 %v4782_v1, %v4283_v30  ;;  %v4622_v12 = vsub.f32 1.0, %v4621_v5  ;;  %v4609_v36 = vadd.f32 %v11355_v2, %v4608_v61  ;;  %v4826_v21 = vmul.f32 %v4786_v46, %v4313_v39 }
 0x869   : > { %v11393_v14 = vadd.f32 %v4054_v45, %v10779_v9  ;;  %v4318_v31 = vmul.f32 %v11387_v40, %v4317_v56  ;;  %v4617_v1 = vor.u32 1.1754944e-38, %v4616_v11  ;;  %v4113_v45 = vpop.f32.mrf.mxu1  ;;  %vm4625_vm2 = vweird.f32 %v11344_v54 }
 0x86a   : > { %7990 = vtanh.f32 %v4824_v53  ;;  %v4613_v8 = vsel %vm4612_vm11, %v11355_v2, %v4609_v36  ;;  %v4623_v29 = vmul.f32 %v11400_v25, %v4622_v12  ;;  %v4629_v10 = vand.u32 2147483647, %v11344_v54  ;;  %vm4627_vm3 = vmor %vm4625_vm2, %vm4626_vm15 }
 0x86b   : > { %7163 = vmatmul.msk.f32.gmra.mxu2 %vm3952_vm4, %v4855_v42  ;;  %7179 = vmatmul.msk.f32.gmra.mxu3 %vm3952_vm4, %v4855_v42  ;;  %7992 = vtanh.f32 %v11393_v14  ;;  %v4319_v19 = vadd.f32 %v11387_v40, %v4318_v31  ;;  %v4327_v7 = vor.u32 1.1754944e-38, %v4326_v4  ;;  %vm4325_vm5 = vcmp.eq.f32.partialorder %v4324_v13, 8.507059e+37 }
 0x86c   : > { %7195 = vmatmul.msk.f32.gmra.mxu0 %vm3952_vm4, %v4855_v42  ;;  %7994 = vrcp.f32 %v11389_v57  ;;  %v4618_v42 = vsel %vm4615_vm12, %v4617_v1, %v4613_v8  ;;  %v4624_v15 = vadd.f32 %v11400_v25, %v4623_v29  ;;  %v4632_v5 = vor.u32 1.1754944e-38, %v4631_v32 }
 0x86d   : > { %v4323_v63 = vsel %vm11482_vm0, %v11387_v40, %v4319_v19  ;;  %vm4630_vm1 = vcmp.eq.f32.partialorder %v4629_v10, 8.507059e+37  ;;  %vm4640_vm7 = vweird.f32 %v11389_v57  ;;  %v4644_v56 = vand.u32 2147483647, %v11389_v57 }
 0x86e   : > { %v4628_v47 = vsel %vm4627_vm3, %v11400_v25, %v4624_v15  ;;  %v4328_v40 = vsel %vm4325_vm5, %v4327_v7, %v4323_v63 }
 0x86f   : > { %v4784_v3 = vpop.permute.xlu1 %4783  ;;  %v4633_v54 = vsel %vm4630_vm1, %v4632_v5, %v4628_v47  ;;  %vm4645_vm9 = vcmp.eq.f32.partialorder %v4644_v56, 8.507059e+37 }
 0x870   : > { %v7991_v60 = vpop.eup %7990  ;;  %v4825_v48 = vmul.f32 %v4784_v3, %v4298_v43  ;;  %v4057_v33 = vpop.f32.mrf.mxu0  ;;  %v4646_v43 = vand.u32 2147483648, %v11389_v57  ;;  %v4111_v3 = vadd.f32 %v11437_v24, %v11006_v37 }
 0x871   : > { %v7993_v49 = vpop.eup %7992  ;;  %v4856_v17 = vmul.f32 %v7991_v60, %v4603_v20  ;;  %v11453_v44 = vadd.f32 %v4057_v33, %v10779_v9  ;;  %v4116_v35 = vpop.f32.mrf.mxu1  ;;  %v7136_v60 = vmul.f32 -1.442695, %v11081_v34  ;;  %v7137_v34 = vmul.f32 -1.442695, %v11132_v0 }
 0x872   : > { %v11450_v52 = vpop.eup %7994  ;;  %7996 = vtanh.f32 %v4825_v48  ;;  %4795 = vrot.lane.b32.xlu1 %v7993_v49, %s8817_s18  ;;  %v4647_v24 = vor.u32 1.1754944e-38, %v4646_v43  ;;  %v7152_v59 = vmul.f32 -1.442695, %v4111_v3  ;;  %v7138_v33 = vmul.f32 -1.442695, %v11195_v58 }
 0x873   : > { %7164 = vmatmul.msk.f32.gmra.mxu2 %vm3952_vm4, %v4856_v17  ;;  %7180 = vmatmul.msk.f32.gmra.mxu3 %vm3952_vm4, %v4856_v17  ;;  %7998 = vtanh.f32 %v11453_v44  ;;  %v4636_v26 = vmul.f32 %v11450_v52, %v11389_v57  ;;  %vm4641_vm6 = vweird.f32 %v11450_v52  ;;  %v4114_v57 = vadd.f32 %v4113_v45, %v11006_v37 }
 0x874   : > { %7196 = vmatmul.msk.f32.gmra.mxu0 %vm3952_vm4, %v4856_v17  ;;  %8000 = vtanh.f32 %v4826_v21  ;;  %vm4642_vm8 = vmor %vm4640_vm7, %vm4641_vm6  ;;  %v4117_v36 = vadd.f32 %v4116_v35, %v11006_v37 }
 0x875   : > { %v4637_v53 = vsub.f32 1.0, %v4636_v26  ;;  %v7153_v46 = vmul.f32 -1.442695, %v4114_v57 }
 0x876   : > { %v7154_v11 = vmul.f32 -1.442695, %v4117_v36 }
 0x877   : > { %v4638_v23 = vmul.f32 %v11450_v52, %v4637_v53 }
 0x878   : > { %v7997_v30 = vpop.eup %7996  ;;  %v4060_v2 = vpop.f32.mrf.mxu0 }
 0x879   : > { %v4857_v62 = vmul.f32 %v7997_v30, %v4618_v42  ;;  %v7999_v50 = vpop.eup %7998  ;;  %v11478_v51 = vadd.f32 %v4060_v2, %v10779_v9  ;;  %v4639_v16 = vadd.f32 %v11450_v52, %v4638_v23  ;;  %v4119_v12 = vpop.f32.mrf.mxu1  ;;  %v7139_v30 = vmul.f32 -1.442695, %v11393_v14 }
 0x87a   : > { %4797 = vrot.lane.b32.xlu2 %v7999_v50, %s8817_s18  ;;  %v8001_v6 = vpop.eup %8000  ;;  %v4120_v29 = vadd.f32 %v4119_v12, %v11006_v37  ;;  %v7140_v14 = vmul.f32 -1.442695, %v11453_v44 }
 0x87b   : > { %7165 = vmatmul.msk.f32.gmra.mxu2 %vm3952_vm4, %v4857_v62  ;;  %8002 = vtanh.f32 %v11478_v51  ;;  %7181 = vmatmul.msk.f32.gmra.mxu3 %vm3952_vm4, %v4857_v62  ;;  %v4858_v61 = vmul.f32 %v8001_v6, %v4633_v54 }
 0x87c   : > { %7197 = vmatmul.msk.f32.gmra.mxu0 %vm3952_vm4, %v4857_v62  ;;  %v7155_v42 = vmul.f32 -1.442695, %v4120_v29 }
 0x87f   : > { %v4788_v55 = vpop.permute.xlu0 %4787 }
 0x880   : > { %v4827_v28 = vmul.f32 %v4788_v55, %v4328_v40  ;;  %v4063_v27 = vpop.f32.mrf.mxu0 }
 0x881   : > { %v8003_v41 = vpop.eup %8002  ;;  %v11502_v25 = vadd.f32 %v4063_v27, %v10779_v9  ;;  %v4643_v9 = vsel %vm4642_vm8, %v11450_v52, %v4639_v16  ;;  %v4122_v31 = vpop.f32.mrf.mxu1 }
 0x882   : > { %8004 = vtanh.f32 %v4827_v28  ;;  %4799 = vrot.lane.b32.xlu0 %v8003_v41, %s8817_s18  ;;  %v4648_v48 = vsel %vm4645_vm9, %v4647_v24, %v4643_v9  ;;  %v4123_v62 = vadd.f32 %v4122_v31, %v11006_v37 }
 0x883   : > { %7166 = vmatmul.msk.f32.gmra.mxu2 %vm3952_vm4, %v4858_v61  ;;  %8006 = vtanh.f32 %v11502_v25  ;;  %7182 = vmatmul.msk.f32.gmra.mxu3 %vm3952_vm4, %v4858_v61 }
 0x884   : > { %7198 = vmatmul.msk.f32.gmra.mxu0 %vm3952_vm4, %v4858_v61  ;;  %8008 = vpow2.f32 %v7136_v60  ;;  %v7156_v63 = vmul.f32 -1.442695, %v4123_v62 }
 0x885   : > { %8010 = vpow2.f32 %v7152_v59 }
 0x886   : > { %8012 = vpow2.f32 %v7137_v34 }
 0x887   : > { %8014 = vpow2.f32 %v7153_v46 }
 0x888   : > { %v8005_v18 = vpop.eup %8004  ;;  %8016 = vpow2.f32 %v7138_v33 }
 0x889   : > { %v4859_v20 = vmul.f32 %v8005_v18, %v4648_v48  ;;  %v8007_v49 = vpop.eup %8006  ;;  %v4125_v4 = vpop.f32.mrf.mxu1 }
 0x88a   : > { %4801 = vrot.lane.b32.xlu1 %v8007_v49, %s8817_s18  ;;  %v8009_v17 = vpop.eup %8008  ;;  %v4126_v35 = vadd.f32 %v4125_v4, %v11006_v37  ;;  %v7141_v49 = vmul.f32 -1.442695, %v11478_v51  ;;  %s14003_s18 = sld [smem:[#allocation35_spill]] }
 0x88b   : > { %7167 = vmatmul.msk.f32.gmra.mxu2 %vm3952_vm4, %v4859_v20  ;;  %7183 = vmatmul.msk.f32.gmra.mxu3 %vm3952_vm4, %v4859_v20  ;;  %v8011_v0 = vpop.eup %8010  ;;  %v11526_v52 = vadd.f32 1.0, %v8009_v17 }
 0x88c   : > { %7199 = vmatmul.msk.f32.gmra.mxu0 %vm3952_vm4, %v4859_v20  ;;  %v8013_v39 = vpop.eup %8012  ;;  %v11528_v38 = vadd.f32 1.0, %v8011_v0  ;;  %v7157_v17 = vmul.f32 -1.442695, %v4126_v35 }
 0x88d   : > { %8018 = vrcp.f32 %v11526_v52  ;;  %v8015_v21 = vpop.eup %8014  ;;  %v11531_v26 = vadd.f32 1.0, %v8013_v39  ;;  %v4341_v7 = vand.u32 2147483648, %v11526_v52  ;;  %v4339_v44 = vand.u32 2147483647, %v11526_v52 }
 0x88e   : > { %8020 = vpow2.f32 %v7154_v11  ;;  %v8017_v58 = vpop.eup %8016  ;;  %v11534_v8 = vadd.f32 1.0, %v8015_v21  ;;  %v4661_v23 = vand.u32 2147483648, %v11528_v38  ;;  %vm4335_vm10 = vweird.f32 %v11526_v52 }
 0x88f   : > { %8022 = vrcp.f32 %v11528_v38  ;;  %v11538_v1 = vadd.f32 1.0, %v8017_v58  ;;  %v4356_v40 = vand.u32 2147483648, %v11531_v26  ;;  %v4659_v28 = vand.u32 2147483647, %v11528_v38 }
 0x890   : > { %8024 = vrcp.f32 %v11531_v26  ;;  %v4342_v16 = vor.u32 1.1754944e-38, %v4341_v7  ;;  %vm11576_vm11 = vcmp.eq.f32.partialorder %v4339_v44, 8.507059e+37  ;;  %vm4655_vm12 = vweird.f32 %v11528_v38  ;;  %s6775_s21 = scalar_lea.hbm %s14003_s18, %s8910_s29  ;;  %s8738_s29 = scalar_lea.hbm %s14003_s18, 2 }
 0x891   : > { %8026 = vrcp.f32 %v11534_v8  ;;  %v4128_v43 = vpop.f32.mrf.mxu1  ;;  %v11581_v56 = vor.u32 1.1754944e-38, %v4661_v23  ;;  %vm4350_vm13 = vweird.f32 %v11531_v26  ;;  %v4354_v24 = vand.u32 2147483647, %v11531_v26  ;;  %s6779_s16 = sshll.u32 %s6775_s21, 4  ;;  %s6780_s16 = int_to_ptr.hbm [resolvable:$true] %s6779_s16 }
 0x892   : > { %8028 = vrcp.f32 %v11538_v1  ;;  %v4357_v48 = vor.u32 1.1754944e-38, %v4356_v40  ;;  %v4129_v12 = vadd.f32 %v4128_v43, %v11006_v37  ;;  %vm4670_vm3 = vweird.f32 %v11534_v8  ;;  %v5856_v37 = vld [vmem:[#allocation14 + $0x150] sm:$0xff]  ;;  %s8732_s14 = sshra.s32 %s6780_s16, 4  ;;  %s8733_s14 = int_to_ptr.hbm [resolvable:$true] %s8732_s14 }
 0x893   : > { %v11540_v19 = vpop.eup %8018  ;;  %8030 = vpow2.f32 %v7139_v30  ;;  %vm11603_vm0 = vcmp.eq.f32.partialorder %v4354_v24, 8.507059e+37  ;;  %v4674_v31 = vand.u32 2147483647, %v11534_v8  ;;  %v7142_v21 = vmul.f32 -1.442695, %v11502_v25  ;;  %s8734_s23 = scalar_lea.hbm %s8733_s14, 1  ;;  %p8739_p3 = scmp.lt.s32.totalorder %s8733_s14, %s14003_s18 }
 0x894   : > { %v8021_v45 = vpop.eup %8020  ;;  %v4331_v53 = vmul.f32 %v11540_v19, %v11526_v52  ;;  %8032 = vpow2.f32 %v7155_v42  ;;  %vm4336_vm14 = vweird.f32 %v11540_v19  ;;  %vm11624_vm1 = vcmp.eq.f32.partialorder %v4659_v28, 8.507059e+37  ;;  %p8735_p0 = scmp.ne.s32.totalorder %s8733_s14, %s8734_s23  ;;  %p8740_p4 = scmp.lt.s32.totalorder %s8738_s29, %s8734_s23 }
 0x895   : > { %v11544_v13 = vpop.eup %8022  ;;  %v11549_v2 = vadd.f32 1.0, %v8021_v45  ;;  %vm11611_vm2 = vmor %vm4335_vm10, %vm4336_vm14  ;;  %v7158_v29 = vmul.f32 -1.442695, %v4129_v12  ;;  %vm11644_vm7 = vcmp.eq.f32.partialorder %v4674_v31, 8.507059e+37 }
 0x896   : > { %v11552_v15 = vpop.eup %8024  ;;  %v4651_v50 = vmul.f32 %v11544_v13, %v11528_v38  ;;  %v4332_v22 = vsub.f32 1.0, %v4331_v53  ;;  %vm4656_vm15 = vweird.f32 %v11544_v13  ;;  %p8736_p1 = pnand %p8735_p0, %p8927_p5  ;;  %p8741_p7 = por %p8740_p4, %p8739_p3 }
 0x897   : > { %v11557_v32 = vpop.eup %8026  ;;  %8034 = vrcp.f32 %v11549_v2  ;;  %v4346_v10 = vmul.f32 %v11552_v15, %v11531_v26  ;;  %vm4351_vm5 = vweird.f32 %v11552_v15  ;;  %vm11640_vm6 = vmor %vm4655_vm12, %vm4656_vm15  ;;  %v4691_v35 = vand.u32 2147483648, %v11549_v2 }
 0x898   : > { %v11563_v47 = vpop.eup %8028  ;;  %8036 = vpow2.f32 %v7140_v14  ;;  %v4652_v55 = vsub.f32 1.0, %v4651_v50  ;;  %v4333_v5 = vmul.f32 %v11540_v19, %v4332_v22  ;;  %v4666_v27 = vmul.f32 %v11557_v32, %v11534_v8  ;;  %vm11655_vm8 = vmor %vm4350_vm13, %vm4351_vm5  ;;  %p8737_p2 = pneg %p8736_p1 }
 0x899   : > { %v8031_v6 = vpop.eup %8030  ;;  %8038 = vpow2.f32 %v7156_v63  ;;  %v4347_v61 = vsub.f32 1.0, %v4346_v10  ;;  %v4361_v60 = vmul.f32 %v11563_v47, %v11538_v1  ;;  %v4676_v14 = vand.u32 2147483648, %v11534_v8 }
 0x89a   : > { %v8033_v54 = vpop.eup %8032  ;;  %v11573_v41 = vadd.f32 1.0, %v8031_v6  ;;  %v4653_v59 = vmul.f32 %v11544_v13, %v4652_v55  ;;  %v4334_v34 = vadd.f32 %v11540_v19, %v4333_v5  ;;  %v4667_v20 = vsub.f32 1.0, %v4666_v27  ;;  %p8742_p8 = pnand %p8741_p7, %p8737_p2 }
 0x89b   : > { %v11591_v57 = vadd.f32 1.0, %v8033_v54  ;;  %v4348_v46 = vmul.f32 %v11552_v15, %v4347_v61  ;;  %v4362_v36 = vsub.f32 1.0, %v4361_v60  ;;  %v4369_v10 = vand.u32 2147483647, %v11538_v1 }
 0x89c   : > { %8040 = vrcp.f32 %v11573_v41  ;;  %v4654_v51 = vadd.f32 %v11544_v13, %v4653_v59  ;;  %v4338_v52 = vsel %vm11611_vm2, %v11540_v19, %v4334_v34  ;;  %v4668_v45 = vmul.f32 %v11557_v32, %v4667_v20 }
 0x89d   : > { %v11585_v9 = vpop.eup %8034  ;;  %8042 = vrcp.f32 %v11591_v57  ;;  %v4349_v30 = vadd.f32 %v11552_v15, %v4348_v46  ;;  %v4363_v25 = vmul.f32 %v11563_v47, %v4362_v36  ;;  %v4343_v19 = vsel %vm11576_vm11, %v4342_v16, %v4338_v52 }
 0x89e   : > { %v8037_v18 = vpop.eup %8036  ;;  %v4681_v33 = vmul.f32 %v11585_v9, %v11549_v2  ;;  %8044 = vpow2.f32 %v7141_v49  ;;  %v4658_v63 = vsel %vm11640_vm6, %v11544_v13, %v4654_v51  ;;  %vm4671_vm9 = vweird.f32 %v11557_v32 }
 0x89f   : > { %v8039_v0 = vpop.eup %8038  ;;  %v11601_v11 = vadd.f32 1.0, %v8037_v18  ;;  %8046 = vpow2.f32 %v7157_v17  ;;  %v4353_v7 = vsel %vm11655_vm8, %v11552_v15, %v4349_v30  ;;  %v4669_v26 = vadd.f32 %v11557_v32, %v4668_v45  ;;  %vm11684_vm12 = vmor %vm4670_vm3, %vm4671_vm9 }
 0x8a0   : > { %v4682_v42 = vsub.f32 1.0, %v4681_v33  ;;  %v11630_v4 = vadd.f32 1.0, %v8039_v0  ;;  %v4364_v55 = vadd.f32 %v11563_v47, %v4363_v25  ;;  %vm4366_vm10 = vweird.f32 %v11563_v47 }
 0x8a1   : > { %8048 = vrcp.f32 %v11601_v11  ;;  %v4371_v5 = vand.u32 2147483648, %v11538_v1  ;;  %v4677_v28 = vor.u32 1.1754944e-38, %v4676_v14  ;;  %v4358_v27 = vsel %vm11603_vm0, %v4357_v48, %v4353_v7 }
 0x8a2   : > { %v11649_v50 = vpop.eup %8040  ;;  %8050 = vpow2.f32 %v7142_v21  ;;  %v4683_v13 = vmul.f32 %v11585_v9, %v4682_v42  ;;  %vm4365_vm11 = vweird.f32 %v11538_v1  ;;  %v4689_v16 = vand.u32 2147483647, %v11549_v2 }
 0x8a3   : > { %8052 = vpow2.f32 %v7158_v29  ;;  %v11668_v23 = vpop.eup %8042  ;;  %v4792_v6 = vpop.permute.xlu2 %4791  ;;  %v4376_v15 = vmul.f32 %v11649_v50, %v11573_v41  ;;  %v4663_v1 = vsel %vm11624_vm1, %v11581_v56, %v4658_v63  ;;  %vm11699_vm13 = vmor %vm4365_vm11, %vm4366_vm10  ;;  %v4673_v24 = vsel %vm11684_vm12, %v11557_v32, %v4669_v26 }
 0x8a4   : > { %8054 = vrcp.f32 %v11630_v4  ;;  %v8045_v40 = vpop.eup %8044  ;;  %v4696_v3 = vmul.f32 %v11668_v23, %v11591_v57  ;;  %v4829_v60 = vmul.f32 %v4792_v6, %v4358_v27  ;;  %v4368_v18 = vsel %vm11699_vm13, %v11563_v47, %v4364_v55 }
 0x8a5   : > { %v8047_v54 = vpop.eup %8046  ;;  %vm11709_vm14 = vcmp.eq.f32.partialorder %v4369_v10, 8.507059e+37  ;;  %v4684_v56 = vadd.f32 %v11585_v9, %v4683_v13  ;;  %vm4686_vm15 = vweird.f32 %v11585_v9  ;;  %v11715_v20 = vadd.f32 1.0, %v8045_v40 }
 0x8a6   : > { %v4372_v49 = vor.u32 1.1754944e-38, %v4371_v5  ;;  %vm4685_vm0 = vweird.f32 %v11549_v2  ;;  %v4377_v32 = vsub.f32 1.0, %v4376_v15  ;;  %v11720_v46 = vadd.f32 1.0, %v8047_v54 }
 0x8a7   : > { %v11690_v43 = vpop.eup %8048  ;;  %v4678_v47 = vsel %vm11644_vm7, %v4677_v28, %v4673_v24  ;;  %vm11724_vm2 = vcmp.eq.f32.partialorder %v4689_v16, 8.507059e+37  ;;  %v4692_v17 = vor.u32 1.1754944e-38, %v4691_v35  ;;  %v4697_v0 = vsub.f32 1.0, %v4696_v3  ;;  %vm11734_vm3 = vmor %vm4685_vm0, %vm4686_vm15 }
 0x8a8   : > { %v8051_v59 = vpop.eup %8050  ;;  %v4373_v2 = vsel %vm11709_vm14, %v4372_v49, %v4368_v18  ;;  %v4688_v21 = vsel %vm11734_vm3, %v11585_v9, %v4684_v56  ;;  %v4384_v52 = vand.u32 2147483647, %v11573_v41  ;;  %v4391_v58 = vmul.f32 %v11690_v43, %v11601_v11  ;;  %v11757_v9 = vld [vmem:[%s13679_s12 + $0xc] sm:$0x7]  ;;  %v5859_v56 = vld [vmem:[#allocation14 + $0x168] sm:$0xff] }
 0x8a9   : > { %v8053_v34 = vpop.eup %8052  ;;  %v11728_v39 = vadd.f32 1.0, %v8051_v59  ;;  %v4378_v29 = vmul.f32 %v11649_v50, %v4377_v32  ;;  %v4386_v30 = vand.u32 2147483648, %v11573_v41  ;;  %v4704_v42 = vand.u32 2147483647, %v11591_v57  ;;  %5870 = vmatpush.msra.mxu1 %v5859_v56  ;;  %v5844_v59 = vld [vmem:[#allocation14 + $0xf0] sm:$0xff] }
 0x8aa   : > { %v11718_v12 = vpop.eup %8054  ;;  %v11738_v51 = vadd.f32 1.0, %v8053_v34  ;;  %v4706_v25 = vand.u32 2147483648, %v11591_v57  ;;  %vm4380_vm5 = vweird.f32 %v11573_v41  ;;  %v4698_v53 = vmul.f32 %v11668_v23, %v4697_v0 }
 0x8ab   : > { %v4711_v45 = vmul.f32 %v11718_v12, %v11630_v4  ;;  %vm4381_vm1 = vweird.f32 %v11649_v50  ;;  %vm11771_vm6 = vcmp.eq.f32.partialorder %v4384_v52, 8.507059e+37  ;;  %vm4700_vm7 = vweird.f32 %v11591_v57  ;;  %5871 = vmatpush.msra.mxu1 %v5856_v37 }
 0x8ac   : > { %v11777_v22 = vperm.slane %v11757_v9, 2  ;;  %v4401_v63 = vand.u32 2147483648, %v11601_v11  ;;  %v4379_v10 = vadd.f32 %v11649_v50, %v4378_v29  ;;  %vm11781_vm8 = vcmp.eq.f32.partialorder %v4704_v42, 8.507059e+37  ;;  %vm11797_vm11 = vmor %vm4380_vm5, %vm4381_vm1  ;;  %v5853_v29 = vld [vmem:[#allocation14 + $0x138] sm:$0xff] }
 0x8ad   : > { %v4712_v7 = vsub.f32 1.0, %v4711_v45  ;;  %v4707_v6 = vor.u32 1.1754944e-38, %v4706_v25  ;;  %vm4395_vm9 = vweird.f32 %v11601_v11  ;;  %v4399_v40 = vand.u32 2147483647, %v11601_v11  ;;  %5872 = vmatpush.msra.mxu1 %v5853_v29  ;;  %v5832_v11 = vld [vmem:[#allocation14 + $0x90] sm:$0xff] }
 0x8ae   : > { %v4699_v5 = vadd.f32 %v11668_v23, %v4698_v53  ;;  %vm4701_vm10 = vweird.f32 %v11668_v23  ;;  %vm4715_vm12 = vweird.f32 %v11630_v4  ;;  %v4719_v16 = vand.u32 2147483647, %v11630_v4 }
 0x8af   : > { %v4383_v41 = vsel %vm11797_vm11, %v11649_v50, %v4379_v10  ;;  %v11817_v24 = vperm.slane %v11757_v9, 0  ;;  %vm11823_vm13 = vmor %vm4700_vm7, %vm4701_vm10  ;;  %v4713_v18 = vmul.f32 %v11718_v12, %v4712_v7  ;;  %vm11831_vm14 = vcmp.eq.f32.partialorder %v4399_v40, 8.507059e+37  ;;  %v5850_v40 = vld [vmem:[#allocation14 + $0x120] sm:$0xff] }
 0x8b0   : > { %v4703_v57 = vsel %vm11823_vm13, %v11668_v23, %v4699_v5  ;;  %v4416_v49 = vand.u32 2147483648, %v11715_v20  ;;  %v4721_v32 = vand.u32 2147483648, %v11630_v4  ;;  %vm11846_vm15 = vcmp.eq.f32.partialorder %v4719_v16, 8.507059e+37  ;;  %5873 = vmatpush.msra.mxu1 %v5850_v40  ;;  %v5847_v4 = vld [vmem:[#allocation14 + $0x108] sm:$0xff] }
 0x8b1   : > { %vm4396_vm0 = vweird.f32 %v11690_v43  ;;  %v4414_v45 = vand.u32 2147483647, %v11715_v20  ;;  %v4736_v25 = vand.u32 2147483648, %v11720_v46  ;;  %vm4410_vm5 = vweird.f32 %v11715_v20 }
 0x8b2   : > { %v11866_v42 = vor.u32 1.1754944e-38, %v4416_v49  ;;  %vm11873_vm3 = vmor %vm4395_vm9, %vm4396_vm0  ;;  %v4722_v10 = vor.u32 1.1754944e-38, %v4721_v32  ;;  %5874 = vmatpush.msra.mxu1 %v5847_v4  ;;  %v4431_v34 = vand.u32 2147483648, %v11728_v39  ;;  %v11932_v49 = vperm.slane %v11757_v9, 1  ;;  %v5841_v32 = vld [vmem:[#allocation14 + $0xd8] sm:$0xff]  ;;  %v5838_v9 = vld [vmem:[#allocation14 + $0xc0] sm:$0xff] }
 0x8b3   : > { %v4790_v38 = vpop.permute.xlu1 %4789  ;;  %vm11911_vm9 = vcmp.eq.f32.partialorder %v4414_v45, 8.507059e+37 }
 0x8b4   : > { %v4828_v44 = vmul.f32 %v4790_v38, %v4343_v19  ;;  %v11765_v19 = vsel %vm11724_vm2, %v4692_v17, %v4688_v21  ;;  %v4392_v38 = vsub.f32 1.0, %v4391_v58  ;;  %v4714_v58 = vadd.f32 %v11718_v12, %v4713_v18  ;;  %5875 = vmatpush.msra.mxu1 %v5844_v59 }
 0x8b5   : > { %vm4716_vm2 = vweird.f32 %v11718_v12  ;;  %v4429_v18 = vand.u32 2147483647, %v11728_v39  ;;  %v4751_v17 = vand.u32 2147483648, %v11738_v51 }
 0x8b6   : > { %8056 = vtanh.f32 %v4828_v44  ;;  %v4387_v44 = vor.u32 1.1754944e-38, %v4386_v30  ;;  %v11863_v30 = vsel %vm11781_vm8, %v4707_v6, %v4703_v57  ;;  %vm11887_vm1 = vmor %vm4715_vm12, %vm4716_vm2  ;;  %vm4425_vm8 = vweird.f32 %v11728_v39  ;;  %5876 = vmatpush.msra.mxu1 %v5841_v32  ;;  %v5823_v32 = vld [vmem:[#allocation14 + $0x48] sm:$0xff] }
 0x8b7   : > { %8058 = vtanh.f32 %v4829_v60  ;;  %v4393_v60 = vmul.f32 %v11690_v43, %v4392_v38  ;;  %vm11956_vm0 = vcmp.eq.f32.partialorder %v4429_v18, 8.507059e+37 }
 0x8b8   : > { %8060 = vrcp.f32 %v11715_v20  ;;  %v11844_v33 = vsel %vm11771_vm6, %v4387_v44, %v4383_v41  ;;  %vm4730_vm6 = vweird.f32 %v11720_v46  ;;  %5877 = vmatpush.msra.mxu1 %v5838_v9 }
 0x8b9   : > { %8062 = vrcp.f32 %v11720_v46 }
 0x8ba   : > { %8064 = vrcp.f32 %v11728_v39 }
 0x8bb   : > { %8066 = vrcp.f32 %v11738_v51 }
 0x8bc   : > { %v8057_v36 = vpop.eup %8056 }
 0x8bd   : > { %v4860_v31 = vmul.f32 %v8057_v36, %v4663_v1  ;;  %v8059_v14 = vpop.eup %8058  ;;  %v11807_v1 = vor.u32 1.1754944e-38, %v4401_v63 }
 0x8be   : > { %v11785_v55 = vpop.eup %8060  ;;  %v4861_v27 = vmul.f32 %v8059_v14, %v4678_v47 }
 0x8bf   : > { %7168 = vmatmul.msk.f32.gmra.mxu2 %vm3952_vm4, %v4860_v31  ;;  %7184 = vmatmul.msk.f32.gmra.mxu3 %vm3952_vm4, %v4860_v31  ;;  %v11791_v28 = vpop.eup %8062  ;;  %v4406_v50 = vmul.f32 %v11785_v55, %v11715_v20  ;;  %vm4411_vm7 = vweird.f32 %v11785_v55  ;;  %v4432_v20 = vor.u32 1.1754944e-38, %v4431_v34 }
 0x8c0   : > { %7200 = vmatmul.msk.f32.gmra.mxu0 %vm3952_vm4, %v4860_v31  ;;  %v11803_v35 = vpop.eup %8064  ;;  %v4726_v47 = vmul.f32 %v11791_v28, %v11720_v46  ;;  %vm4731_vm11 = vweird.f32 %v11791_v28  ;;  %vm11946_vm13 = vmor %vm4410_vm5, %vm4411_vm7 }
 0x8c1   : > { %v11812_v8 = vpop.eup %8066  ;;  %v4421_v36 = vmul.f32 %v11803_v35, %v11728_v39  ;;  %v4407_v52 = vsub.f32 1.0, %v4406_v50  ;;  %vm4426_vm12 = vweird.f32 %v11803_v35  ;;  %vm11964_vm2 = vmor %vm4730_vm6, %vm4731_vm11 }
 0x8c2   : > { %v4741_v23 = vmul.f32 %v11812_v8, %v11738_v51  ;;  %v4727_v62 = vsub.f32 1.0, %v4726_v47  ;;  %v4749_v47 = vand.u32 2147483647, %v11738_v51 }
 0x8c3   : > { %v4422_v7 = vsub.f32 1.0, %v4421_v36  ;;  %v4408_v5 = vmul.f32 %v11785_v55, %v4407_v52 }
 0x8c4   : > { %v4794_v13 = vpop.permute.xlu0 %4793  ;;  %v5094_v15 = vpop.f32.mrf.mxu0  ;;  %v4742_v44 = vsub.f32 1.0, %v4741_v23  ;;  %vm11979_vm5 = vcmp.eq.f32.partialorder %v4749_v47, 8.507059e+37 }
 0x8c5   : > { %v4830_v54 = vmul.f32 %v4794_v13, %v4373_v2  ;;  %v5095_v3 = vadd.f32 %v5094_v15, %v11777_v22  ;;  %v4394_v2 = vadd.f32 %v11690_v43, %v4393_v60  ;;  %v4728_v60 = vmul.f32 %v11791_v28, %v4727_v62 }
 0x8c6   : > { %v4409_v56 = vadd.f32 %v11785_v55, %v4408_v5 }
 0x8c7   : > { %8068 = vtanh.f32 %v4830_v54  ;;  %7169 = vmatmul.msk.f32.gmra.mxu2 %vm3952_vm4, %v4861_v27  ;;  %7185 = vmatmul.msk.f32.gmra.mxu3 %vm3952_vm4, %v4861_v27  ;;  %v7223_v48 = vmul.f32 -1.442695, %v5095_v3  ;;  %v4398_v13 = vsel %vm11873_vm3, %v11690_v43, %v4394_v2  ;;  %v4734_v43 = vand.u32 2147483647, %v11720_v46  ;;  %vm11975_vm3 = vmor %vm4425_vm8, %vm4426_vm12 }
 0x8c8   : > { %7201 = vmatmul.msk.f32.gmra.mxu0 %vm3952_vm4, %v4861_v27  ;;  %v11901_v27 = vor.u32 1.1754944e-38, %v4736_v25  ;;  %v4423_v3 = vmul.f32 %v11803_v35, %v4422_v7  ;;  %v4729_v37 = vadd.f32 %v11791_v28, %v4728_v60  ;;  %v4413_v29 = vsel %vm11946_vm13, %v11785_v55, %v4409_v56 }
 0x8c9   : > { %8070 = vpow2.f32 %v7223_v48  ;;  %v4964_v0 = vpop.f32.mrf.mxu2  ;;  %v11857_v21 = vpop.f32.mrf.mxu3  ;;  %vm11927_vm10 = vcmp.eq.f32.partialorder %v4734_v43, 8.507059e+37 }
 0x8ca   : > { %v4965_v31 = vadd.f32 %v4964_v0, %v11817_v24  ;;  %v4424_v2 = vadd.f32 %v11803_v35, %v4423_v3  ;;  %v5030_v62 = vadd.f32 %v11857_v21, %v11932_v49 }
 0x8cc   : > { %v7207_v14 = vmul.f32 -1.442695, %v4965_v31  ;;  %v5097_v38 = vpop.f32.mrf.mxu0  ;;  %v4428_v39 = vsel %vm11975_vm3, %v11803_v35, %v4424_v2  ;;  %v12008_v35 = vsel %vm11911_vm9, %v11866_v42, %v4413_v29 }
 0x8cd   : > { %v8069_v53 = vpop.eup %8068  ;;  %v5098_v26 = vadd.f32 %v5097_v38, %v11777_v22  ;;  %v5835_v38 = vld [vmem:[#allocation14 + $0xa8] sm:$0xff] }
 0x8ce   : > { %v4862_v6 = vmul.f32 %v8069_v53, %v11765_v19  ;;  %8072 = vpow2.f32 %v7207_v14  ;;  %v4718_v19 = vsel %vm11887_vm1, %v11718_v12, %v4714_v58  ;;  %v11909_v12 = vsel %vm11831_vm14, %v11807_v1, %v4398_v13  ;;  %5878 = vmatpush.msra.mxu1 %v5835_v38 }
 0x8cf   : > { %v8071_v15 = vpop.eup %8070  ;;  %v7224_v54 = vmul.f32 -1.442695, %v5098_v26  ;;  %v11919_v50 = vsel %vm11846_vm15, %v4722_v10, %v4718_v19  ;;  %v4743_v1 = vmul.f32 %v11812_v8, %v4742_v44  ;;  %vm4745_vm14 = vweird.f32 %v11738_v51 }
 0x8d0   : > { %7170 = vmatmul.msk.f32.gmra.mxu2 %vm3952_vm4, %v4862_v6  ;;  %7186 = vmatmul.msk.f32.gmra.mxu3 %vm3952_vm4, %v4862_v6  ;;  %v11903_v61 = vadd.f32 1.0, %v8071_v15  ;;  %vm4746_vm15 = vweird.f32 %v11812_v8  ;;  %v4752_v10 = vor.u32 1.1754944e-38, %v4751_v17  ;;  %v4733_v26 = vsel %vm11964_vm2, %v11791_v28, %v4729_v37  ;;  %v5829_v15 = vld [vmem:[#allocation14 + $0x78] sm:$0xff] }
 0x8d1   : > { %7202 = vmatmul.msk.f32.gmra.mxu0 %vm3952_vm4, %v4862_v6  ;;  %8074 = vpow2.f32 %v7224_v54  ;;  %v4967_v41 = vpop.f32.mrf.mxu2  ;;  %v5032_v0 = vpop.f32.mrf.mxu3  ;;  %v4744_v58 = vadd.f32 %v11812_v8, %v4743_v1  ;;  %vm11998_vm1 = vmor %vm4745_vm14, %vm4746_vm15  ;;  %5879 = vmatpush.msra.mxu1 %v5832_v11  ;;  %v12018_v54 = vsel %vm11956_vm0, %v4432_v20, %v4428_v39  ;;  %v12023_v42 = vsel %vm11927_vm10, %v11901_v27, %v4733_v26  ;;  %v5826_v1 = vld [vmem:[#allocation14 + $0x60] sm:$0xff] }
 0x8d2   : > { %8076 = vrcp.f32 %v11903_v61  ;;  %v4968_v48 = vadd.f32 %v4967_v41, %v11817_v24  ;;  %v5033_v40 = vadd.f32 %v5032_v0, %v11932_v49  ;;  %v5537_v51 = vand.u32 2147483648, %v11903_v61 }
 0x8d3   : > { %v4748_v28 = vsel %vm11998_vm1, %v11812_v8, %v4744_v58  ;;  %5880 = vmatpush.msra.mxu1 %v5829_v15  ;;  %v5535_v3 = vand.u32 2147483647, %v11903_v61  ;;  %vm5531_vm6 = vweird.f32 %v11903_v61  ;;  %v5820_v58 = vld [vmem:[#allocation14 + $0x30] sm:$0xff] }
 0x8d4   : > { %v8073_v36 = vpop.eup %8072  ;;  %v7208_v23 = vmul.f32 -1.442695, %v4968_v48  ;;  %v4798_v55 = vpop.permute.xlu2 %4797  ;;  %v12029_v60 = vsel %vm11979_vm5, %v4752_v10, %v4748_v28  ;;  %v12038_v48 = vor.u32 1.1754944e-38, %v5537_v51 }
 0x8d5   : > { %v11940_v31 = vadd.f32 1.0, %v8073_v36  ;;  %v4832_v5 = vmul.f32 %v4798_v55, %v11909_v12  ;;  %5881 = vmatpush.msra.mxu1 %v5826_v1  ;;  %vm12081_vm14 = vcmp.eq.f32.partialorder %v5535_v3, 8.507059e+37 }
 0x8d6   : > { %8078 = vpow2.f32 %v7208_v23  ;;  %v5855_v23 = vld [vmem:[#allocation14 + $0x148] sm:$0xff] }
 0x8d7   : > { %v8075_v53 = vpop.eup %8074  ;;  %8080 = vrcp.f32 %v11940_v31  ;;  %v5215_v4 = vand.u32 2147483647, %v11940_v31  ;;  %v5217_v27 = vand.u32 2147483648, %v11940_v31  ;;  %vm5211_vm7 = vweird.f32 %v11940_v31  ;;  %5882 = vmatpush.msra.mxu1 %v5823_v32 }
 0x8d8   : > { %v11983_v7 = vpop.eup %8076  ;;  %v11985_v44 = vadd.f32 1.0, %v8075_v53 }
 0x8d9   : > { %v5100_v14 = vpop.f32.mrf.mxu0  ;;  %v5527_v13 = vmul.f32 %v11983_v7, %v11903_v61  ;;  %vm5532_vm8 = vweird.f32 %v11983_v7  ;;  %vm12049_vm9 = vcmp.eq.f32.partialorder %v5215_v4, 8.507059e+37  ;;  %v5218_v9 = vor.u32 1.1754944e-38, %v5217_v27  ;;  %5883 = vmatpush.msra.mxu1 %v5820_v58  ;;  %v5857_v27 = vld [vmem:[#allocation14 + $0x158] sm:$0xff]  ;;  %v5836_v58 = vld [vmem:[#allocation14 + $0xb0] sm:$0xff] }
 0x8da   : > { %v5101_v21 = vadd.f32 %v5100_v14, %v11777_v22  ;;  %8082 = vrcp.f32 %v11985_v44  ;;  %v5552_v47 = vand.u32 2147483648, %v11985_v44  ;;  %v5550_v29 = vand.u32 2147483647, %v11985_v44  ;;  %v5817_v14 = vld [vmem:[#allocation14 + $0x18] sm:$0xff]  ;;  %vm12095_vm15 = vmor %vm5531_vm6, %vm5532_vm8 }
 0x8db   : > { %v5528_v43 = vsub.f32 1.0, %v5527_v13  ;;  %8084 = vtanh.f32 %v5030_v62  ;;  %vm5546_vm11 = vweird.f32 %v11985_v44  ;;  %5884 = vmatpush.msra.mxu1 %v5817_v14 }
 0x8dc   : > { %v7225_v19 = vmul.f32 -1.442695, %v5101_v21  ;;  %v8079_v8 = vpop.eup %8078  ;;  %v12068_v46 = vor.u32 1.1754944e-38, %v5552_v47  ;;  %vm12113_vm2 = vcmp.eq.f32.partialorder %v5550_v29, 8.507059e+37 }
 0x8dd   : > { %v12031_v41 = vpop.eup %8080  ;;  %v12035_v59 = vadd.f32 1.0, %v8079_v8  ;;  %v5529_v34 = vmul.f32 %v11983_v7, %v5528_v43  ;;  %v5861_v43 = vld [vmem:[#allocation14 + $0x178] sm:$0xff] }
 0x8de   : > { %8086 = vpow2.f32 %v7225_v19  ;;  %v4970_v16 = vpop.f32.mrf.mxu2  ;;  %v5035_v12 = vpop.f32.mrf.mxu3  ;;  %v5207_v56 = vmul.f32 %v12031_v41, %v11940_v31  ;;  %vm5212_vm10 = vweird.f32 %v12031_v41  ;;  %v5860_v19 = vld [vmem:[#allocation14 + $0x170] sm:$0xff]  ;;  %6000 = vmatpush.msrb.mxu3 %v5861_v43 }
 0x8df   : > { %8088 = vtanh.f32 %v5033_v40  ;;  %v4971_v18 = vadd.f32 %v4970_v16, %v11817_v24  ;;  %v5036_v25 = vadd.f32 %v5035_v12, %v11932_v49  ;;  %v12065_v38 = vadd.f32 %v11983_v7, %v5529_v34  ;;  %vm12075_vm12 = vmor %vm5211_vm7, %vm5212_vm10  ;;  %5935 = vmatpush.msrb.mxu2 %v5860_v19 }
 0x8e0   : > { %8090 = vtanh.f32 %v4832_v5  ;;  %v12047_v17 = vpop.eup %8082  ;;  %v5208_v36 = vsub.f32 1.0, %v5207_v56  ;;  %vm5226_vm13 = vweird.f32 %v12035_v59  ;;  %v5230_v26 = vand.u32 2147483647, %v12035_v59  ;;  %v5814_v5 = vld [vmem:[#allocation14] sm:$0xff] }
 0x8e1   : > { %8092 = vrcp.f32 %v12035_v59  ;;  %v5103_v57 = vpop.f32.mrf.mxu0  ;;  %v7209_v0 = vmul.f32 -1.442695, %v4971_v18  ;;  %v8085_v37 = vpop.eup %8084  ;;  %v5542_v52 = vmul.f32 %v12047_v17, %v11985_v44  ;;  %v5232_v16 = vand.u32 2147483648, %v12035_v59  ;;  %5885 = vmatpush.msra.mxu1 %v5814_v5  ;;  %v5858_v18 = vld [vmem:[#allocation14 + $0x160] sm:$0xff]  ;;  %5936 = vmatpush.msrb.mxu2 %v5857_v27 }
 0x8e2   : > { %v5104_v2 = vadd.f32 %v5103_v57, %v11777_v22  ;;  %v5209_v20 = vmul.f32 %v12031_v41, %v5208_v36  ;;  %vm5547_vm0 = vweird.f32 %v12047_v17  ;;  %6001 = vmatpush.msrb.mxu3 %v5858_v18  ;;  %vm12125_vm5 = vcmp.eq.f32.partialorder %v5230_v26, 8.507059e+37 }
 0x8e3   : > { %8094 = vpow2.f32 %v7209_v0  ;;  %v5543_v63 = vsub.f32 1.0, %v5542_v52  ;;  %v5233_v29 = vor.u32 1.1754944e-38, %v5232_v16  ;;  %vm12144_vm1 = vmor %vm5546_vm11, %vm5547_vm0 }
 0x8e4   : > { %v8087_v45 = vpop.eup %8086  ;;  %v7226_v53 = vmul.f32 -1.442695, %v5104_v2  ;;  %v5210_v21 = vadd.f32 %v12031_v41, %v5209_v20  ;;  %v4796_v6 = vpop.permute.xlu1 %4795  ;;  %6002 = vmatpush.msrb.mxu3 %v5855_v23  ;;  %v5852_v20 = vld [vmem:[#allocation14 + $0x130] sm:$0xff] }
 0x8e5   : > { %v12060_v62 = vpop.eup %8088  ;;  %v12062_v55 = vadd.f32 1.0, %v8087_v45  ;;  %v4831_v31 = vmul.f32 %v4796_v6, %v11844_v33  ;;  %v5544_v15 = vmul.f32 %v12047_v17, %v5543_v63  ;;  %v5851_v45 = vld [vmem:[#allocation14 + $0x128] sm:$0xff] }
 0x8e6   : > { %v8091_v10 = vpop.eup %8090  ;;  %8096 = vpow2.f32 %v7226_v53  ;;  %v4973_v13 = vpop.f32.mrf.mxu2  ;;  %v5214_v33 = vsel %vm12075_vm12, %v12031_v41, %v5210_v21  ;;  %v5534_v41 = vsel %vm12095_vm15, %v11983_v7, %v12065_v38  ;;  %v5854_v7 = vld [vmem:[#allocation14 + $0x140] sm:$0xff]  ;;  %6003 = vmatpush.msrb.mxu3 %v5852_v20 }
 0x8e7   : > { %v12085_v11 = vpop.eup %8092  ;;  %8098 = vrcp.f32 %v12062_v55  ;;  %v4974_v28 = vadd.f32 %v4973_v13, %v11817_v24  ;;  %v5038_v51 = vpop.f32.mrf.mxu3  ;;  %v5219_v12 = vsel %vm12049_vm9, %v5218_v9, %v5214_v33  ;;  %v5545_v0 = vadd.f32 %v12047_v17, %v5544_v15  ;;  %5937 = vmatpush.msrb.mxu2 %v5854_v7  ;;  %v5848_v13 = vld [vmem:[#allocation14 + $0x110] sm:$0xff]  ;;  %v5846_v15 = vld [vmem:[#allocation14 + $0x100] sm:$0xff] }
 0x8e8   : > { %v5222_v4 = vmul.f32 %v12085_v11, %v12035_v59  ;;  %8100 = vtanh.f32 %v5036_v25  ;;  %v5766_v56 = vmul.f32 %v8085_v37, %v5219_v12  ;;  %v5039_v36 = vadd.f32 %v5038_v51, %v11932_v49  ;;  %v5840_v7 = vld [vmem:[#allocation14 + $0xd0] sm:$0xff] }
 0x8e9   : > { %8102 = vtanh.f32 %v4831_v31  ;;  %v7210_v61 = vmul.f32 -1.442695, %v4974_v28  ;;  %v5106_v3 = vpop.f32.mrf.mxu0  ;;  %v8095_v1 = vpop.eup %8094  ;;  %vm5227_vm3 = vweird.f32 %v12085_v11  ;;  %v12131_v25 = vmul.f32 %v8091_v10, %v11919_v50  ;;  %5938 = vmatpush.msrb.mxu2 %v5851_v45  ;;  %v5849_v31 = vld [vmem:[#allocation14 + $0x118] sm:$0xff] }
 0x8ea   : > { %v5223_v34 = vsub.f32 1.0, %v5222_v4  ;;  %v5107_v57 = vadd.f32 %v5106_v3, %v11777_v22  ;;  %v12117_v47 = vadd.f32 1.0, %v8095_v1  ;;  %vm12152_vm6 = vmor %vm5226_vm13, %vm5227_vm3  ;;  %v5539_v44 = vsel %vm12081_vm14, %v12038_v48, %v5534_v41  ;;  %6004 = vmatpush.msrb.mxu3 %v5849_v31  ;;  %v5842_v3 = vld [vmem:[#allocation14 + $0xe0] sm:$0xff]  ;;  %v5843_v41 = vld [vmem:[#allocation14 + $0xe8] sm:$0xff] }
 0x8eb   : > { %8104 = vpow2.f32 %v7210_v61  ;;  %v5549_v28 = vsel %vm12144_vm1, %v12047_v17, %v5545_v0  ;;  %5939 = vmatpush.msrb.mxu2 %v5848_v13  ;;  %v5845_v17 = vld [vmem:[#allocation14 + $0xf8] sm:$0xff]  ;;  %vm5561_vm7 = vweird.f32 %v12062_v55  ;;  %v5567_v27 = vand.u32 2147483648, %v12062_v55 }
 0x8ec   : > { %v8097_v2 = vpop.eup %8096  ;;  %8106 = vtanh.f32 %v5766_v56  ;;  %v5224_v37 = vmul.f32 %v12085_v11, %v5223_v34  ;;  %v7227_v9 = vmul.f32 -1.442695, %v5107_v57  ;;  %v5245_v51 = vand.u32 2147483647, %v12117_v47  ;;  %6005 = vmatpush.msrb.mxu3 %v5846_v15  ;;  %v5833_v31 = vld [vmem:[#allocation14 + $0x98] sm:$0xff] }
 0x8ed   : > { %v12123_v52 = vpop.eup %8098  ;;  %8108 = vrcp.f32 %v12117_v47  ;;  %v12138_v63 = vadd.f32 1.0, %v8097_v2  ;;  %v5247_v19 = vand.u32 2147483648, %v12117_v47  ;;  %5940 = vmatpush.msrb.mxu2 %v5845_v17  ;;  %vm5241_vm8 = vweird.f32 %v12117_v47  ;;  %v5830_v17 = vld [vmem:[#allocation14 + $0x80] sm:$0xff] }
 0x8ee   : > { %v12133_v53 = vpop.eup %8100  ;;  %v5225_v14 = vadd.f32 %v12085_v11, %v5224_v37  ;;  %v5557_v38 = vmul.f32 %v12123_v52, %v12062_v55  ;;  %8110 = vpow2.f32 %v7227_v9  ;;  %v4976_v21 = vpop.f32.mrf.mxu2  ;;  %vm12196_vm9 = vcmp.eq.f32.partialorder %v5245_v51, 8.507059e+37  ;;  %6006 = vmatpush.msrb.mxu3 %v5843_v41  ;;  %v5834_v51 = vld [vmem:[#allocation14 + $0xa0] sm:$0xff] }
 0x8ef   : > { %v8103_v50 = vpop.eup %8102  ;;  %8112 = vtanh.f32 %v5039_v36  ;;  %v4977_v26 = vadd.f32 %v4976_v21, %v11817_v24  ;;  %v5041_v6 = vpop.f32.mrf.mxu3  ;;  %v5248_v57 = vor.u32 1.1754944e-38, %v5247_v19  ;;  %5941 = vmatpush.msrb.mxu2 %v5842_v3  ;;  %v5839_v36 = vld [vmem:[#allocation14 + $0xc8] sm:$0xff]  ;;  %vm5562_vm10 = vweird.f32 %v12123_v52 }
 0x8f0   : > { %v5229_v59 = vsel %vm12152_vm6, %v12085_v11, %v5225_v14  ;;  %8114 = vrcp.f32 %v12138_v63  ;;  %v4863_v5 = vmul.f32 %v8103_v50, %v11863_v30  ;;  %v5558_v8 = vsub.f32 1.0, %v5557_v38  ;;  %6007 = vmatpush.msrb.mxu3 %v5840_v7  ;;  %v5837_v50 = vld [vmem:[#allocation14 + $0xb8] sm:$0xff]  ;;  %vm12233_vm13 = vmor %vm5561_vm7, %vm5562_vm10 }
 0x8f1   : > { %v8105_v40 = vpop.eup %8104  ;;  %v5234_v48 = vsel %vm12125_vm5, %v5233_v29, %v5229_v59  ;;  %v7211_v43 = vmul.f32 -1.442695, %v4977_v26  ;;  %v5042_v16 = vadd.f32 %v5041_v6, %v11932_v49  ;;  %v5109_v12 = vpop.f32.mrf.mxu0  ;;  %5942 = vmatpush.msrb.mxu2 %v5839_v36  ;;  %v5565_v29 = vand.u32 2147483647, %v12062_v55 }
 0x8f2   : > { %v8107_v33 = vpop.eup %8106  ;;  %v5767_v11 = vmul.f32 %v12060_v62, %v5234_v48  ;;  %v12173_v4 = vadd.f32 1.0, %v8105_v40  ;;  %7171 = vmatmul.msk.f32.gmra.mxu2 %vm3952_vm4, %v4863_v5  ;;  %7187 = vmatmul.msk.f32.gmra.mxu3 %vm3952_vm4, %v4863_v5  ;;  %v12187_v62 = vsel %vm12113_vm2, %v12068_v46, %v5549_v28  ;;  %v5559_v56 = vmul.f32 %v12123_v52, %v5558_v8 }
 0x8f3   : > { %v12179_v30 = vpop.eup %8108  ;;  %8116 = vpow2.f32 %v7211_v43  ;;  %7203 = vmatmul.msk.f32.gmra.mxu0 %vm3952_vm4, %v4863_v5  ;;  %v12182_v61 = vmul.f32 %v8107_v33, %v5539_v44  ;;  %v5110_v2 = vadd.f32 %v5109_v12, %v11777_v22  ;;  %v5568_v45 = vor.u32 1.1754944e-38, %v5567_v27  ;;  %5943 = vmatpush.msrb.mxu2 %v5836_v58 }
 0x8f4   : > { %v8111_v18 = vpop.eup %8110  ;;  %8118 = vtanh.f32 %v5767_v11  ;;  %v5237_v1 = vmul.f32 %v12179_v30, %v12117_v47  ;;  %vm5242_vm11 = vweird.f32 %v12179_v30  ;;  %v4800_v9 = vpop.permute.xlu0 %4799  ;;  %v5560_v10 = vadd.f32 %v12123_v52, %v5559_v56  ;;  %6008 = vmatpush.msrb.mxu3 %v5837_v50  ;;  %v5821_v50 = vld [vmem:[#allocation14 + $0x38] sm:$0xff] }
 0x8f5   : > { %v12194_v34 = vpop.eup %8112  ;;  %8120 = vrcp.f32 %v12173_v4  ;;  %v12201_v32 = vadd.f32 1.0, %v8111_v18  ;;  %5886 = vmatmul.f32.vlgmr.msra.gmra.mxu1 %v12182_v61  ;;  %v7228_v14 = vmul.f32 -1.442695, %v5110_v2  ;;  %v4833_v38 = vmul.f32 %v4800_v9, %v12008_v35  ;;  %vm12243_vm14 = vmor %vm5241_vm8, %vm5242_vm11  ;;  %5944 = vmatpush.msrb.mxu2 %v5833_v31  ;;  %v5825_v9 = vld [vmem:[#allocation14 + $0x58] sm:$0xff] }
 0x8f6   : > { %v12204_v23 = vpop.eup %8114  ;;  %v5238_v0 = vsub.f32 1.0, %v5237_v1  ;;  %8122 = vtanh.f32 %v5042_v16  ;;  %v4979_v21 = vpop.f32.mrf.mxu2  ;;  %v5260_v6 = vand.u32 2147483647, %v12173_v4  ;;  %v5262_v44 = vand.u32 2147483648, %v12173_v4  ;;  %6009 = vmatpush.msrb.mxu3 %v5834_v51  ;;  %v5818_v51 = vld [vmem:[#allocation14 + $0x20] sm:$0xff] }
 0x8f7   : > { %v12211_v37 = vmul.f32 %v12204_v23, %v12138_v63  ;;  %v5044_v39 = vpop.f32.mrf.mxu3  ;;  %8124 = vrcp.f32 %v12201_v32  ;;  %v4980_v13 = vadd.f32 %v4979_v21, %v11817_v24  ;;  %vm5256_vm12 = vweird.f32 %v12173_v4  ;;  %5945 = vmatpush.msrb.mxu2 %v5830_v17 }
 0x8f8   : > { %v5239_v20 = vmul.f32 %v12179_v30, %v5238_v0  ;;  %8126 = vpow2.f32 %v7228_v14  ;;  %v5564_v11 = vsel %vm12233_vm13, %v12123_v52, %v5560_v10  ;;  %vm12266_vm15 = vcmp.eq.f32.partialorder %v5260_v6, 8.507059e+37  ;;  %v5828_v52 = vld [vmem:[#allocation14 + $0x70] sm:$0xff] }
 0x8f9   : > { %v8117_v26 = vpop.eup %8116  ;;  %8128 = vtanh.f32 %v4833_v38  ;;  %v7212_v19 = vmul.f32 -1.442695, %v4980_v13  ;;  %v5112_v43 = vpop.f32.mrf.mxu0  ;;  %v5573_v15 = vsub.f32 1.0, %v12211_v37  ;;  %vm5566_vm0 = vcmp.eq.f32.partialorder %v5565_v29, 8.507059e+37  ;;  %v5822_v13 = vld [vmem:[#allocation14 + $0x40] sm:$0xff] }
 0x8fa   : > { %v8119_v28 = vpop.eup %8118  ;;  %v5240_v35 = vadd.f32 %v12179_v30, %v5239_v20  ;;  %v12223_v59 = vadd.f32 1.0, %v8117_v26  ;;  %7172 = vmatmul.msk.f32.gmra.mxu2 %vm3952_vm4, %v12131_v25  ;;  %7188 = vmatmul.msk.f32.gmra.mxu3 %vm3952_vm4, %v12131_v25  ;;  %v5045_v27 = vadd.f32 %v5044_v39, %v11932_v49  ;;  %v5113_v1 = vadd.f32 %v5112_v43, %v11777_v22 }
 0x8fb   : > { %v12237_v40 = vpop.eup %8120  ;;  %7204 = vmatmul.msk.f32.gmra.mxu0 %vm3952_vm4, %v12131_v25  ;;  %v12250_v55 = vmul.f32 %v8119_v28, %v12187_v62  ;;  %v5831_v25 = vld [vmem:[#allocation14 + $0x88] sm:$0xff]  ;;  %v5263_v62 = vor.u32 1.1754944e-38, %v5262_v44  ;;  %v12277_v46 = vsel %vm5566_vm0, %v5568_v45, %v5564_v11  ;;  %v12280_v36 = vmul.f32 %v12204_v23, %v5573_v15 }
 0x8fc   : > { %v12253_v8 = vpop.eup %8122  ;;  %v5244_v47 = vsel %vm12243_vm14, %v12179_v30, %v5240_v35  ;;  %v5252_v33 = vmul.f32 %v12237_v40, %v12173_v4  ;;  %8130 = vrcp.f32 %v12223_v59  ;;  %v5827_v30 = vld [vmem:[#allocation14 + $0x68] sm:$0xff]  ;;  %vm5257_vm2 = vweird.f32 %v12237_v40  ;;  %v4802_v56 = vpop.permute.xlu1 %4801  ;;  %6010 = vmatpush.msrb.mxu3 %v5831_v25 }
 0x8fd   : > { %v5249_v16 = vsel %vm12196_vm9, %v5248_v57, %v5244_v47  ;;  %5889 = vmatmul.f32.gmra.mxu1 %v12250_v55  ;;  %8132 = vpow2.f32 %v7212_v19  ;;  %v12273_v18 = vpop.eup %8124  ;;  %v5824_v57 = vld [vmem:[#allocation14 + $0x50] sm:$0xff]  ;;  %v5275_v0 = vand.u32 2147483647, %v12223_v59  ;;  %v4834_v2 = vmul.f32 %v4802_v56, %v12018_v54  ;;  %5946 = vmatpush.msrb.mxu2 %v5827_v30  ;;  %vm12298_vm5 = vmor %vm5256_vm12, %vm5257_vm2 }
 0x8fe   : > { %v5768_v3 = vmul.f32 %v12133_v53, %v5249_v16  ;;  %v5253_v41 = vsub.f32 1.0, %v5252_v33  ;;  %v8127_v53 = vpop.eup %8126  ;;  %v4982_v37 = vpop.f32.mrf.mxu2  ;;  %vm5271_vm3 = vweird.f32 %v12223_v59  ;;  %v5277_v29 = vand.u32 2147483648, %v12223_v59  ;;  %6011 = vmatpush.msrb.mxu3 %v5828_v52  ;;  %v5815_v33 = vld [vmem:[#allocation14 + $0x8] sm:$0xff]  ;;  %v5816_v16 = vld [vmem:[#allocation14 + $0x10] sm:$0xff] }
 0x8ff   : > { %v8129_v58 = vpop.eup %8128  ;;  %v7229_v45 = vmul.f32 -1.442695, %v5113_v1  ;;  %v4983_v20 = vadd.f32 %v4982_v37, %v11817_v24  ;;  %v5047_v14 = vpop.f32.mrf.mxu3  ;;  %v12291_v39 = vadd.f32 1.0, %v8127_v53  ;;  %5947 = vmatpush.msrb.mxu2 %v5824_v57  ;;  %v12304_v26 = vmul.f32 %v12273_v18, %v12201_v32 }
 0x900   : > { %8134 = vtanh.f32 %v5768_v3  ;;  %v5254_v7 = vmul.f32 %v12237_v40, %v5253_v41  ;;  %v4865_v54 = vmul.f32 %v8129_v58, %v12023_v42  ;;  %6012 = vmatpush.msrb.mxu3 %v5825_v9  ;;  %vm5576_vm1 = vweird.f32 %v12138_v63 }
 0x901   : > { %8136 = vtanh.f32 %v4834_v2  ;;  %v7213_v44 = vmul.f32 -1.442695, %v4983_v20  ;;  %v5115_v42 = vpop.f32.mrf.mxu0  ;;  %vm12312_vm6 = vcmp.eq.f32.partialorder %v5275_v0, 8.507059e+37  ;;  %5948 = vmatpush.msrb.mxu2 %v5821_v50  ;;  %v5048_v15 = vadd.f32 %v5047_v14, %v11932_v49 }
 0x902   : > { %v12288_v38 = vpop.eup %8130  ;;  %v5255_v21 = vadd.f32 %v12237_v40, %v5254_v7  ;;  %8138 = vtanh.f32 %v5045_v27  ;;  %7173 = vmatmul.msk.f32.gmra.mxu2 %vm3952_vm4, %v4865_v54  ;;  %7189 = vmatmul.msk.f32.gmra.mxu3 %vm3952_vm4, %v4865_v54  ;;  %v5116_v35 = vadd.f32 %v5115_v42, %v11777_v22  ;;  %v5278_v11 = vor.u32 1.1754944e-38, %v5277_v29 }
 0x903   : > { %v5267_v6 = vmul.f32 %v12288_v38, %v12223_v59  ;;  %v8133_v31 = vpop.eup %8132  ;;  %8140 = vpow2.f32 %v7229_v45  ;;  %7205 = vmatmul.msk.f32.gmra.mxu0 %vm3952_vm4, %v4865_v54  ;;  %6013 = vmatpush.msrb.mxu3 %v5822_v13  ;;  %vm5272_vm7 = vweird.f32 %v12288_v38  ;;  %v5575_v30 = vadd.f32 %v12204_v23, %v12280_v36 }
 0x904   : > { %v5259_v4 = vsel %vm12298_vm5, %v12237_v40, %v5255_v21  ;;  %v12321_v19 = vadd.f32 1.0, %v8133_v31  ;;  %8142 = vpow2.f32 %v7213_v44  ;;  %v5819_v40 = vld [vmem:[#allocation14 + $0x28] sm:$0xff]  ;;  %v7230_v47 = vmul.f32 -1.442695, %v5116_v35  ;;  %5949 = vmatpush.msrb.mxu2 %v5818_v51  ;;  %vm5273_vm9 = vmor %vm5271_vm3, %vm5272_vm7 }
 0x905   : > { %v5264_v5 = vsel %vm12266_vm15, %v5263_v62, %v5259_v4  ;;  %v5268_v48 = vsub.f32 1.0, %v5267_v6  ;;  %8144 = vrcp.f32 %v12291_v39  ;;  %6014 = vmatpush.msrb.mxu3 %v5819_v40  ;;  %vm5577_vm8 = vweird.f32 %v12204_v23 }
 0x906   : > { %v8135_v43 = vpop.eup %8134  ;;  %v5769_v17 = vmul.f32 %v12194_v34, %v5264_v5  ;;  %8146 = vrcp.f32 %v12321_v19  ;;  %v4985_v62 = vpop.f32.mrf.mxu2  ;;  %5950 = vmatpush.msrb.mxu2 %v5815_v33  ;;  %v5580_v1 = vand.u32 2147483647, %v12138_v63  ;;  %v5292_v0 = vand.u32 2147483648, %v12321_v19  ;;  %vm12367_vm10 = vmor %vm5576_vm1, %vm5577_vm8 }
 0x907   : > { %v5269_v25 = vmul.f32 %v12288_v38, %v5268_v48  ;;  %v8137_v12 = vpop.eup %8136  ;;  %v12331_v34 = vmul.f32 %v8135_v43, %v12277_v46  ;;  %v4986_v27 = vadd.f32 %v4985_v62, %v11817_v24  ;;  %v5050_v52 = vpop.f32.mrf.mxu3  ;;  %v5290_v46 = vand.u32 2147483647, %v12321_v19  ;;  %6015 = vmatpush.msrb.mxu3 %v5816_v16 }
 0x908   : > { %8148 = vtanh.f32 %v5769_v17  ;;  %v12336_v3 = vpop.eup %8138  ;;  %v5051_v57 = vadd.f32 %v5050_v52, %v11932_v49  ;;  %v4866_v36 = vmul.f32 %v8137_v12, %v12029_v60  ;;  %v5582_v59 = vand.u32 2147483648, %v12138_v63 }
 0x909   : > { %v5270_v41 = vadd.f32 %v12288_v38, %v5269_v25  ;;  %8150 = vpow2.f32 %v7230_v47  ;;  %v8141_v56 = vpop.eup %8140  ;;  %5892 = vmatmul.f32.gmra.mxu1 %v12331_v34  ;;  %v5118_v37 = vpop.f32.mrf.mxu0  ;;  %v7214_v60 = vmul.f32 -1.442695, %v4986_v27  ;;  %vm5286_vm11 = vweird.f32 %v12321_v19 }
 0x90a   : > { %8152 = vtanh.f32 %v5048_v15  ;;  %v8143_v53 = vpop.eup %8142  ;;  %v12351_v2 = vadd.f32 1.0, %v8141_v56  ;;  %7174 = vmatmul.msk.f32.gmra.mxu2 %vm3952_vm4, %v4866_v36  ;;  %7190 = vmatmul.msk.f32.gmra.mxu3 %vm3952_vm4, %v4866_v36  ;;  %v5119_v45 = vadd.f32 %v5118_v37, %v11777_v22  ;;  %vm12376_vm12 = vcmp.eq.f32.partialorder %v5580_v1, 8.507059e+37 }
 0x90b   : > { %v5274_v7 = vsel %vm5273_vm9, %v12288_v38, %v5270_v41  ;;  %v12354_v9 = vpop.eup %8144  ;;  %v12358_v29 = vadd.f32 1.0, %v8143_v53  ;;  %8154 = vtanh.f32 %v5051_v57  ;;  %7206 = vmatmul.msk.f32.gmra.mxu0 %vm3952_vm4, %v4866_v36  ;;  %v5579_v38 = vsel %vm12367_vm10, %v12204_v23, %v5575_v30 }
 0x90c   : > { %v5279_v58 = vsel %vm12312_vm6, %v5278_v11, %v5274_v7  ;;  %v8147_v14 = vpop.eup %8146  ;;  %vm12382_vm13 = vcmp.eq.f32.partialorder %v5290_v46, 8.507059e+37  ;;  %v7231_v44 = vmul.f32 -1.442695, %v5119_v45  ;;  %v5583_v23 = vor.u32 1.1754944e-38, %v5582_v59 }
 0x90d   : > { %v5770_v63 = vmul.f32 %v12253_v8, %v5279_v58  ;;  %v5282_v50 = vmul.f32 %v8147_v14, %v12321_v19  ;;  %8156 = vrcp.f32 %v12358_v29  ;;  %v5588_v42 = vsub.f32 1.0, %v12304_v26 }
 0x90e   : > { %v8149_v54 = vpop.eup %8148  ;;  %8158 = vrcp.f32 %v12351_v2  ;;  %v5602_v8 = vmul.f32 %v12354_v9, %v12291_v39  ;;  %v5293_v4 = vor.u32 1.1754944e-38, %v5292_v0  ;;  %v4988_v28 = vpop.f32.mrf.mxu2  ;;  %vm5287_vm4 = vweird.f32 %v8147_v14 }
 0x90f   : > { %v8151_v6 = vpop.eup %8150  ;;  %v5283_v31 = vsub.f32 1.0, %v5282_v50  ;;  %8160 = vpow2.f32 %v7214_v60  ;;  %v4989_v35 = vadd.f32 %v4988_v28, %v11817_v24  ;;  %v5584_v51 = vsel %vm12376_vm12, %v5583_v23, %v5579_v38  ;;  %vm5288_vm2 = vmor %vm5286_vm11, %vm5287_vm4  ;;  %v5053_v0 = vpop.f32.mrf.mxu3 }
 0x910   : > { %v12389_v13 = vpop.eup %8152  ;;  %8162 = vpow2.f32 %v7231_v44  ;;  %v12396_v48 = vadd.f32 1.0, %v8151_v6  ;;  %v12398_v26 = vmul.f32 %v8149_v54, %v5584_v51  ;;  %vm5301_vm14 = vweird.f32 %v12358_v29 }
 0x911   : > { %8164 = vtanh.f32 %v5770_v63  ;;  %v5284_v5 = vmul.f32 %v8147_v14, %v5283_v31  ;;  %v12400_v40 = vpop.eup %8154  ;;  %v7215_v43 = vmul.f32 -1.442695, %v4989_v35  ;;  %v5589_v17 = vmul.f32 %v12273_v18, %v5588_v42 }
 0x912   : > { %vm5592_vm15 = vweird.f32 %v12273_v18  ;;  %v5305_v33 = vand.u32 2147483647, %v12358_v29  ;;  %v5307_v25 = vand.u32 2147483648, %v12358_v29  ;;  %5895 = vmatmul.f32.gmra.mxu1 %v12398_v26  ;;  %5951 = vmatmul.f32.vlgmr.msrb.gmra.mxu2 %v12182_v61  ;;  %vm5591_vm0 = vweird.f32 %v12201_v32 }
 0x913   : > { %v8157_v15 = vpop.eup %8156  ;;  %v5285_v47 = vadd.f32 %v8147_v14, %v5284_v5  ;;  %8166 = vpow2.f32 %v7215_v43  ;;  %6016 = vmatmul.f32.vlgmr.msrb.gmra.mxu3 %v12182_v61  ;;  %v5590_v12 = vadd.f32 %v12273_v18, %v5589_v17  ;;  %v5595_v62 = vand.u32 2147483647, %v12201_v32  ;;  %vm12422_vm3 = vmor %vm5591_vm0, %vm5592_vm15 }
 0x914   : > { %v12410_v11 = vpop.eup %8158  ;;  %v5297_v16 = vmul.f32 %v8157_v15, %v12358_v29  ;;  %8168 = vrcp.f32 %v12396_v48  ;;  %v5597_v19 = vand.u32 2147483648, %v12201_v32  ;;  %v5603_v52 = vsub.f32 1.0, %v5602_v8 }
 0x915   : > { %v8161_v30 = vpop.eup %8160  ;;  %v5289_v41 = vsel %vm5288_vm2, %v8147_v14, %v5285_v47  ;;  %v5594_v57 = vsel %vm12422_vm3, %v12273_v18, %v5590_v12  ;;  %vm5302_vm5 = vweird.f32 %v8157_v15  ;;  %vm5596_vm1 = vcmp.eq.f32.partialorder %v5595_v62, 8.507059e+37 }
 0x916   : > { %v8163_v1 = vpop.eup %8162  ;;  %v5294_v61 = vsel %vm12382_vm13, %v5293_v4, %v5289_v41  ;;  %v5298_v56 = vsub.f32 1.0, %v5297_v16  ;;  %v12429_v46 = vadd.f32 1.0, %v8161_v30  ;;  %v5598_v37 = vor.u32 1.1754944e-38, %v5597_v19  ;;  %vm5303_vm7 = vmor %vm5301_vm14, %vm5302_vm5 }
 0x917   : > { %v8165_v36 = vpop.eup %8164  ;;  %v5771_v53 = vmul.f32 %v12336_v3, %v5294_v61  ;;  %v12435_v7 = vadd.f32 1.0, %v8163_v1  ;;  %v5604_v32 = vmul.f32 %v12354_v9, %v5603_v52  ;;  %vm12439_vm6 = vcmp.eq.f32.partialorder %v5305_v33, 8.507059e+37 }
 0x918   : > { %v5299_v59 = vmul.f32 %v8157_v15, %v5298_v56  ;;  %8170 = vrcp.f32 %v12429_v46  ;;  %v5308_v18 = vor.u32 1.1754944e-38, %v5307_v25  ;;  %v5599_v60 = vsel %vm5596_vm1, %v5598_v37, %v5594_v57 }
 0x919   : > { %8172 = vtanh.f32 %v5771_v53  ;;  %v8167_v45 = vpop.eup %8166  ;;  %v5054_v20 = vadd.f32 %v5053_v0, %v11932_v49  ;;  %v12444_v14 = vmul.f32 %v8165_v36, %v5599_v60  ;;  %v5605_v38 = vadd.f32 %v12354_v9, %v5604_v32 }
 0x91a   : > { %v5300_v3 = vadd.f32 %v8157_v15, %v5299_v59  ;;  %v12447_v21 = vpop.eup %8168  ;;  %v5617_v54 = vmul.f32 %v12410_v11, %v12351_v2  ;;  %8174 = vrcp.f32 %v12435_v7  ;;  %v12454_v63 = vadd.f32 1.0, %v8167_v45  ;;  %5954 = vmatmul.f32.gmra.mxu2 %v12250_v55 }
 0x91b   : > { %vm5606_vm8 = vweird.f32 %v12291_v39  ;;  %5898 = vmatmul.f32.gmra.mxu1 %v12444_v14  ;;  %6019 = vmatmul.f32.gmra.mxu3 %v12250_v55  ;;  %vm5607_vm9 = vweird.f32 %v12354_v9  ;;  %v5610_v10 = vand.u32 2147483647, %v12291_v39  ;;  %v5612_v29 = vand.u32 2147483648, %v12291_v39 }
 0x91c   : > { %v5304_v50 = vsel %vm5303_vm7, %v8157_v15, %v5300_v3  ;;  %8176 = vrcp.f32 %v12454_v63  ;;  %vm12466_vm10 = vmor %vm5606_vm8, %vm5607_vm9  ;;  %v5632_v39 = vmul.f32 %v12447_v21, %v12396_v48  ;;  %v5320_v4 = vand.u32 2147483647, %v12429_v46 }
 0x91d   : > { %v5309_v6 = vsel %vm12439_vm6, %v5308_v18, %v5304_v50  ;;  %8178 = vtanh.f32 %v5054_v20  ;;  %v5609_v55 = vsel %vm12466_vm10, %v12354_v9, %v5605_v38  ;;  %v5613_v28 = vor.u32 1.1754944e-38, %v5612_v29 }
 0x91e   : > { %v8171_v23 = vpop.eup %8170  ;;  %v5772_v42 = vmul.f32 %v12389_v13, %v5309_v6  ;;  %vm5316_vm11 = vweird.f32 %v12429_v46  ;;  %vm5611_vm12 = vcmp.eq.f32.partialorder %v5610_v10, 8.507059e+37  ;;  %v5618_v35 = vsub.f32 1.0, %v5617_v54 }
 0x91f   : > { %v8173_v8 = vpop.eup %8172  ;;  %v5312_v31 = vmul.f32 %v8171_v23, %v12429_v46  ;;  %v5322_v5 = vand.u32 2147483648, %v12429_v46  ;;  %v5614_v9 = vsel %vm5611_vm12, %v5613_v28, %v5609_v55  ;;  %vm5622_vm13 = vweird.f32 %v12410_v11 }
 0x920   : > { %8180 = vtanh.f32 %v5772_v42  ;;  %v12479_v13 = vpop.eup %8174  ;;  %v12483_v43 = vmul.f32 %v8173_v8, %v5614_v9  ;;  %v5619_v17 = vmul.f32 %v12410_v11, %v5618_v35  ;;  %v5625_v15 = vand.u32 2147483647, %v12351_v2 }
 0x921   : > { %v5313_v51 = vsub.f32 1.0, %v5312_v31  ;;  %v5627_v47 = vand.u32 2147483648, %v12351_v2  ;;  %vm5317_vm4 = vweird.f32 %v8171_v23  ;;  %vm12488_vm14 = vcmp.eq.f32.partialorder %v5320_v4, 8.507059e+37 }
 0x922   : > { %v8177_v33 = vpop.eup %8176  ;;  %5957 = vmatmul.f32.gmra.mxu2 %v12331_v34  ;;  %v5633_v12 = vsub.f32 1.0, %v5632_v39  ;;  %v5647_v30 = vmul.f32 %v12479_v13, %v12435_v7  ;;  %v5620_v27 = vadd.f32 %v12410_v11, %v5619_v17  ;;  %vm5621_vm15 = vweird.f32 %v12351_v2  ;;  %vm5318_vm2 = vmor %vm5316_vm11, %vm5317_vm4 }
 0x923   : > { %v5314_v25 = vmul.f32 %v8171_v23, %v5313_v51  ;;  %v8179_v62 = vpop.eup %8178  ;;  %v5327_v41 = vmul.f32 %v8177_v33, %v12454_v63  ;;  %5901 = vmatmul.f32.gmra.mxu1 %v12483_v43  ;;  %6022 = vmatmul.f32.gmra.mxu3 %v12331_v34  ;;  %v5323_v52 = vor.u32 1.1754944e-38, %v5322_v5  ;;  %v5335_v1 = vand.u32 2147483647, %v12454_v63  ;;  %vm5623_vm0 = vmor %vm5621_vm15, %vm5622_vm13 }
 0x924   : > { %v5628_v61 = vor.u32 1.1754944e-38, %v5627_v47  ;;  %v5624_v34 = vsel %vm5623_vm0, %v12410_v11, %v5620_v27  ;;  %vm5626_vm3 = vcmp.eq.f32.partialorder %v5625_v15, 8.507059e+37  ;;  %v5634_v36 = vmul.f32 %v12447_v21, %v5633_v12 }
 0x925   : > { %v5315_v19 = vadd.f32 %v8171_v23, %v5314_v25  ;;  %v5328_v57 = vsub.f32 1.0, %v5327_v41  ;;  %vm5332_vm5 = vweird.f32 %v8177_v33  ;;  %v5337_v53 = vand.u32 2147483648, %v12454_v63 }
 0x926   : > { %v8181_v56 = vpop.eup %8180  ;;  %v5629_v0 = vsel %vm5626_vm3, %v5628_v61, %v5624_v34  ;;  %v5648_v58 = vsub.f32 1.0, %v5647_v30  ;;  %vm5331_vm1 = vweird.f32 %v12454_v63  ;;  %v5635_v11 = vadd.f32 %v12447_v21, %v5634_v36 }
 0x927   : > { %v5319_v2 = vsel %vm5318_vm2, %v8171_v23, %v5315_v19  ;;  %v5329_v32 = vmul.f32 %v8177_v33, %v5328_v57  ;;  %v5804_v59 = vmul.f32 %v8181_v56, %v5629_v0  ;;  %vm5637_vm6 = vweird.f32 %v12447_v21  ;;  %vm5333_vm7 = vmor %vm5331_vm1, %vm5332_vm5 }
 0x928   : > { %v5324_v37 = vsel %vm12488_vm14, %v5323_v52, %v5319_v2  ;;  %vm5336_vm8 = vcmp.eq.f32.partialorder %v5335_v1, 8.507059e+37  ;;  %v5338_v60 = vor.u32 1.1754944e-38, %v5337_v53  ;;  %v5642_v45 = vand.u32 2147483648, %v12396_v48 }
 0x929   : > { %v5773_v46 = vmul.f32 %v12400_v40, %v5324_v37  ;;  %v5330_v18 = vadd.f32 %v8177_v33, %v5329_v32  ;;  %vm5636_vm9 = vweird.f32 %v12396_v48  ;;  %v5640_v40 = vand.u32 2147483647, %v12396_v48 }
 0x92a   : > { %5960 = vmatmul.f32.gmra.mxu2 %v12398_v26  ;;  %v5649_v20 = vmul.f32 %v12479_v13, %v5648_v58  ;;  %vm5638_vm10 = vmor %vm5636_vm9, %vm5637_vm6  ;;  %v5643_v50 = vor.u32 1.1754944e-38, %v5642_v45  ;;  %vm5652_vm12 = vweird.f32 %v12479_v13  ;;  %v5657_v6 = vand.u32 2147483648, %v12435_v7 }
 0x92b   : > { %8182 = vtanh.f32 %v5773_v46  ;;  %v5334_v3 = vsel %vm5333_vm7, %v8177_v33, %v5330_v18  ;;  %5904 = vmatmul.f32.gmra.mxu1 %v5804_v59  ;;  %6025 = vmatmul.f32.gmra.mxu3 %v12398_v26  ;;  %v5639_v63 = vsel %vm5638_vm10, %v12447_v21, %v5635_v11  ;;  %vm5641_vm11 = vcmp.eq.f32.partialorder %v5640_v40, 8.507059e+37 }
 0x92c   : > { %v5339_v38 = vsel %vm5336_vm8, %v5338_v60, %v5334_v3  ;;  %v5650_v10 = vadd.f32 %v12479_v13, %v5649_v20  ;;  %v5644_v26 = vsel %vm5641_vm11, %v5643_v50, %v5639_v63  ;;  %vm5651_vm13 = vweird.f32 %v12435_v7 }
 0x92d   : > { %v5774_v54 = vmul.f32 %v8179_v62, %v5339_v38  ;;  %v5655_v48 = vand.u32 2147483647, %v12435_v7  ;;  %vm5653_vm4 = vmor %vm5651_vm13, %vm5652_vm12  ;;  %v5658_v23 = vor.u32 1.1754944e-38, %v5657_v6 }
 0x92e   : > { %v5654_v21 = vsel %vm5653_vm4, %v12479_v13, %v5650_v10 }
 0x92f   : > { %8184 = vtanh.f32 %v5774_v54  ;;  %vm5656_vm14 = vcmp.eq.f32.partialorder %v5655_v48, 8.507059e+37 }
 0x930   : > { %v5659_v55 = vsel %vm5656_vm14, %v5658_v23, %v5654_v21 }
 0x931   : > { %v8183_v29 = vpop.eup %8182 }
 0x932   : > { %v5805_v44 = vmul.f32 %v8183_v29, %v5644_v26  ;;  %5963 = vmatmul.f32.gmra.mxu2 %v12444_v14 }
 0x933   : > { %6028 = vmatmul.f32.gmra.mxu3 %v12444_v14 }
 0x934   : > { %5907 = vmatmul.f32.gmra.mxu1 %v5805_v44 }
 0x935   : > { %v8185_v42 = vpop.eup %8184 }
 0x936   : > { %v5806_v8 = vmul.f32 %v8185_v42, %v5659_v55 }
 0x93a   : > { %5966 = vmatmul.f32.gmra.mxu2 %v12483_v43 }
 0x93b   : > { %6031 = vmatmul.f32.gmra.mxu3 %v12483_v43 }
 0x93c   : > { %5910 = vmatmul.f32.gmra.mxu1 %v5806_v8 }
 0x93d   : > { %v5121_v39 = vpop.f32.mrf.mxu0 }
 0x93e   : > { %v5122_v7 = vadd.f32 %v5121_v39, %v11777_v22 }
 0x940   : > { %v7232_v31 = vmul.f32 -1.442695, %v5122_v7 }
 0x942   : > { %8186 = vpow2.f32 %v7232_v31  ;;  %v4991_v4 = vpop.f32.mrf.mxu2  ;;  %5969 = vmatmul.f32.gmra.mxu2 %v5804_v59  ;;  %v5056_v62 = vpop.f32.mrf.mxu3 }
 0x943   : > { %v4992_v14 = vadd.f32 %v4991_v4, %v11817_v24  ;;  %6034 = vmatmul.f32.gmra.mxu3 %v5804_v59  ;;  %v5057_v57 = vadd.f32 %v5056_v62, %v11932_v49 }
 0x945   : > { %v7216_v28 = vmul.f32 -1.442695, %v4992_v14  ;;  %v5124_v35 = vpop.f32.mrf.mxu0 }
 0x946   : > { %v5125_v13 = vadd.f32 %v5124_v35, %v11777_v22 }
 0x947   : > { %8188 = vpow2.f32 %v7216_v28 }
 0x948   : > { %v8187_v51 = vpop.eup %8186  ;;  %v7233_v5 = vmul.f32 -1.442695, %v5125_v13 }
 0x949   : > { %v12535_v9 = vadd.f32 1.0, %v8187_v51 }
 0x94a   : > { %8190 = vpow2.f32 %v7233_v5  ;;  %v4994_v43 = vpop.f32.mrf.mxu2  ;;  %5972 = vmatmul.f32.gmra.mxu2 %v5805_v44  ;;  %v5059_v32 = vpop.f32.mrf.mxu3 }
 0x94b   : > { %v4995_v17 = vadd.f32 %v4994_v43, %v11817_v24  ;;  %6037 = vmatmul.f32.gmra.mxu3 %v5805_v44  ;;  %8192 = vrcp.f32 %v12535_v9  ;;  %v5060_v45 = vadd.f32 %v5059_v32, %v11932_v49  ;;  %v5672_v6 = vand.u32 2147483648, %v12535_v9 }
 0x94c   : > { %vm5666_vm6 = vweird.f32 %v12535_v9  ;;  %v5670_v39 = vand.u32 2147483647, %v12535_v9 }
 0x94d   : > { %v8189_v15 = vpop.eup %8188  ;;  %v7217_v47 = vmul.f32 -1.442695, %v4995_v17 }
 0x94e   : > { %v5199_v33 = vadd.f32 1.0, %v8189_v15  ;;  %v5127_v25 = vpop.f32.mrf.mxu0  ;;  %vm5671_vm11 = vcmp.eq.f32.partialorder %v5670_v39, 8.507059e+37 }
 0x94f   : > { %8194 = vpow2.f32 %v7217_v47  ;;  %v5128_v16 = vadd.f32 %v5127_v25, %v11777_v22 }
 0x950   : > { %v8191_v12 = vpop.eup %8190  ;;  %8196 = vrcp.f32 %v5199_v33  ;;  %v5352_v37 = vand.u32 2147483648, %v5199_v33  ;;  %v5350_v18 = vand.u32 2147483647, %v5199_v33  ;;  %vm5346_vm0 = vweird.f32 %v5199_v33 }
 0x951   : > { %v12540_v30 = vadd.f32 1.0, %v8191_v12  ;;  %v7234_v41 = vmul.f32 -1.442695, %v5128_v16  ;;  %v12542_v27 = vpop.eup %8192 }
 0x952   : > { %5975 = vmatmul.f32.gmra.mxu2 %v5806_v8  ;;  %v5662_v56 = vmul.f32 %v12542_v27, %v12535_v9  ;;  %v5353_v40 = vor.u32 1.1754944e-38, %v5352_v37  ;;  %vm5351_vm3 = vcmp.eq.f32.partialorder %v5350_v18, 8.507059e+37  ;;  %vm5667_vm5 = vweird.f32 %v12542_v27 }
 0x953   : > { %v4997_v19 = vpop.f32.mrf.mxu2  ;;  %8198 = vpow2.f32 %v7234_v41  ;;  %6040 = vmatmul.f32.gmra.mxu3 %v5806_v8  ;;  %v5062_v4 = vpop.f32.mrf.mxu3  ;;  %vm12570_vm8 = vmor %vm5666_vm6, %vm5667_vm5  ;;  %v5673_v9 = vor.u32 1.1754944e-38, %v5672_v6  ;;  %vm5681_vm13 = vweird.f32 %v12540_v30 }
 0x954   : > { %v4998_v52 = vadd.f32 %v4997_v19, %v11817_v24  ;;  %8200 = vrcp.f32 %v12540_v30  ;;  %v5663_v59 = vsub.f32 1.0, %v5662_v56  ;;  %v5063_v47 = vadd.f32 %v5062_v4, %v11932_v49  ;;  %v12587_v19 = vld [vmem:[%s13679_s12 + $0xf] sm:$0x7] }
 0x955   : > { %v8195_v1 = vpop.eup %8194 }
 0x956   : > { %v8197_v61 = vpop.eup %8196  ;;  %v5200_v34 = vadd.f32 1.0, %v8195_v1  ;;  %v7218_v36 = vmul.f32 -1.442695, %v4998_v52  ;;  %v5664_v38 = vmul.f32 %v12542_v27, %v5663_v59  ;;  %v5687_v52 = vand.u32 2147483648, %v12540_v30 }
 0x957   : > { %v5342_v2 = vmul.f32 %v8197_v61, %v5199_v33  ;;  %vm5347_vm15 = vweird.f32 %v8197_v61 }
 0x958   : > { %8202 = vrcp.f32 %v5200_v34  ;;  %vm5348_vm2 = vmor %vm5346_vm0, %vm5347_vm15  ;;  %v5367_v21 = vand.u32 2147483648, %v5200_v34  ;;  %v5665_v23 = vadd.f32 %v12542_v27, %v5664_v38  ;;  %v5365_v8 = vand.u32 2147483647, %v5200_v34 }
 0x959   : > { %v5343_v53 = vsub.f32 1.0, %v5342_v2  ;;  %8204 = vpow2.f32 %v7218_v36  ;;  %v8199_v0 = vpop.eup %8198  ;;  %vm5361_vm7 = vweird.f32 %v5200_v34  ;;  %v12601_v2 = vperm.slane %v12587_v19, 0 }
 0x95a   : > { %8206 = vtanh.f32 %v5057_v57  ;;  %v12549_v58 = vpop.eup %8200  ;;  %v12551_v11 = vadd.f32 1.0, %v8199_v0  ;;  %v5368_v28 = vor.u32 1.1754944e-38, %v5367_v21  ;;  %v5669_v35 = vsel %vm12570_vm8, %v12542_v27, %v5665_v23 }
 0x95b   : > { %v5344_v46 = vmul.f32 %v8197_v61, %v5343_v53  ;;  %v5677_v20 = vmul.f32 %v12549_v58, %v12540_v30  ;;  %vm5366_vm10 = vcmp.eq.f32.partialorder %v5365_v8, 8.507059e+37  ;;  %v5674_v12 = vsel %vm5671_vm11, %v5673_v9, %v5669_v35 }
 0x95c   : > { %8208 = vrcp.f32 %v12551_v11  ;;  %vm5682_vm12 = vweird.f32 %v12549_v58  ;;  %v5688_v37 = vor.u32 1.1754944e-38, %v5687_v52 }
 0x95d   : > { %v5345_v60 = vadd.f32 %v8197_v61, %v5344_v46  ;;  %8210 = vtanh.f32 %v5060_v45  ;;  %v5678_v42 = vsub.f32 1.0, %v5677_v20  ;;  %vm12596_vm14 = vmor %vm5681_vm13, %vm5682_vm12 }
 0x95e   : > { %v8203_v3 = vpop.eup %8202 }
 0x95f   : > { %v8205_v54 = vpop.eup %8204  ;;  %v5349_v63 = vsel %vm5348_vm2, %v8197_v61, %v5345_v60  ;;  %v5357_v50 = vmul.f32 %v8203_v3, %v5200_v34  ;;  %vm5362_vm1 = vweird.f32 %v8203_v3  ;;  %v5679_v13 = vmul.f32 %v12549_v58, %v5678_v42 }
 0x960   : > { %v8207_v10 = vpop.eup %8206  ;;  %v5354_v29 = vsel %vm5351_vm3, %v5353_v40, %v5349_v63  ;;  %v12558_v26 = vadd.f32 1.0, %v8205_v54  ;;  %vm5363_vm9 = vmor %vm5361_vm7, %vm5362_vm1  ;;  %v5685_v61 = vand.u32 2147483647, %v12540_v30  ;;  %vm5696_vm1 = vweird.f32 %v12551_v11 }
 0x961   : > { %v5775_v44 = vmul.f32 %v8207_v10, %v5354_v29  ;;  %v5358_v48 = vsub.f32 1.0, %v5357_v50  ;;  %v5680_v41 = vadd.f32 %v12549_v58, %v5679_v13 }
 0x962   : > { %8212 = vrcp.f32 %v12558_v26  ;;  %v12566_v7 = vpop.eup %8208  ;;  %v5382_v1 = vand.u32 2147483648, %v12558_v26  ;;  %v5380_v34 = vand.u32 2147483647, %v12558_v26  ;;  %vm5376_vm15 = vweird.f32 %v12558_v26 }
 0x963   : > { %8214 = vtanh.f32 %v5775_v44  ;;  %v5359_v55 = vmul.f32 %v8203_v3, %v5358_v48  ;;  %v8211_v51 = vpop.eup %8210  ;;  %v5692_v15 = vmul.f32 %v12566_v7, %v12551_v11  ;;  %v5684_v53 = vsel %vm12596_vm14, %v12549_v58, %v5680_v41 }
 0x964   : > { %v5383_v32 = vor.u32 1.1754944e-38, %v5382_v1  ;;  %vm5686_vm2 = vcmp.eq.f32.partialorder %v5685_v61, 8.507059e+37  ;;  %vm5381_vm3 = vcmp.eq.f32.partialorder %v5380_v34, 8.507059e+37  ;;  %vm5697_vm5 = vweird.f32 %v12566_v7 }
 0x965   : > { %v5360_v31 = vadd.f32 %v8203_v3, %v5359_v55  ;;  %v5693_v56 = vsub.f32 1.0, %v5692_v15  ;;  %v5702_v44 = vand.u32 2147483648, %v12551_v11  ;;  %v5700_v48 = vand.u32 2147483647, %v12551_v11  ;;  %vm5698_vm6 = vmor %vm5696_vm1, %vm5697_vm5 }
 0x967   : > { %v5364_v5 = vsel %vm5363_vm9, %v8203_v3, %v5360_v31  ;;  %v5694_v46 = vmul.f32 %v12566_v7, %v5693_v56  ;;  %v5689_v3 = vsel %vm5686_vm2, %v5688_v37, %v5684_v53  ;;  %v5703_v39 = vor.u32 1.1754944e-38, %v5702_v44 }
 0x968   : > { %v8213_v43 = vpop.eup %8212  ;;  %v5369_v17 = vsel %vm5366_vm10, %v5368_v28, %v5364_v5  ;;  %vm5701_vm7 = vcmp.eq.f32.partialorder %v5700_v48, 8.507059e+37 }
 0x969   : > { %v8215_v33 = vpop.eup %8214  ;;  %v5776_v25 = vmul.f32 %v8211_v51, %v5369_v17  ;;  %v5372_v16 = vmul.f32 %v8213_v43, %v12558_v26  ;;  %vm5377_vm4 = vweird.f32 %v8213_v43  ;;  %v5695_v26 = vadd.f32 %v12566_v7, %v5694_v46 }
 0x96a   : > { %v5807_v62 = vmul.f32 %v8215_v33, %v5674_v12  ;;  %vm5378_vm0 = vmor %vm5376_vm15, %vm5377_vm4 }
 0x96b   : > { %8216 = vtanh.f32 %v5776_v25  ;;  %v5373_v27 = vsub.f32 1.0, %v5372_v16  ;;  %v5699_v55 = vsel %vm5698_vm6, %v12566_v7, %v5695_v26 }
 0x96c   : > { %8218 = vtanh.f32 %v5063_v47  ;;  %5913 = vmatmul.f32.gmra.mxu1 %v5807_v62  ;;  %5978 = vmatmul.f32.gmra.mxu2 %v5807_v62  ;;  %v5704_v35 = vsel %vm5701_vm7, %v5703_v39, %v5699_v55 }
 0x96d   : > { %v5374_v57 = vmul.f32 %v8213_v43, %v5373_v27  ;;  %6043 = vmatmul.f32.gmra.mxu3 %v5807_v62 }
 0x96f   : > { %v5375_v30 = vadd.f32 %v8213_v43, %v5374_v57 }
 0x970   : > { %v5130_v0 = vpop.f32.mrf.mxu0 }
 0x971   : > { %v5131_v59 = vadd.f32 %v5130_v0, %v11777_v22  ;;  %v8217_v18 = vpop.eup %8216  ;;  %v5379_v60 = vsel %vm5378_vm0, %v8213_v43, %v5375_v30 }
 0x972   : > { %v5887_v45 = vpop.f32.mrf.mxu1  ;;  %v8219_v40 = vpop.eup %8218  ;;  %v5384_v20 = vsel %vm5381_vm3, %v5383_v32, %v5379_v60  ;;  %v5808_v54 = vmul.f32 %v8217_v18, %v5689_v3 }
 0x973   : > { %v7235_v58 = vmul.f32 -1.442695, %v5131_v59  ;;  %v5888_v38 = vadd.f32 %v5887_v45, %v12601_v2  ;;  %v5777_v63 = vmul.f32 %v8219_v40, %v5384_v20 }
 0x974   : > { %5916 = vmatmul.f32.gmra.mxu1 %v5808_v54  ;;  %5981 = vmatmul.f32.gmra.mxu2 %v5808_v54 }
 0x975   : > { %8220 = vpow2.f32 %v7235_v58  ;;  %v7239_v50 = vmul.f32 -1.442695, %v5888_v38  ;;  %v5000_v10 = vpop.f32.mrf.mxu2  ;;  %v5065_v29 = vpop.f32.mrf.mxu3  ;;  %6046 = vmatmul.f32.gmra.mxu3 %v5808_v54 }
 0x976   : > { %8222 = vtanh.f32 %v5777_v63  ;;  %v5001_v6 = vadd.f32 %v5000_v10, %v11817_v24  ;;  %v5066_v25 = vadd.f32 %v5065_v29, %v11932_v49 }
 0x977   : > { %8224 = vpow2.f32 %v7239_v50 }
 0x978   : > { %v7219_v21 = vmul.f32 -1.442695, %v5001_v6  ;;  %v5133_v23 = vpop.f32.mrf.mxu0 }
 0x979   : > { %v5134_v42 = vadd.f32 %v5133_v23, %v11777_v22 }
 0x97a   : > { %8226 = vpow2.f32 %v7219_v21  ;;  %v5890_v8 = vpop.f32.mrf.mxu1 }
 0x97b   : > { %v8221_v31 = vpop.eup %8220  ;;  %v7236_v4 = vmul.f32 -1.442695, %v5134_v42  ;;  %v5891_v14 = vadd.f32 %v5890_v8, %v12601_v2 }
 0x97c   : > { %v8223_v28 = vpop.eup %8222  ;;  %v12619_v51 = vadd.f32 1.0, %v8221_v31 }
 0x97d   : > { %v8225_v13 = vpop.eup %8224  ;;  %8228 = vpow2.f32 %v7236_v4  ;;  %v7240_v11 = vmul.f32 -1.442695, %v5891_v14  ;;  %v5003_v5 = vpop.f32.mrf.mxu2  ;;  %v5809_v43 = vmul.f32 %v8223_v28, %v5704_v35 }
 0x97e   : > { %v5068_v9 = vpop.f32.mrf.mxu3  ;;  %v12621_v17 = vadd.f32 1.0, %v8225_v13  ;;  %v5004_v7 = vadd.f32 %v5003_v5, %v11817_v24  ;;  %v5717_v52 = vand.u32 2147483648, %v12619_v51  ;;  %v5715_v37 = vand.u32 2147483647, %v12619_v51 }
 0x97f   : > { %8230 = vpow2.f32 %v7240_v11  ;;  %5919 = vmatmul.f32.gmra.mxu1 %v5809_v43  ;;  %5984 = vmatmul.f32.gmra.mxu2 %v5809_v43  ;;  %v5069_v62 = vadd.f32 %v5068_v9, %v11932_v49  ;;  %vm5711_vm5 = vweird.f32 %v12619_v51 }
 0x980   : > { %v8227_v15 = vpop.eup %8226  ;;  %8232 = vrcp.f32 %v12621_v17  ;;  %v7220_v47 = vmul.f32 -1.442695, %v5004_v7  ;;  %6049 = vmatmul.f32.gmra.mxu3 %v5809_v43  ;;  %v5136_v16 = vpop.f32.mrf.mxu0  ;;  %v6138_v30 = vand.u32 2147483647, %v12621_v17  ;;  %v6140_v0 = vand.u32 2147483648, %v12621_v17 }
 0x981   : > { %8234 = vrcp.f32 %v12619_v51  ;;  %v12626_v33 = vadd.f32 1.0, %v8227_v15  ;;  %v5137_v27 = vadd.f32 %v5136_v16, %v11777_v22  ;;  %v12647_v60 = vor.u32 1.1754944e-38, %v5717_v52 }
 0x982   : > { %8236 = vpow2.f32 %v7220_v47  ;;  %v12671_v42 = vor.u32 1.1754944e-38, %v6140_v0  ;;  %vm6134_vm11 = vweird.f32 %v12621_v17  ;;  %vm12733_vm2 = vcmp.eq.f32.partialorder %v6138_v30, 8.507059e+37 }
 0x983   : > { %v8229_v12 = vpop.eup %8228  ;;  %8238 = vrcp.f32 %v12626_v33  ;;  %v7237_v57 = vmul.f32 -1.442695, %v5137_v27  ;;  %v5395_v59 = vand.u32 2147483647, %v12626_v33  ;;  %vm5391_vm8 = vweird.f32 %v12626_v33 }
 0x984   : > { %v12631_v41 = vadd.f32 1.0, %v8229_v12  ;;  %8240 = vtanh.f32 %v5066_v25  ;;  %v5397_v50 = vand.u32 2147483648, %v12626_v33 }
 0x985   : > { %v8231_v1 = vpop.eup %8230  ;;  %8242 = vtanh.f32 %v5069_v62  ;;  %v5006_v36 = vpop.f32.mrf.mxu2  ;;  %vm12667_vm10 = vcmp.eq.f32.partialorder %v5395_v59, 8.507059e+37 }
 0x986   : > { %v12635_v61 = vpop.eup %8232  ;;  %v12637_v56 = vadd.f32 1.0, %v8231_v1  ;;  %v5071_v53 = vpop.f32.mrf.mxu3  ;;  %8244 = vrcp.f32 %v12631_v41  ;;  %v5007_v46 = vadd.f32 %v5006_v36, %v11817_v24  ;;  %v5730_v13 = vand.u32 2147483647, %v12631_v41 }
 0x987   : > { %v12639_v34 = vpop.eup %8234  ;;  %v5893_v18 = vpop.f32.mrf.mxu1  ;;  %v6130_v3 = vmul.f32 %v12635_v61, %v12621_v17  ;;  %8246 = vpow2.f32 %v7237_v57  ;;  %v5072_v10 = vadd.f32 %v5071_v53, %v11932_v49  ;;  %vm6135_vm12 = vweird.f32 %v12635_v61 }
 0x988   : > { %v8237_v32 = vpop.eup %8236  ;;  %v5894_v20 = vadd.f32 %v5893_v18, %v12601_v2  ;;  %8248 = vrcp.f32 %v12637_v56  ;;  %v7221_v38 = vmul.f32 -1.442695, %v5007_v46  ;;  %v5139_v54 = vpop.f32.mrf.mxu0  ;;  %v12659_v63 = vmul.f32 %v12639_v34, %v12619_v51  ;;  %vm12748_vm1 = vmor %vm6134_vm11, %vm6135_vm12 }
 0x989   : > { %v8239_v45 = vpop.eup %8238  ;;  %v12651_v40 = vadd.f32 1.0, %v8237_v32  ;;  %v5140_v6 = vadd.f32 %v5139_v54, %v11777_v22  ;;  %v6131_v21 = vsub.f32 1.0, %v6130_v3  ;;  %v5398_v22 = vor.u32 1.1754944e-38, %v5397_v50 }
 0x98a   : > { %v5387_v58 = vmul.f32 %v8239_v45, %v12626_v33  ;;  %v8241_v29 = vpop.eup %8240  ;;  %v7241_v44 = vmul.f32 -1.442695, %v5894_v20  ;;  %vm5392_vm9 = vweird.f32 %v8239_v45  ;;  %v5708_v35 = vsub.f32 1.0, %v12659_v63 }
 0x98b   : > { %8250 = vrcp.f32 %v12651_v40  ;;  %v12665_v48 = vpop.eup %8242  ;;  %v5412_v39 = vand.u32 2147483648, %v12651_v40  ;;  %v7238_v31 = vmul.f32 -1.442695, %v5140_v6  ;;  %v5410_v9 = vand.u32 2147483647, %v12651_v40  ;;  %vm12689_vm13 = vmor %vm5391_vm8, %vm5392_vm9 }
 0x98c   : > { %v5388_v26 = vsub.f32 1.0, %v5387_v58  ;;  %8252 = vpow2.f32 %v7221_v38  ;;  %v12673_v55 = vpop.eup %8244  ;;  %vm5406_vm4 = vweird.f32 %v12651_v40  ;;  %v6132_v16 = vmul.f32 %v12635_v61, %v6131_v21 }
 0x98d   : > { %8254 = vpow2.f32 %v7241_v44  ;;  %v8247_v4 = vpop.eup %8246  ;;  %v5009_v14 = vpop.f32.mrf.mxu2  ;;  %v12695_v47 = vmul.f32 %v12673_v55, %v12631_v41  ;;  %v5413_v62 = vor.u32 1.1754944e-38, %v5412_v39  ;;  %v6153_v36 = vand.u32 2147483647, %v12637_v56 }
 0x98e   : > { %v5389_v8 = vmul.f32 %v8239_v45, %v5388_v26  ;;  %v5074_v28 = vpop.f32.mrf.mxu3  ;;  %v12680_v11 = vpop.eup %8248  ;;  %8256 = vtanh.f32 %v5072_v10  ;;  %v5010_v43 = vadd.f32 %v5009_v14, %v11817_v24  ;;  %v12703_v27 = vadd.f32 1.0, %v8247_v4 }
 0x98f   : > { %8258 = vpow2.f32 %v7238_v31  ;;  %v5896_v25 = vpop.f32.mrf.mxu1  ;;  %v6145_v52 = vmul.f32 %v12680_v11, %v12637_v56  ;;  %vm12712_vm14 = vcmp.eq.f32.partialorder %v5410_v9, 8.507059e+37  ;;  %v12718_v18 = vperm.slane %v12587_v19, 1 }
 0x990   : > { %v5390_v5 = vadd.f32 %v8239_v45, %v5389_v8  ;;  %v7222_v57 = vmul.f32 -1.442695, %v5010_v43  ;;  %v5897_v46 = vadd.f32 %v5896_v25, %v12601_v2  ;;  %v6133_v3 = vadd.f32 %v12635_v61, %v6132_v16 }
 0x991   : > { %v12684_v7 = vpop.eup %8250  ;;  %vm5712_vm0 = vweird.f32 %v12639_v34  ;;  %v6146_v26 = vsub.f32 1.0, %v6145_v52  ;;  %vm6150_vm3 = vweird.f32 %v12680_v11  ;;  %v6155_v44 = vand.u32 2147483648, %v12637_v56 }
 0x992   : > { %v8253_v24 = vpop.eup %8252  ;;  %v5394_v12 = vsel %vm12689_vm13, %v8239_v45, %v5390_v5  ;;  %v5402_v33 = vmul.f32 %v12684_v7, %v12651_v40  ;;  %vm5407_vm15 = vweird.f32 %v12684_v7  ;;  %v5075_v45 = vadd.f32 %v5074_v28, %v11932_v49  ;;  %vm12819_vm13 = vmor %vm5711_vm5, %vm5712_vm0 }
 0x993   : > { %v12707_v1 = vadd.f32 1.0, %v8253_v24  ;;  %v8255_v53 = vpop.eup %8254  ;;  %v5399_v0 = vsel %vm12667_vm10, %v5398_v22, %v5394_v12  ;;  %v7242_v54 = vmul.f32 -1.442695, %v5897_v46  ;;  %vm12756_vm6 = vmor %vm5406_vm4, %vm5407_vm15  ;;  %v6137_v17 = vsel %vm12748_vm1, %v12635_v61, %v6133_v3 }
 0x994   : > { %v5403_v32 = vsub.f32 1.0, %v5402_v33  ;;  %v12725_v20 = vpop.eup %8256  ;;  %v12729_v38 = vadd.f32 1.0, %v8255_v53  ;;  %v5778_v10 = vmul.f32 %v8241_v29, %v5399_v0  ;;  %v12765_v4 = vperm.slane %v12587_v19, 2 }
 0x995   : > { %8260 = vrcp.f32 %v12707_v1  ;;  %v8259_v49 = vpop.eup %8258  ;;  %v5952_v6 = vpop.f32.mrf.mxu2  ;;  %v5425_v23 = vand.u32 2147483647, %v12707_v1  ;;  %v5427_v31 = vand.u32 2147483648, %v12707_v1  ;;  %vm6149_vm7 = vweird.f32 %v12637_v56 }
 0x996   : > { %v5404_v58 = vmul.f32 %v12684_v7, %v5403_v32  ;;  %8262 = vrcp.f32 %v12703_v27  ;;  %v5953_v30 = vadd.f32 %v5952_v6, %v12718_v18  ;;  %v6017_v8 = vpop.f32.mrf.mxu3  ;;  %v12771_v22 = vadd.f32 1.0, %v8259_v49  ;;  %vm12835_vm4 = vmor %vm6149_vm7, %vm6150_vm3 }
 0x997   : > { %8264 = vpow2.f32 %v7222_v57  ;;  %v5709_v28 = vmul.f32 %v12639_v34, %v5708_v35  ;;  %v6018_v61 = vadd.f32 %v6017_v8, %v12765_v4  ;;  %v6147_v9 = vmul.f32 %v12680_v11, %v6146_v26 }
 0x998   : > { %v5405_v21 = vadd.f32 %v12684_v7, %v5404_v58  ;;  %8266 = vrcp.f32 %v12729_v38  ;;  %v5899_v14 = vpop.f32.mrf.mxu1  ;;  %vm12781_vm8 = vcmp.eq.f32.partialorder %v5715_v37, 8.507059e+37  ;;  %vm5421_vm9 = vweird.f32 %v12707_v1 }
 0x999   : > { %8268 = vtanh.f32 %v5075_v45  ;;  %v5900_v19 = vadd.f32 %v5899_v14, %v12601_v2  ;;  %vm12789_vm10 = vcmp.eq.f32.partialorder %v5425_v23, 8.507059e+37  ;;  %v5428_v16 = vor.u32 1.1754944e-38, %v5427_v31 }
 0x99a   : > { %v5409_v40 = vsel %vm12756_vm6, %v12684_v7, %v5405_v21  ;;  %8270 = vpow2.f32 %v7242_v54  ;;  %v7255_v37 = vmul.f32 -1.442695, %v6018_v61  ;;  %vm12795_vm11 = vcmp.eq.f32.partialorder %v6153_v36, 8.507059e+37 }
 0x99b   : > { %v8261_v5 = vpop.eup %8260  ;;  %8272 = vtanh.f32 %v5953_v30  ;;  %v5414_v25 = vsel %vm12712_vm14, %v5413_v62, %v5409_v40  ;;  %v5710_v12 = vadd.f32 %v12639_v34, %v5709_v28  ;;  %v7243_v53 = vmul.f32 -1.442695, %v5900_v19 }
 0x99c   : > { %v12785_v7 = vpop.eup %8262  ;;  %8274 = vtanh.f32 %v5778_v10  ;;  %v5417_v63 = vmul.f32 %v8261_v5, %v12707_v1  ;;  %v6142_v36 = vsel %vm12733_vm2, %v12671_v42, %v6137_v17  ;;  %v6148_v59 = vadd.f32 %v12680_v11, %v6147_v9 }
 0x99d   : > { %v8265_v15 = vpop.eup %8264  ;;  %8276 = vrcp.f32 %v12771_v22  ;;  %v5955_v32 = vpop.f32.mrf.mxu2  ;;  %v5779_v45 = vmul.f32 %v12665_v48, %v5414_v25  ;;  %vm5422_vm12 = vweird.f32 %v8261_v5  ;;  %v6156_v10 = vor.u32 1.1754944e-38, %v6155_v44 }
 0x99e   : > { %v12800_v33 = vpop.eup %8266  ;;  %v5418_v52 = vsub.f32 1.0, %v5417_v63  ;;  %v12803_v57 = vadd.f32 1.0, %v8265_v15  ;;  %8278 = vpow2.f32 %v7255_v37  ;;  %v6020_v58 = vpop.f32.mrf.mxu3  ;;  %v5714_v48 = vsel %vm12819_vm13, %v12639_v34, %v5710_v12  ;;  %vm5423_vm14 = vmor %vm5421_vm9, %vm5422_vm12 }
 0x99f   : > { %v12805_v0 = vpop.eup %8268  ;;  %v6160_v62 = vmul.f32 %v12800_v33, %v12729_v38  ;;  %v5956_v51 = vadd.f32 %v5955_v32, %v12718_v18  ;;  %v6152_v30 = vsel %vm12835_vm4, %v12680_v11, %v6148_v59  ;;  %v6021_v29 = vadd.f32 %v6020_v58, %v12765_v4 }
 0x9a0   : > { %v8271_v46 = vpop.eup %8270  ;;  %v5419_v3 = vmul.f32 %v8261_v5, %v5418_v52  ;;  %8280 = vrcp.f32 %v12803_v57  ;;  %v5902_v44 = vpop.f32.mrf.mxu1  ;;  %v5440_v34 = vand.u32 2147483647, %v12803_v57  ;;  %vm6164_vm15 = vweird.f32 %v12729_v38 }
 0x9a1   : > { %v8273_v42 = vpop.eup %8272  ;;  %v6161_v50 = vsub.f32 1.0, %v6160_v62  ;;  %v12823_v49 = vadd.f32 1.0, %v8271_v46  ;;  %8282 = vpow2.f32 %v7243_v53  ;;  %v5903_v39 = vadd.f32 %v5902_v44, %v12601_v2 }
 0x9a2   : > { %v8275_v26 = vpop.eup %8274  ;;  %v5420_v6 = vadd.f32 %v8261_v5, %v5419_v3  ;;  %v12828_v21 = vmul.f32 %v8273_v42, %v6142_v36  ;;  %v5719_v1 = vsel %vm12781_vm8, %v12647_v60, %v5714_v48  ;;  %v7256_v11 = vmul.f32 -1.442695, %v6021_v29 }
 0x9a3   : > { %8284 = vrcp.f32 %v12823_v49  ;;  %v12849_v56 = vpop.eup %8276  ;;  %v5810_v40 = vmul.f32 %v8275_v26, %v5719_v1  ;;  %v6157_v61 = vsel %vm12795_vm11, %v6156_v10, %v6152_v30  ;;  %v6162_v19 = vmul.f32 %v12800_v33, %v6161_v50 }
 0x9a4   : > { %8286 = vtanh.f32 %v5779_v45  ;;  %v5424_v8 = vsel %vm5423_vm14, %v8261_v5, %v5420_v6  ;;  %v8279_v31 = vpop.eup %8278  ;;  %v7244_v5 = vmul.f32 -1.442695, %v5903_v39  ;;  %vm5436_vm0 = vweird.f32 %v12803_v57 }
 0x9a5   : > { %v5429_v17 = vsel %vm12789_vm10, %v5428_v16, %v5424_v8  ;;  %8288 = vtanh.f32 %v5956_v51  ;;  %vm12863_vm2 = vcmp.eq.f32.partialorder %v5440_v34, 8.507059e+37  ;;  %v5442_v43 = vand.u32 2147483648, %v12803_v57  ;;  %5922 = vmatmul.f32.gmra.mxu1 %v5810_v40  ;;  %5987 = vmatmul.f32.gmra.mxu2 %v5810_v40  ;;  %v5958_v63 = vpop.f32.mrf.mxu2 }
 0x9a6   : > { %v8281_v14 = vpop.eup %8280  ;;  %v5780_v28 = vmul.f32 %v12725_v20, %v5429_v17  ;;  %v12868_v35 = vadd.f32 1.0, %v8279_v31  ;;  %8290 = vpow2.f32 %v7256_v11  ;;  %6052 = vmatmul.f32.gmra.mxu3 %v5810_v40  ;;  %v5959_v15 = vadd.f32 %v5958_v63, %v12718_v18  ;;  %v6023_v25 = vpop.f32.mrf.mxu3 }
 0x9a7   : > { %v5432_v9 = vmul.f32 %v8281_v14, %v12803_v57  ;;  %v8283_v20 = vpop.eup %8282  ;;  %vm6165_vm3 = vweird.f32 %v12800_v33  ;;  %v6163_v12 = vadd.f32 %v12800_v33, %v6162_v19  ;;  %vm5726_vm5 = vweird.f32 %v12631_v41 }
 0x9a8   : > { %8292 = vtanh.f32 %v5780_v28  ;;  %v12874_v24 = vadd.f32 1.0, %v8283_v20  ;;  %vm5437_vm1 = vweird.f32 %v8281_v14  ;;  %v6170_v62 = vand.u32 2147483648, %v12729_v38  ;;  %v5905_v36 = vpop.f32.mrf.mxu1  ;;  %vm12888_vm6 = vmor %vm6164_vm15, %vm6165_vm3 }
 0x9a9   : > { %v12872_v16 = vpop.eup %8284  ;;  %v5433_v37 = vsub.f32 1.0, %v5432_v9  ;;  %8294 = vpow2.f32 %v7244_v5  ;;  %v6168_v46 = vand.u32 2147483647, %v12729_v38  ;;  %v6024_v45 = vadd.f32 %v6023_v25, %v12765_v4  ;;  %vm5438_vm7 = vmor %vm5436_vm0, %vm5437_vm1 }
 0x9aa   : > { %v8287_v52 = vpop.eup %8286  ;;  %v6175_v53 = vmul.f32 %v12872_v16, %v12823_v49  ;;  %8296 = vrcp.f32 %v12874_v24  ;;  %v5443_v3 = vor.u32 1.1754944e-38, %v5442_v43  ;;  %v5906_v42 = vadd.f32 %v5905_v36, %v12601_v2 }
 0x9ab   : > { %v8289_v32 = vpop.eup %8288  ;;  %v5434_v59 = vmul.f32 %v8281_v14, %v5433_v37  ;;  %8298 = vtanh.f32 %v5959_v15  ;;  %v6167_v10 = vsel %vm12888_vm6, %v12800_v33, %v6163_v12  ;;  %v7257_v48 = vmul.f32 -1.442695, %v6024_v45 }
 0x9ac   : > { %v6690_v58 = vmul.f32 %v8289_v32, %v6157_v61  ;;  %v5723_v26 = vsub.f32 1.0, %v12695_v47  ;;  %v8291_v6 = vpop.eup %8290  ;;  %v6176_v38 = vsub.f32 1.0, %v6175_v53  ;;  %8300 = vrcp.f32 %v12868_v35 }
 0x9ad   : > { %v5435_v50 = vadd.f32 %v8281_v14, %v5434_v59  ;;  %v6171_v51 = vor.u32 1.1754944e-38, %v6170_v62  ;;  %v7245_v23 = vmul.f32 -1.442695, %v5906_v42  ;;  %vm6169_vm8 = vcmp.eq.f32.partialorder %v6168_v46, 8.507059e+37  ;;  %v5961_v33 = vpop.f32.mrf.mxu2 }
 0x9ae   : > { %v12901_v44 = vpop.eup %8292  ;;  %v5724_v30 = vmul.f32 %v12673_v55, %v5723_v26  ;;  %vm5727_vm9 = vweird.f32 %v12673_v55  ;;  %8302 = vpow2.f32 %v7257_v48  ;;  %v5732_v8 = vand.u32 2147483648, %v12631_v41  ;;  %v6026_v39 = vpop.f32.mrf.mxu3 }
 0x9af   : > { %v5439_v34 = vsel %vm5438_vm7, %v8281_v14, %v5435_v50  ;;  %v8295_v47 = vpop.eup %8294  ;;  %v6172_v57 = vsel %vm6169_vm8, %v6171_v51, %v6167_v10  ;;  %v12910_v31 = vadd.f32 1.0, %v8291_v6  ;;  %8304 = vpow2.f32 %v7245_v23  ;;  %vm5728_vm10 = vmor %vm5726_vm5, %vm5727_vm9 }
 0x9b0   : > { %v5444_v29 = vsel %vm12863_vm2, %v5443_v3, %v5439_v34  ;;  %v12908_v1 = vpop.eup %8296  ;;  %v12912_v17 = vadd.f32 1.0, %v8295_v47  ;;  %v5725_v11 = vadd.f32 %v12673_v55, %v5724_v30  ;;  %8306 = vtanh.f32 %v6690_v58 }
 0x9b1   : > { %v8299_v40 = vpop.eup %8298  ;;  %v5733_v14 = vor.u32 1.1754944e-38, %v5732_v8  ;;  %v5962_v28 = vadd.f32 %v5961_v33, %v12718_v18  ;;  %v6177_v61 = vmul.f32 %v12872_v16, %v6176_v38  ;;  %v5781_v5 = vmul.f32 %v12805_v0, %v5444_v29  ;;  %v5908_v15 = vpop.f32.mrf.mxu1 }
 0x9b2   : > { %v6691_v19 = vmul.f32 %v8299_v40, %v6172_v57  ;;  %v5729_v9 = vsel %vm5728_vm10, %v12673_v55, %v5725_v11  ;;  %vm5731_vm11 = vcmp.eq.f32.partialorder %v5730_v13, 8.507059e+37  ;;  %v12925_v60 = vpop.eup %8300  ;;  %v5737_v43 = vmul.f32 %v12785_v7, %v12703_v27 }
 0x9b3   : > { %v6190_v63 = vmul.f32 %v12908_v1, %v12874_v24  ;;  %8308 = vrcp.f32 %v12912_v17  ;;  %v5734_v20 = vsel %vm5731_vm11, %v5733_v14, %v5729_v9  ;;  %v6178_v55 = vadd.f32 %v12872_v16, %v6177_v61 }
 0x9b4   : > { %8310 = vrcp.f32 %v12910_v31  ;;  %v5811_v0 = vmul.f32 %v8287_v52, %v5734_v20  ;;  %vm6180_vm12 = vweird.f32 %v12872_v16  ;;  %v8303_v41 = vpop.eup %8302  ;;  %v6183_v13 = vand.u32 2147483647, %v12823_v49 }
 0x9b5   : > { %v6185_v25 = vand.u32 2147483648, %v12823_v49  ;;  %8312 = vtanh.f32 %v5962_v28  ;;  %v6027_v37 = vadd.f32 %v6026_v39, %v12765_v4  ;;  %v8305_v12 = vpop.eup %8304  ;;  %v12940_v53 = vmul.f32 %v12849_v56, %v12771_v22  ;;  %v5964_v62 = vpop.f32.mrf.mxu2 }
 0x9b6   : > { %8314 = vtanh.f32 %v5781_v5  ;;  %5925 = vmatmul.f32.gmra.mxu1 %v5811_v0  ;;  %5990 = vmatmul.f32.gmra.mxu2 %v5811_v0  ;;  %vm6179_vm13 = vweird.f32 %v12823_v49  ;;  %v5909_v52 = vadd.f32 %v5908_v15, %v12601_v2  ;;  %v12944_v36 = vpop.eup %8306  ;;  %v6191_v32 = vsub.f32 1.0, %v6190_v63  ;;  %v6029_v3 = vpop.f32.mrf.mxu3 }
 0x9b7   : > { %8316 = vtanh.f32 %v6691_v19  ;;  %v12946_v59 = vadd.f32 1.0, %v8305_v12  ;;  %6055 = vmatmul.f32.gmra.mxu3 %v5811_v0  ;;  %vm12950_vm4 = vmor %vm6179_vm13, %vm6180_vm12  ;;  %v7258_v45 = vmul.f32 -1.442695, %v6027_v37  ;;  %v12954_v58 = vadd.f32 1.0, %v8303_v41 }
 0x9b8   : > { %v6182_v49 = vsel %vm12950_vm4, %v12872_v16, %v6178_v55  ;;  %v7246_v54 = vmul.f32 -1.442695, %v5909_v52  ;;  %v5738_v42 = vsub.f32 1.0, %v5737_v43  ;;  %vm6184_vm14 = vcmp.eq.f32.partialorder %v6183_v13, 8.507059e+37 }
 0x9b9   : > { %v12959_v50 = vpop.eup %8308  ;;  %8318 = vrcp.f32 %v12946_v59  ;;  %v6186_v10 = vor.u32 1.1754944e-38, %v6185_v25  ;;  %v5747_v48 = vand.u32 2147483648, %v12703_v27  ;;  %vm5742_vm15 = vweird.f32 %v12785_v7  ;;  %v5911_v28 = vpop.f32.mrf.mxu1 }
 0x9ba   : > { %v12963_v26 = vpop.eup %8310  ;;  %8320 = vpow2.f32 %v7258_v45  ;;  %v5739_v6 = vmul.f32 %v12785_v7, %v5738_v42  ;;  %v5745_v38 = vand.u32 2147483647, %v12703_v27  ;;  %vm5741_vm0 = vweird.f32 %v12703_v27 }
 0x9bb   : > { %v8313_v16 = vpop.eup %8312  ;;  %v6187_v51 = vsel %vm6184_vm14, %v6186_v10, %v6182_v49  ;;  %8322 = vpow2.f32 %v7246_v54  ;;  %v6192_v23 = vmul.f32 %v12908_v1, %v6191_v32  ;;  %v6205_v30 = vmul.f32 %v12959_v50, %v12912_v17  ;;  %vm5743_vm2 = vmor %vm5741_vm0, %vm5742_vm15 }
 0x9bc   : > { %v12970_v34 = vpop.eup %8314  ;;  %v12974_v33 = vmul.f32 %v8313_v16, %v6187_v51  ;;  %v5740_v47 = vadd.f32 %v12785_v7, %v5739_v6  ;;  %v5965_v29 = vadd.f32 %v5964_v62, %v12718_v18  ;;  %v5748_v8 = vor.u32 1.1754944e-38, %v5747_v48 }
 0x9bd   : > { %v12978_v57 = vpop.eup %8316  ;;  %v6193_v39 = vadd.f32 %v12908_v1, %v6192_v23  ;;  %vm6195_vm3 = vweird.f32 %v12908_v1  ;;  %v6198_v27 = vand.u32 2147483647, %v12874_v24  ;;  %vm5746_vm5 = vcmp.eq.f32.partialorder %v5745_v38, 8.507059e+37  ;;  %v5967_v61 = vpop.f32.mrf.mxu2 }
 0x9be   : > { %v5744_v11 = vsel %vm5743_vm2, %v12785_v7, %v5740_v47  ;;  %v6200_v40 = vand.u32 2147483648, %v12874_v24  ;;  %v6030_v14 = vadd.f32 %v6029_v3, %v12765_v4  ;;  %8324 = vrcp.f32 %v12954_v58  ;;  %v6032_v9 = vpop.f32.mrf.mxu3 }
 0x9bf   : > { %v12986_v5 = vpop.eup %8318  ;;  %v5749_v19 = vsel %vm5746_vm5, %v5748_v8, %v5744_v11  ;;  %vm6194_vm1 = vweird.f32 %v12874_v24  ;;  %v6206_v63 = vsub.f32 1.0, %v6205_v30  ;;  %8326 = vtanh.f32 %v5965_v29 }
 0x9c0   : > { %v8321_v43 = vpop.eup %8320  ;;  %v5812_v20 = vmul.f32 %v12901_v44, %v5749_v19  ;;  %vm12993_vm6 = vmor %vm6194_vm1, %vm6195_vm3  ;;  %v7259_v15 = vmul.f32 -1.442695, %v6030_v14  ;;  %vm13000_vm7 = vcmp.eq.f32.partialorder %v6198_v27, 8.507059e+37  ;;  %v5912_v41 = vadd.f32 %v5911_v28, %v12601_v2 }
 0x9c1   : > { %v8323_v0 = vpop.eup %8322  ;;  %v6197_v55 = vsel %vm12993_vm6, %v12908_v1, %v6193_v39  ;;  %v5753_v44 = vsub.f32 1.0, %v12940_v53  ;;  %v6220_v13 = vmul.f32 %v12986_v5, %v12946_v59  ;;  %v6201_v37 = vor.u32 1.1754944e-38, %v6200_v40 }
 0x9c2   : > { %v13008_v25 = vadd.f32 1.0, %v8323_v0  ;;  %5928 = vmatmul.f32.gmra.mxu1 %v5812_v20  ;;  %5993 = vmatmul.f32.gmra.mxu2 %v5812_v20  ;;  %8328 = vpow2.f32 %v7259_v15  ;;  %v13010_v12 = vadd.f32 1.0, %v8321_v43  ;;  %v7247_v1 = vmul.f32 -1.442695, %v5912_v41 }
 0x9c3   : > { %6058 = vmatmul.f32.gmra.mxu3 %v5812_v20  ;;  %v5754_v52 = vmul.f32 %v12849_v56, %v5753_v44  ;;  %vm5757_vm8 = vweird.f32 %v12849_v56  ;;  %v5760_v53 = vand.u32 2147483647, %v12771_v22  ;;  %v5762_v62 = vand.u32 2147483648, %v12771_v22 }
 0x9c4   : > { %8330 = vrcp.f32 %v13008_v25  ;;  %v5968_v32 = vadd.f32 %v5967_v61, %v12718_v18  ;;  %v13018_v46 = vpop.eup %8324  ;;  %vm5756_vm9 = vweird.f32 %v12771_v22  ;;  %v6207_v3 = vmul.f32 %v12959_v50, %v6206_v63 }
 0x9c5   : > { %8332 = vpow2.f32 %v7247_v1  ;;  %v5755_v45 = vadd.f32 %v12849_v56, %v5754_v52  ;;  %v8327_v49 = vpop.eup %8326  ;;  %v6221_v54 = vsub.f32 1.0, %v6220_v13  ;;  %v6202_v42 = vsel %vm13000_vm7, %v6201_v37, %v6197_v55  ;;  %vm5758_vm10 = vmor %vm5756_vm9, %vm5757_vm8  ;;  %v5970_v48 = vpop.f32.mrf.mxu2 }
 0x9c6   : > { %vm5761_vm11 = vcmp.eq.f32.partialorder %v5760_v53, 8.507059e+37  ;;  %v5763_v10 = vor.u32 1.1754944e-38, %v5762_v62  ;;  %v13025_v6 = vmul.f32 %v8327_v49, %v6202_v42  ;;  %v6208_v16 = vadd.f32 %v12959_v50, %v6207_v3  ;;  %v6035_v22 = vpop.f32.mrf.mxu3 }
 0x9c7   : > { %v5759_v38 = vsel %vm5758_vm10, %v12849_v56, %v5755_v45  ;;  %vm6210_vm12 = vweird.f32 %v12959_v50  ;;  %v6215_v30 = vand.u32 2147483648, %v12912_v17  ;;  %8334 = vtanh.f32 %v5968_v32 }
 0x9c8   : > { %v8329_v51 = vpop.eup %8328  ;;  %v5764_v23 = vsel %vm5761_vm11, %v5763_v10, %v5759_v38  ;;  %v6033_v47 = vadd.f32 %v6032_v9, %v12765_v4  ;;  %vm6209_vm13 = vweird.f32 %v12912_v17  ;;  %v6213_v56 = vand.u32 2147483647, %v12912_v17 }
 0x9c9   : > { %v13032_v29 = vadd.f32 1.0, %v8329_v51  ;;  %v5813_v8 = vmul.f32 %v12970_v34, %v5764_v23  ;;  %8336 = vtanh.f32 %v12974_v33  ;;  %vm13040_vm4 = vmor %vm6209_vm13, %vm6210_vm12  ;;  %v6222_v34 = vmul.f32 %v12986_v5, %v6221_v54 }
 0x9ca   : > { %v13037_v39 = vpop.eup %8330  ;;  %v7260_v11 = vmul.f32 -1.442695, %v6033_v47  ;;  %8338 = vrcp.f32 %v13010_v12  ;;  %v6212_v17 = vsel %vm13040_vm4, %v12959_v50, %v6208_v16  ;;  %v6216_v28 = vor.u32 1.1754944e-38, %v6215_v30 }
 0x9cb   : > { %v8333_v40 = vpop.eup %8332  ;;  %v6235_v14 = vmul.f32 %v13037_v39, %v13008_v25  ;;  %5931 = vmatmul.f32.gmra.mxu1 %v5813_v8  ;;  %5996 = vmatmul.f32.gmra.mxu2 %v5813_v8  ;;  %v5971_v61 = vadd.f32 %v5970_v48, %v12718_v18  ;;  %vm6214_vm14 = vcmp.eq.f32.partialorder %v6213_v56, 8.507059e+37  ;;  %v6036_v63 = vadd.f32 %v6035_v22, %v12765_v4 }
 0x9cc   : > { %v13051_v33 = vadd.f32 1.0, %v8333_v40  ;;  %6061 = vmatmul.f32.gmra.mxu3 %v5813_v8  ;;  %8340 = vpow2.f32 %v7260_v11  ;;  %v6217_v43 = vsel %vm6214_vm14, %v6216_v28, %v6212_v17  ;;  %v6223_v7 = vadd.f32 %v12986_v5, %v6222_v34 }
 0x9cd   : > { %v6236_v19 = vsub.f32 1.0, %v6235_v14  ;;  %8342 = vrcp.f32 %v13032_v29  ;;  %v8335_v9 = vpop.eup %8334  ;;  %v5973_v50 = vpop.f32.mrf.mxu2  ;;  %vm6225_vm15 = vweird.f32 %v12986_v5  ;;  %v6230_v15 = vand.u32 2147483648, %v12946_v59 }
 0x9ce   : > { %8344 = vrcp.f32 %v13051_v33  ;;  %v6694_v20 = vmul.f32 %v8335_v9, %v6217_v43  ;;  %v6038_v0 = vpop.f32.mrf.mxu3  ;;  %v7261_v24 = vmul.f32 -1.442695, %v6036_v63  ;;  %v5974_v41 = vadd.f32 %v5973_v50, %v12718_v18 }
 0x9cf   : > { %v13060_v55 = vpop.eup %8336  ;;  %8346 = vtanh.f32 %v5971_v61  ;;  %v6237_v44 = vmul.f32 %v13037_v39, %v6236_v19  ;;  %vm6224_vm0 = vweird.f32 %v12946_v59  ;;  %v6228_v37 = vand.u32 2147483647, %v12946_v59 }
 0x9d0   : > { %v13064_v13 = vpop.eup %8338  ;;  %vm6239_vm2 = vweird.f32 %v13008_v25  ;;  %vm6240_vm3 = vweird.f32 %v13037_v39  ;;  %vm13070_vm5 = vmor %vm6224_vm0, %vm6225_vm15  ;;  %8348 = vpow2.f32 %v7261_v24  ;;  %v6245_v62 = vand.u32 2147483648, %v13008_v25 }
 0x9d1   : > { %v6238_v53 = vadd.f32 %v13037_v39, %v6237_v44  ;;  %v6039_v32 = vadd.f32 %v6038_v0, %v12765_v4  ;;  %v6227_v59 = vsel %vm13070_vm5, %v12986_v5, %v6223_v7  ;;  %v6243_v49 = vand.u32 2147483647, %v13008_v25  ;;  %vm13094_vm1 = vmor %vm6239_vm2, %vm6240_vm3 }
 0x9d2   : > { %v8341_v1 = vpop.eup %8340  ;;  %8350 = vtanh.f32 %v5974_v41  ;;  %v13087_v42 = vmul.f32 %v12925_v60, %v12868_v35  ;;  %v6231_v10 = vor.u32 1.1754944e-38, %v6230_v15  ;;  %vm6229_vm6 = vcmp.eq.f32.partialorder %v6228_v37, 8.507059e+37 }
 0x9d3   : > { %v13077_v45 = vpop.eup %8342  ;;  %v13079_v3 = vadd.f32 1.0, %v8341_v1  ;;  %8352 = vtanh.f32 %v13025_v6  ;;  %v7262_v5 = vmul.f32 -1.442695, %v6039_v32  ;;  %v6242_v16 = vsel %vm13094_vm1, %v13037_v39, %v6238_v53 }
 0x9d4   : > { %v8345_v54 = vpop.eup %8344  ;;  %v6495_v22 = vmul.f32 %v13064_v13, %v13010_v12  ;;  %v6232_v51 = vsel %vm6229_vm6, %v6231_v10, %v6227_v59  ;;  %v6246_v25 = vor.u32 1.1754944e-38, %v6245_v62  ;;  %vm6244_vm7 = vcmp.eq.f32.partialorder %v6243_v49, 8.507059e+37 }
 0x9d5   : > { %v6250_v38 = vmul.f32 %v8345_v54, %v13051_v33  ;;  %8354 = vrcp.f32 %v13079_v3  ;;  %v8347_v6 = vpop.eup %8346  ;;  %v5976_v23 = vpop.f32.mrf.mxu2  ;;  %v6510_v11 = vmul.f32 %v13077_v45, %v13032_v29  ;;  %v6258_v39 = vand.u32 2147483647, %v13051_v33 }
 0x9d6   : > { %8356 = vpow2.f32 %v7262_v5  ;;  %v6695_v47 = vmul.f32 %v8347_v6, %v6232_v51  ;;  %v5977_v8 = vadd.f32 %v5976_v23, %v12718_v18  ;;  %v6041_v56 = vpop.f32.mrf.mxu3  ;;  %v8349_v27 = vpop.eup %8348  ;;  %v6247_v40 = vsel %vm6244_vm7, %v6246_v25, %v6242_v16 }
 0x9d7   : > { %v6251_v30 = vsub.f32 1.0, %v6250_v38  ;;  %v6042_v14 = vadd.f32 %v6041_v56, %v12765_v4  ;;  %v13110_v34 = vadd.f32 1.0, %v8349_v27  ;;  %vm6255_vm8 = vweird.f32 %v8345_v54 }
 0x9d8   : > { %v8351_v17 = vpop.eup %8350  ;;  %v6260_v61 = vand.u32 2147483648, %v13051_v33  ;;  %v13115_v9 = vmul.f32 %v12963_v26, %v12910_v31  ;;  %v6480_v43 = vmul.f32 %v13018_v46, %v12954_v58  ;;  %8358 = vtanh.f32 %v5977_v8 }
 0x9d9   : > { %v6252_v28 = vmul.f32 %v8345_v54, %v6251_v30  ;;  %v8353_v19 = vpop.eup %8352  ;;  %v13119_v63 = vmul.f32 %v8351_v17, %v6247_v40  ;;  %8360 = vtanh.f32 %v6694_v20  ;;  %vm6254_vm9 = vweird.f32 %v13051_v33 }
 0x9da   : > { %v6496_v15 = vsub.f32 1.0, %v6495_v22  ;;  %vm13124_vm10 = vmor %vm6254_vm9, %vm6255_vm8  ;;  %vm13128_vm11 = vcmp.eq.f32.partialorder %v6258_v39, 8.507059e+37  ;;  %v7263_v44 = vmul.f32 -1.442695, %v6042_v14  ;;  %v6511_v37 = vsub.f32 1.0, %v6510_v11 }
 0x9db   : > { %v13121_v50 = vpop.eup %8354  ;;  %v6253_v7 = vadd.f32 %v8345_v54, %v6252_v28  ;;  %vm6514_vm12 = vweird.f32 %v13032_v29  ;;  %8362 = vrcp.f32 %v13110_v34  ;;  %v6261_v33 = vor.u32 1.1754944e-38, %v6260_v61 }
 0x9dc   : > { %v8357_v0 = vpop.eup %8356  ;;  %v6518_v1 = vand.u32 2147483647, %v13032_v29  ;;  %8364 = vtanh.f32 %v6695_v47  ;;  %v6512_v52 = vmul.f32 %v13077_v45, %v6511_v37  ;;  %vm6515_vm13 = vweird.f32 %v13077_v45 }
 0x9dd   : > { %v6257_v20 = vsel %vm13124_vm10, %v8345_v54, %v6253_v7  ;;  %v6520_v53 = vand.u32 2147483648, %v13032_v29  ;;  %v6525_v62 = vmul.f32 %v13121_v50, %v13079_v3  ;;  %v13142_v32 = vadd.f32 1.0, %v8357_v0  ;;  %vm6516_vm14 = vmor %vm6514_vm12, %vm6515_vm13 }
 0x9de   : > { %v6533_v59 = vand.u32 2147483647, %v13079_v3  ;;  %v6497_v49 = vmul.f32 %v13064_v13, %v6496_v15  ;;  %v8359_v54 = vpop.eup %8358  ;;  %v6262_v10 = vsel %vm13128_vm11, %v6261_v33, %v6257_v20  ;;  %8366 = vpow2.f32 %v7263_v44 }
 0x9df   : > { %v6513_v48 = vadd.f32 %v13077_v45, %v6512_v52  ;;  %vm6500_vm4 = vweird.f32 %v13064_v13  ;;  %v8361_v5 = vpop.eup %8360  ;;  %v13150_v38 = vmul.f32 %v8359_v54, %v6262_v10  ;;  %v6535_v16 = vand.u32 2147483648, %v13079_v3 }
 0x9e0   : > { %v6498_v6 = vadd.f32 %v13064_v13, %v6497_v49  ;;  %v6505_v22 = vand.u32 2147483648, %v13010_v12  ;;  %v6521_v51 = vor.u32 1.1754944e-38, %v6520_v53  ;;  %vm6499_vm15 = vweird.f32 %v13010_v12 }
 0x9e1   : > { %v6503_v25 = vand.u32 2147483647, %v13010_v12  ;;  %v6481_v23 = vsub.f32 1.0, %v6480_v43  ;;  %v13161_v30 = vpop.eup %8362  ;;  %v6526_v47 = vsub.f32 1.0, %v6525_v62  ;;  %vm6529_vm0 = vweird.f32 %v13079_v3  ;;  %vm13167_vm3 = vmor %vm6499_vm15, %vm6500_vm4 }
 0x9e2   : > { %v6517_v8 = vsel %vm6516_vm14, %v13077_v45, %v6513_v48  ;;  %vm6519_vm2 = vcmp.eq.f32.partialorder %v6518_v1, 8.507059e+37  ;;  %v13171_v29 = vpop.eup %8364  ;;  %8368 = vrcp.f32 %v13142_v32  ;;  %vm13174_vm5 = vcmp.eq.f32.partialorder %v6533_v59, 8.507059e+37 }
 0x9e3   : > { %v6522_v27 = vsel %vm6519_vm2, %v6521_v51, %v6517_v8  ;;  %v6502_v45 = vsel %vm13167_vm3, %v13064_v13, %v6498_v6  ;;  %v6527_v11 = vmul.f32 %v13121_v50, %v6526_v47  ;;  %vm6530_vm1 = vweird.f32 %v13121_v50 }
 0x9e4   : > { %v13183_v40 = vmul.f32 %v8353_v19, %v6522_v27  ;;  %v6506_v39 = vor.u32 1.1754944e-38, %v6505_v22  ;;  %v8367_v14 = vpop.eup %8366  ;;  %v6540_v17 = vmul.f32 %v13161_v30, %v13110_v34  ;;  %v6536_v28 = vor.u32 1.1754944e-38, %v6535_v16  ;;  %vm13193_vm8 = vmor %vm6529_vm0, %vm6530_vm1 }
 0x9e5   : > { %vm6504_vm6 = vcmp.eq.f32.partialorder %v6503_v25, 8.507059e+37  ;;  %v6482_v61 = vmul.f32 %v13018_v46, %v6481_v23  ;;  %v6528_v43 = vadd.f32 %v13121_v50, %v6527_v11  ;;  %vm6485_vm7 = vweird.f32 %v13018_v46 }
 0x9e6   : > { %v6507_v7 = vsel %vm6504_vm6, %v6506_v39, %v6502_v45  ;;  %v6490_v13 = vand.u32 2147483648, %v12954_v58  ;;  %v6488_v24 = vand.u32 2147483647, %v12954_v58  ;;  %v6466_v41 = vsub.f32 1.0, %v13115_v9 }
 0x9e7   : > { %v13198_v15 = vmul.f32 %v13060_v55, %v6507_v7  ;;  %v6483_v0 = vadd.f32 %v13018_v46, %v6482_v61  ;;  %v13203_v44 = vadd.f32 1.0, %v8367_v14  ;;  %vm6544_vm9 = vweird.f32 %v13110_v34 }
 0x9e8   : > { %v6532_v3 = vsel %vm13193_vm8, %v13121_v50, %v6528_v43  ;;  %vm6484_vm10 = vweird.f32 %v12954_v58  ;;  %v13210_v20 = vpop.eup %8368  ;;  %v6548_v33 = vand.u32 2147483647, %v13110_v34  ;;  %v6550_v1 = vand.u32 2147483648, %v13110_v34 }
 0x9e9   : > { %v5914_v37 = vpop.f32.mrf.mxu1  ;;  %vm6486_vm11 = vmor %vm6484_vm10, %vm6485_vm7  ;;  %v6491_v9 = vor.u32 1.1754944e-38, %v6490_v13  ;;  %v6541_v52 = vsub.f32 1.0, %v6540_v17  ;;  %v6537_v53 = vsel %vm13174_vm5, %v6536_v28, %v6532_v3  ;;  %v6467_v58 = vmul.f32 %v12963_v26, %v6466_v41 }
 0x9ea   : > { %v5915_v55 = vadd.f32 %v5914_v37, %v12601_v2  ;;  %v6487_v50 = vsel %vm6486_vm11, %v13018_v46, %v6483_v0  ;;  %vm6545_vm12 = vweird.f32 %v13161_v30  ;;  %v13222_v59 = vmul.f32 %v8361_v5, %v6537_v53 }
 0x9eb   : > { %vm6489_vm13 = vcmp.eq.f32.partialorder %v6488_v24, 8.507059e+37  ;;  %8370 = vrcp.f32 %v13203_v44  ;;  %v6542_v49 = vmul.f32 %v13161_v30, %v6541_v52  ;;  %v6468_v10 = vadd.f32 %v12963_v26, %v6467_v58  ;;  %vm6546_vm14 = vmor %vm6544_vm9, %vm6545_vm12 }
 0x9ec   : > { %v7248_v62 = vmul.f32 -1.442695, %v5915_v55  ;;  %v6492_v54 = vsel %vm6489_vm13, %v6491_v9, %v6487_v50  ;;  %v6555_v48 = vmul.f32 %v13210_v20, %v13142_v32  ;;  %vm6470_vm4 = vweird.f32 %v12963_v26 }
 0x9ed   : > { %v13230_v46 = vmul.f32 %v12978_v57, %v6492_v54  ;;  %v6543_v5 = vadd.f32 %v13161_v30, %v6542_v49  ;;  %vm6469_vm15 = vweird.f32 %v12910_v31  ;;  %v6473_v16 = vand.u32 2147483647, %v12910_v31 }
 0x9ee   : > { %8372 = vpow2.f32 %v7248_v62  ;;  %v6475_v6 = vand.u32 2147483648, %v12910_v31  ;;  %vm13239_vm0 = vmor %vm6469_vm15, %vm6470_vm4  ;;  %v6551_v51 = vor.u32 1.1754944e-38, %v6550_v1  ;;  %vm6549_vm2 = vcmp.eq.f32.partialorder %v6548_v33, 8.507059e+37 }
 0x9ef   : > { %13970 = vst [vmem:[#allocation30_spill] sm:$0xff] %v13230_v46  ;;  %v6547_v57 = vsel %vm6546_vm14, %v13161_v30, %v6543_v5  ;;  %v6472_v25 = vsel %vm13239_vm0, %v12963_v26, %v6468_v10  ;;  %v6451_v47 = vsub.f32 1.0, %v13087_v42  ;;  %v6556_v56 = vsub.f32 1.0, %v6555_v48  ;;  %v5979_v17 = vpop.f32.mrf.mxu2 }
 0x9f0   : > { %v6044_v23 = vpop.f32.mrf.mxu3  ;;  %v6476_v34 = vor.u32 1.1754944e-38, %v6475_v6  ;;  %v6552_v31 = vsel %vm6549_vm2, %v6551_v51, %v6547_v57  ;;  %vm6474_vm3 = vcmp.eq.f32.partialorder %v6473_v16, 8.507059e+37  ;;  %8374 = vtanh.f32 %v13119_v63 }
 0x9f1   : > { %v13248_v8 = vpop.eup %8370  ;;  %v13252_v30 = vmul.f32 %v13171_v29, %v6552_v31  ;;  %v6045_v26 = vadd.f32 %v6044_v23, %v12765_v4  ;;  %v6557_v11 = vmul.f32 %v13210_v20, %v6556_v56  ;;  %v6565_v42 = vand.u32 2147483648, %v13142_v32 }
 0x9f2   : > { %v6477_v27 = vsel %vm6474_vm3, %v6476_v34, %v6472_v25  ;;  %vm6560_vm5 = vweird.f32 %v13210_v20  ;;  %v6563_v39 = vand.u32 2147483647, %v13142_v32  ;;  %v6452_v63 = vmul.f32 %v12925_v60, %v6451_v47 }
 0x9f3   : > { %v13262_v14 = vmul.f32 %v12944_v36, %v6477_v27  ;;  %v6570_v29 = vmul.f32 %v13248_v8, %v13203_v44  ;;  %v6558_v28 = vadd.f32 %v13210_v20, %v6557_v11  ;;  %vm6559_vm1 = vweird.f32 %v13142_v32 }
 0x9f4   : > { %v8373_v12 = vpop.eup %8372  ;;  %v7264_v61 = vmul.f32 -1.442695, %v6045_v26  ;;  %vm6561_vm6 = vmor %vm6559_vm1, %vm6560_vm5  ;;  %v6566_v43 = vor.u32 1.1754944e-38, %v6565_v42  ;;  %v6453_v36 = vadd.f32 %v12925_v60, %v6452_v63  ;;  %vm6455_vm7 = vweird.f32 %v12925_v60 }
 0x9f5   : > { %v13254_v45 = vadd.f32 1.0, %v8373_v12  ;;  %13973 = vst [vmem:[#allocation31_spill] sm:$0xff] %v13262_v14  ;;  %v6562_v13 = vsel %vm6561_vm6, %v13210_v20, %v6558_v28  ;;  %vm6564_vm8 = vcmp.eq.f32.partialorder %v6563_v39, 8.507059e+37  ;;  %vm6454_vm9 = vweird.f32 %v12868_v35 }
 0x9f6   : > { %v8375_v7 = vpop.eup %8374  ;;  %v5980_v19 = vadd.f32 %v5979_v17, %v12718_v18  ;;  %v6571_v0 = vsub.f32 1.0, %v6570_v29  ;;  %v6567_v24 = vsel %vm6564_vm8, %v6566_v43, %v6562_v13  ;;  %v6458_v32 = vand.u32 2147483647, %v12868_v35  ;;  %vm13282_vm10 = vmor %vm6454_vm9, %vm6455_vm7 }
 0x9f7   : > { %8376 = vrcp.f32 %v13254_v45  ;;  %v6578_v41 = vand.u32 2147483647, %v13203_v44  ;;  %v13280_v37 = vmul.f32 %v8375_v7, %v6567_v24  ;;  %v6580_v33 = vand.u32 2147483648, %v13203_v44  ;;  %v13305_v43 = vpop.f32.mrf.mxu2 }
 0x9f8   : > { %8378 = vtanh.f32 %v12828_v21  ;;  %v6460_v21 = vand.u32 2147483648, %v12868_v35  ;;  %v6572_v55 = vmul.f32 %v13248_v8, %v6571_v0  ;;  %v6457_v35 = vsel %vm13282_vm10, %v12925_v60, %v6453_v36  ;;  %v6047_v63 = vpop.f32.mrf.mxu3 }
 0x9f9   : > { %8380 = vtanh.f32 %v13150_v38  ;;  %vm6575_vm11 = vweird.f32 %v13248_v8  ;;  %vm6459_vm12 = vcmp.eq.f32.partialorder %v6458_v32, 8.507059e+37  ;;  %vm6574_vm13 = vweird.f32 %v13203_v44 }
 0x9fa   : > { %8382 = vpow2.f32 %v7264_v61  ;;  %v6461_v9 = vor.u32 1.1754944e-38, %v6460_v21  ;;  %v6573_v53 = vadd.f32 %v13248_v8, %v6572_v55  ;;  %v6275_v58 = vand.u32 2147483648, %v13254_v45  ;;  %vm6576_vm4 = vmor %vm6574_vm13, %vm6575_vm11 }
 0x9fb   : > { %8384 = vtanh.f32 %v5980_v19  ;;  %vm6579_vm14 = vcmp.eq.f32.partialorder %v6578_v41, 8.507059e+37  ;;  %v6581_v62 = vor.u32 1.1754944e-38, %v6580_v33  ;;  %v6273_v10 = vand.u32 2147483647, %v13254_v45 }
 0x9fc   : > { %v6462_v50 = vsel %vm6459_vm12, %v6461_v9, %v6457_v35  ;;  %v6577_v48 = vsel %vm6576_vm4, %v13248_v8, %v6573_v53  ;;  %vm6269_vm0 = vweird.f32 %v13254_v45  ;;  %v6276_v57 = vor.u32 1.1754944e-38, %v6275_v58  ;;  %v5917_v8 = vpop.f32.mrf.mxu1 }
 0x9fd   : > { %v8377_v20 = vpop.eup %8376  ;;  %v6582_v16 = vsel %vm6579_vm14, %v6581_v62, %v6577_v48  ;;  %vm6274_vm3 = vcmp.eq.f32.partialorder %v6273_v10, 8.507059e+37  ;;  %v5918_v7 = vadd.f32 %v5917_v8, %v12601_v2  ;;  %v6048_v55 = vadd.f32 %v6047_v63, %v12765_v4 }
 0x9fe   : > { %v8379_v1 = vpop.eup %8378  ;;  %v6265_v38 = vmul.f32 %v8377_v20, %v13254_v45  ;;  %vm6270_vm15 = vweird.f32 %v8377_v20 }
 0x9ff   : > { %v13296_v60 = vmul.f32 %v8379_v1, %v6462_v50  ;;  %v8381_v49 = vpop.eup %8380  ;;  %vm6271_vm2 = vmor %vm6269_vm0, %vm6270_vm15  ;;  %v7249_v21 = vmul.f32 -1.442695, %v5918_v7  ;;  %v5983_v7 = vadd.f32 %v13305_v43, %v12718_v18 }
 0xa00   : > { %v6266_v52 = vsub.f32 1.0, %v6265_v38  ;;  %v8383_v5 = vpop.eup %8382  ;;  %v13301_v44 = vmul.f32 %v8381_v49, %v6582_v16 }
 0xa01   : > { %13976 = vst [vmem:[#allocation32_spill] sm:$0xff] %v13296_v60  ;;  %v8385_v22 = vpop.eup %8384  ;;  %v6442_v25 = vadd.f32 1.0, %v8383_v5 }
 0xa02   : > { %v6267_v54 = vmul.f32 %v8377_v20, %v6266_v52  ;;  %v13309_v24 = vpop.f32.mrf.mxu2  ;;  %v7265_v52 = vmul.f32 -1.442695, %v6048_v55 }
 0xa03   : > { %8386 = vrcp.f32 %v6442_v25  ;;  %v6595_v45 = vand.u32 2147483648, %v6442_v25  ;;  %vm6589_vm1 = vweird.f32 %v6442_v25  ;;  %v6593_v26 = vand.u32 2147483647, %v6442_v25  ;;  %v6050_v61 = vpop.f32.mrf.mxu3 }
 0xa04   : > { %v6268_v6 = vadd.f32 %v8377_v20, %v6267_v54  ;;  %v5920_v28 = vpop.f32.mrf.mxu1  ;;  %v6051_v35 = vadd.f32 %v6050_v61, %v12765_v4  ;;  %v5986_v55 = vadd.f32 %v13309_v24, %v12718_v18 }
 0xa05   : > { %v6596_v39 = vor.u32 1.1754944e-38, %v6595_v45  ;;  %vm6594_vm7 = vcmp.eq.f32.partialorder %v6593_v26, 8.507059e+37  ;;  %v5921_v13 = vadd.f32 %v5920_v28, %v12601_v2 }
 0xa06   : > { %v6272_v51 = vsel %vm6271_vm2, %v8377_v20, %v6268_v6  ;;  %v7266_v62 = vmul.f32 -1.442695, %v6051_v35 }
 0xa07   : > { %v6277_v23 = vsel %vm6274_vm3, %v6276_v57, %v6272_v51  ;;  %v7250_v0 = vmul.f32 -1.442695, %v5921_v13 }
 0xa08   : > { %v6698_v34 = vmul.f32 %v8385_v22, %v6277_v23 }
 0xa09   : > { %v8387_v47 = vpop.eup %8386 }
 0xa0a   : > { %v6585_v56 = vmul.f32 %v8387_v47, %v6442_v25  ;;  %8388 = vtanh.f32 %v6698_v34  ;;  %vm6590_vm5 = vweird.f32 %v8387_v47 }
 0xa0b   : > { %vm6591_vm6 = vmor %vm6589_vm1, %vm6590_vm5  ;;  %8390 = vpow2.f32 %v7249_v21 }
 0xa0c   : > { %v6586_v31 = vsub.f32 1.0, %v6585_v56  ;;  %8392 = vpow2.f32 %v7250_v0 }
 0xa0e   : > { %v6587_v12 = vmul.f32 %v8387_v47, %v6586_v31 }
 0xa10   : > { %v6588_v27 = vadd.f32 %v8387_v47, %v6587_v12  ;;  %v8389_v42 = vpop.eup %8388 }
 0xa11   : > { %v8391_v33 = vpop.eup %8390 }
 0xa12   : > { %v6592_v11 = vsel %vm6591_vm6, %v8387_v47, %v6588_v27  ;;  %v8393_v53 = vpop.eup %8392  ;;  %v13317_v50 = vadd.f32 1.0, %v8391_v33 }
 0xa13   : > { %v6597_v29 = vsel %vm6594_vm7, %v6596_v39, %v6592_v11  ;;  %v13320_v54 = vadd.f32 1.0, %v8393_v53 }
 0xa14   : > { %v13303_v17 = vmul.f32 %v8389_v42, %v6597_v29  ;;  %v6290_v35 = vand.u32 2147483648, %v13317_v50  ;;  %vm6284_vm3 = vweird.f32 %v13317_v50  ;;  %v13985_v46 = vand.u32 2147483647, %v13317_v50 }
 0xa15   : > { %vm6299_vm13 = vweird.f32 %v13320_v54 }
 0xa22   : > { %v5923_v36 = vpop.f32.mrf.mxu1 }
 0xa23   : > { %v5924_v32 = vadd.f32 %v5923_v36, %v12601_v2 }
 0xa25   : > { %v7251_v20 = vmul.f32 -1.442695, %v5924_v32 }
 0xa27   : > { %8394 = vpow2.f32 %v7251_v20 }
 0xa28   : > { %v13315_v9 = vpop.f32.mrf.mxu2 }
 0xa29   : > { %v6053_v19 = vpop.f32.mrf.mxu3 }
 0xa2a   : > { %v6054_v56 = vadd.f32 %v6053_v19, %v12765_v4 }
 0xa2c   : > { %v7267_v39 = vmul.f32 -1.442695, %v6054_v56 }
 0xa2d   : > { %v8395_v10 = vpop.eup %8394 }
 0xa2e   : > { %v13325_v6 = vadd.f32 1.0, %v8395_v10  ;;  %v5989_v10 = vadd.f32 %v13315_v9, %v12718_v18 }
 0xa30   : > { %vm6314_vm8 = vweird.f32 %v13325_v6 }
 0xa33   : > { %v5926_v41 = vpop.f32.mrf.mxu1 }
 0xa34   : > { %v5927_v3 = vadd.f32 %v5926_v41, %v12601_v2 }
 0xa36   : > { %v7252_v1 = vmul.f32 -1.442695, %v5927_v3 }
 0xa38   : > { %8396 = vpow2.f32 %v7252_v1  ;;  %v6305_v1 = vand.u32 2147483648, %v13320_v54 }
 0xa39   : > { %8398 = vpow2.f32 %v7265_v52  ;;  %v13327_v57 = vpop.f32.mrf.mxu2 }
 0xa3a   : > { %v6056_v38 = vpop.f32.mrf.mxu3  ;;  %8400 = vrcp.f32 %v13317_v50 }
 0xa3b   : > { %v6057_v48 = vadd.f32 %v6056_v38, %v12765_v4  ;;  %8402 = vpow2.f32 %v7266_v62 }
 0xa3d   : > { %v7268_v51 = vmul.f32 -1.442695, %v6057_v48 }
 0xa3e   : > { %v8397_v16 = vpop.eup %8396 }
 0xa3f   : > { %v5929_v58 = vpop.f32.mrf.mxu1  ;;  %v8399_v23 = vpop.eup %8398  ;;  %v13333_v31 = vadd.f32 1.0, %v8397_v16 }
 0xa40   : > { %v5930_v49 = vadd.f32 %v5929_v58, %v12601_v2  ;;  %v13330_v47 = vpop.eup %8400  ;;  %v13344_v29 = vadd.f32 1.0, %v8399_v23  ;;  %v13388_v23 = vor.u32 1.1754944e-38, %v6290_v35 }
 0xa41   : > { %v8403_v12 = vpop.eup %8402  ;;  %v6280_v63 = vmul.f32 %v13330_v47, %v13317_v50  ;;  %vm6285_vm15 = vweird.f32 %v13330_v47  ;;  %vm6329_vm2 = vweird.f32 %v13333_v31 }
 0xa42   : > { %v7253_v5 = vmul.f32 -1.442695, %v5930_v49  ;;  %v13349_v28 = vadd.f32 1.0, %v8403_v12 }
 0xa43   : > { %v6281_v32 = vsub.f32 1.0, %v6280_v63 }
 0xa44   : > { %8404 = vpow2.f32 %v7253_v5 }
 0xa45   : > { %8406 = vrcp.f32 %v13320_v54  ;;  %v5994_v19 = vpop.f32.mrf.mxu2  ;;  %v6282_v24 = vmul.f32 %v13330_v47, %v6281_v32 }
 0xa46   : > { %v6059_v22 = vpop.f32.mrf.mxu3  ;;  %8408 = vrcp.f32 %v13325_v6 }
 0xa47   : > { %v6060_v25 = vadd.f32 %v6059_v22, %v12765_v4  ;;  %8410 = vpow2.f32 %v7268_v51  ;;  %v13395_v9 = vadd.f32 %v13330_v47, %v6282_v24 }
 0xa48   : > { %v5932_v34 = vpop.f32.mrf.mxu1 }
 0xa49   : > { %v7269_v8 = vmul.f32 -1.442695, %v6060_v25  ;;  %v5933_v27 = vadd.f32 %v5932_v34, %v12601_v2  ;;  %v6303_v34 = vand.u32 2147483647, %v13320_v54 }
 0xa4a   : > { %v8405_v45 = vpop.eup %8404 }
 0xa4b   : > { %v13337_v26 = vpop.eup %8406  ;;  %v13339_v11 = vadd.f32 1.0, %v8405_v45  ;;  %8412 = vpow2.f32 %v7269_v8  ;;  %v7254_v42 = vmul.f32 -1.442695, %v5933_v27  ;;  %v13397_v8 = vor.u32 1.1754944e-38, %v6305_v1 }
 0xa4c   : > { %8414 = vrcp.f32 %v13333_v31  ;;  %v6295_v2 = vmul.f32 %v13337_v26, %v13320_v54  ;;  %v13351_v36 = vpop.eup %8408  ;;  %vm6300_vm10 = vweird.f32 %v13337_v26  ;;  %vm13488_vm7 = vcmp.eq.f32.partialorder %v6303_v34, 8.507059e+37 }
 0xa4d   : > { %8416 = vrcp.f32 %v13339_v11  ;;  %v8411_v21 = vpop.eup %8410  ;;  %vm6315_vm9 = vweird.f32 %v13351_v36  ;;  %vm6344_vm4 = vweird.f32 %v13339_v11  ;;  %v6348_v24 = vand.u32 2147483647, %v13339_v11 }
 0xa4e   : > { %8418 = vpow2.f32 %v7254_v42  ;;  %v6296_v20 = vsub.f32 1.0, %v6295_v2  ;;  %v13382_v22 = vadd.f32 1.0, %v8411_v21  ;;  %v5997_v63 = vpop.f32.mrf.mxu2 }
 0xa4f   : > { %v6062_v61 = vpop.f32.mrf.mxu3  ;;  %8420 = vpow2.f32 %v7267_v39  ;;  %vm6349_vm1 = vcmp.eq.f32.partialorder %v6348_v24, 8.507059e+37 }
 0xa50   : > { %v6063_v13 = vadd.f32 %v6062_v61, %v12765_v4  ;;  %8422 = vrcp.f32 %v13344_v29  ;;  %v6310_v4 = vmul.f32 %v13351_v36, %v13325_v6  ;;  %v6297_v49 = vmul.f32 %v13337_v26, %v6296_v20 }
 0xa51   : > { %v8413_v0 = vpop.eup %8412  ;;  %8424 = vrcp.f32 %v13349_v28 }
 0xa52   : > { %v7270_v41 = vmul.f32 -1.442695, %v6063_v13  ;;  %v13357_v3 = vpop.eup %8414  ;;  %8426 = vtanh.f32 %v5983_v7  ;;  %v13370_v52 = vadd.f32 1.0, %v8413_v0  ;;  %v6311_v16 = vsub.f32 1.0, %v6310_v4 }
 0xa53   : > { %v13362_v33 = vpop.eup %8416  ;;  %v6325_v53 = vmul.f32 %v13357_v3, %v13333_v31  ;;  %v13406_v42 = vadd.f32 %v13337_v26, %v6297_v49  ;;  %v5992_v13 = vadd.f32 %v13327_v57, %v12718_v18  ;;  %v5998_v4 = vadd.f32 %v5997_v63, %v12718_v18 }
 0xa54   : > { %v8419_v43 = vpop.eup %8418  ;;  %v6340_v38 = vmul.f32 %v13362_v33, %v13339_v11  ;;  %8428 = vpow2.f32 %v7270_v41  ;;  %v6312_v7 = vmul.f32 %v13351_v36, %v6311_v16  ;;  %v5995_v41 = vadd.f32 %v5994_v19, %v12718_v18 }
 0xa55   : > { %v13375_v58 = vadd.f32 1.0, %v8419_v43  ;;  %v8421_v62 = vpop.eup %8420  ;;  %8430 = vtanh.f32 %v5986_v55  ;;  %v6326_v27 = vsub.f32 1.0, %v6325_v53  ;;  %vm6345_vm11 = vweird.f32 %v13362_v33 }
 0xa56   : > { %v6341_v48 = vsub.f32 1.0, %v6340_v38  ;;  %v13380_v5 = vpop.eup %8422  ;;  %v13399_v12 = vadd.f32 1.0, %v8421_v62  ;;  %v13440_v1 = vadd.f32 %v13351_v36, %v6312_v7  ;;  %vm6330_vm12 = vweird.f32 %v13357_v3  ;;  %vm13454_vm14 = vmor %vm6344_vm4, %vm6345_vm11 }
 0xa57   : > { %8432 = vrcp.f32 %v13375_v58  ;;  %v13385_v51 = vpop.eup %8424  ;;  %v13403_v45 = vmul.f32 %v13380_v5, %v13344_v29  ;;  %v6327_v57 = vmul.f32 %v13357_v3, %v6326_v27  ;;  %v6350_v18 = vand.u32 2147483648, %v13339_v11  ;;  %vm13478_vm5 = vmor %vm6329_vm2, %vm6330_vm12 }
 0xa58   : > { %8434 = vrcp.f32 %v13370_v52  ;;  %v13392_v56 = vpop.eup %8426  ;;  %v6342_v39 = vmul.f32 %v13362_v33, %v6341_v48  ;;  %v13411_v61 = vmul.f32 %v13385_v51, %v13349_v28  ;;  %v6365_v16 = vand.u32 2147483648, %v13375_v58  ;;  %vm13500_vm12 = vmor %vm6314_vm8, %vm6315_vm9 }
 0xa59   : > { %8436 = vtanh.f32 %v5989_v10  ;;  %v6328_v49 = vadd.f32 %v13357_v3, %v6327_v57  ;;  %v6335_v7 = vand.u32 2147483648, %v13333_v31  ;;  %vm6359_vm6 = vweird.f32 %v13375_v58 }
 0xa5a   : > { %v8429_v2 = vpop.eup %8428  ;;  %8438 = vrcp.f32 %v13382_v22  ;;  %v6343_v19 = vadd.f32 %v13362_v33, %v6342_v39  ;;  %v6363_v39 = vand.u32 2147483647, %v13375_v58  ;;  %vm13516_vm9 = vcmp.eq.f32.partialorder %v13985_v46, 8.507059e+37 }
 0xa5b   : > { %v13417_v21 = vpop.eup %8430  ;;  %v13422_v20 = vadd.f32 1.0, %v8429_v2  ;;  %8440 = vrcp.f32 %v13399_v12  ;;  %v6333_v2 = vand.u32 2147483647, %v13333_v31 }
 0xa5c   : > { %v6347_v11 = vsel %vm13454_vm14, %v13362_v33, %v6343_v19  ;;  %vm6364_vm4 = vcmp.eq.f32.partialorder %v6363_v39, 8.507059e+37  ;;  %vm13524_vm14 = vmor %vm6299_vm13, %vm6300_vm10 }
 0xa5d   : > { %v13424_v55 = vpop.eup %8432  ;;  %8442 = vrcp.f32 %v13422_v20  ;;  %vm6334_vm8 = vcmp.eq.f32.partialorder %v6333_v2, 8.507059e+37  ;;  %v6302_v46 = vsel %vm13524_vm14, %v13337_v26, %v13406_v42  ;;  %v6685_v54 = vand.u32 2147483648, %v13422_v20 }
 0xa5e   : > { %v13431_v43 = vpop.eup %8434  ;;  %v6355_v35 = vmul.f32 %v13424_v55, %v13375_v58  ;;  %8444 = vtanh.f32 %v5992_v13  ;;  %vm6360_vm0 = vweird.f32 %v13424_v55  ;;  %v6351_v13 = vor.u32 1.1754944e-38, %v6350_v18 }
 0xa5f   : > { %v13444_v38 = vpop.eup %8436  ;;  %8446 = vtanh.f32 %v5995_v41  ;;  %v6660_v48 = vmul.f32 %v13431_v43, %v13370_v52  ;;  %vm6361_vm11 = vmor %vm6359_vm6, %vm6360_vm0  ;;  %v6366_v18 = vor.u32 1.1754944e-38, %v6365_v16  ;;  %v6332_v16 = vsel %vm13478_vm5, %v13357_v3, %v6328_v49 }
 0xa60   : > { %v6356_v53 = vsub.f32 1.0, %v6355_v35  ;;  %v13449_v62 = vpop.eup %8438  ;;  %8448 = vtanh.f32 %v5998_v4  ;;  %v6352_v35 = vsel %vm6349_vm1, %v6351_v13, %v6347_v11  ;;  %v6336_v13 = vor.u32 1.1754944e-38, %v6335_v7  ;;  %vm13551_vm5 = vmor %vm6284_vm3, %vm6285_vm15 }
 0xa61   : > { %v13468_v63 = vpop.eup %8440  ;;  %v6645_v57 = vmul.f32 %v13449_v62, %v13382_v22  ;;  %v6661_v24 = vsub.f32 1.0, %v6660_v48  ;;  %v13990_v49 = vand.u32 2147483648, %v13325_v6  ;;  %v13991_v2 = vand.u32 2147483647, %v13325_v6 }
 0xa62   : > { %v6357_v27 = vmul.f32 %v13424_v55, %v6356_v53  ;;  %v6630_v34 = vmul.f32 %v13468_v63, %v13399_v12  ;;  %vm6679_vm13 = vweird.f32 %v13422_v20  ;;  %v6683_v7 = vand.u32 2147483647, %v13422_v20 }
 0xa63   : > { %v13473_v41 = vpop.eup %8442  ;;  %v6646_v14 = vsub.f32 1.0, %v6645_v57  ;;  %v6321_v39 = vor.u32 1.1754944e-38, %v13990_v49  ;;  %vm6319_vm10 = vcmp.eq.f32.partialorder %v13991_v2, 8.507059e+37  ;;  %vm6665_vm1 = vweird.f32 %v13431_v43 }
 0xa64   : > { %v6358_v4 = vadd.f32 %v13424_v55, %v6357_v27  ;;  %v8445_v31 = vpop.eup %8444  ;;  %v6675_v53 = vmul.f32 %v13473_v41, %v13422_v20  ;;  %v6317_v27 = vsel %vm13500_vm12, %v13351_v36, %v13440_v1  ;;  %v6337_v36 = vsel %vm6334_vm8, %v6336_v13, %v6332_v16 }
 0xa65   : > { %v8447_v10 = vpop.eup %8446  ;;  %vm6680_vm0 = vweird.f32 %v13473_v41  ;;  %v6322_v33 = vsel %vm6319_vm10, %v6321_v39, %v6317_v27  ;;  %v6702_v57 = vmul.f32 %v8445_v31, %v6337_v36  ;;  %v6631_v42 = vsub.f32 1.0, %v6630_v34 }
 0xa66   : > { %v6362_v11 = vsel %vm6361_vm11, %v13424_v55, %v6358_v4  ;;  %v8449_v48 = vpop.eup %8448  ;;  %v6676_v32 = vsub.f32 1.0, %v6675_v53  ;;  %v6703_v25 = vmul.f32 %v8447_v10, %v6352_v35  ;;  %vm13543_vm2 = vmor %vm6679_vm13, %vm6680_vm0  ;;  %v6287_v4 = vsel %vm13551_vm5, %v13330_v47, %v13395_v9 }
 0xa67   : > { %v6367_v0 = vsel %vm6364_vm4, %v6366_v18, %v6362_v11  ;;  %v6307_v50 = vsel %vm13488_vm7, %v13397_v8, %v6302_v46  ;;  %v6686_v31 = vor.u32 1.1754944e-38, %v6685_v54  ;;  %v6670_v35 = vand.u32 2147483648, %v13370_v52 }
 0xa68   : > { %v6704_v60 = vmul.f32 %v8449_v48, %v6367_v0  ;;  %v6677_v1 = vmul.f32 %v13473_v41, %v6676_v32  ;;  %v6662_v0 = vmul.f32 %v13431_v43, %v6661_v24  ;;  %vm6684_vm15 = vcmp.eq.f32.partialorder %v6683_v7, 8.507059e+37 }
 0xa69   : > { %vm6664_vm3 = vweird.f32 %v13370_v52  ;;  %v6616_v18 = vsub.f32 1.0, %v13411_v61  ;;  %v6701_v53 = vmul.f32 %v13444_v38, %v6322_v33  ;;  %v6632_v9 = vmul.f32 %v13468_v63, %v6631_v42 }
 0xa6a   : > { %8450 = vtanh.f32 %v6704_v60  ;;  %v6678_v32 = vadd.f32 %v13473_v41, %v6677_v1  ;;  %v6663_v20 = vadd.f32 %v13431_v43, %v6662_v0  ;;  %vm13573_vm6 = vmor %vm6664_vm3, %vm6665_vm1  ;;  %vm6650_vm7 = vweird.f32 %v13449_v62 }
 0xa6b   : > { %8452 = vtanh.f32 %v6703_v25  ;;  %v6647_v25 = vmul.f32 %v13449_v62, %v6646_v14  ;;  %v6292_v38 = vsel %vm13516_vm9, %v13388_v23, %v6287_v4  ;;  %v6671_v10 = vor.u32 1.1754944e-38, %v6670_v35 }
 0xa6c   : > { %v6682_v6 = vsel %vm13543_vm2, %v13473_v41, %v6678_v32  ;;  %v6668_v41 = vand.u32 2147483647, %v13370_v52  ;;  %8454 = vtanh.f32 %v6702_v57  ;;  %v6667_v19 = vsel %vm13573_vm6, %v13431_v43, %v6663_v20 }
 0xa6d   : > { %v6687_v24 = vsel %vm6684_vm15, %v6686_v31, %v6682_v6  ;;  %v6648_v52 = vadd.f32 %v13449_v62, %v6647_v25  ;;  %v6655_v58 = vand.u32 2147483648, %v13382_v22  ;;  %v6700_v34 = vmul.f32 %v13417_v21, %v6307_v50  ;;  %v14002_v50 = vld [vmem:[#allocation32_spill] sm:$0xff] }
 0xa6e   : > { %vm6669_vm11 = vcmp.eq.f32.partialorder %v6668_v41, 8.507059e+37  ;;  %vm6649_vm12 = vweird.f32 %v13382_v22  ;;  %v6653_v43 = vand.u32 2147483647, %v13382_v22  ;;  %8456 = vtanh.f32 %v6701_v53 }
 0xa6f   : > { %v6672_v16 = vsel %vm6669_vm11, %v6671_v10, %v6667_v19  ;;  %vm13590_vm4 = vmor %vm6649_vm12, %vm6650_vm7  ;;  %v6617_v48 = vmul.f32 %v13385_v51, %v6616_v18  ;;  %v6601_v23 = vsub.f32 1.0, %v13403_v45  ;;  %v6633_v13 = vadd.f32 %v13468_v63, %v6632_v9 }
 0xa70   : > { %v8451_v14 = vpop.eup %8450  ;;  %v6652_v21 = vsel %vm13590_vm4, %v13449_v62, %v6648_v52  ;;  %vm6635_vm8 = vweird.f32 %v13468_v63  ;;  %v6656_v3 = vor.u32 1.1754944e-38, %v6655_v58  ;;  %v6640_v55 = vand.u32 2147483648, %v13399_v12 }
 0xa71   : > { %v6736_v8 = vmul.f32 %v8451_v14, %v6687_v24  ;;  %v8453_v61 = vpop.eup %8452  ;;  %vm6654_vm9 = vcmp.eq.f32.partialorder %v6653_v43, 8.507059e+37  ;;  %vm6634_vm14 = vweird.f32 %v13399_v12  ;;  %v6638_v36 = vand.u32 2147483647, %v13399_v12 }
 0xa72   : > { %v6735_v27 = vmul.f32 %v8453_v61, %v6672_v16  ;;  %v8455_v22 = vpop.eup %8454  ;;  %v6699_v45 = vmul.f32 %v13392_v56, %v6292_v38  ;;  %8458 = vtanh.f32 %v6700_v34  ;;  %v6657_v1 = vsel %vm6654_vm9, %v6656_v3, %v6652_v21  ;;  %vm6636_vm0 = vmor %vm6634_vm14, %vm6635_vm8 }
 0xa73   : > { %6745 = vmatpush.xpose.msrb.mxu0 %v6736_v8  ;;  %v6602_v62 = vmul.f32 %v13380_v5, %v6601_v23  ;;  %v6734_v0 = vmul.f32 %v8455_v22, %v6657_v1  ;;  %v6637_v46 = vsel %vm6636_vm0, %v13468_v63, %v6633_v13  ;;  %v6618_v49 = vadd.f32 %v13385_v51, %v6617_v48 }
 0xa74   : > { %vm6620_vm10 = vweird.f32 %v13385_v51  ;;  %v8457_v39 = vpop.eup %8456  ;;  %v6641_v54 = vor.u32 1.1754944e-38, %v6640_v55  ;;  %v6625_v2 = vand.u32 2147483648, %v13349_v28  ;;  %vm6639_vm13 = vcmp.eq.f32.partialorder %v6638_v36, 8.507059e+37 }
 0xa75   : > { %vm6619_vm2 = vweird.f32 %v13349_v28  ;;  %v6623_v56 = vand.u32 2147483647, %v13349_v28  ;;  %8460 = vtanh.f32 %v6699_v45  ;;  %v6603_v7 = vadd.f32 %v13380_v5, %v6602_v62 }
 0xa76   : > { %v6642_v12 = vsel %vm6639_vm13, %v6641_v54, %v6637_v46  ;;  %vm6621_vm5 = vmor %vm6619_vm2, %vm6620_vm10  ;;  %vm6605_vm1 = vweird.f32 %v13380_v5  ;;  %v6626_v57 = vor.u32 1.1754944e-38, %v6625_v2  ;;  %v6610_v26 = vand.u32 2147483648, %v13344_v29 }
 0xa77   : > { %6746 = vmatpush.xpose.msrb.mxu0 %v6735_v27  ;;  %v6733_v32 = vmul.f32 %v8457_v39, %v6642_v12  ;;  %v6622_v63 = vsel %vm6621_vm5, %v13385_v51, %v6618_v49  ;;  %vm6624_vm15 = vcmp.eq.f32.partialorder %v6623_v56, 8.507059e+37  ;;  %vm6604_vm3 = vweird.f32 %v13344_v29 }
 0xa78   : > { %v8459_v33 = vpop.eup %8458  ;;  %v6608_v28 = vand.u32 2147483647, %v13344_v29  ;;  %v6627_v42 = vsel %vm6624_vm15, %v6626_v57, %v6622_v63  ;;  %vm6606_vm6 = vmor %vm6604_vm3, %vm6605_vm1  ;;  %v6611_v20 = vor.u32 1.1754944e-38, %v6610_v26  ;;  %v6738_v29 = vld [vmem:[%s13679_s12 + $0x12] sm:$0x1] }
 0xa79   : > { %v6732_v60 = vmul.f32 %v8459_v33, %v6627_v42  ;;  %v6607_v6 = vsel %vm6606_vm6, %v13380_v5, %v6603_v7  ;;  %v8818_v5 = vmov 0  }
 0xa7a   : > { %vm6609_vm7 = vcmp.eq.f32.partialorder %v6608_v28, 8.507059e+37  ;;  %7434 = vset.pattern.permute.xlu2 %v8818_v5  ;;  %7435 = vset.pattern.permute.xlu0 %v8818_v5 }
 0xa7b   : > { %6747 = vmatpush.xpose.msrb.mxu0 %v6734_v0  ;;  %v8461_v51 = vpop.eup %8460  ;;  %v6612_v25 = vsel %vm6609_vm7, %v6611_v20, %v6607_v6  ;;  %6741 = vperm.xlu2 %7434, %v6738_v29  }
 0xa7c   : > { %v6731_v4 = vmul.f32 %v8461_v51, %v6612_v25 }
 0xa7f   : > { %6748 = vmatpush.xpose.msrb.mxu0 %v6733_v32 }
 0xa83   : > { %6749 = vmatpush.xpose.msrb.mxu0 %v6732_v60 }
 0xa87   : > { %6750 = vmatpush.xpose.msrb.mxu0 %v6731_v4 }
 0xa8b   : > { %6751 = vmatpush.xpose.msrb.mxu0 %v13303_v17  ;;  %v14001_v17 = vld [vmem:[#allocation31_spill] sm:$0xff] }
 0xa8f   : > { %6752 = vmatpush.xpose.msrb.mxu0 %v13301_v44  ;;  %v14000_v44 = vld [vmem:[#allocation30_spill] sm:$0xff] }
 0xa93   : > { %6753 = vmatpush.xpose.msrb.mxu0 %v13280_v37  ;;  %v6737_v37 = vld [vmem:[%s13678_s11] sm:$0x1] }
 0xa97   : > { %6754 = vmatpush.xpose.msrb.mxu0 %v13252_v30 }
 0xa9b   : > { %6755 = vmatpush.xpose.msrb.mxu0 %v13222_v59 }
 0xa9f   : > { %6756 = vmatpush.xpose.msrb.mxu0 %v13183_v40 }
 0xaa3   : > { %6757 = vmatpush.xpose.msrb.mxu0 %v13198_v15 }
 0xaa7   : > { %6758 = vmatpush.xpose.msrb.mxu0 %v14000_v44 }
 0xaab   : > { %6759 = vmatpush.xpose.msrb.mxu0 %v14001_v17 }
 0xaaf   : > { %6760 = vmatpush.xpose.msrb.mxu0 %v14002_v50 }
 0xab2   : > { %6761 = vmatmul.f32.vlgmr.msrb.gmra.mxu0 %v6737_v37 }
 0xad5   : > { %v6742_v31 = vpop.permute.xlu2 %6741 }
 0xad6   : > { %v6744_v40 = vperm.slane %v6742_v31, 0 }
 0xb2f   : > { %v6762_v15 = vpop.f32.mrf.mxu0 }
 0xb30   : > { %v6763_v59 = vadd.f32 %v6762_v15, %v6744_v40 }
 0xb32   : > { %6765 = vst [vmem:[%s562_s22] sm:$0x1] %v6763_v59 }
 0xb33   : > { %8745 = shalt.err (!%p8742_p8)
}
 0xb34   : > { %7337 = dma.vmem_to_hbm [thread:$0]  (%p8927_p5), %s6778_s28, 16, %s6780_s16, %s6767_s3  }
 0xb35 PF: > { %s14005_s13 = sld [smem:[#allocation25_spill]] }
 0xb36   : > { %s14006_s24 = sld [smem:[#allocation23_spill]] }
 0xb3b   : > { %p7384_p9 = scmp.ge.s32.totalorder %s14005_s13, 2 }
 0xb3c   : > { %s6791_s6 = sand.u32 1, %s14006_s24  }
 0xb3d   : > { %p7365_p10 = pnand %p7384_p9, %p8931_p6  ;;  %s6792_s20 = scalar_lea.sflag [#allocation4], %s6791_s6 }
 0xb3f   : > { %p7366_p11 = pneg %p7365_p10 }
 0xb41   : > { %8783 = dma.done.wait (%p7366_p11), %s6792_s20, 16  }
 0xb42   : > { %8785 = vsyncadd (%p7366_p11), %s6792_s20, 4294967280  ;;  %s14008_s28 = sld [smem:[#allocation26_spill]]  ;;  %s14011_s25 = smov %s8792_s26 }
 0xb43   : > { %s14009_s21 = sld [smem:[#allocation24_spill]] }
 0xb44   : > { %s14010_s27 = sld [smem:[#allocation27_spill]] }
 0xb48   : > { %p28_p12 = scmp.ge.s32.totalorder %s14008_s28, 4  }
 0xb49   : > { %s14012_s26 = smov %s14009_s21 }
 0xb4a   :  { %30 = sbr.rel (!%p28_p12) target bundleno = 12 (0xc), region = 140 }
 0xb4f   :  { %6797 = vsyncpa [#allocation3], 1 }
 0xb50   :  { %6799 = vsyncpa [#allocation3 + $0x1], 1 }
 0xb51   :  { %6800 = vsyncpa [#allocation6], 1 }
 0xb52   :  { %6801 = vsyncpa [#allocation9], 1 }
 0xb53   :  { %6802 = vsyncpa [#allocation12], 1 }
 0xb54   :  { %6803 = vsyncpa [#allocation15], 1 }
 0xb55   :  { %6804 = vsyncpa [#allocation4], 1 }
 0xb56   :  { %6806 = vsyncpa [#allocation4 + $0x1], 1 }

</bundles_post_ra>
